<compile_context>
chip_gen: v7x
topology: tpu7x:2x2x1
jax: 0.10.0
libtpu: 0.0.40
codegen_flags: <defaults>
</compile_context>

<pallas_src>
import functools
import math

import jax
import jax.numpy as jnp
from jax.experimental import pallas as pl
from jax.experimental.pallas import tpu as pltpu


def _rup(x, m):
    return ((x + m - 1) // m) * m


def _cdiv(a, b):
    return (a + b - 1) // b


# ----------------------------------------------------------------------------
# Grouped / tiled matmul kernels (every conv via im2col, and the fc head).
# bf16 operands, f32 accumulation, pl.when-guarded epilogue, optional fused
# per-column (per-channel) sum / sum-of-squares for BatchNorm.
# ----------------------------------------------------------------------------
def _gmm_kernel(a_ref, b_ref, o_ref, acc_ref):
    @pl.when(pl.program_id(3) == 0)
    def _():
        acc_ref[...] = jnp.zeros_like(acc_ref)

    acc_ref[...] += jnp.dot(a_ref[0], b_ref[0],
                            preferred_element_type=jnp.float32)

    @pl.when(pl.program_id(3) == pl.num_programs(3) - 1)
    def _():
        o_ref[0] = acc_ref[...].astype(o_ref.dtype)


def _gmm_stats_kernel(a_ref, b_ref, o_ref, stats_ref, acc_ref):
    @pl.when(pl.program_id(3) == 0)
    def _():
        acc_ref[...] = jnp.zeros_like(acc_ref)
        stats_ref[...] = jnp.zeros_like(stats_ref)

    acc_ref[...] += jnp.dot(a_ref[0], b_ref[0],
                            preferred_element_type=jnp.float32)

    @pl.when(pl.program_id(3) == pl.num_programs(3) - 1)
    def _():
        acc = acc_ref[...]
        o_ref[0] = acc.astype(o_ref.dtype)
        stats_ref[0, 0, 0:1, :] = jnp.sum(acc, axis=0, keepdims=True)
        stats_ref[0, 0, 1:2, :] = jnp.sum(acc * acc, axis=0, keepdims=True)


def grouped_matmul(a, b, *, with_stats=False, out_dtype=jnp.float32):
    """a: [G, M, K], b: [G, K, N] -> ([G, M, N], (colsum, colsq) or None)."""
    G, M, K = a.shape
    _, _, N = b.shape
    tm = min(256, _rup(M, 16))
    tn = min(256, _rup(N, 128))
    tk = min(512, _rup(K, 128))
    Mp, Kp, Np = _rup(M, tm), _rup(K, tk), _rup(N, tn)
    a = jnp.pad(a.astype(jnp.bfloat16), ((0, 0), (0, Mp - M), (0, Kp - K)))
    b = jnp.pad(b.astype(jnp.bfloat16), ((0, 0), (0, Kp - K), (0, Np - N)))
    n_i = Mp // tm
    grid = (G, n_i, Np // tn, Kp // tk)
    a_spec = pl.BlockSpec((1, tm, tk), lambda g, i, j, k: (g, i, k))
    b_spec = pl.BlockSpec((1, tk, tn), lambda g, i, j, k: (g, k, j))
    o_spec = pl.BlockSpec((1, tm, tn), lambda g, i, j, k: (g, i, j))
    cparams = pltpu.CompilerParams(
        dimension_semantics=("parallel", "parallel", "parallel", "arbitrary"),
        vmem_limit_bytes=32 * 1024 * 1024)

    if not with_stats:
        out = pl.pallas_call(
            _gmm_kernel,
            out_shape=jax.ShapeDtypeStruct((G, Mp, Np), out_dtype),
            grid_spec=pltpu.PrefetchScalarGridSpec(
                num_scalar_prefetch=0, grid=grid,
                in_specs=[a_spec, b_spec], out_specs=o_spec,
                scratch_shapes=[pltpu.VMEM((tm, tn), jnp.float32)]),
            compiler_params=cparams,
        )(a, b)
        return out[:, :M, :N], None

    out, stats = pl.pallas_call(
        _gmm_stats_kernel,
        out_shape=(jax.ShapeDtypeStruct((G, Mp, Np), out_dtype),
                   jax.ShapeDtypeStruct((G, n_i, 8, Np), jnp.float32)),
        grid_spec=pltpu.PrefetchScalarGridSpec(
            num_scalar_prefetch=0, grid=grid,
            in_specs=[a_spec, b_spec],
            out_specs=(o_spec,
                       pl.BlockSpec((1, 1, 8, tn),
                                    lambda g, i, j, k: (g, i, 0, j))),
            scratch_shapes=[pltpu.VMEM((tm, tn), jnp.float32)]),
        compiler_params=cparams,
    )(a, b)
    col_sum = jnp.sum(stats[:, :, 0, :N], axis=1)   # [G, N]
    col_sq = jnp.sum(stats[:, :, 1, :N], axis=1)    # [G, N]
    return out[:, :M, :N], (col_sum, col_sq)


# ----------------------------------------------------------------------------
# Fused BN affine + (optional residual) + (optional ReLU) elementwise kernels
# ----------------------------------------------------------------------------
def _affine_kernel(x_ref, scale_ref, shift_ref, o_ref, *, relu):
    y = x_ref[...].astype(jnp.float32) * scale_ref[...] + shift_ref[...]
    if relu:
        y = jnp.maximum(y, 0.0)
    o_ref[...] = y.astype(o_ref.dtype)


def _affine_res_kernel(x_ref, scale_ref, shift_ref, r_ref, o_ref, *, relu):
    y = (x_ref[...].astype(jnp.float32) * scale_ref[...] + shift_ref[...]
         + r_ref[...].astype(jnp.float32))
    if relu:
        y = jnp.maximum(y, 0.0)
    o_ref[...] = y.astype(o_ref.dtype)


def _pick_rows(rows, lane_width, bytes_per=2, budget=2 * 1024 * 1024,
               cap=1024):
    t = budget // max(1, lane_width * bytes_per)
    t = max(16, min(cap, t))
    t = (t // 16) * 16
    return min(t, _rup(rows, 16))


def batchnorm_apply(x2d, col_sum, col_sq, count, gamma, beta, *,
                    relu, residual=None, eps=1e-5):
    """Training-mode BN affine from precomputed sums, + residual/ReLU."""
    M, C = x2d.shape
    mean = col_sum / count
    # TODO(synk): E[x^2]-E[x]^2 in f32; use a two-pass/Welford reduction if
    # bit-level parity with PyTorch BN at large magnitudes is required.
    var = jnp.maximum(col_sq / count - mean * mean, 0.0)
    inv = gamma * jax.lax.rsqrt(var + eps)
    scale = inv
    shift = beta - mean * inv

    # Lane-density packing: fold r consecutive rows into the lane axis so the
    # elementwise kernel stores a >=128-wide last dim even for small C.
    r = 128 // C if (C < 128 and 128 % C == 0) else 1
    Cr = C * r
    rows = _cdiv(M, r)
    t = _pick_rows(rows, Cr, bytes_per=x2d.dtype.itemsize)
    rows_p = _rup(rows, t)
    Mp = rows_p * r

    def pack(arr):
        return jnp.pad(arr, ((0, Mp - M), (0, 0))).reshape(rows_p, Cr)

    xp = pack(x2d)
    scale_t = jnp.tile(scale, r).reshape(1, Cr).astype(jnp.float32)
    shift_t = jnp.tile(shift, r).reshape(1, Cr).astype(jnp.float32)

    row_spec = pl.BlockSpec((t, Cr), lambda i: (i, 0))
    vec_spec = pl.BlockSpec((1, Cr), lambda i: (0, 0))
    cparams = pltpu.CompilerParams(dimension_semantics=("parallel",))

    if residual is None:
        out = pl.pallas_call(
            functools.partial(_affine_kernel, relu=relu),
            out_shape=jax.ShapeDtypeStruct((rows_p, Cr), x2d.dtype),
            grid=(rows_p // t,),
            in_specs=[row_spec, vec_spec, vec_spec],
            out_specs=row_spec,
            compiler_params=cparams,
        )(xp, scale_t, shift_t)
    else:
        out = pl.pallas_call(
            functools.partial(_affine_res_kernel, relu=relu),
            out_shape=jax.ShapeDtypeStruct((rows_p, Cr), x2d.dtype),
            grid=(rows_p // t,),
            in_specs=[row_spec, vec_spec, vec_spec, row_spec],
            out_specs=row_spec,
            compiler_params=cparams,
        )(xp, scale_t, shift_t, pack(residual.astype(x2d.dtype)))
    return out.reshape(Mp, C)[:M]


# ----------------------------------------------------------------------------
# Max pool 3x3 / stride 2 / pad 1, via parity-decimated slabs (no 9x patches)
# ----------------------------------------------------------------------------
def _maxpool_kernel(x00, x01, x10, x11, o_ref, *, oh, ow):
    refs = (x00, x01, x10, x11)
    best = None
    for di in range(3):
        p, io = di % 2, di // 2
        for dj in range(3):
            q, jo = dj % 2, dj // 2
            v = refs[p * 2 + q][0, pl.ds(io, oh), pl.ds(jo, ow), :]
            best = v if best is None else jnp.maximum(best, v)
    o_ref[0] = best


def maxpool2d_3x3_s2(x):
    N, H, W, C = x.shape
    pad = 1
    oh = (H + 2 * pad - 3) // 2 + 1
    ow = (W + 2 * pad - 3) // 2 + 1
    h_need = 2 * (oh + 1)
    w_need = 2 * (ow + 1)
    xp = jnp.pad(x, ((0, 0), (pad, h_need - H - pad), (pad, w_need - W - pad),
                     (0, 0)), constant_values=-jnp.inf)
    slabs = []
    for p in range(2):
        for q in range(2):
            slabs.append(xp[:, p::2, q::2, :][:, :oh + 1, :ow + 1, :])
    in_spec = pl.BlockSpec((1, oh + 1, ow + 1, C), lambda n: (n, 0, 0, 0))
    out = pl.pallas_call(
        functools.partial(_maxpool_kernel, oh=oh, ow=ow),
        out_shape=jax.ShapeDtypeStruct((N, oh, ow, C), x.dtype),
        grid=(N,),
        in_specs=[in_spec, in_spec, in_spec, in_spec],
        out_specs=pl.BlockSpec((1, oh, ow, C), lambda n: (n, 0, 0, 0)),
        compiler_params=pltpu.CompilerParams(dimension_semantics=("parallel",)),
    )(*slabs)
    return out


# ----------------------------------------------------------------------------
# Global average pool kernel (batched over images per grid step)
# ----------------------------------------------------------------------------
def _gap_kernel(x_ref, o_ref, *, inv_hw):
    o_ref[...] = (jnp.sum(x_ref[...].astype(jnp.float32), axis=1,
                          keepdims=True) * inv_hw)


def global_avg_pool(x):
    N, H, W, C = x.shape
    HW = H * W
    HWp = _rup(HW, 16)
    xr = jnp.pad(x.reshape(N, HW, C), ((0, 0), (0, HWp - HW), (0, 0)))
    per_img = HWp * C * xr.dtype.itemsize
    nb = max(1, min(N, (8 * 1024 * 1024) // max(1, per_img)))
    Np_ = _rup(N, nb)
    xr = jnp.pad(xr, ((0, Np_ - N), (0, 0), (0, 0)))
    out = pl.pallas_call(
        functools.partial(_gap_kernel, inv_hw=1.0 / HW),
        out_shape=jax.ShapeDtypeStruct((Np_, 1, C), jnp.float32),
        grid=(Np_ // nb,),
        in_specs=[pl.BlockSpec((nb, HWp, C), lambda i: (i, 0, 0))],
        out_specs=pl.BlockSpec((nb, 1, C), lambda i: (i, 0, 0)),
        compiler_params=pltpu.CompilerParams(dimension_semantics=("parallel",)),
    )(xr)
    return out[:N, 0, :]


# ----------------------------------------------------------------------------
# Convolution = (light) im2col glue + grouped Pallas matmul (+ fused BN stats)
# ----------------------------------------------------------------------------
def _extract_patches(x, kh, kw, stride, pad, pad_value=0.0):
    """x: NHWC -> [N, oh, ow, kh*kw, C]"""
    N, H, W, C = x.shape
    xp = jnp.pad(x, ((0, 0), (pad, pad), (pad, pad), (0, 0)),
                 constant_values=pad_value)
    Hp, Wp = H + 2 * pad, W + 2 * pad
    oh = (Hp - kh) // stride + 1
    ow = (Wp - kw) // stride + 1
    cols = []
    for i in range(kh):
        for j in range(kw):
            cols.append(xp[:, i:i + stride * (oh - 1) + 1:stride,
                           j:j + stride * (ow - 1) + 1:stride, :])
    return jnp.stack(cols, axis=3), oh, ow


def conv2d(x, w, *, stride=1, pad=0, groups=1, want_stats=False,
           out_dtype=jnp.bfloat16):
    """x: NHWC, w: [Cout, Cin_g, KH, KW] (PyTorch layout), no bias."""
    N, H, W_, Cin = x.shape
    Cout, Cin_g, KH, KW = w.shape
    assert Cin_g * groups == Cin and Cout % groups == 0
    Og = Cout // groups
    x = x.astype(jnp.bfloat16)

    if KH == 1 and KW == 1 and stride == 1 and pad == 0:
        oh, ow = H, W_
        M = N * oh * ow
        if groups == 1:
            lhs = x.reshape(1, M, Cin)
        else:
            lhs = jnp.transpose(x.reshape(M, groups, Cin_g), (1, 0, 2))
    else:
        lhs_g = []
        oh = ow = None
        for g in range(groups):
            xg = x[..., g * Cin_g:(g + 1) * Cin_g] if groups > 1 else x
            pg, oh, ow = _extract_patches(xg, KH, KW, stride, pad)
            lhs_g.append(pg.reshape(N * oh * ow, KH * KW * Cin_g))
        M = N * oh * ow
        lhs = jnp.stack(lhs_g, axis=0)                     # [G, M, KH*KW*Cin_g]

    # rhs: [G, KH*KW*Cin_g, Og] with the same (kh, kw, cin_g) element order.
    wr = w.astype(jnp.bfloat16).reshape(groups, Og, Cin_g, KH, KW)
    rhs = jnp.transpose(wr, (0, 3, 4, 2, 1)).reshape(groups, KH * KW * Cin_g, Og)

    out, stats = grouped_matmul(lhs, rhs, with_stats=want_stats,
                                out_dtype=out_dtype)       # [G, M, Og]
    if groups == 1:
        y = out[0].reshape(N, oh, ow, Cout)
    else:
        y = jnp.transpose(out, (1, 0, 2)).reshape(N, oh, ow, Cout)
    if not want_stats:
        return y, None
    col_sum, col_sq = stats
    return y, (col_sum.reshape(Cout), col_sq.reshape(Cout))


# ----------------------------------------------------------------------------
# ResNeXt model (Bottleneck w/ grouped 3x3 conv), synthetic deterministic init
# ----------------------------------------------------------------------------
def _kaiming(key, shape, fan_in):
    return jax.random.normal(key, shape, jnp.float32) * math.sqrt(2.0 / fan_in)


def make_resnext_params(key, *, layers, planes, groups, base_width,
                        stem_width, num_classes, in_ch=3):
    keys = iter(jax.random.split(key, 1024))
    expansion = 4
    params = {
        "groups": groups,
        "stem_conv": _kaiming(next(keys), (stem_width, in_ch, 7, 7), in_ch * 49),
        "stem_bn_g": jnp.ones((stem_width,), jnp.float32),
        "stem_bn_b": jnp.zeros((stem_width,), jnp.float32),
    }
    inplanes = stem_width
    stages = []
    for si, (nblocks, pln) in enumerate(zip(layers, planes)):
        stage_stride = 1 if si == 0 else 2
        blocks = []
        for bi in range(nblocks):
            s = stage_stride if bi == 0 else 1
            width = int(pln * (base_width / 64.0)) * groups
            out_ch = pln * expansion
            blk = {
                "stride": s,
                "conv1": _kaiming(next(keys), (width, inplanes, 1, 1), inplanes),
                "bn1_g": jnp.ones((width,), jnp.float32),
                "bn1_b": jnp.zeros((width,), jnp.float32),
                "conv2": _kaiming(next(keys), (width, width // groups, 3, 3),
                                  (width // groups) * 9),
                "bn2_g": jnp.ones((width,), jnp.float32),
                "bn2_b": jnp.zeros((width,), jnp.float32),
                "conv3": _kaiming(next(keys), (out_ch, width, 1, 1), width),
                "bn3_g": jnp.ones((out_ch,), jnp.float32),
                "bn3_b": jnp.zeros((out_ch,), jnp.float32),
            }
            if s != 1 or inplanes != out_ch:
                blk["down_conv"] = _kaiming(next(keys), (out_ch, inplanes, 1, 1),
                                            inplanes)
                blk["down_bn_g"] = jnp.ones((out_ch,), jnp.float32)
                blk["down_bn_b"] = jnp.zeros((out_ch,), jnp.float32)
            blocks.append(blk)
            inplanes = out_ch
        stages.append(blocks)
    params["stages"] = stages
    # fc head: kaiming_normal_ weight (fan_in), zero bias (as in ResNext.__init__)
    params["fc_w"] = _kaiming(next(keys), (num_classes, inplanes), inplanes)
    params["fc_b"] = jnp.zeros((num_classes,), jnp.float32)
    return params


def _bn(y, stats, gamma, beta, *, relu, residual=None):
    N, H, W, C = y.shape
    res2d = None if residual is None else residual.reshape(-1, C)
    out = batchnorm_apply(y.reshape(-1, C), stats[0], stats[1], N * H * W,
                          gamma, beta, relu=relu, residual=res2d)
    return out.reshape(N, H, W, C)


def bottleneck(x, blk, groups):
    s = blk["stride"]
    identity = x
    out, st = conv2d(x, blk["conv1"], want_stats=True)
    out = _bn(out, st, blk["bn1_g"], blk["bn1_b"], relu=True)
    out, st = conv2d(out, blk["conv2"], stride=s, pad=1, groups=groups,
                     want_stats=True)
    out = _bn(out, st, blk["bn2_g"], blk["bn2_b"], relu=True)
    out, st3 = conv2d(out, blk["conv3"], want_stats=True)
    if "down_conv" in blk:
        identity, std = conv2d(x, blk["down_conv"], stride=s, want_stats=True)
        identity = _bn(identity, std, blk["down_bn_g"], blk["down_bn_b"],
                       relu=False)
    # out = relu(bn3(out) + identity)
    return _bn(out, st3, blk["bn3_g"], blk["bn3_b"], relu=True,
               residual=identity)


def resnext_forward(params, x_nchw):
    x = jnp.transpose(x_nchw, (0, 2, 3, 1)).astype(jnp.bfloat16)  # NCHW->NHWC
    x, st = conv2d(x, params["stem_conv"], stride=2, pad=3, want_stats=True)
    x = _bn(x, st, params["stem_bn_g"], params["stem_bn_b"], relu=True)
    x = maxpool2d_3x3_s2(x)
    for blocks in params["stages"]:
        for blk in blocks:
            x = bottleneck(x, blk, params["groups"])
    feat = global_avg_pool(x)                                     # [N, C] f32
    logits, _ = grouped_matmul(feat[None], params["fc_w"].T[None],
                               with_stats=False, out_dtype=jnp.float32)
    return logits[0] + params["fc_b"][None, :]


if __name__ == "__main__":
    key = jax.random.PRNGKey(0)
    pkey, xkey = jax.random.split(key)
    # Small ResNeXt config (same topology as resnext101_32x8d, reduced size).
    params = make_resnext_params(
        pkey, layers=(1, 1, 1, 1), planes=(16, 32, 64, 128),
        groups=4, base_width=8, stem_width=16, num_classes=10, in_ch=3)

    x = jax.random.normal(xkey, (2, 3, 32, 32), jnp.float32)  # NCHW, as PyTorch
    fwd = jax.jit(lambda inp: resnext_forward(params, inp))
    logits = fwd(x)
    jax.block_until_ready(logits)
    assert logits.shape == (2, 10) and logits.dtype == jnp.float32
    print("KERNEL_OK")
</pallas_src>

<mosaic_0001>
module attributes {stable_mosaic.version = 11 : i64} {
  func.func @_gmm_stats_kernel(%arg0: i32, %arg1: i32, %arg2: i32, %arg3: i32, %arg4: memref<1x256x256xbf16, #tpu.memory_space<vmem>>, %arg5: memref<1x256x128xbf16, #tpu.memory_space<vmem>>, %arg6: memref<1x256x128xbf16, #tpu.memory_space<vmem>>, %arg7: memref<1x1x8x128xf32, #tpu.memory_space<vmem>>, %arg8: memref<256x128xf32, #tpu.memory_space<vmem>>) attributes {dimension_semantics = [#tpu.dimension_semantics<parallel>, #tpu.dimension_semantics<parallel>, #tpu.dimension_semantics<parallel>, #tpu.dimension_semantics<arbitrary>], iteration_bounds = array<i64: 1, 2, 1, 1>, scalar_prefetch = 0 : i64, scratch_operands = 1 : i64, tpu.core_type = #tpu.core_type<tc>, window_params = [{transform_indices = @transform_0, window_bounds = array<i64: 1, 256, 256>}, {transform_indices = @transform_1, window_bounds = array<i64: 1, 256, 128>}, {transform_indices = @transform_2, window_bounds = array<i64: 1, 256, 128>}, {transform_indices = @transform_3, window_bounds = array<i64: 1, 1, 8, 128>}]} {
    %c0_i32 = arith.constant 0 : i32
    %0 = arith.cmpi eq, %arg3, %c0_i32 : i32
    %1 = arith.extui %0 : i1 to i32
    %c0_i32_0 = arith.constant 0 : i32
    %2 = arith.cmpi ne, %1, %c0_i32_0 : i32
    scf.if %2 {
      %cst_12 = arith.constant 0.000000e+00 : f32
      %14 = vector.broadcast %cst_12 : f32 to vector<256x128xf32>
      %c0_13 = arith.constant 0 : index
      %c0_14 = arith.constant 0 : index
      %15 = vector.load %arg8[%c0_13, %c0_14] : memref<256x128xf32, #tpu.memory_space<vmem>>, vector<256x128xf32>
      tpu.vector_store %arg8[%c0_13, %c0_14], %14 {strides = array<i32>} : memref<256x128xf32, #tpu.memory_space<vmem>>, vector<256x128xf32>,
      %cst_15 = arith.constant 0.000000e+00 : f32
      %16 = vector.broadcast %cst_15 : f32 to vector<1x1x8x128xf32>
      %c0_16 = arith.constant 0 : index
      %c0_17 = arith.constant 0 : index
      %c0_18 = arith.constant 0 : index
      %c0_19 = arith.constant 0 : index
      %17 = vector.load %arg7[%c0_16, %c0_17, %c0_18, %c0_19] : memref<1x1x8x128xf32, #tpu.memory_space<vmem>>, vector<1x1x8x128xf32>
      tpu.vector_store %arg7[%c0_16, %c0_17, %c0_18, %c0_19], %16 {strides = array<i32>} : memref<1x1x8x128xf32, #tpu.memory_space<vmem>>, vector<1x1x8x128xf32>,
    } else {
    }
    %c0 = arith.constant 0 : index
    %c0_1 = arith.constant 0 : index
    %3 = vector.load %arg8[%c0, %c0_1] : memref<256x128xf32, #tpu.memory_space<vmem>>, vector<256x128xf32>
    %c0_2 = arith.constant 0 : index
    %c0_3 = arith.constant 0 : index
    %c0_4 = arith.constant 0 : index
    %4 = vector.load %arg4[%c0_2, %c0_3, %c0_4] : memref<1x256x256xbf16, #tpu.memory_space<vmem>>, vector<1x256x256xbf16>
    %5 = vector.shape_cast %4 : vector<1x256x256xbf16> to vector<256x256xbf16>
    %c0_5 = arith.constant 0 : index
    %c0_6 = arith.constant 0 : index
    %c0_7 = arith.constant 0 : index
    %6 = vector.load %arg5[%c0_5, %c0_6, %c0_7] : memref<1x256x128xbf16, #tpu.memory_space<vmem>>, vector<1x256x128xbf16>
    %7 = vector.shape_cast %6 : vector<1x256x128xbf16> to vector<256x128xbf16>
    %cst = arith.constant dense<0.000000e+00> : vector<256x128xf32>
    %8 = tpu.matmul %5, %7, %cst {dimension_numbers = #tpu.dot_dimension_numbers<[1], [0], [0], [1], [0, 0, 1, 1], [], []>} : vector<256x256xbf16>, vector<256x128xbf16>, vector<256x128xf32> -> vector<256x128xf32>
    %9 = arith.addf %3, %8 : vector<256x128xf32>
    %c0_8 = arith.constant 0 : index
    %c0_9 = arith.constant 0 : index
    %10 = vector.load %arg8[%c0_8, %c0_9] : memref<256x128xf32, #tpu.memory_space<vmem>>, vector<256x128xf32>
    tpu.vector_store %arg8[%c0_8, %c0_9], %9 {strides = array<i32>} : memref<256x128xf32, #tpu.memory_space<vmem>>, vector<256x128xf32>,
    %c0_i32_10 = arith.constant 0 : i32
    %11 = arith.cmpi eq, %arg3, %c0_i32_10 : i32
    %12 = arith.extui %11 : i1 to i32
    %c0_i32_11 = arith.constant 0 : i32
    %13 = arith.cmpi ne, %12, %c0_i32_11 : i32
    scf.if %13 {
      %c0_12 = arith.constant 0 : index
      %c0_13 = arith.constant 0 : index
      %14 = vector.load %arg8[%c0_12, %c0_13] : memref<256x128xf32, #tpu.memory_space<vmem>>, vector<256x128xf32>
      %15 = arith.truncf %14 : vector<256x128xf32> to vector<256x128xbf16>
      %c0_14 = arith.constant 0 : index
      %c0_15 = arith.constant 0 : index
      %c0_16 = arith.constant 0 : index
      %16 = vector.load %arg6[%c0_14, %c0_15, %c0_16] : memref<1x256x128xbf16, #tpu.memory_space<vmem>>, vector<1x256x128xbf16>
      %17 = vector.shape_cast %16 : vector<1x256x128xbf16> to vector<256x128xbf16>
      %18 = vector.shape_cast %15 : vector<256x128xbf16> to vector<1x256x128xbf16>
      tpu.vector_store %arg6[%c0_14, %c0_15, %c0_16], %18 {strides = array<i32>} : memref<1x256x128xbf16, #tpu.memory_space<vmem>>, vector<1x256x128xbf16>,
      %cst_17 = arith.constant dense<0.000000e+00> : vector<128xf32>
      %19 = vector.multi_reduction <add>, %14, %cst_17 [0] : vector<256x128xf32> to vector<128xf32>
      %20 = vector.shape_cast %19 : vector<128xf32> to vector<1x128xf32>
      %c0_18 = arith.constant 0 : index
      %c0_19 = arith.constant 0 : index
      %c0_20 = arith.constant 0 : index
      %c0_21 = arith.constant 0 : index
      %21 = vector.load %arg7[%c0_18, %c0_19, %c0_20, %c0_21] : memref<1x1x8x128xf32, #tpu.memory_space<vmem>>, vector<1x1x1x128xf32>
      %22 = vector.shape_cast %21 : vector<1x1x1x128xf32> to vector<1x128xf32>
      %23 = vector.shape_cast %20 : vector<1x128xf32> to vector<1x1x1x128xf32>
      tpu.vector_store %arg7[%c0_18, %c0_19, %c0_20, %c0_21], %23 {strides = array<i32>} : memref<1x1x8x128xf32, #tpu.memory_space<vmem>>, vector<1x1x1x128xf32>,
      %24 = arith.mulf %14, %14 : vector<256x128xf32>
      %cst_22 = arith.constant dense<0.000000e+00> : vector<128xf32>
      %25 = vector.multi_reduction <add>, %24, %cst_22 [0] : vector<256x128xf32> to vector<128xf32>
      %26 = vector.shape_cast %25 : vector<128xf32> to vector<1x128xf32>
      %c0_23 = arith.constant 0 : index
      %c0_24 = arith.constant 0 : index
      %c1 = arith.constant 1 : index
      %c0_25 = arith.constant 0 : index
      %27 = vector.load %arg7[%c0_23, %c0_24, %c1, %c0_25] : memref<1x1x8x128xf32, #tpu.memory_space<vmem>>, vector<1x1x1x128xf32>
      %28 = vector.shape_cast %27 : vector<1x1x1x128xf32> to vector<1x128xf32>
      %29 = vector.shape_cast %26 : vector<1x128xf32> to vector<1x1x1x128xf32>
      tpu.vector_store %arg7[%c0_23, %c0_24, %c1, %c0_25], %29 {strides = array<i32>} : memref<1x1x8x128xf32, #tpu.memory_space<vmem>>, vector<1x1x1x128xf32>,
    } else {
    }
    return
  }
  func.func @transform_0(%arg0: i32, %arg1: i32, %arg2: i32, %arg3: i32) -> (i32, i32, i32) {
    %c0_i32 = arith.constant 0 : i32
    return %arg0, %arg1, %arg3 : i32, i32, i32
  }
  func.func @transform_1(%arg0: i32, %arg1: i32, %arg2: i32, %arg3: i32) -> (i32, i32, i32) {
    %c0_i32 = arith.constant 0 : i32
    return %arg0, %arg3, %arg2 : i32, i32, i32
  }
  func.func @transform_2(%arg0: i32, %arg1: i32, %arg2: i32, %arg3: i32) -> (i32, i32, i32) {
    %c0_i32 = arith.constant 0 : i32
    return %arg0, %arg1, %arg2 : i32, i32, i32
  }
  func.func @transform_3(%arg0: i32, %arg1: i32, %arg2: i32, %arg3: i32) -> (i32, i32, i32, i32) {
    %c0_i32 = arith.constant 0 : i32
    %c0_i32_0 = arith.constant 0 : i32
    return %arg0, %arg1, %c0_i32, %arg2 : i32, i32, i32, i32
  }
}

module attributes {stable_mosaic.version = 11 : i64} {
  func.func @_affine_kernel(%arg0: i32, %arg1: memref<64x128xbf16, #tpu.memory_space<vmem>>, %arg2: memref<1x128xf32, #tpu.memory_space<vmem>>, %arg3: memref<1x128xf32, #tpu.memory_space<vmem>>, %arg4: memref<64x128xbf16, #tpu.memory_space<vmem>>) attributes {dimension_semantics = [#tpu.dimension_semantics<parallel>], iteration_bounds = array<i64: 1>, scalar_prefetch = 0 : i64, scratch_operands = 0 : i64, tpu.core_type = #tpu.core_type<tc>, window_params = [{transform_indices = @transform_0, window_bounds = array<i64: 64, 128>}, {pipeline_mode = #tpu.pipeline_mode<synchronous>, transform_indices = @transform_1, window_bounds = array<i64: 1, 128>}, {pipeline_mode = #tpu.pipeline_mode<synchronous>, transform_indices = @transform_2, window_bounds = array<i64: 1, 128>}, {transform_indices = @transform_3, window_bounds = array<i64: 64, 128>}]} {
    %c0 = arith.constant 0 : index
    %c0_0 = arith.constant 0 : index
    %0 = vector.load %arg1[%c0, %c0_0] : memref<64x128xbf16, #tpu.memory_space<vmem>>, vector<64x128xbf16>
    %1 = arith.extf %0 : vector<64x128xbf16> to vector<64x128xf32>
    %c0_1 = arith.constant 0 : index
    %c0_2 = arith.constant 0 : index
    %2 = vector.load %arg2[%c0_1, %c0_2] : memref<1x128xf32, #tpu.memory_space<vmem>>, vector<1x128xf32>
    %3 = vector.broadcast %2 : vector<1x128xf32> to vector<64x128xf32>
    %4 = arith.mulf %1, %3 : vector<64x128xf32>
    %c0_3 = arith.constant 0 : index
    %c0_4 = arith.constant 0 : index
    %5 = vector.load %arg3[%c0_3, %c0_4] : memref<1x128xf32, #tpu.memory_space<vmem>>, vector<1x128xf32>
    %6 = vector.broadcast %5 : vector<1x128xf32> to vector<64x128xf32>
    %7 = arith.addf %4, %6 : vector<64x128xf32>
    %cst = arith.constant 0.000000e+00 : f32
    %8 = vector.broadcast %cst : f32 to vector<64x128xf32>
    %9 = arith.maximumf %7, %8 : vector<64x128xf32>
    %10 = arith.truncf %9 : vector<64x128xf32> to vector<64x128xbf16>
    %c0_5 = arith.constant 0 : index
    %c0_6 = arith.constant 0 : index
    %11 = vector.load %arg4[%c0_5, %c0_6] : memref<64x128xbf16, #tpu.memory_space<vmem>>, vector<64x128xbf16>
    tpu.vector_store %arg4[%c0_5, %c0_6], %10 {strides = array<i32>} : memref<64x128xbf16, #tpu.memory_space<vmem>>, vector<64x128xbf16>,
    return
  }
  func.func @transform_0(%arg0: i32) -> (i32, i32) {
    %c0_i32 = arith.constant 0 : i32
    %c0_i32_0 = arith.constant 0 : i32
    return %arg0, %c0_i32 : i32, i32
  }
  func.func @transform_1(%arg0: i32) -> (i32, i32) {
    %c0_i32 = arith.constant 0 : i32
    %c0_i32_0 = arith.constant 0 : i32
    %c0_i32_1 = arith.constant 0 : i32
    return %c0_i32, %c0_i32_0 : i32, i32
  }
  func.func @transform_2(%arg0: i32) -> (i32, i32) {
    %c0_i32 = arith.constant 0 : i32
    %c0_i32_0 = arith.constant 0 : i32
    %c0_i32_1 = arith.constant 0 : i32
    return %c0_i32, %c0_i32_0 : i32, i32
  }
  func.func @transform_3(%arg0: i32) -> (i32, i32) {
    %c0_i32 = arith.constant 0 : i32
    %c0_i32_0 = arith.constant 0 : i32
    return %arg0, %c0_i32 : i32, i32
  }
}

module attributes {stable_mosaic.version = 11 : i64} {
  func.func @_maxpool_kernel(%arg0: i32, %arg1: memref<1x9x9x16xbf16, #tpu.memory_space<vmem>>, %arg2: memref<1x9x9x16xbf16, #tpu.memory_space<vmem>>, %arg3: memref<1x9x9x16xbf16, #tpu.memory_space<vmem>>, %arg4: memref<1x9x9x16xbf16, #tpu.memory_space<vmem>>, %arg5: memref<1x8x8x16xbf16, #tpu.memory_space<vmem>>) attributes {dimension_semantics = [#tpu.dimension_semantics<parallel>], iteration_bounds = array<i64: 2>, scalar_prefetch = 0 : i64, scratch_operands = 0 : i64, tpu.core_type = #tpu.core_type<tc>, window_params = [{transform_indices = @transform_0, window_bounds = array<i64: 1, 9, 9, 16>}, {transform_indices = @transform_1, window_bounds = array<i64: 1, 9, 9, 16>}, {transform_indices = @transform_2, window_bounds = array<i64: 1, 9, 9, 16>}, {transform_indices = @transform_3, window_bounds = array<i64: 1, 9, 9, 16>}, {transform_indices = @transform_4, window_bounds = array<i64: 1, 8, 8, 16>}]} {
    %c0 = arith.constant 0 : index
    %c0_0 = arith.constant 0 : index
    %c0_1 = arith.constant 0 : index
    %c0_2 = arith.constant 0 : index
    %0 = vector.load %arg1[%c0, %c0_0, %c0_1, %c0_2] : memref<1x9x9x16xbf16, #tpu.memory_space<vmem>>, vector<1x8x8x16xbf16>
    %1 = vector.shape_cast %0 : vector<1x8x8x16xbf16> to vector<8x8x16xbf16>
    %c0_3 = arith.constant 0 : index
    %c0_4 = arith.constant 0 : index
    %c0_5 = arith.constant 0 : index
    %c0_6 = arith.constant 0 : index
    %2 = vector.load %arg2[%c0_3, %c0_4, %c0_5, %c0_6] : memref<1x9x9x16xbf16, #tpu.memory_space<vmem>>, vector<1x8x8x16xbf16>
    %3 = vector.shape_cast %2 : vector<1x8x8x16xbf16> to vector<8x8x16xbf16>
    %4 = arith.maximumf %1, %3 : vector<8x8x16xbf16>
    %c0_7 = arith.constant 0 : index
    %c0_8 = arith.constant 0 : index
    %c1 = arith.constant 1 : index
    %c0_9 = arith.constant 0 : index
    %5 = vector.load %arg1[%c0_7, %c0_8, %c1, %c0_9] : memref<1x9x9x16xbf16, #tpu.memory_space<vmem>>, vector<1x8x8x16xbf16>
    %6 = vector.shape_cast %5 : vector<1x8x8x16xbf16> to vector<8x8x16xbf16>
    %7 = arith.maximumf %4, %6 : vector<8x8x16xbf16>
    %c0_10 = arith.constant 0 : index
    %c0_11 = arith.constant 0 : index
    %c0_12 = arith.constant 0 : index
    %c0_13 = arith.constant 0 : index
    %8 = vector.load %arg3[%c0_10, %c0_11, %c0_12, %c0_13] : memref<1x9x9x16xbf16, #tpu.memory_space<vmem>>, vector<1x8x8x16xbf16>
    %9 = vector.shape_cast %8 : vector<1x8x8x16xbf16> to vector<8x8x16xbf16>
    %10 = arith.maximumf %7, %9 : vector<8x8x16xbf16>
    %c0_14 = arith.constant 0 : index
    %c0_15 = arith.constant 0 : index
    %c0_16 = arith.constant 0 : index
    %c0_17 = arith.constant 0 : index
    %11 = vector.load %arg4[%c0_14, %c0_15, %c0_16, %c0_17] : memref<1x9x9x16xbf16, #tpu.memory_space<vmem>>, vector<1x8x8x16xbf16>
    %12 = vector.shape_cast %11 : vector<1x8x8x16xbf16> to vector<8x8x16xbf16>
    %13 = arith.maximumf %10, %12 : vector<8x8x16xbf16>
    %c0_18 = arith.constant 0 : index
    %c0_19 = arith.constant 0 : index
    %c1_20 = arith.constant 1 : index
    %c0_21 = arith.constant 0 : index
    %14 = vector.load %arg3[%c0_18, %c0_19, %c1_20, %c0_21] : memref<1x9x9x16xbf16, #tpu.memory_space<vmem>>, vector<1x8x8x16xbf16>
    %15 = vector.shape_cast %14 : vector<1x8x8x16xbf16> to vector<8x8x16xbf16>
    %16 = arith.maximumf %13, %15 : vector<8x8x16xbf16>
    %c0_22 = arith.constant 0 : index
    %c1_23 = arith.constant 1 : index
    %c0_24 = arith.constant 0 : index
    %c0_25 = arith.constant 0 : index
    %17 = vector.load %arg1[%c0_22, %c1_23, %c0_24, %c0_25] : memref<1x9x9x16xbf16, #tpu.memory_space<vmem>>, vector<1x8x8x16xbf16>
    %18 = vector.shape_cast %17 : vector<1x8x8x16xbf16> to vector<8x8x16xbf16>
    %19 = arith.maximumf %16, %18 : vector<8x8x16xbf16>
    %c0_26 = arith.constant 0 : index
    %c1_27 = arith.constant 1 : index
    %c0_28 = arith.constant 0 : index
    %c0_29 = arith.constant 0 : index
    %20 = vector.load %arg2[%c0_26, %c1_27, %c0_28, %c0_29] : memref<1x9x9x16xbf16, #tpu.memory_space<vmem>>, vector<1x8x8x16xbf16>
    %21 = vector.shape_cast %20 : vector<1x8x8x16xbf16> to vector<8x8x16xbf16>
    %22 = arith.maximumf %19, %21 : vector<8x8x16xbf16>
    %c0_30 = arith.constant 0 : index
    %c1_31 = arith.constant 1 : index
    %c1_32 = arith.constant 1 : index
    %c0_33 = arith.constant 0 : index
    %23 = vector.load %arg1[%c0_30, %c1_31, %c1_32, %c0_33] : memref<1x9x9x16xbf16, #tpu.memory_space<vmem>>, vector<1x8x8x16xbf16>
    %24 = vector.shape_cast %23 : vector<1x8x8x16xbf16> to vector<8x8x16xbf16>
    %25 = arith.maximumf %22, %24 : vector<8x8x16xbf16>
    %c0_34 = arith.constant 0 : index
    %c0_35 = arith.constant 0 : index
    %c0_36 = arith.constant 0 : index
    %c0_37 = arith.constant 0 : index
    %26 = vector.load %arg5[%c0_34, %c0_35, %c0_36, %c0_37] : memref<1x8x8x16xbf16, #tpu.memory_space<vmem>>, vector<1x8x8x16xbf16>
    %27 = vector.shape_cast %26 : vector<1x8x8x16xbf16> to vector<8x8x16xbf16>
    %28 = vector.shape_cast %25 : vector<8x8x16xbf16> to vector<1x8x8x16xbf16>
    tpu.vector_store %arg5[%c0_34, %c0_35, %c0_36, %c0_37], %28 {strides = array<i32>} : memref<1x8x8x16xbf16, #tpu.memory_space<vmem>>, vector<1x8x8x16xbf16>,
    return
  }
  func.func @transform_0(%arg0: i32) -> (i32, i32, i32, i32) {
    %c0_i32 = arith.constant 0 : i32
    %c0_i32_0 = arith.constant 0 : i32
    %c0_i32_1 = arith.constant 0 : i32
    %c0_i32_2 = arith.constant 0 : i32
    return %arg0, %c0_i32, %c0_i32_0, %c0_i32_1 : i32, i32, i32, i32
  }
  func.func @transform_1(%arg0: i32) -> (i32, i32, i32, i32) {
    %c0_i32 = arith.constant 0 : i32
    %c0_i32_0 = arith.constant 0 : i32
    %c0_i32_1 = arith.constant 0 : i32
    %c0_i32_2 = arith.constant 0 : i32
    return %arg0, %c0_i32, %c0_i32_0, %c0_i32_1 : i32, i32, i32, i32
  }
  func.func @transform_2(%arg0: i32) -> (i32, i32, i32, i32) {
    %c0_i32 = arith.constant 0 : i32
    %c0_i32_0 = arith.constant 0 : i32
    %c0_i32_1 = arith.constant 0 : i32
    %c0_i32_2 = arith.constant 0 : i32
    return %arg0, %c0_i32, %c0_i32_0, %c0_i32_1 : i32, i32, i32, i32
  }
  func.func @transform_3(%arg0: i32) -> (i32, i32, i32, i32) {
    %c0_i32 = arith.constant 0 : i32
    %c0_i32_0 = arith.constant 0 : i32
    %c0_i32_1 = arith.constant 0 : i32
    %c0_i32_2 = arith.constant 0 : i32
    return %arg0, %c0_i32, %c0_i32_0, %c0_i32_1 : i32, i32, i32, i32
  }
  func.func @transform_4(%arg0: i32) -> (i32, i32, i32, i32) {
    %c0_i32 = arith.constant 0 : i32
    %c0_i32_0 = arith.constant 0 : i32
    %c0_i32_1 = arith.constant 0 : i32
    %c0_i32_2 = arith.constant 0 : i32
    return %arg0, %c0_i32, %c0_i32_0, %c0_i32_1 : i32, i32, i32, i32
  }
}

module attributes {stable_mosaic.version = 11 : i64} {
  func.func @_gmm_stats_kernel(%arg0: i32, %arg1: i32, %arg2: i32, %arg3: i32, %arg4: memref<1x128x128xbf16, #tpu.memory_space<vmem>>, %arg5: memref<1x128x128xbf16, #tpu.memory_space<vmem>>, %arg6: memref<1x128x128xbf16, #tpu.memory_space<vmem>>, %arg7: memref<1x1x8x128xf32, #tpu.memory_space<vmem>>, %arg8: memref<128x128xf32, #tpu.memory_space<vmem>>) attributes {dimension_semantics = [#tpu.dimension_semantics<parallel>, #tpu.dimension_semantics<parallel>, #tpu.dimension_semantics<parallel>, #tpu.dimension_semantics<arbitrary>], iteration_bounds = array<i64: 1, 1, 1, 1>, scalar_prefetch = 0 : i64, scratch_operands = 1 : i64, tpu.core_type = #tpu.core_type<tc>, window_params = [{transform_indices = @transform_0, window_bounds = array<i64: 1, 128, 128>}, {transform_indices = @transform_1, window_bounds = array<i64: 1, 128, 128>}, {transform_indices = @transform_2, window_bounds = array<i64: 1, 128, 128>}, {transform_indices = @transform_3, window_bounds = array<i64: 1, 1, 8, 128>}]} {
    %c0_i32 = arith.constant 0 : i32
    %0 = arith.cmpi eq, %arg3, %c0_i32 : i32
    %1 = arith.extui %0 : i1 to i32
    %c0_i32_0 = arith.constant 0 : i32
    %2 = arith.cmpi ne, %1, %c0_i32_0 : i32
    scf.if %2 {
      %cst_12 = arith.constant 0.000000e+00 : f32
      %14 = vector.broadcast %cst_12 : f32 to vector<128x128xf32>
      %c0_13 = arith.constant 0 : index
      %c0_14 = arith.constant 0 : index
      %15 = vector.load %arg8[%c0_13, %c0_14] : memref<128x128xf32, #tpu.memory_space<vmem>>, vector<128x128xf32>
      tpu.vector_store %arg8[%c0_13, %c0_14], %14 {strides = array<i32>} : memref<128x128xf32, #tpu.memory_space<vmem>>, vector<128x128xf32>,
      %cst_15 = arith.constant 0.000000e+00 : f32
      %16 = vector.broadcast %cst_15 : f32 to vector<1x1x8x128xf32>
      %c0_16 = arith.constant 0 : index
      %c0_17 = arith.constant 0 : index
      %c0_18 = arith.constant 0 : index
      %c0_19 = arith.constant 0 : index
      %17 = vector.load %arg7[%c0_16, %c0_17, %c0_18, %c0_19] : memref<1x1x8x128xf32, #tpu.memory_space<vmem>>, vector<1x1x8x128xf32>
      tpu.vector_store %arg7[%c0_16, %c0_17, %c0_18, %c0_19], %16 {strides = array<i32>} : memref<1x1x8x128xf32, #tpu.memory_space<vmem>>, vector<1x1x8x128xf32>,
    } else {
    }
    %c0 = arith.constant 0 : index
    %c0_1 = arith.constant 0 : index
    %3 = vector.load %arg8[%c0, %c0_1] : memref<128x128xf32, #tpu.memory_space<vmem>>, vector<128x128xf32>
    %c0_2 = arith.constant 0 : index
    %c0_3 = arith.constant 0 : index
    %c0_4 = arith.constant 0 : index
    %4 = vector.load %arg4[%c0_2, %c0_3, %c0_4] : memref<1x128x128xbf16, #tpu.memory_space<vmem>>, vector<1x128x128xbf16>
    %5 = vector.shape_cast %4 : vector<1x128x128xbf16> to vector<128x128xbf16>
    %c0_5 = arith.constant 0 : index
    %c0_6 = arith.constant 0 : index
    %c0_7 = arith.constant 0 : index
    %6 = vector.load %arg5[%c0_5, %c0_6, %c0_7] : memref<1x128x128xbf16, #tpu.memory_space<vmem>>, vector<1x128x128xbf16>
    %7 = vector.shape_cast %6 : vector<1x128x128xbf16> to vector<128x128xbf16>
    %cst = arith.constant dense<0.000000e+00> : vector<128x128xf32>
    %8 = tpu.matmul %5, %7, %cst {dimension_numbers = #tpu.dot_dimension_numbers<[1], [0], [0], [1], [0, 0, 1, 1], [], []>} : vector<128x128xbf16>, vector<128x128xbf16>, vector<128x128xf32> -> vector<128x128xf32>
    %9 = arith.addf %3, %8 : vector<128x128xf32>
    %c0_8 = arith.constant 0 : index
    %c0_9 = arith.constant 0 : index
    %10 = vector.load %arg8[%c0_8, %c0_9] : memref<128x128xf32, #tpu.memory_space<vmem>>, vector<128x128xf32>
    tpu.vector_store %arg8[%c0_8, %c0_9], %9 {strides = array<i32>} : memref<128x128xf32, #tpu.memory_space<vmem>>, vector<128x128xf32>,
    %c0_i32_10 = arith.constant 0 : i32
    %11 = arith.cmpi eq, %arg3, %c0_i32_10 : i32
    %12 = arith.extui %11 : i1 to i32
    %c0_i32_11 = arith.constant 0 : i32
    %13 = arith.cmpi ne, %12, %c0_i32_11 : i32
    scf.if %13 {
      %c0_12 = arith.constant 0 : index
      %c0_13 = arith.constant 0 : index
      %14 = vector.load %arg8[%c0_12, %c0_13] : memref<128x128xf32, #tpu.memory_space<vmem>>, vector<128x128xf32>
      %15 = arith.truncf %14 : vector<128x128xf32> to vector<128x128xbf16>
      %c0_14 = arith.constant 0 : index
      %c0_15 = arith.constant 0 : index
      %c0_16 = arith.constant 0 : index
      %16 = vector.load %arg6[%c0_14, %c0_15, %c0_16] : memref<1x128x128xbf16, #tpu.memory_space<vmem>>, vector<1x128x128xbf16>
      %17 = vector.shape_cast %16 : vector<1x128x128xbf16> to vector<128x128xbf16>
      %18 = vector.shape_cast %15 : vector<128x128xbf16> to vector<1x128x128xbf16>
      tpu.vector_store %arg6[%c0_14, %c0_15, %c0_16], %18 {strides = array<i32>} : memref<1x128x128xbf16, #tpu.memory_space<vmem>>, vector<1x128x128xbf16>,
      %cst_17 = arith.constant dense<0.000000e+00> : vector<128xf32>
      %19 = vector.multi_reduction <add>, %14, %cst_17 [0] : vector<128x128xf32> to vector<128xf32>
      %20 = vector.shape_cast %19 : vector<128xf32> to vector<1x128xf32>
      %c0_18 = arith.constant 0 : index
      %c0_19 = arith.constant 0 : index
      %c0_20 = arith.constant 0 : index
      %c0_21 = arith.constant 0 : index
      %21 = vector.load %arg7[%c0_18, %c0_19, %c0_20, %c0_21] : memref<1x1x8x128xf32, #tpu.memory_space<vmem>>, vector<1x1x1x128xf32>
      %22 = vector.shape_cast %21 : vector<1x1x1x128xf32> to vector<1x128xf32>
      %23 = vector.shape_cast %20 : vector<1x128xf32> to vector<1x1x1x128xf32>
      tpu.vector_store %arg7[%c0_18, %c0_19, %c0_20, %c0_21], %23 {strides = array<i32>} : memref<1x1x8x128xf32, #tpu.memory_space<vmem>>, vector<1x1x1x128xf32>,
      %24 = arith.mulf %14, %14 : vector<128x128xf32>
      %cst_22 = arith.constant dense<0.000000e+00> : vector<128xf32>
      %25 = vector.multi_reduction <add>, %24, %cst_22 [0] : vector<128x128xf32> to vector<128xf32>
      %26 = vector.shape_cast %25 : vector<128xf32> to vector<1x128xf32>
      %c0_23 = arith.constant 0 : index
      %c0_24 = arith.constant 0 : index
      %c1 = arith.constant 1 : index
      %c0_25 = arith.constant 0 : index
      %27 = vector.load %arg7[%c0_23, %c0_24, %c1, %c0_25] : memref<1x1x8x128xf32, #tpu.memory_space<vmem>>, vector<1x1x1x128xf32>
      %28 = vector.shape_cast %27 : vector<1x1x1x128xf32> to vector<1x128xf32>
      %29 = vector.shape_cast %26 : vector<1x128xf32> to vector<1x1x1x128xf32>
      tpu.vector_store %arg7[%c0_23, %c0_24, %c1, %c0_25], %29 {strides = array<i32>} : memref<1x1x8x128xf32, #tpu.memory_space<vmem>>, vector<1x1x1x128xf32>,
    } else {
    }
    return
  }
  func.func @transform_0(%arg0: i32, %arg1: i32, %arg2: i32, %arg3: i32) -> (i32, i32, i32) {
    %c0_i32 = arith.constant 0 : i32
    return %arg0, %arg1, %arg3 : i32, i32, i32
  }
  func.func @transform_1(%arg0: i32, %arg1: i32, %arg2: i32, %arg3: i32) -> (i32, i32, i32) {
    %c0_i32 = arith.constant 0 : i32
    return %arg0, %arg3, %arg2 : i32, i32, i32
  }
  func.func @transform_2(%arg0: i32, %arg1: i32, %arg2: i32, %arg3: i32) -> (i32, i32, i32) {
    %c0_i32 = arith.constant 0 : i32
    return %arg0, %arg1, %arg2 : i32, i32, i32
  }
  func.func @transform_3(%arg0: i32, %arg1: i32, %arg2: i32, %arg3: i32) -> (i32, i32, i32, i32) {
    %c0_i32 = arith.constant 0 : i32
    %c0_i32_0 = arith.constant 0 : i32
    return %arg0, %arg1, %c0_i32, %arg2 : i32, i32, i32, i32
  }
}

module attributes {stable_mosaic.version = 11 : i64} {
  func.func @_affine_kernel(%arg0: i32, %arg1: memref<64x128xbf16, #tpu.memory_space<vmem>>, %arg2: memref<1x128xf32, #tpu.memory_space<vmem>>, %arg3: memref<1x128xf32, #tpu.memory_space<vmem>>, %arg4: memref<64x128xbf16, #tpu.memory_space<vmem>>) attributes {dimension_semantics = [#tpu.dimension_semantics<parallel>], iteration_bounds = array<i64: 1>, scalar_prefetch = 0 : i64, scratch_operands = 0 : i64, tpu.core_type = #tpu.core_type<tc>, window_params = [{transform_indices = @transform_0, window_bounds = array<i64: 64, 128>}, {pipeline_mode = #tpu.pipeline_mode<synchronous>, transform_indices = @transform_1, window_bounds = array<i64: 1, 128>}, {pipeline_mode = #tpu.pipeline_mode<synchronous>, transform_indices = @transform_2, window_bounds = array<i64: 1, 128>}, {transform_indices = @transform_3, window_bounds = array<i64: 64, 128>}]} {
    %c0 = arith.constant 0 : index
    %c0_0 = arith.constant 0 : index
    %0 = vector.load %arg1[%c0, %c0_0] : memref<64x128xbf16, #tpu.memory_space<vmem>>, vector<64x128xbf16>
    %1 = arith.extf %0 : vector<64x128xbf16> to vector<64x128xf32>
    %c0_1 = arith.constant 0 : index
    %c0_2 = arith.constant 0 : index
    %2 = vector.load %arg2[%c0_1, %c0_2] : memref<1x128xf32, #tpu.memory_space<vmem>>, vector<1x128xf32>
    %3 = vector.broadcast %2 : vector<1x128xf32> to vector<64x128xf32>
    %4 = arith.mulf %1, %3 : vector<64x128xf32>
    %c0_3 = arith.constant 0 : index
    %c0_4 = arith.constant 0 : index
    %5 = vector.load %arg3[%c0_3, %c0_4] : memref<1x128xf32, #tpu.memory_space<vmem>>, vector<1x128xf32>
    %6 = vector.broadcast %5 : vector<1x128xf32> to vector<64x128xf32>
    %7 = arith.addf %4, %6 : vector<64x128xf32>
    %8 = arith.truncf %7 : vector<64x128xf32> to vector<64x128xbf16>
    %c0_5 = arith.constant 0 : index
    %c0_6 = arith.constant 0 : index
    %9 = vector.load %arg4[%c0_5, %c0_6] : memref<64x128xbf16, #tpu.memory_space<vmem>>, vector<64x128xbf16>
    tpu.vector_store %arg4[%c0_5, %c0_6], %8 {strides = array<i32>} : memref<64x128xbf16, #tpu.memory_space<vmem>>, vector<64x128xbf16>,
    return
  }
  func.func @transform_0(%arg0: i32) -> (i32, i32) {
    %c0_i32 = arith.constant 0 : i32
    %c0_i32_0 = arith.constant 0 : i32
    return %arg0, %c0_i32 : i32, i32
  }
  func.func @transform_1(%arg0: i32) -> (i32, i32) {
    %c0_i32 = arith.constant 0 : i32
    %c0_i32_0 = arith.constant 0 : i32
    %c0_i32_1 = arith.constant 0 : i32
    return %c0_i32, %c0_i32_0 : i32, i32
  }
  func.func @transform_2(%arg0: i32) -> (i32, i32) {
    %c0_i32 = arith.constant 0 : i32
    %c0_i32_0 = arith.constant 0 : i32
    %c0_i32_1 = arith.constant 0 : i32
    return %c0_i32, %c0_i32_0 : i32, i32
  }
  func.func @transform_3(%arg0: i32) -> (i32, i32) {
    %c0_i32 = arith.constant 0 : i32
    %c0_i32_0 = arith.constant 0 : i32
    return %arg0, %c0_i32 : i32, i32
  }
}

module attributes {stable_mosaic.version = 11 : i64} {
  func.func @_affine_kernel(%arg0: i32, %arg1: memref<16x128xbf16, #tpu.memory_space<vmem>>, %arg2: memref<1x128xf32, #tpu.memory_space<vmem>>, %arg3: memref<1x128xf32, #tpu.memory_space<vmem>>, %arg4: memref<16x128xbf16, #tpu.memory_space<vmem>>) attributes {dimension_semantics = [#tpu.dimension_semantics<parallel>], iteration_bounds = array<i64: 1>, scalar_prefetch = 0 : i64, scratch_operands = 0 : i64, tpu.core_type = #tpu.core_type<tc>, window_params = [{transform_indices = @transform_0, window_bounds = array<i64: 16, 128>}, {pipeline_mode = #tpu.pipeline_mode<synchronous>, transform_indices = @transform_1, window_bounds = array<i64: 1, 128>}, {pipeline_mode = #tpu.pipeline_mode<synchronous>, transform_indices = @transform_2, window_bounds = array<i64: 1, 128>}, {transform_indices = @transform_3, window_bounds = array<i64: 16, 128>}]} {
    %c0 = arith.constant 0 : index
    %c0_0 = arith.constant 0 : index
    %0 = vector.load %arg1[%c0, %c0_0] : memref<16x128xbf16, #tpu.memory_space<vmem>>, vector<16x128xbf16>
    %1 = arith.extf %0 : vector<16x128xbf16> to vector<16x128xf32>
    %c0_1 = arith.constant 0 : index
    %c0_2 = arith.constant 0 : index
    %2 = vector.load %arg2[%c0_1, %c0_2] : memref<1x128xf32, #tpu.memory_space<vmem>>, vector<1x128xf32>
    %3 = vector.broadcast %2 : vector<1x128xf32> to vector<16x128xf32>
    %4 = arith.mulf %1, %3 : vector<16x128xf32>
    %c0_3 = arith.constant 0 : index
    %c0_4 = arith.constant 0 : index
    %5 = vector.load %arg3[%c0_3, %c0_4] : memref<1x128xf32, #tpu.memory_space<vmem>>, vector<1x128xf32>
    %6 = vector.broadcast %5 : vector<1x128xf32> to vector<16x128xf32>
    %7 = arith.addf %4, %6 : vector<16x128xf32>
    %cst = arith.constant 0.000000e+00 : f32
    %8 = vector.broadcast %cst : f32 to vector<16x128xf32>
    %9 = arith.maximumf %7, %8 : vector<16x128xf32>
    %10 = arith.truncf %9 : vector<16x128xf32> to vector<16x128xbf16>
    %c0_5 = arith.constant 0 : index
    %c0_6 = arith.constant 0 : index
    %11 = vector.load %arg4[%c0_5, %c0_6] : memref<16x128xbf16, #tpu.memory_space<vmem>>, vector<16x128xbf16>
    tpu.vector_store %arg4[%c0_5, %c0_6], %10 {strides = array<i32>} : memref<16x128xbf16, #tpu.memory_space<vmem>>, vector<16x128xbf16>,
    return
  }
  func.func @transform_0(%arg0: i32) -> (i32, i32) {
    %c0_i32 = arith.constant 0 : i32
    %c0_i32_0 = arith.constant 0 : i32
    return %arg0, %c0_i32 : i32, i32
  }
  func.func @transform_1(%arg0: i32) -> (i32, i32) {
    %c0_i32 = arith.constant 0 : i32
    %c0_i32_0 = arith.constant 0 : i32
    %c0_i32_1 = arith.constant 0 : i32
    return %c0_i32, %c0_i32_0 : i32, i32
  }
  func.func @transform_2(%arg0: i32) -> (i32, i32) {
    %c0_i32 = arith.constant 0 : i32
    %c0_i32_0 = arith.constant 0 : i32
    %c0_i32_1 = arith.constant 0 : i32
    return %c0_i32, %c0_i32_0 : i32, i32
  }
  func.func @transform_3(%arg0: i32) -> (i32, i32) {
    %c0_i32 = arith.constant 0 : i32
    %c0_i32_0 = arith.constant 0 : i32
    return %arg0, %c0_i32 : i32, i32
  }
}

module attributes {stable_mosaic.version = 11 : i64} {
  func.func @_gmm_stats_kernel(%arg0: i32, %arg1: i32, %arg2: i32, %arg3: i32, %arg4: memref<1x128x128xbf16, #tpu.memory_space<vmem>>, %arg5: memref<1x128x128xbf16, #tpu.memory_space<vmem>>, %arg6: memref<1x128x128xbf16, #tpu.memory_space<vmem>>, %arg7: memref<1x1x8x128xf32, #tpu.memory_space<vmem>>, %arg8: memref<128x128xf32, #tpu.memory_space<vmem>>) attributes {dimension_semantics = [#tpu.dimension_semantics<parallel>, #tpu.dimension_semantics<parallel>, #tpu.dimension_semantics<parallel>, #tpu.dimension_semantics<arbitrary>], iteration_bounds = array<i64: 4, 1, 1, 1>, scalar_prefetch = 0 : i64, scratch_operands = 1 : i64, tpu.core_type = #tpu.core_type<tc>, window_params = [{transform_indices = @transform_0, window_bounds = array<i64: 1, 128, 128>}, {transform_indices = @transform_1, window_bounds = array<i64: 1, 128, 128>}, {transform_indices = @transform_2, window_bounds = array<i64: 1, 128, 128>}, {transform_indices = @transform_3, window_bounds = array<i64: 1, 1, 8, 128>}]} {
    %c0_i32 = arith.constant 0 : i32
    %0 = arith.cmpi eq, %arg3, %c0_i32 : i32
    %1 = arith.extui %0 : i1 to i32
    %c0_i32_0 = arith.constant 0 : i32
    %2 = arith.cmpi ne, %1, %c0_i32_0 : i32
    scf.if %2 {
      %cst_12 = arith.constant 0.000000e+00 : f32
      %14 = vector.broadcast %cst_12 : f32 to vector<128x128xf32>
      %c0_13 = arith.constant 0 : index
      %c0_14 = arith.constant 0 : index
      %15 = vector.load %arg8[%c0_13, %c0_14] : memref<128x128xf32, #tpu.memory_space<vmem>>, vector<128x128xf32>
      tpu.vector_store %arg8[%c0_13, %c0_14], %14 {strides = array<i32>} : memref<128x128xf32, #tpu.memory_space<vmem>>, vector<128x128xf32>,
      %cst_15 = arith.constant 0.000000e+00 : f32
      %16 = vector.broadcast %cst_15 : f32 to vector<1x1x8x128xf32>
      %c0_16 = arith.constant 0 : index
      %c0_17 = arith.constant 0 : index
      %c0_18 = arith.constant 0 : index
      %c0_19 = arith.constant 0 : index
      %17 = vector.load %arg7[%c0_16, %c0_17, %c0_18, %c0_19] : memref<1x1x8x128xf32, #tpu.memory_space<vmem>>, vector<1x1x8x128xf32>
      tpu.vector_store %arg7[%c0_16, %c0_17, %c0_18, %c0_19], %16 {strides = array<i32>} : memref<1x1x8x128xf32, #tpu.memory_space<vmem>>, vector<1x1x8x128xf32>,
    } else {
    }
    %c0 = arith.constant 0 : index
    %c0_1 = arith.constant 0 : index
    %3 = vector.load %arg8[%c0, %c0_1] : memref<128x128xf32, #tpu.memory_space<vmem>>, vector<128x128xf32>
    %c0_2 = arith.constant 0 : index
    %c0_3 = arith.constant 0 : index
    %c0_4 = arith.constant 0 : index
    %4 = vector.load %arg4[%c0_2, %c0_3, %c0_4] : memref<1x128x128xbf16, #tpu.memory_space<vmem>>, vector<1x128x128xbf16>
    %5 = vector.shape_cast %4 : vector<1x128x128xbf16> to vector<128x128xbf16>
    %c0_5 = arith.constant 0 : index
    %c0_6 = arith.constant 0 : index
    %c0_7 = arith.constant 0 : index
    %6 = vector.load %arg5[%c0_5, %c0_6, %c0_7] : memref<1x128x128xbf16, #tpu.memory_space<vmem>>, vector<1x128x128xbf16>
    %7 = vector.shape_cast %6 : vector<1x128x128xbf16> to vector<128x128xbf16>
    %cst = arith.constant dense<0.000000e+00> : vector<128x128xf32>
    %8 = tpu.matmul %5, %7, %cst {dimension_numbers = #tpu.dot_dimension_numbers<[1], [0], [0], [1], [0, 0, 1, 1], [], []>} : vector<128x128xbf16>, vector<128x128xbf16>, vector<128x128xf32> -> vector<128x128xf32>
    %9 = arith.addf %3, %8 : vector<128x128xf32>
    %c0_8 = arith.constant 0 : index
    %c0_9 = arith.constant 0 : index
    %10 = vector.load %arg8[%c0_8, %c0_9] : memref<128x128xf32, #tpu.memory_space<vmem>>, vector<128x128xf32>
    tpu.vector_store %arg8[%c0_8, %c0_9], %9 {strides = array<i32>} : memref<128x128xf32, #tpu.memory_space<vmem>>, vector<128x128xf32>,
    %c0_i32_10 = arith.constant 0 : i32
    %11 = arith.cmpi eq, %arg3, %c0_i32_10 : i32
    %12 = arith.extui %11 : i1 to i32
    %c0_i32_11 = arith.constant 0 : i32
    %13 = arith.cmpi ne, %12, %c0_i32_11 : i32
    scf.if %13 {
      %c0_12 = arith.constant 0 : index
      %c0_13 = arith.constant 0 : index
      %14 = vector.load %arg8[%c0_12, %c0_13] : memref<128x128xf32, #tpu.memory_space<vmem>>, vector<128x128xf32>
      %15 = arith.truncf %14 : vector<128x128xf32> to vector<128x128xbf16>
      %c0_14 = arith.constant 0 : index
      %c0_15 = arith.constant 0 : index
      %c0_16 = arith.constant 0 : index
      %16 = vector.load %arg6[%c0_14, %c0_15, %c0_16] : memref<1x128x128xbf16, #tpu.memory_space<vmem>>, vector<1x128x128xbf16>
      %17 = vector.shape_cast %16 : vector<1x128x128xbf16> to vector<128x128xbf16>
      %18 = vector.shape_cast %15 : vector<128x128xbf16> to vector<1x128x128xbf16>
      tpu.vector_store %arg6[%c0_14, %c0_15, %c0_16], %18 {strides = array<i32>} : memref<1x128x128xbf16, #tpu.memory_space<vmem>>, vector<1x128x128xbf16>,
      %cst_17 = arith.constant dense<0.000000e+00> : vector<128xf32>
      %19 = vector.multi_reduction <add>, %14, %cst_17 [0] : vector<128x128xf32> to vector<128xf32>
      %20 = vector.shape_cast %19 : vector<128xf32> to vector<1x128xf32>
      %c0_18 = arith.constant 0 : index
      %c0_19 = arith.constant 0 : index
      %c0_20 = arith.constant 0 : index
      %c0_21 = arith.constant 0 : index
      %21 = vector.load %arg7[%c0_18, %c0_19, %c0_20, %c0_21] : memref<1x1x8x128xf32, #tpu.memory_space<vmem>>, vector<1x1x1x128xf32>
      %22 = vector.shape_cast %21 : vector<1x1x1x128xf32> to vector<1x128xf32>
      %23 = vector.shape_cast %20 : vector<1x128xf32> to vector<1x1x1x128xf32>
      tpu.vector_store %arg7[%c0_18, %c0_19, %c0_20, %c0_21], %23 {strides = array<i32>} : memref<1x1x8x128xf32, #tpu.memory_space<vmem>>, vector<1x1x1x128xf32>,
      %24 = arith.mulf %14, %14 : vector<128x128xf32>
      %cst_22 = arith.constant dense<0.000000e+00> : vector<128xf32>
      %25 = vector.multi_reduction <add>, %24, %cst_22 [0] : vector<128x128xf32> to vector<128xf32>
      %26 = vector.shape_cast %25 : vector<128xf32> to vector<1x128xf32>
      %c0_23 = arith.constant 0 : index
      %c0_24 = arith.constant 0 : index
      %c1 = arith.constant 1 : index
      %c0_25 = arith.constant 0 : index
      %27 = vector.load %arg7[%c0_23, %c0_24, %c1, %c0_25] : memref<1x1x8x128xf32, #tpu.memory_space<vmem>>, vector<1x1x1x128xf32>
      %28 = vector.shape_cast %27 : vector<1x1x1x128xf32> to vector<1x128xf32>
      %29 = vector.shape_cast %26 : vector<1x128xf32> to vector<1x1x1x128xf32>
      tpu.vector_store %arg7[%c0_23, %c0_24, %c1, %c0_25], %29 {strides = array<i32>} : memref<1x1x8x128xf32, #tpu.memory_space<vmem>>, vector<1x1x1x128xf32>,
    } else {
    }
    return
  }
  func.func @transform_0(%arg0: i32, %arg1: i32, %arg2: i32, %arg3: i32) -> (i32, i32, i32) {
    %c0_i32 = arith.constant 0 : i32
    return %arg0, %arg1, %arg3 : i32, i32, i32
  }
  func.func @transform_1(%arg0: i32, %arg1: i32, %arg2: i32, %arg3: i32) -> (i32, i32, i32) {
    %c0_i32 = arith.constant 0 : i32
    return %arg0, %arg3, %arg2 : i32, i32, i32
  }
  func.func @transform_2(%arg0: i32, %arg1: i32, %arg2: i32, %arg3: i32) -> (i32, i32, i32) {
    %c0_i32 = arith.constant 0 : i32
    return %arg0, %arg1, %arg2 : i32, i32, i32
  }
  func.func @transform_3(%arg0: i32, %arg1: i32, %arg2: i32, %arg3: i32) -> (i32, i32, i32, i32) {
    %c0_i32 = arith.constant 0 : i32
    %c0_i32_0 = arith.constant 0 : i32
    return %arg0, %arg1, %c0_i32, %arg2 : i32, i32, i32, i32
  }
}

module attributes {stable_mosaic.version = 11 : i64} {
  func.func @_gmm_stats_kernel(%arg0: i32, %arg1: i32, %arg2: i32, %arg3: i32, %arg4: memref<1x32x128xbf16, #tpu.memory_space<vmem>>, %arg5: memref<1x128x128xbf16, #tpu.memory_space<vmem>>, %arg6: memref<1x32x128xbf16, #tpu.memory_space<vmem>>, %arg7: memref<1x1x8x128xf32, #tpu.memory_space<vmem>>, %arg8: memref<32x128xf32, #tpu.memory_space<vmem>>) attributes {dimension_semantics = [#tpu.dimension_semantics<parallel>, #tpu.dimension_semantics<parallel>, #tpu.dimension_semantics<parallel>, #tpu.dimension_semantics<arbitrary>], iteration_bounds = array<i64: 1, 1, 1, 1>, scalar_prefetch = 0 : i64, scratch_operands = 1 : i64, tpu.core_type = #tpu.core_type<tc>, window_params = [{transform_indices = @transform_0, window_bounds = array<i64: 1, 32, 128>}, {transform_indices = @transform_1, window_bounds = array<i64: 1, 128, 128>}, {transform_indices = @transform_2, window_bounds = array<i64: 1, 32, 128>}, {transform_indices = @transform_3, window_bounds = array<i64: 1, 1, 8, 128>}]} {
    %c0_i32 = arith.constant 0 : i32
    %0 = arith.cmpi eq, %arg3, %c0_i32 : i32
    %1 = arith.extui %0 : i1 to i32
    %c0_i32_0 = arith.constant 0 : i32
    %2 = arith.cmpi ne, %1, %c0_i32_0 : i32
    scf.if %2 {
      %cst_12 = arith.constant 0.000000e+00 : f32
      %14 = vector.broadcast %cst_12 : f32 to vector<32x128xf32>
      %c0_13 = arith.constant 0 : index
      %c0_14 = arith.constant 0 : index
      %15 = vector.load %arg8[%c0_13, %c0_14] : memref<32x128xf32, #tpu.memory_space<vmem>>, vector<32x128xf32>
      tpu.vector_store %arg8[%c0_13, %c0_14], %14 {strides = array<i32>} : memref<32x128xf32, #tpu.memory_space<vmem>>, vector<32x128xf32>,
      %cst_15 = arith.constant 0.000000e+00 : f32
      %16 = vector.broadcast %cst_15 : f32 to vector<1x1x8x128xf32>
      %c0_16 = arith.constant 0 : index
      %c0_17 = arith.constant 0 : index
      %c0_18 = arith.constant 0 : index
      %c0_19 = arith.constant 0 : index
      %17 = vector.load %arg7[%c0_16, %c0_17, %c0_18, %c0_19] : memref<1x1x8x128xf32, #tpu.memory_space<vmem>>, vector<1x1x8x128xf32>
      tpu.vector_store %arg7[%c0_16, %c0_17, %c0_18, %c0_19], %16 {strides = array<i32>} : memref<1x1x8x128xf32, #tpu.memory_space<vmem>>, vector<1x1x8x128xf32>,
    } else {
    }
    %c0 = arith.constant 0 : index
    %c0_1 = arith.constant 0 : index
    %3 = vector.load %arg8[%c0, %c0_1] : memref<32x128xf32, #tpu.memory_space<vmem>>, vector<32x128xf32>
    %c0_2 = arith.constant 0 : index
    %c0_3 = arith.constant 0 : index
    %c0_4 = arith.constant 0 : index
    %4 = vector.load %arg4[%c0_2, %c0_3, %c0_4] : memref<1x32x128xbf16, #tpu.memory_space<vmem>>, vector<1x32x128xbf16>
    %5 = vector.shape_cast %4 : vector<1x32x128xbf16> to vector<32x128xbf16>
    %c0_5 = arith.constant 0 : index
    %c0_6 = arith.constant 0 : index
    %c0_7 = arith.constant 0 : index
    %6 = vector.load %arg5[%c0_5, %c0_6, %c0_7] : memref<1x128x128xbf16, #tpu.memory_space<vmem>>, vector<1x128x128xbf16>
    %7 = vector.shape_cast %6 : vector<1x128x128xbf16> to vector<128x128xbf16>
    %cst = arith.constant dense<0.000000e+00> : vector<32x128xf32>
    %8 = tpu.matmul %5, %7, %cst {dimension_numbers = #tpu.dot_dimension_numbers<[1], [0], [0], [1], [0, 0, 1, 1], [], []>} : vector<32x128xbf16>, vector<128x128xbf16>, vector<32x128xf32> -> vector<32x128xf32>
    %9 = arith.addf %3, %8 : vector<32x128xf32>
    %c0_8 = arith.constant 0 : index
    %c0_9 = arith.constant 0 : index
    %10 = vector.load %arg8[%c0_8, %c0_9] : memref<32x128xf32, #tpu.memory_space<vmem>>, vector<32x128xf32>
    tpu.vector_store %arg8[%c0_8, %c0_9], %9 {strides = array<i32>} : memref<32x128xf32, #tpu.memory_space<vmem>>, vector<32x128xf32>,
    %c0_i32_10 = arith.constant 0 : i32
    %11 = arith.cmpi eq, %arg3, %c0_i32_10 : i32
    %12 = arith.extui %11 : i1 to i32
    %c0_i32_11 = arith.constant 0 : i32
    %13 = arith.cmpi ne, %12, %c0_i32_11 : i32
    scf.if %13 {
      %c0_12 = arith.constant 0 : index
      %c0_13 = arith.constant 0 : index
      %14 = vector.load %arg8[%c0_12, %c0_13] : memref<32x128xf32, #tpu.memory_space<vmem>>, vector<32x128xf32>
      %15 = arith.truncf %14 : vector<32x128xf32> to vector<32x128xbf16>
      %c0_14 = arith.constant 0 : index
      %c0_15 = arith.constant 0 : index
      %c0_16 = arith.constant 0 : index
      %16 = vector.load %arg6[%c0_14, %c0_15, %c0_16] : memref<1x32x128xbf16, #tpu.memory_space<vmem>>, vector<1x32x128xbf16>
      %17 = vector.shape_cast %16 : vector<1x32x128xbf16> to vector<32x128xbf16>
      %18 = vector.shape_cast %15 : vector<32x128xbf16> to vector<1x32x128xbf16>
      tpu.vector_store %arg6[%c0_14, %c0_15, %c0_16], %18 {strides = array<i32>} : memref<1x32x128xbf16, #tpu.memory_space<vmem>>, vector<1x32x128xbf16>,
      %cst_17 = arith.constant dense<0.000000e+00> : vector<128xf32>
      %19 = vector.multi_reduction <add>, %14, %cst_17 [0] : vector<32x128xf32> to vector<128xf32>
      %20 = vector.shape_cast %19 : vector<128xf32> to vector<1x128xf32>
      %c0_18 = arith.constant 0 : index
      %c0_19 = arith.constant 0 : index
      %c0_20 = arith.constant 0 : index
      %c0_21 = arith.constant 0 : index
      %21 = vector.load %arg7[%c0_18, %c0_19, %c0_20, %c0_21] : memref<1x1x8x128xf32, #tpu.memory_space<vmem>>, vector<1x1x1x128xf32>
      %22 = vector.shape_cast %21 : vector<1x1x1x128xf32> to vector<1x128xf32>
      %23 = vector.shape_cast %20 : vector<1x128xf32> to vector<1x1x1x128xf32>
      tpu.vector_store %arg7[%c0_18, %c0_19, %c0_20, %c0_21], %23 {strides = array<i32>} : memref<1x1x8x128xf32, #tpu.memory_space<vmem>>, vector<1x1x1x128xf32>,
      %24 = arith.mulf %14, %14 : vector<32x128xf32>
      %cst_22 = arith.constant dense<0.000000e+00> : vector<128xf32>
      %25 = vector.multi_reduction <add>, %24, %cst_22 [0] : vector<32x128xf32> to vector<128xf32>
      %26 = vector.shape_cast %25 : vector<128xf32> to vector<1x128xf32>
      %c0_23 = arith.constant 0 : index
      %c0_24 = arith.constant 0 : index
      %c1 = arith.constant 1 : index
      %c0_25 = arith.constant 0 : index
      %27 = vector.load %arg7[%c0_23, %c0_24, %c1, %c0_25] : memref<1x1x8x128xf32, #tpu.memory_space<vmem>>, vector<1x1x1x128xf32>
      %28 = vector.shape_cast %27 : vector<1x1x1x128xf32> to vector<1x128xf32>
      %29 = vector.shape_cast %26 : vector<1x128xf32> to vector<1x1x1x128xf32>
      tpu.vector_store %arg7[%c0_23, %c0_24, %c1, %c0_25], %29 {strides = array<i32>} : memref<1x1x8x128xf32, #tpu.memory_space<vmem>>, vector<1x1x1x128xf32>,
    } else {
    }
    return
  }
  func.func @transform_0(%arg0: i32, %arg1: i32, %arg2: i32, %arg3: i32) -> (i32, i32, i32) {
    %c0_i32 = arith.constant 0 : i32
    return %arg0, %arg1, %arg3 : i32, i32, i32
  }
  func.func @transform_1(%arg0: i32, %arg1: i32, %arg2: i32, %arg3: i32) -> (i32, i32, i32) {
    %c0_i32 = arith.constant 0 : i32
    return %arg0, %arg3, %arg2 : i32, i32, i32
  }
  func.func @transform_2(%arg0: i32, %arg1: i32, %arg2: i32, %arg3: i32) -> (i32, i32, i32) {
    %c0_i32 = arith.constant 0 : i32
    return %arg0, %arg1, %arg2 : i32, i32, i32
  }
  func.func @transform_3(%arg0: i32, %arg1: i32, %arg2: i32, %arg3: i32) -> (i32, i32, i32, i32) {
    %c0_i32 = arith.constant 0 : i32
    %c0_i32_0 = arith.constant 0 : i32
    return %arg0, %arg1, %c0_i32, %arg2 : i32, i32, i32, i32
  }
}

module attributes {stable_mosaic.version = 11 : i64} {
  func.func @_affine_res_kernel(%arg0: i32, %arg1: memref<64x128xbf16, #tpu.memory_space<vmem>>, %arg2: memref<1x128xf32, #tpu.memory_space<vmem>>, %arg3: memref<1x128xf32, #tpu.memory_space<vmem>>, %arg4: memref<64x128xbf16, #tpu.memory_space<vmem>>, %arg5: memref<64x128xbf16, #tpu.memory_space<vmem>>) attributes {dimension_semantics = [#tpu.dimension_semantics<parallel>], iteration_bounds = array<i64: 1>, scalar_prefetch = 0 : i64, scratch_operands = 0 : i64, tpu.core_type = #tpu.core_type<tc>, window_params = [{transform_indices = @transform_0, window_bounds = array<i64: 64, 128>}, {pipeline_mode = #tpu.pipeline_mode<synchronous>, transform_indices = @transform_1, window_bounds = array<i64: 1, 128>}, {pipeline_mode = #tpu.pipeline_mode<synchronous>, transform_indices = @transform_2, window_bounds = array<i64: 1, 128>}, {transform_indices = @transform_3, window_bounds = array<i64: 64, 128>}, {transform_indices = @transform_4, window_bounds = array<i64: 64, 128>}]} {
    %c0 = arith.constant 0 : index
    %c0_0 = arith.constant 0 : index
    %0 = vector.load %arg1[%c0, %c0_0] : memref<64x128xbf16, #tpu.memory_space<vmem>>, vector<64x128xbf16>
    %1 = arith.extf %0 : vector<64x128xbf16> to vector<64x128xf32>
    %c0_1 = arith.constant 0 : index
    %c0_2 = arith.constant 0 : index
    %2 = vector.load %arg2[%c0_1, %c0_2] : memref<1x128xf32, #tpu.memory_space<vmem>>, vector<1x128xf32>
    %3 = vector.broadcast %2 : vector<1x128xf32> to vector<64x128xf32>
    %4 = arith.mulf %1, %3 : vector<64x128xf32>
    %c0_3 = arith.constant 0 : index
    %c0_4 = arith.constant 0 : index
    %5 = vector.load %arg3[%c0_3, %c0_4] : memref<1x128xf32, #tpu.memory_space<vmem>>, vector<1x128xf32>
    %6 = vector.broadcast %5 : vector<1x128xf32> to vector<64x128xf32>
    %7 = arith.addf %4, %6 : vector<64x128xf32>
    %c0_5 = arith.constant 0 : index
    %c0_6 = arith.constant 0 : index
    %8 = vector.load %arg4[%c0_5, %c0_6] : memref<64x128xbf16, #tpu.memory_space<vmem>>, vector<64x128xbf16>
    %9 = arith.extf %8 : vector<64x128xbf16> to vector<64x128xf32>
    %10 = arith.addf %7, %9 : vector<64x128xf32>
    %cst = arith.constant 0.000000e+00 : f32
    %11 = vector.broadcast %cst : f32 to vector<64x128xf32>
    %12 = arith.maximumf %10, %11 : vector<64x128xf32>
    %13 = arith.truncf %12 : vector<64x128xf32> to vector<64x128xbf16>
    %c0_7 = arith.constant 0 : index
    %c0_8 = arith.constant 0 : index
    %14 = vector.load %arg5[%c0_7, %c0_8] : memref<64x128xbf16, #tpu.memory_space<vmem>>, vector<64x128xbf16>
    tpu.vector_store %arg5[%c0_7, %c0_8], %13 {strides = array<i32>} : memref<64x128xbf16, #tpu.memory_space<vmem>>, vector<64x128xbf16>,
    return
  }
  func.func @transform_0(%arg0: i32) -> (i32, i32) {
    %c0_i32 = arith.constant 0 : i32
    %c0_i32_0 = arith.constant 0 : i32
    return %arg0, %c0_i32 : i32, i32
  }
  func.func @transform_1(%arg0: i32) -> (i32, i32) {
    %c0_i32 = arith.constant 0 : i32
    %c0_i32_0 = arith.constant 0 : i32
    %c0_i32_1 = arith.constant 0 : i32
    return %c0_i32, %c0_i32_0 : i32, i32
  }
  func.func @transform_2(%arg0: i32) -> (i32, i32) {
    %c0_i32 = arith.constant 0 : i32
    %c0_i32_0 = arith.constant 0 : i32
    %c0_i32_1 = arith.constant 0 : i32
    return %c0_i32, %c0_i32_0 : i32, i32
  }
  func.func @transform_3(%arg0: i32) -> (i32, i32) {
    %c0_i32 = arith.constant 0 : i32
    %c0_i32_0 = arith.constant 0 : i32
    return %arg0, %c0_i32 : i32, i32
  }
  func.func @transform_4(%arg0: i32) -> (i32, i32) {
    %c0_i32 = arith.constant 0 : i32
    %c0_i32_0 = arith.constant 0 : i32
    return %arg0, %c0_i32 : i32, i32
  }
}

module attributes {stable_mosaic.version = 11 : i64} {
  func.func @_affine_kernel(%arg0: i32, %arg1: memref<32x128xbf16, #tpu.memory_space<vmem>>, %arg2: memref<1x128xf32, #tpu.memory_space<vmem>>, %arg3: memref<1x128xf32, #tpu.memory_space<vmem>>, %arg4: memref<32x128xbf16, #tpu.memory_space<vmem>>) attributes {dimension_semantics = [#tpu.dimension_semantics<parallel>], iteration_bounds = array<i64: 1>, scalar_prefetch = 0 : i64, scratch_operands = 0 : i64, tpu.core_type = #tpu.core_type<tc>, window_params = [{transform_indices = @transform_0, window_bounds = array<i64: 32, 128>}, {pipeline_mode = #tpu.pipeline_mode<synchronous>, transform_indices = @transform_1, window_bounds = array<i64: 1, 128>}, {pipeline_mode = #tpu.pipeline_mode<synchronous>, transform_indices = @transform_2, window_bounds = array<i64: 1, 128>}, {transform_indices = @transform_3, window_bounds = array<i64: 32, 128>}]} {
    %c0 = arith.constant 0 : index
    %c0_0 = arith.constant 0 : index
    %0 = vector.load %arg1[%c0, %c0_0] : memref<32x128xbf16, #tpu.memory_space<vmem>>, vector<32x128xbf16>
    %1 = arith.extf %0 : vector<32x128xbf16> to vector<32x128xf32>
    %c0_1 = arith.constant 0 : index
    %c0_2 = arith.constant 0 : index
    %2 = vector.load %arg2[%c0_1, %c0_2] : memref<1x128xf32, #tpu.memory_space<vmem>>, vector<1x128xf32>
    %3 = vector.broadcast %2 : vector<1x128xf32> to vector<32x128xf32>
    %4 = arith.mulf %1, %3 : vector<32x128xf32>
    %c0_3 = arith.constant 0 : index
    %c0_4 = arith.constant 0 : index
    %5 = vector.load %arg3[%c0_3, %c0_4] : memref<1x128xf32, #tpu.memory_space<vmem>>, vector<1x128xf32>
    %6 = vector.broadcast %5 : vector<1x128xf32> to vector<32x128xf32>
    %7 = arith.addf %4, %6 : vector<32x128xf32>
    %8 = arith.truncf %7 : vector<32x128xf32> to vector<32x128xbf16>
    %c0_5 = arith.constant 0 : index
    %c0_6 = arith.constant 0 : index
    %9 = vector.load %arg4[%c0_5, %c0_6] : memref<32x128xbf16, #tpu.memory_space<vmem>>, vector<32x128xbf16>
    tpu.vector_store %arg4[%c0_5, %c0_6], %8 {strides = array<i32>} : memref<32x128xbf16, #tpu.memory_space<vmem>>, vector<32x128xbf16>,
    return
  }
  func.func @transform_0(%arg0: i32) -> (i32, i32) {
    %c0_i32 = arith.constant 0 : i32
    %c0_i32_0 = arith.constant 0 : i32
    return %arg0, %c0_i32 : i32, i32
  }
  func.func @transform_1(%arg0: i32) -> (i32, i32) {
    %c0_i32 = arith.constant 0 : i32
    %c0_i32_0 = arith.constant 0 : i32
    %c0_i32_1 = arith.constant 0 : i32
    return %c0_i32, %c0_i32_0 : i32, i32
  }
  func.func @transform_2(%arg0: i32) -> (i32, i32) {
    %c0_i32 = arith.constant 0 : i32
    %c0_i32_0 = arith.constant 0 : i32
    %c0_i32_1 = arith.constant 0 : i32
    return %c0_i32, %c0_i32_0 : i32, i32
  }
  func.func @transform_3(%arg0: i32) -> (i32, i32) {
    %c0_i32 = arith.constant 0 : i32
    %c0_i32_0 = arith.constant 0 : i32
    return %arg0, %c0_i32 : i32, i32
  }
}

module attributes {stable_mosaic.version = 11 : i64} {
  func.func @_gmm_stats_kernel(%arg0: i32, %arg1: i32, %arg2: i32, %arg3: i32, %arg4: memref<1x32x128xbf16, #tpu.memory_space<vmem>>, %arg5: memref<1x128x128xbf16, #tpu.memory_space<vmem>>, %arg6: memref<1x32x128xbf16, #tpu.memory_space<vmem>>, %arg7: memref<1x1x8x128xf32, #tpu.memory_space<vmem>>, %arg8: memref<32x128xf32, #tpu.memory_space<vmem>>) attributes {dimension_semantics = [#tpu.dimension_semantics<parallel>, #tpu.dimension_semantics<parallel>, #tpu.dimension_semantics<parallel>, #tpu.dimension_semantics<arbitrary>], iteration_bounds = array<i64: 4, 1, 1, 1>, scalar_prefetch = 0 : i64, scratch_operands = 1 : i64, tpu.core_type = #tpu.core_type<tc>, window_params = [{transform_indices = @transform_0, window_bounds = array<i64: 1, 32, 128>}, {transform_indices = @transform_1, window_bounds = array<i64: 1, 128, 128>}, {transform_indices = @transform_2, window_bounds = array<i64: 1, 32, 128>}, {transform_indices = @transform_3, window_bounds = array<i64: 1, 1, 8, 128>}]} {
    %c0_i32 = arith.constant 0 : i32
    %0 = arith.cmpi eq, %arg3, %c0_i32 : i32
    %1 = arith.extui %0 : i1 to i32
    %c0_i32_0 = arith.constant 0 : i32
    %2 = arith.cmpi ne, %1, %c0_i32_0 : i32
    scf.if %2 {
      %cst_12 = arith.constant 0.000000e+00 : f32
      %14 = vector.broadcast %cst_12 : f32 to vector<32x128xf32>
      %c0_13 = arith.constant 0 : index
      %c0_14 = arith.constant 0 : index
      %15 = vector.load %arg8[%c0_13, %c0_14] : memref<32x128xf32, #tpu.memory_space<vmem>>, vector<32x128xf32>
      tpu.vector_store %arg8[%c0_13, %c0_14], %14 {strides = array<i32>} : memref<32x128xf32, #tpu.memory_space<vmem>>, vector<32x128xf32>,
      %cst_15 = arith.constant 0.000000e+00 : f32
      %16 = vector.broadcast %cst_15 : f32 to vector<1x1x8x128xf32>
      %c0_16 = arith.constant 0 : index
      %c0_17 = arith.constant 0 : index
      %c0_18 = arith.constant 0 : index
      %c0_19 = arith.constant 0 : index
      %17 = vector.load %arg7[%c0_16, %c0_17, %c0_18, %c0_19] : memref<1x1x8x128xf32, #tpu.memory_space<vmem>>, vector<1x1x8x128xf32>
      tpu.vector_store %arg7[%c0_16, %c0_17, %c0_18, %c0_19], %16 {strides = array<i32>} : memref<1x1x8x128xf32, #tpu.memory_space<vmem>>, vector<1x1x8x128xf32>,
    } else {
    }
    %c0 = arith.constant 0 : index
    %c0_1 = arith.constant 0 : index
    %3 = vector.load %arg8[%c0, %c0_1] : memref<32x128xf32, #tpu.memory_space<vmem>>, vector<32x128xf32>
    %c0_2 = arith.constant 0 : index
    %c0_3 = arith.constant 0 : index
    %c0_4 = arith.constant 0 : index
    %4 = vector.load %arg4[%c0_2, %c0_3, %c0_4] : memref<1x32x128xbf16, #tpu.memory_space<vmem>>, vector<1x32x128xbf16>
    %5 = vector.shape_cast %4 : vector<1x32x128xbf16> to vector<32x128xbf16>
    %c0_5 = arith.constant 0 : index
    %c0_6 = arith.constant 0 : index
    %c0_7 = arith.constant 0 : index
    %6 = vector.load %arg5[%c0_5, %c0_6, %c0_7] : memref<1x128x128xbf16, #tpu.memory_space<vmem>>, vector<1x128x128xbf16>
    %7 = vector.shape_cast %6 : vector<1x128x128xbf16> to vector<128x128xbf16>
    %cst = arith.constant dense<0.000000e+00> : vector<32x128xf32>
    %8 = tpu.matmul %5, %7, %cst {dimension_numbers = #tpu.dot_dimension_numbers<[1], [0], [0], [1], [0, 0, 1, 1], [], []>} : vector<32x128xbf16>, vector<128x128xbf16>, vector<32x128xf32> -> vector<32x128xf32>
    %9 = arith.addf %3, %8 : vector<32x128xf32>
    %c0_8 = arith.constant 0 : index
    %c0_9 = arith.constant 0 : index
    %10 = vector.load %arg8[%c0_8, %c0_9] : memref<32x128xf32, #tpu.memory_space<vmem>>, vector<32x128xf32>
    tpu.vector_store %arg8[%c0_8, %c0_9], %9 {strides = array<i32>} : memref<32x128xf32, #tpu.memory_space<vmem>>, vector<32x128xf32>,
    %c0_i32_10 = arith.constant 0 : i32
    %11 = arith.cmpi eq, %arg3, %c0_i32_10 : i32
    %12 = arith.extui %11 : i1 to i32
    %c0_i32_11 = arith.constant 0 : i32
    %13 = arith.cmpi ne, %12, %c0_i32_11 : i32
    scf.if %13 {
      %c0_12 = arith.constant 0 : index
      %c0_13 = arith.constant 0 : index
      %14 = vector.load %arg8[%c0_12, %c0_13] : memref<32x128xf32, #tpu.memory_space<vmem>>, vector<32x128xf32>
      %15 = arith.truncf %14 : vector<32x128xf32> to vector<32x128xbf16>
      %c0_14 = arith.constant 0 : index
      %c0_15 = arith.constant 0 : index
      %c0_16 = arith.constant 0 : index
      %16 = vector.load %arg6[%c0_14, %c0_15, %c0_16] : memref<1x32x128xbf16, #tpu.memory_space<vmem>>, vector<1x32x128xbf16>
      %17 = vector.shape_cast %16 : vector<1x32x128xbf16> to vector<32x128xbf16>
      %18 = vector.shape_cast %15 : vector<32x128xbf16> to vector<1x32x128xbf16>
      tpu.vector_store %arg6[%c0_14, %c0_15, %c0_16], %18 {strides = array<i32>} : memref<1x32x128xbf16, #tpu.memory_space<vmem>>, vector<1x32x128xbf16>,
      %cst_17 = arith.constant dense<0.000000e+00> : vector<128xf32>
      %19 = vector.multi_reduction <add>, %14, %cst_17 [0] : vector<32x128xf32> to vector<128xf32>
      %20 = vector.shape_cast %19 : vector<128xf32> to vector<1x128xf32>
      %c0_18 = arith.constant 0 : index
      %c0_19 = arith.constant 0 : index
      %c0_20 = arith.constant 0 : index
      %c0_21 = arith.constant 0 : index
      %21 = vector.load %arg7[%c0_18, %c0_19, %c0_20, %c0_21] : memref<1x1x8x128xf32, #tpu.memory_space<vmem>>, vector<1x1x1x128xf32>
      %22 = vector.shape_cast %21 : vector<1x1x1x128xf32> to vector<1x128xf32>
      %23 = vector.shape_cast %20 : vector<1x128xf32> to vector<1x1x1x128xf32>
      tpu.vector_store %arg7[%c0_18, %c0_19, %c0_20, %c0_21], %23 {strides = array<i32>} : memref<1x1x8x128xf32, #tpu.memory_space<vmem>>, vector<1x1x1x128xf32>,
      %24 = arith.mulf %14, %14 : vector<32x128xf32>
      %cst_22 = arith.constant dense<0.000000e+00> : vector<128xf32>
      %25 = vector.multi_reduction <add>, %24, %cst_22 [0] : vector<32x128xf32> to vector<128xf32>
      %26 = vector.shape_cast %25 : vector<128xf32> to vector<1x128xf32>
      %c0_23 = arith.constant 0 : index
      %c0_24 = arith.constant 0 : index
      %c1 = arith.constant 1 : index
      %c0_25 = arith.constant 0 : index
      %27 = vector.load %arg7[%c0_23, %c0_24, %c1, %c0_25] : memref<1x1x8x128xf32, #tpu.memory_space<vmem>>, vector<1x1x1x128xf32>
      %28 = vector.shape_cast %27 : vector<1x1x1x128xf32> to vector<1x128xf32>
      %29 = vector.shape_cast %26 : vector<1x128xf32> to vector<1x1x1x128xf32>
      tpu.vector_store %arg7[%c0_23, %c0_24, %c1, %c0_25], %29 {strides = array<i32>} : memref<1x1x8x128xf32, #tpu.memory_space<vmem>>, vector<1x1x1x128xf32>,
    } else {
    }
    return
  }
  func.func @transform_0(%arg0: i32, %arg1: i32, %arg2: i32, %arg3: i32) -> (i32, i32, i32) {
    %c0_i32 = arith.constant 0 : i32
    return %arg0, %arg1, %arg3 : i32, i32, i32
  }
  func.func @transform_1(%arg0: i32, %arg1: i32, %arg2: i32, %arg3: i32) -> (i32, i32, i32) {
    %c0_i32 = arith.constant 0 : i32
    return %arg0, %arg3, %arg2 : i32, i32, i32
  }
  func.func @transform_2(%arg0: i32, %arg1: i32, %arg2: i32, %arg3: i32) -> (i32, i32, i32) {
    %c0_i32 = arith.constant 0 : i32
    return %arg0, %arg1, %arg2 : i32, i32, i32
  }
  func.func @transform_3(%arg0: i32, %arg1: i32, %arg2: i32, %arg3: i32) -> (i32, i32, i32, i32) {
    %c0_i32 = arith.constant 0 : i32
    %c0_i32_0 = arith.constant 0 : i32
    return %arg0, %arg1, %c0_i32, %arg2 : i32, i32, i32, i32
  }
}

module attributes {stable_mosaic.version = 11 : i64} {
  func.func @_affine_res_kernel(%arg0: i32, %arg1: memref<32x128xbf16, #tpu.memory_space<vmem>>, %arg2: memref<1x128xf32, #tpu.memory_space<vmem>>, %arg3: memref<1x128xf32, #tpu.memory_space<vmem>>, %arg4: memref<32x128xbf16, #tpu.memory_space<vmem>>, %arg5: memref<32x128xbf16, #tpu.memory_space<vmem>>) attributes {dimension_semantics = [#tpu.dimension_semantics<parallel>], iteration_bounds = array<i64: 1>, scalar_prefetch = 0 : i64, scratch_operands = 0 : i64, tpu.core_type = #tpu.core_type<tc>, window_params = [{transform_indices = @transform_0, window_bounds = array<i64: 32, 128>}, {pipeline_mode = #tpu.pipeline_mode<synchronous>, transform_indices = @transform_1, window_bounds = array<i64: 1, 128>}, {pipeline_mode = #tpu.pipeline_mode<synchronous>, transform_indices = @transform_2, window_bounds = array<i64: 1, 128>}, {transform_indices = @transform_3, window_bounds = array<i64: 32, 128>}, {transform_indices = @transform_4, window_bounds = array<i64: 32, 128>}]} {
    %c0 = arith.constant 0 : index
    %c0_0 = arith.constant 0 : index
    %0 = vector.load %arg1[%c0, %c0_0] : memref<32x128xbf16, #tpu.memory_space<vmem>>, vector<32x128xbf16>
    %1 = arith.extf %0 : vector<32x128xbf16> to vector<32x128xf32>
    %c0_1 = arith.constant 0 : index
    %c0_2 = arith.constant 0 : index
    %2 = vector.load %arg2[%c0_1, %c0_2] : memref<1x128xf32, #tpu.memory_space<vmem>>, vector<1x128xf32>
    %3 = vector.broadcast %2 : vector<1x128xf32> to vector<32x128xf32>
    %4 = arith.mulf %1, %3 : vector<32x128xf32>
    %c0_3 = arith.constant 0 : index
    %c0_4 = arith.constant 0 : index
    %5 = vector.load %arg3[%c0_3, %c0_4] : memref<1x128xf32, #tpu.memory_space<vmem>>, vector<1x128xf32>
    %6 = vector.broadcast %5 : vector<1x128xf32> to vector<32x128xf32>
    %7 = arith.addf %4, %6 : vector<32x128xf32>
    %c0_5 = arith.constant 0 : index
    %c0_6 = arith.constant 0 : index
    %8 = vector.load %arg4[%c0_5, %c0_6] : memref<32x128xbf16, #tpu.memory_space<vmem>>, vector<32x128xbf16>
    %9 = arith.extf %8 : vector<32x128xbf16> to vector<32x128xf32>
    %10 = arith.addf %7, %9 : vector<32x128xf32>
    %cst = arith.constant 0.000000e+00 : f32
    %11 = vector.broadcast %cst : f32 to vector<32x128xf32>
    %12 = arith.maximumf %10, %11 : vector<32x128xf32>
    %13 = arith.truncf %12 : vector<32x128xf32> to vector<32x128xbf16>
    %c0_7 = arith.constant 0 : index
    %c0_8 = arith.constant 0 : index
    %14 = vector.load %arg5[%c0_7, %c0_8] : memref<32x128xbf16, #tpu.memory_space<vmem>>, vector<32x128xbf16>
    tpu.vector_store %arg5[%c0_7, %c0_8], %13 {strides = array<i32>} : memref<32x128xbf16, #tpu.memory_space<vmem>>, vector<32x128xbf16>,
    return
  }
  func.func @transform_0(%arg0: i32) -> (i32, i32) {
    %c0_i32 = arith.constant 0 : i32
    %c0_i32_0 = arith.constant 0 : i32
    return %arg0, %c0_i32 : i32, i32
  }
  func.func @transform_1(%arg0: i32) -> (i32, i32) {
    %c0_i32 = arith.constant 0 : i32
    %c0_i32_0 = arith.constant 0 : i32
    %c0_i32_1 = arith.constant 0 : i32
    return %c0_i32, %c0_i32_0 : i32, i32
  }
  func.func @transform_2(%arg0: i32) -> (i32, i32) {
    %c0_i32 = arith.constant 0 : i32
    %c0_i32_0 = arith.constant 0 : i32
    %c0_i32_1 = arith.constant 0 : i32
    return %c0_i32, %c0_i32_0 : i32, i32
  }
  func.func @transform_3(%arg0: i32) -> (i32, i32) {
    %c0_i32 = arith.constant 0 : i32
    %c0_i32_0 = arith.constant 0 : i32
    return %arg0, %c0_i32 : i32, i32
  }
  func.func @transform_4(%arg0: i32) -> (i32, i32) {
    %c0_i32 = arith.constant 0 : i32
    %c0_i32_0 = arith.constant 0 : i32
    return %arg0, %c0_i32 : i32, i32
  }
}

module attributes {stable_mosaic.version = 11 : i64} {
  func.func @_gmm_stats_kernel(%arg0: i32, %arg1: i32, %arg2: i32, %arg3: i32, %arg4: memref<1x16x128xbf16, #tpu.memory_space<vmem>>, %arg5: memref<1x128x256xbf16, #tpu.memory_space<vmem>>, %arg6: memref<1x16x256xbf16, #tpu.memory_space<vmem>>, %arg7: memref<1x1x8x256xf32, #tpu.memory_space<vmem>>, %arg8: memref<16x256xf32, #tpu.memory_space<vmem>>) attributes {dimension_semantics = [#tpu.dimension_semantics<parallel>, #tpu.dimension_semantics<parallel>, #tpu.dimension_semantics<parallel>, #tpu.dimension_semantics<arbitrary>], iteration_bounds = array<i64: 1, 1, 1, 1>, scalar_prefetch = 0 : i64, scratch_operands = 1 : i64, tpu.core_type = #tpu.core_type<tc>, window_params = [{transform_indices = @transform_0, window_bounds = array<i64: 1, 16, 128>}, {transform_indices = @transform_1, window_bounds = array<i64: 1, 128, 256>}, {transform_indices = @transform_2, window_bounds = array<i64: 1, 16, 256>}, {transform_indices = @transform_3, window_bounds = array<i64: 1, 1, 8, 256>}]} {
    %c0_i32 = arith.constant 0 : i32
    %0 = arith.cmpi eq, %arg3, %c0_i32 : i32
    %1 = arith.extui %0 : i1 to i32
    %c0_i32_0 = arith.constant 0 : i32
    %2 = arith.cmpi ne, %1, %c0_i32_0 : i32
    scf.if %2 {
      %cst_12 = arith.constant 0.000000e+00 : f32
      %14 = vector.broadcast %cst_12 : f32 to vector<16x256xf32>
      %c0_13 = arith.constant 0 : index
      %c0_14 = arith.constant 0 : index
      %15 = vector.load %arg8[%c0_13, %c0_14] : memref<16x256xf32, #tpu.memory_space<vmem>>, vector<16x256xf32>
      tpu.vector_store %arg8[%c0_13, %c0_14], %14 {strides = array<i32>} : memref<16x256xf32, #tpu.memory_space<vmem>>, vector<16x256xf32>,
      %cst_15 = arith.constant 0.000000e+00 : f32
      %16 = vector.broadcast %cst_15 : f32 to vector<1x1x8x256xf32>
      %c0_16 = arith.constant 0 : index
      %c0_17 = arith.constant 0 : index
      %c0_18 = arith.constant 0 : index
      %c0_19 = arith.constant 0 : index
      %17 = vector.load %arg7[%c0_16, %c0_17, %c0_18, %c0_19] : memref<1x1x8x256xf32, #tpu.memory_space<vmem>>, vector<1x1x8x256xf32>
      tpu.vector_store %arg7[%c0_16, %c0_17, %c0_18, %c0_19], %16 {strides = array<i32>} : memref<1x1x8x256xf32, #tpu.memory_space<vmem>>, vector<1x1x8x256xf32>,
    } else {
    }
    %c0 = arith.constant 0 : index
    %c0_1 = arith.constant 0 : index
    %3 = vector.load %arg8[%c0, %c0_1] : memref<16x256xf32, #tpu.memory_space<vmem>>, vector<16x256xf32>
    %c0_2 = arith.constant 0 : index
    %c0_3 = arith.constant 0 : index
    %c0_4 = arith.constant 0 : index
    %4 = vector.load %arg4[%c0_2, %c0_3, %c0_4] : memref<1x16x128xbf16, #tpu.memory_space<vmem>>, vector<1x16x128xbf16>
    %5 = vector.shape_cast %4 : vector<1x16x128xbf16> to vector<16x128xbf16>
    %c0_5 = arith.constant 0 : index
    %c0_6 = arith.constant 0 : index
    %c0_7 = arith.constant 0 : index
    %6 = vector.load %arg5[%c0_5, %c0_6, %c0_7] : memref<1x128x256xbf16, #tpu.memory_space<vmem>>, vector<1x128x256xbf16>
    %7 = vector.shape_cast %6 : vector<1x128x256xbf16> to vector<128x256xbf16>
    %cst = arith.constant dense<0.000000e+00> : vector<16x256xf32>
    %8 = tpu.matmul %5, %7, %cst {dimension_numbers = #tpu.dot_dimension_numbers<[1], [0], [0], [1], [0, 0, 1, 1], [], []>} : vector<16x128xbf16>, vector<128x256xbf16>, vector<16x256xf32> -> vector<16x256xf32>
    %9 = arith.addf %3, %8 : vector<16x256xf32>
    %c0_8 = arith.constant 0 : index
    %c0_9 = arith.constant 0 : index
    %10 = vector.load %arg8[%c0_8, %c0_9] : memref<16x256xf32, #tpu.memory_space<vmem>>, vector<16x256xf32>
    tpu.vector_store %arg8[%c0_8, %c0_9], %9 {strides = array<i32>} : memref<16x256xf32, #tpu.memory_space<vmem>>, vector<16x256xf32>,
    %c0_i32_10 = arith.constant 0 : i32
    %11 = arith.cmpi eq, %arg3, %c0_i32_10 : i32
    %12 = arith.extui %11 : i1 to i32
    %c0_i32_11 = arith.constant 0 : i32
    %13 = arith.cmpi ne, %12, %c0_i32_11 : i32
    scf.if %13 {
      %c0_12 = arith.constant 0 : index
      %c0_13 = arith.constant 0 : index
      %14 = vector.load %arg8[%c0_12, %c0_13] : memref<16x256xf32, #tpu.memory_space<vmem>>, vector<16x256xf32>
      %15 = arith.truncf %14 : vector<16x256xf32> to vector<16x256xbf16>
      %c0_14 = arith.constant 0 : index
      %c0_15 = arith.constant 0 : index
      %c0_16 = arith.constant 0 : index
      %16 = vector.load %arg6[%c0_14, %c0_15, %c0_16] : memref<1x16x256xbf16, #tpu.memory_space<vmem>>, vector<1x16x256xbf16>
      %17 = vector.shape_cast %16 : vector<1x16x256xbf16> to vector<16x256xbf16>
      %18 = vector.shape_cast %15 : vector<16x256xbf16> to vector<1x16x256xbf16>
      tpu.vector_store %arg6[%c0_14, %c0_15, %c0_16], %18 {strides = array<i32>} : memref<1x16x256xbf16, #tpu.memory_space<vmem>>, vector<1x16x256xbf16>,
      %cst_17 = arith.constant dense<0.000000e+00> : vector<256xf32>
      %19 = vector.multi_reduction <add>, %14, %cst_17 [0] : vector<16x256xf32> to vector<256xf32>
      %20 = vector.shape_cast %19 : vector<256xf32> to vector<1x256xf32>
      %c0_18 = arith.constant 0 : index
      %c0_19 = arith.constant 0 : index
      %c0_20 = arith.constant 0 : index
      %c0_21 = arith.constant 0 : index
      %21 = vector.load %arg7[%c0_18, %c0_19, %c0_20, %c0_21] : memref<1x1x8x256xf32, #tpu.memory_space<vmem>>, vector<1x1x1x256xf32>
      %22 = vector.shape_cast %21 : vector<1x1x1x256xf32> to vector<1x256xf32>
      %23 = vector.shape_cast %20 : vector<1x256xf32> to vector<1x1x1x256xf32>
      tpu.vector_store %arg7[%c0_18, %c0_19, %c0_20, %c0_21], %23 {strides = array<i32>} : memref<1x1x8x256xf32, #tpu.memory_space<vmem>>, vector<1x1x1x256xf32>,
      %24 = arith.mulf %14, %14 : vector<16x256xf32>
      %cst_22 = arith.constant dense<0.000000e+00> : vector<256xf32>
      %25 = vector.multi_reduction <add>, %24, %cst_22 [0] : vector<16x256xf32> to vector<256xf32>
      %26 = vector.shape_cast %25 : vector<256xf32> to vector<1x256xf32>
      %c0_23 = arith.constant 0 : index
      %c0_24 = arith.constant 0 : index
      %c1 = arith.constant 1 : index
      %c0_25 = arith.constant 0 : index
      %27 = vector.load %arg7[%c0_23, %c0_24, %c1, %c0_25] : memref<1x1x8x256xf32, #tpu.memory_space<vmem>>, vector<1x1x1x256xf32>
      %28 = vector.shape_cast %27 : vector<1x1x1x256xf32> to vector<1x256xf32>
      %29 = vector.shape_cast %26 : vector<1x256xf32> to vector<1x1x1x256xf32>
      tpu.vector_store %arg7[%c0_23, %c0_24, %c1, %c0_25], %29 {strides = array<i32>} : memref<1x1x8x256xf32, #tpu.memory_space<vmem>>, vector<1x1x1x256xf32>,
    } else {
    }
    return
  }
  func.func @transform_0(%arg0: i32, %arg1: i32, %arg2: i32, %arg3: i32) -> (i32, i32, i32) {
    %c0_i32 = arith.constant 0 : i32
    return %arg0, %arg1, %arg3 : i32, i32, i32
  }
  func.func @transform_1(%arg0: i32, %arg1: i32, %arg2: i32, %arg3: i32) -> (i32, i32, i32) {
    %c0_i32 = arith.constant 0 : i32
    return %arg0, %arg3, %arg2 : i32, i32, i32
  }
  func.func @transform_2(%arg0: i32, %arg1: i32, %arg2: i32, %arg3: i32) -> (i32, i32, i32) {
    %c0_i32 = arith.constant 0 : i32
    return %arg0, %arg1, %arg2 : i32, i32, i32
  }
  func.func @transform_3(%arg0: i32, %arg1: i32, %arg2: i32, %arg3: i32) -> (i32, i32, i32, i32) {
    %c0_i32 = arith.constant 0 : i32
    %c0_i32_0 = arith.constant 0 : i32
    return %arg0, %arg1, %c0_i32, %arg2 : i32, i32, i32, i32
  }
}

module attributes {stable_mosaic.version = 11 : i64} {
  func.func @_affine_kernel(%arg0: i32, %arg1: memref<16x256xbf16, #tpu.memory_space<vmem>>, %arg2: memref<1x256xf32, #tpu.memory_space<vmem>>, %arg3: memref<1x256xf32, #tpu.memory_space<vmem>>, %arg4: memref<16x256xbf16, #tpu.memory_space<vmem>>) attributes {dimension_semantics = [#tpu.dimension_semantics<parallel>], iteration_bounds = array<i64: 1>, scalar_prefetch = 0 : i64, scratch_operands = 0 : i64, tpu.core_type = #tpu.core_type<tc>, window_params = [{transform_indices = @transform_0, window_bounds = array<i64: 16, 256>}, {pipeline_mode = #tpu.pipeline_mode<synchronous>, transform_indices = @transform_1, window_bounds = array<i64: 1, 256>}, {pipeline_mode = #tpu.pipeline_mode<synchronous>, transform_indices = @transform_2, window_bounds = array<i64: 1, 256>}, {transform_indices = @transform_3, window_bounds = array<i64: 16, 256>}]} {
    %c0 = arith.constant 0 : index
    %c0_0 = arith.constant 0 : index
    %0 = vector.load %arg1[%c0, %c0_0] : memref<16x256xbf16, #tpu.memory_space<vmem>>, vector<16x256xbf16>
    %1 = arith.extf %0 : vector<16x256xbf16> to vector<16x256xf32>
    %c0_1 = arith.constant 0 : index
    %c0_2 = arith.constant 0 : index
    %2 = vector.load %arg2[%c0_1, %c0_2] : memref<1x256xf32, #tpu.memory_space<vmem>>, vector<1x256xf32>
    %3 = vector.broadcast %2 : vector<1x256xf32> to vector<16x256xf32>
    %4 = arith.mulf %1, %3 : vector<16x256xf32>
    %c0_3 = arith.constant 0 : index
    %c0_4 = arith.constant 0 : index
    %5 = vector.load %arg3[%c0_3, %c0_4] : memref<1x256xf32, #tpu.memory_space<vmem>>, vector<1x256xf32>
    %6 = vector.broadcast %5 : vector<1x256xf32> to vector<16x256xf32>
    %7 = arith.addf %4, %6 : vector<16x256xf32>
    %8 = arith.truncf %7 : vector<16x256xf32> to vector<16x256xbf16>
    %c0_5 = arith.constant 0 : index
    %c0_6 = arith.constant 0 : index
    %9 = vector.load %arg4[%c0_5, %c0_6] : memref<16x256xbf16, #tpu.memory_space<vmem>>, vector<16x256xbf16>
    tpu.vector_store %arg4[%c0_5, %c0_6], %8 {strides = array<i32>} : memref<16x256xbf16, #tpu.memory_space<vmem>>, vector<16x256xbf16>,
    return
  }
  func.func @transform_0(%arg0: i32) -> (i32, i32) {
    %c0_i32 = arith.constant 0 : i32
    %c0_i32_0 = arith.constant 0 : i32
    return %arg0, %c0_i32 : i32, i32
  }
  func.func @transform_1(%arg0: i32) -> (i32, i32) {
    %c0_i32 = arith.constant 0 : i32
    %c0_i32_0 = arith.constant 0 : i32
    %c0_i32_1 = arith.constant 0 : i32
    return %c0_i32, %c0_i32_0 : i32, i32
  }
  func.func @transform_2(%arg0: i32) -> (i32, i32) {
    %c0_i32 = arith.constant 0 : i32
    %c0_i32_0 = arith.constant 0 : i32
    %c0_i32_1 = arith.constant 0 : i32
    return %c0_i32, %c0_i32_0 : i32, i32
  }
  func.func @transform_3(%arg0: i32) -> (i32, i32) {
    %c0_i32 = arith.constant 0 : i32
    %c0_i32_0 = arith.constant 0 : i32
    return %arg0, %c0_i32 : i32, i32
  }
}

module attributes {stable_mosaic.version = 11 : i64} {
  func.func @_gmm_stats_kernel(%arg0: i32, %arg1: i32, %arg2: i32, %arg3: i32, %arg4: memref<1x16x128xbf16, #tpu.memory_space<vmem>>, %arg5: memref<1x128x128xbf16, #tpu.memory_space<vmem>>, %arg6: memref<1x16x128xbf16, #tpu.memory_space<vmem>>, %arg7: memref<1x1x8x128xf32, #tpu.memory_space<vmem>>, %arg8: memref<16x128xf32, #tpu.memory_space<vmem>>) attributes {dimension_semantics = [#tpu.dimension_semantics<parallel>, #tpu.dimension_semantics<parallel>, #tpu.dimension_semantics<parallel>, #tpu.dimension_semantics<arbitrary>], iteration_bounds = array<i64: 4, 1, 1, 1>, scalar_prefetch = 0 : i64, scratch_operands = 1 : i64, tpu.core_type = #tpu.core_type<tc>, window_params = [{transform_indices = @transform_0, window_bounds = array<i64: 1, 16, 128>}, {transform_indices = @transform_1, window_bounds = array<i64: 1, 128, 128>}, {transform_indices = @transform_2, window_bounds = array<i64: 1, 16, 128>}, {transform_indices = @transform_3, window_bounds = array<i64: 1, 1, 8, 128>}]} {
    %c0_i32 = arith.constant 0 : i32
    %0 = arith.cmpi eq, %arg3, %c0_i32 : i32
    %1 = arith.extui %0 : i1 to i32
    %c0_i32_0 = arith.constant 0 : i32
    %2 = arith.cmpi ne, %1, %c0_i32_0 : i32
    scf.if %2 {
      %cst_12 = arith.constant 0.000000e+00 : f32
      %14 = vector.broadcast %cst_12 : f32 to vector<16x128xf32>
      %c0_13 = arith.constant 0 : index
      %c0_14 = arith.constant 0 : index
      %15 = vector.load %arg8[%c0_13, %c0_14] : memref<16x128xf32, #tpu.memory_space<vmem>>, vector<16x128xf32>
      tpu.vector_store %arg8[%c0_13, %c0_14], %14 {strides = array<i32>} : memref<16x128xf32, #tpu.memory_space<vmem>>, vector<16x128xf32>,
      %cst_15 = arith.constant 0.000000e+00 : f32
      %16 = vector.broadcast %cst_15 : f32 to vector<1x1x8x128xf32>
      %c0_16 = arith.constant 0 : index
      %c0_17 = arith.constant 0 : index
      %c0_18 = arith.constant 0 : index
      %c0_19 = arith.constant 0 : index
      %17 = vector.load %arg7[%c0_16, %c0_17, %c0_18, %c0_19] : memref<1x1x8x128xf32, #tpu.memory_space<vmem>>, vector<1x1x8x128xf32>
      tpu.vector_store %arg7[%c0_16, %c0_17, %c0_18, %c0_19], %16 {strides = array<i32>} : memref<1x1x8x128xf32, #tpu.memory_space<vmem>>, vector<1x1x8x128xf32>,
    } else {
    }
    %c0 = arith.constant 0 : index
    %c0_1 = arith.constant 0 : index
    %3 = vector.load %arg8[%c0, %c0_1] : memref<16x128xf32, #tpu.memory_space<vmem>>, vector<16x128xf32>
    %c0_2 = arith.constant 0 : index
    %c0_3 = arith.constant 0 : index
    %c0_4 = arith.constant 0 : index
    %4 = vector.load %arg4[%c0_2, %c0_3, %c0_4] : memref<1x16x128xbf16, #tpu.memory_space<vmem>>, vector<1x16x128xbf16>
    %5 = vector.shape_cast %4 : vector<1x16x128xbf16> to vector<16x128xbf16>
    %c0_5 = arith.constant 0 : index
    %c0_6 = arith.constant 0 : index
    %c0_7 = arith.constant 0 : index
    %6 = vector.load %arg5[%c0_5, %c0_6, %c0_7] : memref<1x128x128xbf16, #tpu.memory_space<vmem>>, vector<1x128x128xbf16>
    %7 = vector.shape_cast %6 : vector<1x128x128xbf16> to vector<128x128xbf16>
    %cst = arith.constant dense<0.000000e+00> : vector<16x128xf32>
    %8 = tpu.matmul %5, %7, %cst {dimension_numbers = #tpu.dot_dimension_numbers<[1], [0], [0], [1], [0, 0, 1, 1], [], []>} : vector<16x128xbf16>, vector<128x128xbf16>, vector<16x128xf32> -> vector<16x128xf32>
    %9 = arith.addf %3, %8 : vector<16x128xf32>
    %c0_8 = arith.constant 0 : index
    %c0_9 = arith.constant 0 : index
    %10 = vector.load %arg8[%c0_8, %c0_9] : memref<16x128xf32, #tpu.memory_space<vmem>>, vector<16x128xf32>
    tpu.vector_store %arg8[%c0_8, %c0_9], %9 {strides = array<i32>} : memref<16x128xf32, #tpu.memory_space<vmem>>, vector<16x128xf32>,
    %c0_i32_10 = arith.constant 0 : i32
    %11 = arith.cmpi eq, %arg3, %c0_i32_10 : i32
    %12 = arith.extui %11 : i1 to i32
    %c0_i32_11 = arith.constant 0 : i32
    %13 = arith.cmpi ne, %12, %c0_i32_11 : i32
    scf.if %13 {
      %c0_12 = arith.constant 0 : index
      %c0_13 = arith.constant 0 : index
      %14 = vector.load %arg8[%c0_12, %c0_13] : memref<16x128xf32, #tpu.memory_space<vmem>>, vector<16x128xf32>
      %15 = arith.truncf %14 : vector<16x128xf32> to vector<16x128xbf16>
      %c0_14 = arith.constant 0 : index
      %c0_15 = arith.constant 0 : index
      %c0_16 = arith.constant 0 : index
      %16 = vector.load %arg6[%c0_14, %c0_15, %c0_16] : memref<1x16x128xbf16, #tpu.memory_space<vmem>>, vector<1x16x128xbf16>
      %17 = vector.shape_cast %16 : vector<1x16x128xbf16> to vector<16x128xbf16>
      %18 = vector.shape_cast %15 : vector<16x128xbf16> to vector<1x16x128xbf16>
      tpu.vector_store %arg6[%c0_14, %c0_15, %c0_16], %18 {strides = array<i32>} : memref<1x16x128xbf16, #tpu.memory_space<vmem>>, vector<1x16x128xbf16>,
      %cst_17 = arith.constant dense<0.000000e+00> : vector<128xf32>
      %19 = vector.multi_reduction <add>, %14, %cst_17 [0] : vector<16x128xf32> to vector<128xf32>
      %20 = vector.shape_cast %19 : vector<128xf32> to vector<1x128xf32>
      %c0_18 = arith.constant 0 : index
      %c0_19 = arith.constant 0 : index
      %c0_20 = arith.constant 0 : index
      %c0_21 = arith.constant 0 : index
      %21 = vector.load %arg7[%c0_18, %c0_19, %c0_20, %c0_21] : memref<1x1x8x128xf32, #tpu.memory_space<vmem>>, vector<1x1x1x128xf32>
      %22 = vector.shape_cast %21 : vector<1x1x1x128xf32> to vector<1x128xf32>
      %23 = vector.shape_cast %20 : vector<1x128xf32> to vector<1x1x1x128xf32>
      tpu.vector_store %arg7[%c0_18, %c0_19, %c0_20, %c0_21], %23 {strides = array<i32>} : memref<1x1x8x128xf32, #tpu.memory_space<vmem>>, vector<1x1x1x128xf32>,
      %24 = arith.mulf %14, %14 : vector<16x128xf32>
      %cst_22 = arith.constant dense<0.000000e+00> : vector<128xf32>
      %25 = vector.multi_reduction <add>, %24, %cst_22 [0] : vector<16x128xf32> to vector<128xf32>
      %26 = vector.shape_cast %25 : vector<128xf32> to vector<1x128xf32>
      %c0_23 = arith.constant 0 : index
      %c0_24 = arith.constant 0 : index
      %c1 = arith.constant 1 : index
      %c0_25 = arith.constant 0 : index
      %27 = vector.load %arg7[%c0_23, %c0_24, %c1, %c0_25] : memref<1x1x8x128xf32, #tpu.memory_space<vmem>>, vector<1x1x1x128xf32>
      %28 = vector.shape_cast %27 : vector<1x1x1x128xf32> to vector<1x128xf32>
      %29 = vector.shape_cast %26 : vector<1x128xf32> to vector<1x1x1x128xf32>
      tpu.vector_store %arg7[%c0_23, %c0_24, %c1, %c0_25], %29 {strides = array<i32>} : memref<1x1x8x128xf32, #tpu.memory_space<vmem>>, vector<1x1x1x128xf32>,
    } else {
    }
    return
  }
  func.func @transform_0(%arg0: i32, %arg1: i32, %arg2: i32, %arg3: i32) -> (i32, i32, i32) {
    %c0_i32 = arith.constant 0 : i32
    return %arg0, %arg1, %arg3 : i32, i32, i32
  }
  func.func @transform_1(%arg0: i32, %arg1: i32, %arg2: i32, %arg3: i32) -> (i32, i32, i32) {
    %c0_i32 = arith.constant 0 : i32
    return %arg0, %arg3, %arg2 : i32, i32, i32
  }
  func.func @transform_2(%arg0: i32, %arg1: i32, %arg2: i32, %arg3: i32) -> (i32, i32, i32) {
    %c0_i32 = arith.constant 0 : i32
    return %arg0, %arg1, %arg2 : i32, i32, i32
  }
  func.func @transform_3(%arg0: i32, %arg1: i32, %arg2: i32, %arg3: i32) -> (i32, i32, i32, i32) {
    %c0_i32 = arith.constant 0 : i32
    %c0_i32_0 = arith.constant 0 : i32
    return %arg0, %arg1, %c0_i32, %arg2 : i32, i32, i32, i32
  }
}

module attributes {stable_mosaic.version = 11 : i64} {
  func.func @_affine_res_kernel(%arg0: i32, %arg1: memref<16x256xbf16, #tpu.memory_space<vmem>>, %arg2: memref<1x256xf32, #tpu.memory_space<vmem>>, %arg3: memref<1x256xf32, #tpu.memory_space<vmem>>, %arg4: memref<16x256xbf16, #tpu.memory_space<vmem>>, %arg5: memref<16x256xbf16, #tpu.memory_space<vmem>>) attributes {dimension_semantics = [#tpu.dimension_semantics<parallel>], iteration_bounds = array<i64: 1>, scalar_prefetch = 0 : i64, scratch_operands = 0 : i64, tpu.core_type = #tpu.core_type<tc>, window_params = [{transform_indices = @transform_0, window_bounds = array<i64: 16, 256>}, {pipeline_mode = #tpu.pipeline_mode<synchronous>, transform_indices = @transform_1, window_bounds = array<i64: 1, 256>}, {pipeline_mode = #tpu.pipeline_mode<synchronous>, transform_indices = @transform_2, window_bounds = array<i64: 1, 256>}, {transform_indices = @transform_3, window_bounds = array<i64: 16, 256>}, {transform_indices = @transform_4, window_bounds = array<i64: 16, 256>}]} {
    %c0 = arith.constant 0 : index
    %c0_0 = arith.constant 0 : index
    %0 = vector.load %arg1[%c0, %c0_0] : memref<16x256xbf16, #tpu.memory_space<vmem>>, vector<16x256xbf16>
    %1 = arith.extf %0 : vector<16x256xbf16> to vector<16x256xf32>
    %c0_1 = arith.constant 0 : index
    %c0_2 = arith.constant 0 : index
    %2 = vector.load %arg2[%c0_1, %c0_2] : memref<1x256xf32, #tpu.memory_space<vmem>>, vector<1x256xf32>
    %3 = vector.broadcast %2 : vector<1x256xf32> to vector<16x256xf32>
    %4 = arith.mulf %1, %3 : vector<16x256xf32>
    %c0_3 = arith.constant 0 : index
    %c0_4 = arith.constant 0 : index
    %5 = vector.load %arg3[%c0_3, %c0_4] : memref<1x256xf32, #tpu.memory_space<vmem>>, vector<1x256xf32>
    %6 = vector.broadcast %5 : vector<1x256xf32> to vector<16x256xf32>
    %7 = arith.addf %4, %6 : vector<16x256xf32>
    %c0_5 = arith.constant 0 : index
    %c0_6 = arith.constant 0 : index
    %8 = vector.load %arg4[%c0_5, %c0_6] : memref<16x256xbf16, #tpu.memory_space<vmem>>, vector<16x256xbf16>
    %9 = arith.extf %8 : vector<16x256xbf16> to vector<16x256xf32>
    %10 = arith.addf %7, %9 : vector<16x256xf32>
    %cst = arith.constant 0.000000e+00 : f32
    %11 = vector.broadcast %cst : f32 to vector<16x256xf32>
    %12 = arith.maximumf %10, %11 : vector<16x256xf32>
    %13 = arith.truncf %12 : vector<16x256xf32> to vector<16x256xbf16>
    %c0_7 = arith.constant 0 : index
    %c0_8 = arith.constant 0 : index
    %14 = vector.load %arg5[%c0_7, %c0_8] : memref<16x256xbf16, #tpu.memory_space<vmem>>, vector<16x256xbf16>
    tpu.vector_store %arg5[%c0_7, %c0_8], %13 {strides = array<i32>} : memref<16x256xbf16, #tpu.memory_space<vmem>>, vector<16x256xbf16>,
    return
  }
  func.func @transform_0(%arg0: i32) -> (i32, i32) {
    %c0_i32 = arith.constant 0 : i32
    %c0_i32_0 = arith.constant 0 : i32
    return %arg0, %c0_i32 : i32, i32
  }
  func.func @transform_1(%arg0: i32) -> (i32, i32) {
    %c0_i32 = arith.constant 0 : i32
    %c0_i32_0 = arith.constant 0 : i32
    %c0_i32_1 = arith.constant 0 : i32
    return %c0_i32, %c0_i32_0 : i32, i32
  }
  func.func @transform_2(%arg0: i32) -> (i32, i32) {
    %c0_i32 = arith.constant 0 : i32
    %c0_i32_0 = arith.constant 0 : i32
    %c0_i32_1 = arith.constant 0 : i32
    return %c0_i32, %c0_i32_0 : i32, i32
  }
  func.func @transform_3(%arg0: i32) -> (i32, i32) {
    %c0_i32 = arith.constant 0 : i32
    %c0_i32_0 = arith.constant 0 : i32
    return %arg0, %c0_i32 : i32, i32
  }
  func.func @transform_4(%arg0: i32) -> (i32, i32) {
    %c0_i32 = arith.constant 0 : i32
    %c0_i32_0 = arith.constant 0 : i32
    return %arg0, %c0_i32 : i32, i32
  }
}

module attributes {stable_mosaic.version = 11 : i64} {
  func.func @_affine_kernel(%arg0: i32, %arg1: memref<16x512xbf16, #tpu.memory_space<vmem>>, %arg2: memref<1x512xf32, #tpu.memory_space<vmem>>, %arg3: memref<1x512xf32, #tpu.memory_space<vmem>>, %arg4: memref<16x512xbf16, #tpu.memory_space<vmem>>) attributes {dimension_semantics = [#tpu.dimension_semantics<parallel>], iteration_bounds = array<i64: 1>, scalar_prefetch = 0 : i64, scratch_operands = 0 : i64, tpu.core_type = #tpu.core_type<tc>, window_params = [{transform_indices = @transform_0, window_bounds = array<i64: 16, 512>}, {pipeline_mode = #tpu.pipeline_mode<synchronous>, transform_indices = @transform_1, window_bounds = array<i64: 1, 512>}, {pipeline_mode = #tpu.pipeline_mode<synchronous>, transform_indices = @transform_2, window_bounds = array<i64: 1, 512>}, {transform_indices = @transform_3, window_bounds = array<i64: 16, 512>}]} {
    %c0 = arith.constant 0 : index
    %c0_0 = arith.constant 0 : index
    %0 = vector.load %arg1[%c0, %c0_0] : memref<16x512xbf16, #tpu.memory_space<vmem>>, vector<16x512xbf16>
    %1 = arith.extf %0 : vector<16x512xbf16> to vector<16x512xf32>
    %c0_1 = arith.constant 0 : index
    %c0_2 = arith.constant 0 : index
    %2 = vector.load %arg2[%c0_1, %c0_2] : memref<1x512xf32, #tpu.memory_space<vmem>>, vector<1x512xf32>
    %3 = vector.broadcast %2 : vector<1x512xf32> to vector<16x512xf32>
    %4 = arith.mulf %1, %3 : vector<16x512xf32>
    %c0_3 = arith.constant 0 : index
    %c0_4 = arith.constant 0 : index
    %5 = vector.load %arg3[%c0_3, %c0_4] : memref<1x512xf32, #tpu.memory_space<vmem>>, vector<1x512xf32>
    %6 = vector.broadcast %5 : vector<1x512xf32> to vector<16x512xf32>
    %7 = arith.addf %4, %6 : vector<16x512xf32>
    %8 = arith.truncf %7 : vector<16x512xf32> to vector<16x512xbf16>
    %c0_5 = arith.constant 0 : index
    %c0_6 = arith.constant 0 : index
    %9 = vector.load %arg4[%c0_5, %c0_6] : memref<16x512xbf16, #tpu.memory_space<vmem>>, vector<16x512xbf16>
    tpu.vector_store %arg4[%c0_5, %c0_6], %8 {strides = array<i32>} : memref<16x512xbf16, #tpu.memory_space<vmem>>, vector<16x512xbf16>,
    return
  }
  func.func @transform_0(%arg0: i32) -> (i32, i32) {
    %c0_i32 = arith.constant 0 : i32
    %c0_i32_0 = arith.constant 0 : i32
    return %arg0, %c0_i32 : i32, i32
  }
  func.func @transform_1(%arg0: i32) -> (i32, i32) {
    %c0_i32 = arith.constant 0 : i32
    %c0_i32_0 = arith.constant 0 : i32
    %c0_i32_1 = arith.constant 0 : i32
    return %c0_i32, %c0_i32_0 : i32, i32
  }
  func.func @transform_2(%arg0: i32) -> (i32, i32) {
    %c0_i32 = arith.constant 0 : i32
    %c0_i32_0 = arith.constant 0 : i32
    %c0_i32_1 = arith.constant 0 : i32
    return %c0_i32, %c0_i32_0 : i32, i32
  }
  func.func @transform_3(%arg0: i32) -> (i32, i32) {
    %c0_i32 = arith.constant 0 : i32
    %c0_i32_0 = arith.constant 0 : i32
    return %arg0, %c0_i32 : i32, i32
  }
}

module attributes {stable_mosaic.version = 11 : i64} {
  func.func @_gmm_stats_kernel(%arg0: i32, %arg1: i32, %arg2: i32, %arg3: i32, %arg4: memref<1x16x256xbf16, #tpu.memory_space<vmem>>, %arg5: memref<1x256x256xbf16, #tpu.memory_space<vmem>>, %arg6: memref<1x16x256xbf16, #tpu.memory_space<vmem>>, %arg7: memref<1x1x8x256xf32, #tpu.memory_space<vmem>>, %arg8: memref<16x256xf32, #tpu.memory_space<vmem>>) attributes {dimension_semantics = [#tpu.dimension_semantics<parallel>, #tpu.dimension_semantics<parallel>, #tpu.dimension_semantics<parallel>, #tpu.dimension_semantics<arbitrary>], iteration_bounds = array<i64: 1, 1, 2, 1>, scalar_prefetch = 0 : i64, scratch_operands = 1 : i64, tpu.core_type = #tpu.core_type<tc>, window_params = [{transform_indices = @transform_0, window_bounds = array<i64: 1, 16, 256>}, {transform_indices = @transform_1, window_bounds = array<i64: 1, 256, 256>}, {transform_indices = @transform_2, window_bounds = array<i64: 1, 16, 256>}, {transform_indices = @transform_3, window_bounds = array<i64: 1, 1, 8, 256>}]} {
    %c0_i32 = arith.constant 0 : i32
    %0 = arith.cmpi eq, %arg3, %c0_i32 : i32
    %1 = arith.extui %0 : i1 to i32
    %c0_i32_0 = arith.constant 0 : i32
    %2 = arith.cmpi ne, %1, %c0_i32_0 : i32
    scf.if %2 {
      %cst_12 = arith.constant 0.000000e+00 : f32
      %14 = vector.broadcast %cst_12 : f32 to vector<16x256xf32>
      %c0_13 = arith.constant 0 : index
      %c0_14 = arith.constant 0 : index
      %15 = vector.load %arg8[%c0_13, %c0_14] : memref<16x256xf32, #tpu.memory_space<vmem>>, vector<16x256xf32>
      tpu.vector_store %arg8[%c0_13, %c0_14], %14 {strides = array<i32>} : memref<16x256xf32, #tpu.memory_space<vmem>>, vector<16x256xf32>,
      %cst_15 = arith.constant 0.000000e+00 : f32
      %16 = vector.broadcast %cst_15 : f32 to vector<1x1x8x256xf32>
      %c0_16 = arith.constant 0 : index
      %c0_17 = arith.constant 0 : index
      %c0_18 = arith.constant 0 : index
      %c0_19 = arith.constant 0 : index
      %17 = vector.load %arg7[%c0_16, %c0_17, %c0_18, %c0_19] : memref<1x1x8x256xf32, #tpu.memory_space<vmem>>, vector<1x1x8x256xf32>
      tpu.vector_store %arg7[%c0_16, %c0_17, %c0_18, %c0_19], %16 {strides = array<i32>} : memref<1x1x8x256xf32, #tpu.memory_space<vmem>>, vector<1x1x8x256xf32>,
    } else {
    }
    %c0 = arith.constant 0 : index
    %c0_1 = arith.constant 0 : index
    %3 = vector.load %arg8[%c0, %c0_1] : memref<16x256xf32, #tpu.memory_space<vmem>>, vector<16x256xf32>
    %c0_2 = arith.constant 0 : index
    %c0_3 = arith.constant 0 : index
    %c0_4 = arith.constant 0 : index
    %4 = vector.load %arg4[%c0_2, %c0_3, %c0_4] : memref<1x16x256xbf16, #tpu.memory_space<vmem>>, vector<1x16x256xbf16>
    %5 = vector.shape_cast %4 : vector<1x16x256xbf16> to vector<16x256xbf16>
    %c0_5 = arith.constant 0 : index
    %c0_6 = arith.constant 0 : index
    %c0_7 = arith.constant 0 : index
    %6 = vector.load %arg5[%c0_5, %c0_6, %c0_7] : memref<1x256x256xbf16, #tpu.memory_space<vmem>>, vector<1x256x256xbf16>
    %7 = vector.shape_cast %6 : vector<1x256x256xbf16> to vector<256x256xbf16>
    %cst = arith.constant dense<0.000000e+00> : vector<16x256xf32>
    %8 = tpu.matmul %5, %7, %cst {dimension_numbers = #tpu.dot_dimension_numbers<[1], [0], [0], [1], [0, 0, 1, 1], [], []>} : vector<16x256xbf16>, vector<256x256xbf16>, vector<16x256xf32> -> vector<16x256xf32>
    %9 = arith.addf %3, %8 : vector<16x256xf32>
    %c0_8 = arith.constant 0 : index
    %c0_9 = arith.constant 0 : index
    %10 = vector.load %arg8[%c0_8, %c0_9] : memref<16x256xf32, #tpu.memory_space<vmem>>, vector<16x256xf32>
    tpu.vector_store %arg8[%c0_8, %c0_9], %9 {strides = array<i32>} : memref<16x256xf32, #tpu.memory_space<vmem>>, vector<16x256xf32>,
    %c0_i32_10 = arith.constant 0 : i32
    %11 = arith.cmpi eq, %arg3, %c0_i32_10 : i32
    %12 = arith.extui %11 : i1 to i32
    %c0_i32_11 = arith.constant 0 : i32
    %13 = arith.cmpi ne, %12, %c0_i32_11 : i32
    scf.if %13 {
      %c0_12 = arith.constant 0 : index
      %c0_13 = arith.constant 0 : index
      %14 = vector.load %arg8[%c0_12, %c0_13] : memref<16x256xf32, #tpu.memory_space<vmem>>, vector<16x256xf32>
      %15 = arith.truncf %14 : vector<16x256xf32> to vector<16x256xbf16>
      %c0_14 = arith.constant 0 : index
      %c0_15 = arith.constant 0 : index
      %c0_16 = arith.constant 0 : index
      %16 = vector.load %arg6[%c0_14, %c0_15, %c0_16] : memref<1x16x256xbf16, #tpu.memory_space<vmem>>, vector<1x16x256xbf16>
      %17 = vector.shape_cast %16 : vector<1x16x256xbf16> to vector<16x256xbf16>
      %18 = vector.shape_cast %15 : vector<16x256xbf16> to vector<1x16x256xbf16>
      tpu.vector_store %arg6[%c0_14, %c0_15, %c0_16], %18 {strides = array<i32>} : memref<1x16x256xbf16, #tpu.memory_space<vmem>>, vector<1x16x256xbf16>,
      %cst_17 = arith.constant dense<0.000000e+00> : vector<256xf32>
      %19 = vector.multi_reduction <add>, %14, %cst_17 [0] : vector<16x256xf32> to vector<256xf32>
      %20 = vector.shape_cast %19 : vector<256xf32> to vector<1x256xf32>
      %c0_18 = arith.constant 0 : index
      %c0_19 = arith.constant 0 : index
      %c0_20 = arith.constant 0 : index
      %c0_21 = arith.constant 0 : index
      %21 = vector.load %arg7[%c0_18, %c0_19, %c0_20, %c0_21] : memref<1x1x8x256xf32, #tpu.memory_space<vmem>>, vector<1x1x1x256xf32>
      %22 = vector.shape_cast %21 : vector<1x1x1x256xf32> to vector<1x256xf32>
      %23 = vector.shape_cast %20 : vector<1x256xf32> to vector<1x1x1x256xf32>
      tpu.vector_store %arg7[%c0_18, %c0_19, %c0_20, %c0_21], %23 {strides = array<i32>} : memref<1x1x8x256xf32, #tpu.memory_space<vmem>>, vector<1x1x1x256xf32>,
      %24 = arith.mulf %14, %14 : vector<16x256xf32>
      %cst_22 = arith.constant dense<0.000000e+00> : vector<256xf32>
      %25 = vector.multi_reduction <add>, %24, %cst_22 [0] : vector<16x256xf32> to vector<256xf32>
      %26 = vector.shape_cast %25 : vector<256xf32> to vector<1x256xf32>
      %c0_23 = arith.constant 0 : index
      %c0_24 = arith.constant 0 : index
      %c1 = arith.constant 1 : index
      %c0_25 = arith.constant 0 : index
      %27 = vector.load %arg7[%c0_23, %c0_24, %c1, %c0_25] : memref<1x1x8x256xf32, #tpu.memory_space<vmem>>, vector<1x1x1x256xf32>
      %28 = vector.shape_cast %27 : vector<1x1x1x256xf32> to vector<1x256xf32>
      %29 = vector.shape_cast %26 : vector<1x256xf32> to vector<1x1x1x256xf32>
      tpu.vector_store %arg7[%c0_23, %c0_24, %c1, %c0_25], %29 {strides = array<i32>} : memref<1x1x8x256xf32, #tpu.memory_space<vmem>>, vector<1x1x1x256xf32>,
    } else {
    }
    return
  }
  func.func @transform_0(%arg0: i32, %arg1: i32, %arg2: i32, %arg3: i32) -> (i32, i32, i32) {
    %c0_i32 = arith.constant 0 : i32
    return %arg0, %arg1, %arg3 : i32, i32, i32
  }
  func.func @transform_1(%arg0: i32, %arg1: i32, %arg2: i32, %arg3: i32) -> (i32, i32, i32) {
    %c0_i32 = arith.constant 0 : i32
    return %arg0, %arg3, %arg2 : i32, i32, i32
  }
  func.func @transform_2(%arg0: i32, %arg1: i32, %arg2: i32, %arg3: i32) -> (i32, i32, i32) {
    %c0_i32 = arith.constant 0 : i32
    return %arg0, %arg1, %arg2 : i32, i32, i32
  }
  func.func @transform_3(%arg0: i32, %arg1: i32, %arg2: i32, %arg3: i32) -> (i32, i32, i32, i32) {
    %c0_i32 = arith.constant 0 : i32
    %c0_i32_0 = arith.constant 0 : i32
    return %arg0, %arg1, %c0_i32, %arg2 : i32, i32, i32, i32
  }
}

module attributes {stable_mosaic.version = 11 : i64} {
  func.func @_gmm_stats_kernel(%arg0: i32, %arg1: i32, %arg2: i32, %arg3: i32, %arg4: memref<1x16x256xbf16, #tpu.memory_space<vmem>>, %arg5: memref<1x256x128xbf16, #tpu.memory_space<vmem>>, %arg6: memref<1x16x128xbf16, #tpu.memory_space<vmem>>, %arg7: memref<1x1x8x128xf32, #tpu.memory_space<vmem>>, %arg8: memref<16x128xf32, #tpu.memory_space<vmem>>) attributes {dimension_semantics = [#tpu.dimension_semantics<parallel>, #tpu.dimension_semantics<parallel>, #tpu.dimension_semantics<parallel>, #tpu.dimension_semantics<arbitrary>], iteration_bounds = array<i64: 1, 1, 1, 1>, scalar_prefetch = 0 : i64, scratch_operands = 1 : i64, tpu.core_type = #tpu.core_type<tc>, window_params = [{transform_indices = @transform_0, window_bounds = array<i64: 1, 16, 256>}, {transform_indices = @transform_1, window_bounds = array<i64: 1, 256, 128>}, {transform_indices = @transform_2, window_bounds = array<i64: 1, 16, 128>}, {transform_indices = @transform_3, window_bounds = array<i64: 1, 1, 8, 128>}]} {
    %c0_i32 = arith.constant 0 : i32
    %0 = arith.cmpi eq, %arg3, %c0_i32 : i32
    %1 = arith.extui %0 : i1 to i32
    %c0_i32_0 = arith.constant 0 : i32
    %2 = arith.cmpi ne, %1, %c0_i32_0 : i32
    scf.if %2 {
      %cst_12 = arith.constant 0.000000e+00 : f32
      %14 = vector.broadcast %cst_12 : f32 to vector<16x128xf32>
      %c0_13 = arith.constant 0 : index
      %c0_14 = arith.constant 0 : index
      %15 = vector.load %arg8[%c0_13, %c0_14] : memref<16x128xf32, #tpu.memory_space<vmem>>, vector<16x128xf32>
      tpu.vector_store %arg8[%c0_13, %c0_14], %14 {strides = array<i32>} : memref<16x128xf32, #tpu.memory_space<vmem>>, vector<16x128xf32>,
      %cst_15 = arith.constant 0.000000e+00 : f32
      %16 = vector.broadcast %cst_15 : f32 to vector<1x1x8x128xf32>
      %c0_16 = arith.constant 0 : index
      %c0_17 = arith.constant 0 : index
      %c0_18 = arith.constant 0 : index
      %c0_19 = arith.constant 0 : index
      %17 = vector.load %arg7[%c0_16, %c0_17, %c0_18, %c0_19] : memref<1x1x8x128xf32, #tpu.memory_space<vmem>>, vector<1x1x8x128xf32>
      tpu.vector_store %arg7[%c0_16, %c0_17, %c0_18, %c0_19], %16 {strides = array<i32>} : memref<1x1x8x128xf32, #tpu.memory_space<vmem>>, vector<1x1x8x128xf32>,
    } else {
    }
    %c0 = arith.constant 0 : index
    %c0_1 = arith.constant 0 : index
    %3 = vector.load %arg8[%c0, %c0_1] : memref<16x128xf32, #tpu.memory_space<vmem>>, vector<16x128xf32>
    %c0_2 = arith.constant 0 : index
    %c0_3 = arith.constant 0 : index
    %c0_4 = arith.constant 0 : index
    %4 = vector.load %arg4[%c0_2, %c0_3, %c0_4] : memref<1x16x256xbf16, #tpu.memory_space<vmem>>, vector<1x16x256xbf16>
    %5 = vector.shape_cast %4 : vector<1x16x256xbf16> to vector<16x256xbf16>
    %c0_5 = arith.constant 0 : index
    %c0_6 = arith.constant 0 : index
    %c0_7 = arith.constant 0 : index
    %6 = vector.load %arg5[%c0_5, %c0_6, %c0_7] : memref<1x256x128xbf16, #tpu.memory_space<vmem>>, vector<1x256x128xbf16>
    %7 = vector.shape_cast %6 : vector<1x256x128xbf16> to vector<256x128xbf16>
    %cst = arith.constant dense<0.000000e+00> : vector<16x128xf32>
    %8 = tpu.matmul %5, %7, %cst {dimension_numbers = #tpu.dot_dimension_numbers<[1], [0], [0], [1], [0, 0, 1, 1], [], []>} : vector<16x256xbf16>, vector<256x128xbf16>, vector<16x128xf32> -> vector<16x128xf32>
    %9 = arith.addf %3, %8 : vector<16x128xf32>
    %c0_8 = arith.constant 0 : index
    %c0_9 = arith.constant 0 : index
    %10 = vector.load %arg8[%c0_8, %c0_9] : memref<16x128xf32, #tpu.memory_space<vmem>>, vector<16x128xf32>
    tpu.vector_store %arg8[%c0_8, %c0_9], %9 {strides = array<i32>} : memref<16x128xf32, #tpu.memory_space<vmem>>, vector<16x128xf32>,
    %c0_i32_10 = arith.constant 0 : i32
    %11 = arith.cmpi eq, %arg3, %c0_i32_10 : i32
    %12 = arith.extui %11 : i1 to i32
    %c0_i32_11 = arith.constant 0 : i32
    %13 = arith.cmpi ne, %12, %c0_i32_11 : i32
    scf.if %13 {
      %c0_12 = arith.constant 0 : index
      %c0_13 = arith.constant 0 : index
      %14 = vector.load %arg8[%c0_12, %c0_13] : memref<16x128xf32, #tpu.memory_space<vmem>>, vector<16x128xf32>
      %15 = arith.truncf %14 : vector<16x128xf32> to vector<16x128xbf16>
      %c0_14 = arith.constant 0 : index
      %c0_15 = arith.constant 0 : index
      %c0_16 = arith.constant 0 : index
      %16 = vector.load %arg6[%c0_14, %c0_15, %c0_16] : memref<1x16x128xbf16, #tpu.memory_space<vmem>>, vector<1x16x128xbf16>
      %17 = vector.shape_cast %16 : vector<1x16x128xbf16> to vector<16x128xbf16>
      %18 = vector.shape_cast %15 : vector<16x128xbf16> to vector<1x16x128xbf16>
      tpu.vector_store %arg6[%c0_14, %c0_15, %c0_16], %18 {strides = array<i32>} : memref<1x16x128xbf16, #tpu.memory_space<vmem>>, vector<1x16x128xbf16>,
      %cst_17 = arith.constant dense<0.000000e+00> : vector<128xf32>
      %19 = vector.multi_reduction <add>, %14, %cst_17 [0] : vector<16x128xf32> to vector<128xf32>
      %20 = vector.shape_cast %19 : vector<128xf32> to vector<1x128xf32>
      %c0_18 = arith.constant 0 : index
      %c0_19 = arith.constant 0 : index
      %c0_20 = arith.constant 0 : index
      %c0_21 = arith.constant 0 : index
      %21 = vector.load %arg7[%c0_18, %c0_19, %c0_20, %c0_21] : memref<1x1x8x128xf32, #tpu.memory_space<vmem>>, vector<1x1x1x128xf32>
      %22 = vector.shape_cast %21 : vector<1x1x1x128xf32> to vector<1x128xf32>
      %23 = vector.shape_cast %20 : vector<1x128xf32> to vector<1x1x1x128xf32>
      tpu.vector_store %arg7[%c0_18, %c0_19, %c0_20, %c0_21], %23 {strides = array<i32>} : memref<1x1x8x128xf32, #tpu.memory_space<vmem>>, vector<1x1x1x128xf32>,
      %24 = arith.mulf %14, %14 : vector<16x128xf32>
      %cst_22 = arith.constant dense<0.000000e+00> : vector<128xf32>
      %25 = vector.multi_reduction <add>, %24, %cst_22 [0] : vector<16x128xf32> to vector<128xf32>
      %26 = vector.shape_cast %25 : vector<128xf32> to vector<1x128xf32>
      %c0_23 = arith.constant 0 : index
      %c0_24 = arith.constant 0 : index
      %c1 = arith.constant 1 : index
      %c0_25 = arith.constant 0 : index
      %27 = vector.load %arg7[%c0_23, %c0_24, %c1, %c0_25] : memref<1x1x8x128xf32, #tpu.memory_space<vmem>>, vector<1x1x1x128xf32>
      %28 = vector.shape_cast %27 : vector<1x1x1x128xf32> to vector<1x128xf32>
      %29 = vector.shape_cast %26 : vector<1x128xf32> to vector<1x1x1x128xf32>
      tpu.vector_store %arg7[%c0_23, %c0_24, %c1, %c0_25], %29 {strides = array<i32>} : memref<1x1x8x128xf32, #tpu.memory_space<vmem>>, vector<1x1x1x128xf32>,
    } else {
    }
    return
  }
  func.func @transform_0(%arg0: i32, %arg1: i32, %arg2: i32, %arg3: i32) -> (i32, i32, i32) {
    %c0_i32 = arith.constant 0 : i32
    return %arg0, %arg1, %arg3 : i32, i32, i32
  }
  func.func @transform_1(%arg0: i32, %arg1: i32, %arg2: i32, %arg3: i32) -> (i32, i32, i32) {
    %c0_i32 = arith.constant 0 : i32
    return %arg0, %arg3, %arg2 : i32, i32, i32
  }
  func.func @transform_2(%arg0: i32, %arg1: i32, %arg2: i32, %arg3: i32) -> (i32, i32, i32) {
    %c0_i32 = arith.constant 0 : i32
    return %arg0, %arg1, %arg2 : i32, i32, i32
  }
  func.func @transform_3(%arg0: i32, %arg1: i32, %arg2: i32, %arg3: i32) -> (i32, i32, i32, i32) {
    %c0_i32 = arith.constant 0 : i32
    %c0_i32_0 = arith.constant 0 : i32
    return %arg0, %arg1, %c0_i32, %arg2 : i32, i32, i32, i32
  }
}

module attributes {stable_mosaic.version = 11 : i64} {
  func.func @_gmm_stats_kernel(%arg0: i32, %arg1: i32, %arg2: i32, %arg3: i32, %arg4: memref<1x16x256xbf16, #tpu.memory_space<vmem>>, %arg5: memref<1x256x128xbf16, #tpu.memory_space<vmem>>, %arg6: memref<1x16x128xbf16, #tpu.memory_space<vmem>>, %arg7: memref<1x1x8x128xf32, #tpu.memory_space<vmem>>, %arg8: memref<16x128xf32, #tpu.memory_space<vmem>>) attributes {dimension_semantics = [#tpu.dimension_semantics<parallel>, #tpu.dimension_semantics<parallel>, #tpu.dimension_semantics<parallel>, #tpu.dimension_semantics<arbitrary>], iteration_bounds = array<i64: 4, 1, 1, 1>, scalar_prefetch = 0 : i64, scratch_operands = 1 : i64, tpu.core_type = #tpu.core_type<tc>, window_params = [{transform_indices = @transform_0, window_bounds = array<i64: 1, 16, 256>}, {transform_indices = @transform_1, window_bounds = array<i64: 1, 256, 128>}, {transform_indices = @transform_2, window_bounds = array<i64: 1, 16, 128>}, {transform_indices = @transform_3, window_bounds = array<i64: 1, 1, 8, 128>}]} {
    %c0_i32 = arith.constant 0 : i32
    %0 = arith.cmpi eq, %arg3, %c0_i32 : i32
    %1 = arith.extui %0 : i1 to i32
    %c0_i32_0 = arith.constant 0 : i32
    %2 = arith.cmpi ne, %1, %c0_i32_0 : i32
    scf.if %2 {
      %cst_12 = arith.constant 0.000000e+00 : f32
      %14 = vector.broadcast %cst_12 : f32 to vector<16x128xf32>
      %c0_13 = arith.constant 0 : index
      %c0_14 = arith.constant 0 : index
      %15 = vector.load %arg8[%c0_13, %c0_14] : memref<16x128xf32, #tpu.memory_space<vmem>>, vector<16x128xf32>
      tpu.vector_store %arg8[%c0_13, %c0_14], %14 {strides = array<i32>} : memref<16x128xf32, #tpu.memory_space<vmem>>, vector<16x128xf32>,
      %cst_15 = arith.constant 0.000000e+00 : f32
      %16 = vector.broadcast %cst_15 : f32 to vector<1x1x8x128xf32>
      %c0_16 = arith.constant 0 : index
      %c0_17 = arith.constant 0 : index
      %c0_18 = arith.constant 0 : index
      %c0_19 = arith.constant 0 : index
      %17 = vector.load %arg7[%c0_16, %c0_17, %c0_18, %c0_19] : memref<1x1x8x128xf32, #tpu.memory_space<vmem>>, vector<1x1x8x128xf32>
      tpu.vector_store %arg7[%c0_16, %c0_17, %c0_18, %c0_19], %16 {strides = array<i32>} : memref<1x1x8x128xf32, #tpu.memory_space<vmem>>, vector<1x1x8x128xf32>,
    } else {
    }
    %c0 = arith.constant 0 : index
    %c0_1 = arith.constant 0 : index
    %3 = vector.load %arg8[%c0, %c0_1] : memref<16x128xf32, #tpu.memory_space<vmem>>, vector<16x128xf32>
    %c0_2 = arith.constant 0 : index
    %c0_3 = arith.constant 0 : index
    %c0_4 = arith.constant 0 : index
    %4 = vector.load %arg4[%c0_2, %c0_3, %c0_4] : memref<1x16x256xbf16, #tpu.memory_space<vmem>>, vector<1x16x256xbf16>
    %5 = vector.shape_cast %4 : vector<1x16x256xbf16> to vector<16x256xbf16>
    %c0_5 = arith.constant 0 : index
    %c0_6 = arith.constant 0 : index
    %c0_7 = arith.constant 0 : index
    %6 = vector.load %arg5[%c0_5, %c0_6, %c0_7] : memref<1x256x128xbf16, #tpu.memory_space<vmem>>, vector<1x256x128xbf16>
    %7 = vector.shape_cast %6 : vector<1x256x128xbf16> to vector<256x128xbf16>
    %cst = arith.constant dense<0.000000e+00> : vector<16x128xf32>
    %8 = tpu.matmul %5, %7, %cst {dimension_numbers = #tpu.dot_dimension_numbers<[1], [0], [0], [1], [0, 0, 1, 1], [], []>} : vector<16x256xbf16>, vector<256x128xbf16>, vector<16x128xf32> -> vector<16x128xf32>
    %9 = arith.addf %3, %8 : vector<16x128xf32>
    %c0_8 = arith.constant 0 : index
    %c0_9 = arith.constant 0 : index
    %10 = vector.load %arg8[%c0_8, %c0_9] : memref<16x128xf32, #tpu.memory_space<vmem>>, vector<16x128xf32>
    tpu.vector_store %arg8[%c0_8, %c0_9], %9 {strides = array<i32>} : memref<16x128xf32, #tpu.memory_space<vmem>>, vector<16x128xf32>,
    %c0_i32_10 = arith.constant 0 : i32
    %11 = arith.cmpi eq, %arg3, %c0_i32_10 : i32
    %12 = arith.extui %11 : i1 to i32
    %c0_i32_11 = arith.constant 0 : i32
    %13 = arith.cmpi ne, %12, %c0_i32_11 : i32
    scf.if %13 {
      %c0_12 = arith.constant 0 : index
      %c0_13 = arith.constant 0 : index
      %14 = vector.load %arg8[%c0_12, %c0_13] : memref<16x128xf32, #tpu.memory_space<vmem>>, vector<16x128xf32>
      %15 = arith.truncf %14 : vector<16x128xf32> to vector<16x128xbf16>
      %c0_14 = arith.constant 0 : index
      %c0_15 = arith.constant 0 : index
      %c0_16 = arith.constant 0 : index
      %16 = vector.load %arg6[%c0_14, %c0_15, %c0_16] : memref<1x16x128xbf16, #tpu.memory_space<vmem>>, vector<1x16x128xbf16>
      %17 = vector.shape_cast %16 : vector<1x16x128xbf16> to vector<16x128xbf16>
      %18 = vector.shape_cast %15 : vector<16x128xbf16> to vector<1x16x128xbf16>
      tpu.vector_store %arg6[%c0_14, %c0_15, %c0_16], %18 {strides = array<i32>} : memref<1x16x128xbf16, #tpu.memory_space<vmem>>, vector<1x16x128xbf16>,
      %cst_17 = arith.constant dense<0.000000e+00> : vector<128xf32>
      %19 = vector.multi_reduction <add>, %14, %cst_17 [0] : vector<16x128xf32> to vector<128xf32>
      %20 = vector.shape_cast %19 : vector<128xf32> to vector<1x128xf32>
      %c0_18 = arith.constant 0 : index
      %c0_19 = arith.constant 0 : index
      %c0_20 = arith.constant 0 : index
      %c0_21 = arith.constant 0 : index
      %21 = vector.load %arg7[%c0_18, %c0_19, %c0_20, %c0_21] : memref<1x1x8x128xf32, #tpu.memory_space<vmem>>, vector<1x1x1x128xf32>
      %22 = vector.shape_cast %21 : vector<1x1x1x128xf32> to vector<1x128xf32>
      %23 = vector.shape_cast %20 : vector<1x128xf32> to vector<1x1x1x128xf32>
      tpu.vector_store %arg7[%c0_18, %c0_19, %c0_20, %c0_21], %23 {strides = array<i32>} : memref<1x1x8x128xf32, #tpu.memory_space<vmem>>, vector<1x1x1x128xf32>,
      %24 = arith.mulf %14, %14 : vector<16x128xf32>
      %cst_22 = arith.constant dense<0.000000e+00> : vector<128xf32>
      %25 = vector.multi_reduction <add>, %24, %cst_22 [0] : vector<16x128xf32> to vector<128xf32>
      %26 = vector.shape_cast %25 : vector<128xf32> to vector<1x128xf32>
      %c0_23 = arith.constant 0 : index
      %c0_24 = arith.constant 0 : index
      %c1 = arith.constant 1 : index
      %c0_25 = arith.constant 0 : index
      %27 = vector.load %arg7[%c0_23, %c0_24, %c1, %c0_25] : memref<1x1x8x128xf32, #tpu.memory_space<vmem>>, vector<1x1x1x128xf32>
      %28 = vector.shape_cast %27 : vector<1x1x1x128xf32> to vector<1x128xf32>
      %29 = vector.shape_cast %26 : vector<1x128xf32> to vector<1x1x1x128xf32>
      tpu.vector_store %arg7[%c0_23, %c0_24, %c1, %c0_25], %29 {strides = array<i32>} : memref<1x1x8x128xf32, #tpu.memory_space<vmem>>, vector<1x1x1x128xf32>,
    } else {
    }
    return
  }
  func.func @transform_0(%arg0: i32, %arg1: i32, %arg2: i32, %arg3: i32) -> (i32, i32, i32) {
    %c0_i32 = arith.constant 0 : i32
    return %arg0, %arg1, %arg3 : i32, i32, i32
  }
  func.func @transform_1(%arg0: i32, %arg1: i32, %arg2: i32, %arg3: i32) -> (i32, i32, i32) {
    %c0_i32 = arith.constant 0 : i32
    return %arg0, %arg3, %arg2 : i32, i32, i32
  }
  func.func @transform_2(%arg0: i32, %arg1: i32, %arg2: i32, %arg3: i32) -> (i32, i32, i32) {
    %c0_i32 = arith.constant 0 : i32
    return %arg0, %arg1, %arg2 : i32, i32, i32
  }
  func.func @transform_3(%arg0: i32, %arg1: i32, %arg2: i32, %arg3: i32) -> (i32, i32, i32, i32) {
    %c0_i32 = arith.constant 0 : i32
    %c0_i32_0 = arith.constant 0 : i32
    return %arg0, %arg1, %c0_i32, %arg2 : i32, i32, i32, i32
  }
}

module attributes {stable_mosaic.version = 11 : i64} {
  func.func @_affine_res_kernel(%arg0: i32, %arg1: memref<16x512xbf16, #tpu.memory_space<vmem>>, %arg2: memref<1x512xf32, #tpu.memory_space<vmem>>, %arg3: memref<1x512xf32, #tpu.memory_space<vmem>>, %arg4: memref<16x512xbf16, #tpu.memory_space<vmem>>, %arg5: memref<16x512xbf16, #tpu.memory_space<vmem>>) attributes {dimension_semantics = [#tpu.dimension_semantics<parallel>], iteration_bounds = array<i64: 1>, scalar_prefetch = 0 : i64, scratch_operands = 0 : i64, tpu.core_type = #tpu.core_type<tc>, window_params = [{transform_indices = @transform_0, window_bounds = array<i64: 16, 512>}, {pipeline_mode = #tpu.pipeline_mode<synchronous>, transform_indices = @transform_1, window_bounds = array<i64: 1, 512>}, {pipeline_mode = #tpu.pipeline_mode<synchronous>, transform_indices = @transform_2, window_bounds = array<i64: 1, 512>}, {transform_indices = @transform_3, window_bounds = array<i64: 16, 512>}, {transform_indices = @transform_4, window_bounds = array<i64: 16, 512>}]} {
    %c0 = arith.constant 0 : index
    %c0_0 = arith.constant 0 : index
    %0 = vector.load %arg1[%c0, %c0_0] : memref<16x512xbf16, #tpu.memory_space<vmem>>, vector<16x512xbf16>
    %1 = arith.extf %0 : vector<16x512xbf16> to vector<16x512xf32>
    %c0_1 = arith.constant 0 : index
    %c0_2 = arith.constant 0 : index
    %2 = vector.load %arg2[%c0_1, %c0_2] : memref<1x512xf32, #tpu.memory_space<vmem>>, vector<1x512xf32>
    %3 = vector.broadcast %2 : vector<1x512xf32> to vector<16x512xf32>
    %4 = arith.mulf %1, %3 : vector<16x512xf32>
    %c0_3 = arith.constant 0 : index
    %c0_4 = arith.constant 0 : index
    %5 = vector.load %arg3[%c0_3, %c0_4] : memref<1x512xf32, #tpu.memory_space<vmem>>, vector<1x512xf32>
    %6 = vector.broadcast %5 : vector<1x512xf32> to vector<16x512xf32>
    %7 = arith.addf %4, %6 : vector<16x512xf32>
    %c0_5 = arith.constant 0 : index
    %c0_6 = arith.constant 0 : index
    %8 = vector.load %arg4[%c0_5, %c0_6] : memref<16x512xbf16, #tpu.memory_space<vmem>>, vector<16x512xbf16>
    %9 = arith.extf %8 : vector<16x512xbf16> to vector<16x512xf32>
    %10 = arith.addf %7, %9 : vector<16x512xf32>
    %cst = arith.constant 0.000000e+00 : f32
    %11 = vector.broadcast %cst : f32 to vector<16x512xf32>
    %12 = arith.maximumf %10, %11 : vector<16x512xf32>
    %13 = arith.truncf %12 : vector<16x512xf32> to vector<16x512xbf16>
    %c0_7 = arith.constant 0 : index
    %c0_8 = arith.constant 0 : index
    %14 = vector.load %arg5[%c0_7, %c0_8] : memref<16x512xbf16, #tpu.memory_space<vmem>>, vector<16x512xbf16>
    tpu.vector_store %arg5[%c0_7, %c0_8], %13 {strides = array<i32>} : memref<16x512xbf16, #tpu.memory_space<vmem>>, vector<16x512xbf16>,
    return
  }
  func.func @transform_0(%arg0: i32) -> (i32, i32) {
    %c0_i32 = arith.constant 0 : i32
    %c0_i32_0 = arith.constant 0 : i32
    return %arg0, %c0_i32 : i32, i32
  }
  func.func @transform_1(%arg0: i32) -> (i32, i32) {
    %c0_i32 = arith.constant 0 : i32
    %c0_i32_0 = arith.constant 0 : i32
    %c0_i32_1 = arith.constant 0 : i32
    return %c0_i32, %c0_i32_0 : i32, i32
  }
  func.func @transform_2(%arg0: i32) -> (i32, i32) {
    %c0_i32 = arith.constant 0 : i32
    %c0_i32_0 = arith.constant 0 : i32
    %c0_i32_1 = arith.constant 0 : i32
    return %c0_i32, %c0_i32_0 : i32, i32
  }
  func.func @transform_3(%arg0: i32) -> (i32, i32) {
    %c0_i32 = arith.constant 0 : i32
    %c0_i32_0 = arith.constant 0 : i32
    return %arg0, %c0_i32 : i32, i32
  }
  func.func @transform_4(%arg0: i32) -> (i32, i32) {
    %c0_i32 = arith.constant 0 : i32
    %c0_i32_0 = arith.constant 0 : i32
    return %arg0, %c0_i32 : i32, i32
  }
}

module attributes {stable_mosaic.version = 11 : i64} {
  func.func @_gmm_stats_kernel(%arg0: i32, %arg1: i32, %arg2: i32, %arg3: i32, %arg4: memref<1x16x128xbf16, #tpu.memory_space<vmem>>, %arg5: memref<1x128x256xbf16, #tpu.memory_space<vmem>>, %arg6: memref<1x16x256xbf16, #tpu.memory_space<vmem>>, %arg7: memref<1x1x8x256xf32, #tpu.memory_space<vmem>>, %arg8: memref<16x256xf32, #tpu.memory_space<vmem>>) attributes {dimension_semantics = [#tpu.dimension_semantics<parallel>, #tpu.dimension_semantics<parallel>, #tpu.dimension_semantics<parallel>, #tpu.dimension_semantics<arbitrary>], iteration_bounds = array<i64: 1, 1, 2, 1>, scalar_prefetch = 0 : i64, scratch_operands = 1 : i64, tpu.core_type = #tpu.core_type<tc>, window_params = [{transform_indices = @transform_0, window_bounds = array<i64: 1, 16, 128>}, {transform_indices = @transform_1, window_bounds = array<i64: 1, 128, 256>}, {transform_indices = @transform_2, window_bounds = array<i64: 1, 16, 256>}, {transform_indices = @transform_3, window_bounds = array<i64: 1, 1, 8, 256>}]} {
    %c0_i32 = arith.constant 0 : i32
    %0 = arith.cmpi eq, %arg3, %c0_i32 : i32
    %1 = arith.extui %0 : i1 to i32
    %c0_i32_0 = arith.constant 0 : i32
    %2 = arith.cmpi ne, %1, %c0_i32_0 : i32
    scf.if %2 {
      %cst_12 = arith.constant 0.000000e+00 : f32
      %14 = vector.broadcast %cst_12 : f32 to vector<16x256xf32>
      %c0_13 = arith.constant 0 : index
      %c0_14 = arith.constant 0 : index
      %15 = vector.load %arg8[%c0_13, %c0_14] : memref<16x256xf32, #tpu.memory_space<vmem>>, vector<16x256xf32>
      tpu.vector_store %arg8[%c0_13, %c0_14], %14 {strides = array<i32>} : memref<16x256xf32, #tpu.memory_space<vmem>>, vector<16x256xf32>,
      %cst_15 = arith.constant 0.000000e+00 : f32
      %16 = vector.broadcast %cst_15 : f32 to vector<1x1x8x256xf32>
      %c0_16 = arith.constant 0 : index
      %c0_17 = arith.constant 0 : index
      %c0_18 = arith.constant 0 : index
      %c0_19 = arith.constant 0 : index
      %17 = vector.load %arg7[%c0_16, %c0_17, %c0_18, %c0_19] : memref<1x1x8x256xf32, #tpu.memory_space<vmem>>, vector<1x1x8x256xf32>
      tpu.vector_store %arg7[%c0_16, %c0_17, %c0_18, %c0_19], %16 {strides = array<i32>} : memref<1x1x8x256xf32, #tpu.memory_space<vmem>>, vector<1x1x8x256xf32>,
    } else {
    }
    %c0 = arith.constant 0 : index
    %c0_1 = arith.constant 0 : index
    %3 = vector.load %arg8[%c0, %c0_1] : memref<16x256xf32, #tpu.memory_space<vmem>>, vector<16x256xf32>
    %c0_2 = arith.constant 0 : index
    %c0_3 = arith.constant 0 : index
    %c0_4 = arith.constant 0 : index
    %4 = vector.load %arg4[%c0_2, %c0_3, %c0_4] : memref<1x16x128xbf16, #tpu.memory_space<vmem>>, vector<1x16x128xbf16>
    %5 = vector.shape_cast %4 : vector<1x16x128xbf16> to vector<16x128xbf16>
    %c0_5 = arith.constant 0 : index
    %c0_6 = arith.constant 0 : index
    %c0_7 = arith.constant 0 : index
    %6 = vector.load %arg5[%c0_5, %c0_6, %c0_7] : memref<1x128x256xbf16, #tpu.memory_space<vmem>>, vector<1x128x256xbf16>
    %7 = vector.shape_cast %6 : vector<1x128x256xbf16> to vector<128x256xbf16>
    %cst = arith.constant dense<0.000000e+00> : vector<16x256xf32>
    %8 = tpu.matmul %5, %7, %cst {dimension_numbers = #tpu.dot_dimension_numbers<[1], [0], [0], [1], [0, 0, 1, 1], [], []>} : vector<16x128xbf16>, vector<128x256xbf16>, vector<16x256xf32> -> vector<16x256xf32>
    %9 = arith.addf %3, %8 : vector<16x256xf32>
    %c0_8 = arith.constant 0 : index
    %c0_9 = arith.constant 0 : index
    %10 = vector.load %arg8[%c0_8, %c0_9] : memref<16x256xf32, #tpu.memory_space<vmem>>, vector<16x256xf32>
    tpu.vector_store %arg8[%c0_8, %c0_9], %9 {strides = array<i32>} : memref<16x256xf32, #tpu.memory_space<vmem>>, vector<16x256xf32>,
    %c0_i32_10 = arith.constant 0 : i32
    %11 = arith.cmpi eq, %arg3, %c0_i32_10 : i32
    %12 = arith.extui %11 : i1 to i32
    %c0_i32_11 = arith.constant 0 : i32
    %13 = arith.cmpi ne, %12, %c0_i32_11 : i32
    scf.if %13 {
      %c0_12 = arith.constant 0 : index
      %c0_13 = arith.constant 0 : index
      %14 = vector.load %arg8[%c0_12, %c0_13] : memref<16x256xf32, #tpu.memory_space<vmem>>, vector<16x256xf32>
      %15 = arith.truncf %14 : vector<16x256xf32> to vector<16x256xbf16>
      %c0_14 = arith.constant 0 : index
      %c0_15 = arith.constant 0 : index
      %c0_16 = arith.constant 0 : index
      %16 = vector.load %arg6[%c0_14, %c0_15, %c0_16] : memref<1x16x256xbf16, #tpu.memory_space<vmem>>, vector<1x16x256xbf16>
      %17 = vector.shape_cast %16 : vector<1x16x256xbf16> to vector<16x256xbf16>
      %18 = vector.shape_cast %15 : vector<16x256xbf16> to vector<1x16x256xbf16>
      tpu.vector_store %arg6[%c0_14, %c0_15, %c0_16], %18 {strides = array<i32>} : memref<1x16x256xbf16, #tpu.memory_space<vmem>>, vector<1x16x256xbf16>,
      %cst_17 = arith.constant dense<0.000000e+00> : vector<256xf32>
      %19 = vector.multi_reduction <add>, %14, %cst_17 [0] : vector<16x256xf32> to vector<256xf32>
      %20 = vector.shape_cast %19 : vector<256xf32> to vector<1x256xf32>
      %c0_18 = arith.constant 0 : index
      %c0_19 = arith.constant 0 : index
      %c0_20 = arith.constant 0 : index
      %c0_21 = arith.constant 0 : index
      %21 = vector.load %arg7[%c0_18, %c0_19, %c0_20, %c0_21] : memref<1x1x8x256xf32, #tpu.memory_space<vmem>>, vector<1x1x1x256xf32>
      %22 = vector.shape_cast %21 : vector<1x1x1x256xf32> to vector<1x256xf32>
      %23 = vector.shape_cast %20 : vector<1x256xf32> to vector<1x1x1x256xf32>
      tpu.vector_store %arg7[%c0_18, %c0_19, %c0_20, %c0_21], %23 {strides = array<i32>} : memref<1x1x8x256xf32, #tpu.memory_space<vmem>>, vector<1x1x1x256xf32>,
      %24 = arith.mulf %14, %14 : vector<16x256xf32>
      %cst_22 = arith.constant dense<0.000000e+00> : vector<256xf32>
      %25 = vector.multi_reduction <add>, %24, %cst_22 [0] : vector<16x256xf32> to vector<256xf32>
      %26 = vector.shape_cast %25 : vector<256xf32> to vector<1x256xf32>
      %c0_23 = arith.constant 0 : index
      %c0_24 = arith.constant 0 : index
      %c1 = arith.constant 1 : index
      %c0_25 = arith.constant 0 : index
      %27 = vector.load %arg7[%c0_23, %c0_24, %c1, %c0_25] : memref<1x1x8x256xf32, #tpu.memory_space<vmem>>, vector<1x1x1x256xf32>
      %28 = vector.shape_cast %27 : vector<1x1x1x256xf32> to vector<1x256xf32>
      %29 = vector.shape_cast %26 : vector<1x256xf32> to vector<1x1x1x256xf32>
      tpu.vector_store %arg7[%c0_23, %c0_24, %c1, %c0_25], %29 {strides = array<i32>} : memref<1x1x8x256xf32, #tpu.memory_space<vmem>>, vector<1x1x1x256xf32>,
    } else {
    }
    return
  }
  func.func @transform_0(%arg0: i32, %arg1: i32, %arg2: i32, %arg3: i32) -> (i32, i32, i32) {
    %c0_i32 = arith.constant 0 : i32
    return %arg0, %arg1, %arg3 : i32, i32, i32
  }
  func.func @transform_1(%arg0: i32, %arg1: i32, %arg2: i32, %arg3: i32) -> (i32, i32, i32) {
    %c0_i32 = arith.constant 0 : i32
    return %arg0, %arg3, %arg2 : i32, i32, i32
  }
  func.func @transform_2(%arg0: i32, %arg1: i32, %arg2: i32, %arg3: i32) -> (i32, i32, i32) {
    %c0_i32 = arith.constant 0 : i32
    return %arg0, %arg1, %arg2 : i32, i32, i32
  }
  func.func @transform_3(%arg0: i32, %arg1: i32, %arg2: i32, %arg3: i32) -> (i32, i32, i32, i32) {
    %c0_i32 = arith.constant 0 : i32
    %c0_i32_0 = arith.constant 0 : i32
    return %arg0, %arg1, %c0_i32, %arg2 : i32, i32, i32, i32
  }
}

module attributes {stable_mosaic.version = 11 : i64} {
  func.func @_gap_kernel(%arg0: i32, %arg1: memref<2x16x512xbf16, #tpu.memory_space<vmem>>, %arg2: memref<2x1x512xf32, #tpu.memory_space<vmem>>) attributes {dimension_semantics = [#tpu.dimension_semantics<parallel>], iteration_bounds = array<i64: 1>, scalar_prefetch = 0 : i64, scratch_operands = 0 : i64, tpu.core_type = #tpu.core_type<tc>, window_params = [{transform_indices = @transform_0, window_bounds = array<i64: 2, 16, 512>}, {transform_indices = @transform_1, window_bounds = array<i64: 2, 1, 512>}]} {
    %c0 = arith.constant 0 : index
    %c0_0 = arith.constant 0 : index
    %c0_1 = arith.constant 0 : index
    %0 = vector.load %arg1[%c0, %c0_0, %c0_1] : memref<2x16x512xbf16, #tpu.memory_space<vmem>>, vector<2x16x512xbf16>
    %1 = arith.extf %0 : vector<2x16x512xbf16> to vector<2x16x512xf32>
    %cst = arith.constant dense<0.000000e+00> : vector<2x512xf32>
    %2 = vector.multi_reduction <add>, %1, %cst [1] : vector<2x16x512xf32> to vector<2x512xf32>
    %3 = vector.shape_cast %2 : vector<2x512xf32> to vector<2x1x512xf32>
    %cst_2 = arith.constant 1.000000e+00 : f32
    %4 = vector.broadcast %cst_2 : f32 to vector<2x1x512xf32>
    %5 = arith.mulf %3, %4 : vector<2x1x512xf32>
    %c0_3 = arith.constant 0 : index
    %c0_4 = arith.constant 0 : index
    %c0_5 = arith.constant 0 : index
    %6 = vector.load %arg2[%c0_3, %c0_4, %c0_5] : memref<2x1x512xf32, #tpu.memory_space<vmem>>, vector<2x1x512xf32>
    tpu.vector_store %arg2[%c0_3, %c0_4, %c0_5], %5 {strides = array<i32>} : memref<2x1x512xf32, #tpu.memory_space<vmem>>, vector<2x1x512xf32>,
    return
  }
  func.func @transform_0(%arg0: i32) -> (i32, i32, i32) {
    %c0_i32 = arith.constant 0 : i32
    %c0_i32_0 = arith.constant 0 : i32
    %c0_i32_1 = arith.constant 0 : i32
    return %arg0, %c0_i32, %c0_i32_0 : i32, i32, i32
  }
  func.func @transform_1(%arg0: i32) -> (i32, i32, i32) {
    %c0_i32 = arith.constant 0 : i32
    %c0_i32_0 = arith.constant 0 : i32
    %c0_i32_1 = arith.constant 0 : i32
    return %arg0, %c0_i32, %c0_i32_0 : i32, i32, i32
  }
}

module attributes {stable_mosaic.version = 11 : i64} {
  func.func @_gmm_kernel(%arg0: i32, %arg1: i32, %arg2: i32, %arg3: i32, %arg4: memref<1x16x512xbf16, #tpu.memory_space<vmem>>, %arg5: memref<1x512x128xbf16, #tpu.memory_space<vmem>>, %arg6: memref<1x16x128xf32, #tpu.memory_space<vmem>>, %arg7: memref<16x128xf32, #tpu.memory_space<vmem>>) attributes {dimension_semantics = [#tpu.dimension_semantics<parallel>, #tpu.dimension_semantics<parallel>, #tpu.dimension_semantics<parallel>, #tpu.dimension_semantics<arbitrary>], iteration_bounds = array<i64: 1, 1, 1, 1>, scalar_prefetch = 0 : i64, scratch_operands = 1 : i64, tpu.core_type = #tpu.core_type<tc>, window_params = [{transform_indices = @transform_0, window_bounds = array<i64: 1, 16, 512>}, {transform_indices = @transform_1, window_bounds = array<i64: 1, 512, 128>}, {transform_indices = @transform_2, window_bounds = array<i64: 1, 16, 128>}]} {
    %c0_i32 = arith.constant 0 : i32
    %0 = arith.cmpi eq, %arg3, %c0_i32 : i32
    %1 = arith.extui %0 : i1 to i32
    %c0_i32_0 = arith.constant 0 : i32
    %2 = arith.cmpi ne, %1, %c0_i32_0 : i32
    scf.if %2 {
      %cst_12 = arith.constant 0.000000e+00 : f32
      %14 = vector.broadcast %cst_12 : f32 to vector<16x128xf32>
      %c0_13 = arith.constant 0 : index
      %c0_14 = arith.constant 0 : index
      %15 = vector.load %arg7[%c0_13, %c0_14] : memref<16x128xf32, #tpu.memory_space<vmem>>, vector<16x128xf32>
      tpu.vector_store %arg7[%c0_13, %c0_14], %14 {strides = array<i32>} : memref<16x128xf32, #tpu.memory_space<vmem>>, vector<16x128xf32>,
    } else {
    }
    %c0 = arith.constant 0 : index
    %c0_1 = arith.constant 0 : index
    %3 = vector.load %arg7[%c0, %c0_1] : memref<16x128xf32, #tpu.memory_space<vmem>>, vector<16x128xf32>
    %c0_2 = arith.constant 0 : index
    %c0_3 = arith.constant 0 : index
    %c0_4 = arith.constant 0 : index
    %4 = vector.load %arg4[%c0_2, %c0_3, %c0_4] : memref<1x16x512xbf16, #tpu.memory_space<vmem>>, vector<1x16x512xbf16>
    %5 = vector.shape_cast %4 : vector<1x16x512xbf16> to vector<16x512xbf16>
    %c0_5 = arith.constant 0 : index
    %c0_6 = arith.constant 0 : index
    %c0_7 = arith.constant 0 : index
    %6 = vector.load %arg5[%c0_5, %c0_6, %c0_7] : memref<1x512x128xbf16, #tpu.memory_space<vmem>>, vector<1x512x128xbf16>
    %7 = vector.shape_cast %6 : vector<1x512x128xbf16> to vector<512x128xbf16>
    %cst = arith.constant dense<0.000000e+00> : vector<16x128xf32>
    %8 = tpu.matmul %5, %7, %cst {dimension_numbers = #tpu.dot_dimension_numbers<[1], [0], [0], [1], [0, 0, 1, 1], [], []>} : vector<16x512xbf16>, vector<512x128xbf16>, vector<16x128xf32> -> vector<16x128xf32>
    %9 = arith.addf %3, %8 : vector<16x128xf32>
    %c0_8 = arith.constant 0 : index
    %c0_9 = arith.constant 0 : index
    %10 = vector.load %arg7[%c0_8, %c0_9] : memref<16x128xf32, #tpu.memory_space<vmem>>, vector<16x128xf32>
    tpu.vector_store %arg7[%c0_8, %c0_9], %9 {strides = array<i32>} : memref<16x128xf32, #tpu.memory_space<vmem>>, vector<16x128xf32>,
    %c0_i32_10 = arith.constant 0 : i32
    %11 = arith.cmpi eq, %arg3, %c0_i32_10 : i32
    %12 = arith.extui %11 : i1 to i32
    %c0_i32_11 = arith.constant 0 : i32
    %13 = arith.cmpi ne, %12, %c0_i32_11 : i32
    scf.if %13 {
      %c0_12 = arith.constant 0 : index
      %c0_13 = arith.constant 0 : index
      %14 = vector.load %arg7[%c0_12, %c0_13] : memref<16x128xf32, #tpu.memory_space<vmem>>, vector<16x128xf32>
      %c0_14 = arith.constant 0 : index
      %c0_15 = arith.constant 0 : index
      %c0_16 = arith.constant 0 : index
      %15 = vector.load %arg6[%c0_14, %c0_15, %c0_16] : memref<1x16x128xf32, #tpu.memory_space<vmem>>, vector<1x16x128xf32>
      %16 = vector.shape_cast %15 : vector<1x16x128xf32> to vector<16x128xf32>
      %17 = vector.shape_cast %14 : vector<16x128xf32> to vector<1x16x128xf32>
      tpu.vector_store %arg6[%c0_14, %c0_15, %c0_16], %17 {strides = array<i32>} : memref<1x16x128xf32, #tpu.memory_space<vmem>>, vector<1x16x128xf32>,
    } else {
    }
    return
  }
  func.func @transform_0(%arg0: i32, %arg1: i32, %arg2: i32, %arg3: i32) -> (i32, i32, i32) {
    %c0_i32 = arith.constant 0 : i32
    return %arg0, %arg1, %arg3 : i32, i32, i32
  }
  func.func @transform_1(%arg0: i32, %arg1: i32, %arg2: i32, %arg3: i32) -> (i32, i32, i32) {
    %c0_i32 = arith.constant 0 : i32
    return %arg0, %arg3, %arg2 : i32, i32, i32
  }
  func.func @transform_2(%arg0: i32, %arg1: i32, %arg2: i32, %arg3: i32) -> (i32, i32, i32) {
    %c0_i32 = arith.constant 0 : i32
    return %arg0, %arg1, %arg2 : i32, i32, i32
  }
}

</mosaic_0001>

<bundles_post_ra>
// kernel: tile.125
= control target key start
LH: loop header
LB: loop body
LE: loop exit
PB: predicated region body
PF: predicated region fallthrough
CT: control target
= control target key end

     0   :  { %s22_s0 = inlined_call_operand.vmem [shape: f32[16], index: 0, kind: input, shape index: {}]   ;;  %s23_s1 = inlined_call_operand.vmem [shape: f32[8,16], index: 1, kind: output, shape index: {}]  }
   0x1   :  { %v4_v0 = vld [vmem:[%s22_s0] ss:$0 sm:$0xff] }
   0x2   :  { %5 = vst [vmem:[%s23_s1] sm:$0xff] %v4_v0 }

// kernel: tile.126
= control target key start
LH: loop header
LB: loop body
LE: loop exit
PB: predicated region body
PF: predicated region fallthrough
CT: control target
= control target key end

     0   :  { %s67_s10 = smov 112   ;;  %s68_s11 = smov 80   ;;  %vm3_vm0 = vcmask 130048   ;;  %vm9_vm1 = vcmask 1048448   ;;  %vm15_vm2 = vcmask 917248   ;;  %vm21_vm3 = vcmask 786048   ;;  %s111_s0 = inlined_call_operand.vmem [shape: f32[8,16], index: 0, kind: input, shape index: {}]   ;;  %s112_s1 = inlined_call_operand.vmem [shape: f32[1,128], index: 1, kind: output, shape index: {}]  }
   0x1   :  { %v53_v0 = vld [vmem:[%s111_s0 + $0x7] sm:$0x1]   ;;  %v55_v1 = vld [vmem:[%s111_s0 + $0x5] sm:$0x1]   ;;  %v54_v2 = vld [vmem:[%s111_s0 + $0x6] sm:$0x1]  }
   0x2   :  { %7 = vrot.lane.b32.xlu0 %v53_v0, %s67_s10  ;;  %19 = vrot.lane.b32.xlu1 %v55_v1, %s68_s11  ;;  %v56_v3 = vld [vmem:[%s111_s0 + $0x4] sm:$0x1]   ;;  %v2_v4 = vld [vmem:[%s111_s0] sm:$0x1]   ;;  %s69_s18 = smov 96   ;;  %s70_s19 = smov 64  }
   0x3   :  { %4 = vst.msk [vmem:[#allocation0] sm:$0x1] %vm3_vm0, %v2_v4   ;;  %v57_v5 = vld [vmem:[%s111_s0 + $0x3] sm:$0x1]   ;;  %v58_v6 = vld [vmem:[%s111_s0 + $0x2] sm:$0x1]  }
   0x4   :  { %s71_s24 = smov 48   ;;  %s72_s25 = smov 32   ;;  %v59_v7 = vld [vmem:[%s111_s0 + $0x1] sm:$0x1]   ;;  %vm27_vm4 = vcmask 654848   ;;  %vm33_vm5 = vcmask 523648  }
   0x5   :  { %s73_s0 = smov 16   ;;  %vm39_vm6 = vcmask 392448   ;;  %vm45_vm7 = vcmask 261248  }
   0x6   :  { %13 = vrot.lane.b32.xlu0 %v54_v2, %s69_s18  ;;  %25 = vrot.lane.b32.xlu1 %v56_v3, %s70_s19 }
   0xa   :  { %31 = vrot.lane.b32.xlu0 %v57_v5, %s71_s24  ;;  %37 = vrot.lane.b32.xlu1 %v58_v6, %s72_s25 }
   0xe   :  { %43 = vrot.lane.b32.xlu0 %v59_v7, %s73_s0 }
  0x74   :  { %v8_v8 = vpop.permute.xlu0 %7   ;;  %v20_v9 = vpop.permute.xlu1 %19  }
  0x75   :  { %10 = vst.msk [vmem:[#allocation0] sm:$0x1] %vm9_vm1, %v8_v8  }
  0x78   :  { %v14_v10 = vpop.permute.xlu0 %13   ;;  %v26_v11 = vpop.permute.xlu1 %25  }
  0x79   :  { %16 = vst.msk [vmem:[#allocation0] sm:$0x1] %vm15_vm2, %v14_v10  }
  0x7a   :  { %22 = vst.msk [vmem:[#allocation0] sm:$0x1] %vm21_vm3, %v20_v9  }
  0x7b   :  { %28 = vst.msk [vmem:[#allocation0] sm:$0x1] %vm27_vm4, %v26_v11  }
  0x7c   :  { %v32_v12 = vpop.permute.xlu0 %31   ;;  %v38_v13 = vpop.permute.xlu1 %37  }
  0x7d   :  { %34 = vst.msk [vmem:[#allocation0] sm:$0x1] %vm33_vm5, %v32_v12  }
  0x7e   :  { %40 = vst.msk [vmem:[#allocation0] sm:$0x1] %vm39_vm6, %v38_v13  }
  0x80   :  { %v44_v14 = vpop.permute.xlu0 %43  }
  0x81   :  { %46 = vst.msk [vmem:[#allocation0] sm:$0x1] %vm45_vm7, %v44_v14  }
  0x88   :  { %v50_v15 = vld [vmem:[#allocation0] sm:$0x1] }
  0x89   :  { %52 = vst [vmem:[%s112_s1] sm:$0x1] %v50_v15 }

// kernel: _lambda_.38
= control target key start
LH: loop header
LB: loop body
LE: loop exit
PB: predicated region body
PF: predicated region fallthrough
CT: control target
= control target key end

     0   :  { %s222_s0 = inlined_call_operand.vmem [shape: bf16[64,128], index: 0, kind: input, shape index: {}]   ;;  %s223_s1 = inlined_call_operand.vmem [shape: f32[1,128], index: 1, kind: input, shape index: {}]   ;;  %s224_s2 = inlined_call_operand.vmem [shape: f32[1,128], index: 2, kind: input, shape index: {}]   ;;  %s225_s3 = inlined_call_operand.vmem [shape: bf16[64,128], index: 3, kind: output, shape index: {}]  }
   0x1   :  { %v131_v0 = vld [vmem:[%s222_s0] sm:$0xff]   ;;  %v166_v4 = vld [vmem:[%s222_s0 + $0x8] sm:$0xff]   ;;  %v167_v5 = vld [vmem:[%s222_s0 + $0x10] sm:$0xff]  }
   0x2   :  { %v112_v1 = vld [vmem:[%s223_s1] ss:$0 sm:$0xff]  ;;  %v132_v2 = vunpack.c.l.bf16 %v131_v0  ;;  %v133_v3 = vunpack.c.h.bf16 %v131_v0  ;;  %v168_v6 = vld [vmem:[%s222_s0 + $0x18] sm:$0xff]   ;;  %v136_v8 = vunpack.c.l.bf16 %v166_v4  ;;  %v137_v9 = vunpack.c.h.bf16 %v166_v4 }
   0x3   :  { %v113_v7 = vld [vmem:[%s224_s2] ss:$0 sm:$0xff]  ;;  %v140_v10 = vunpack.c.l.bf16 %v167_v5  ;;  %v141_v11 = vunpack.c.h.bf16 %v167_v5  ;;  %v144_v14 = vunpack.c.l.bf16 %v168_v6  ;;  %v145_v15 = vunpack.c.h.bf16 %v168_v6 }
   0x4   :  { %v37_v12 = vmul.f32 %v132_v2, %v112_v1  ;;  %v38_v13 = vmul.f32 %v133_v3, %v112_v1  ;;  %v39_v16 = vmul.f32 %v136_v8, %v112_v1  ;;  %v40_v17 = vmul.f32 %v137_v9, %v112_v1 }
   0x5   :  { %v41_v18 = vmul.f32 %v140_v10, %v112_v1  ;;  %v42_v19 = vmul.f32 %v141_v11, %v112_v1  ;;  %v43_v22 = vmul.f32 %v144_v14, %v112_v1  ;;  %v44_v23 = vmul.f32 %v145_v15, %v112_v1 }
   0x6   :  { %v52_v20 = vadd.f32 %v113_v7, %v37_v12  ;;  %v53_v21 = vadd.f32 %v113_v7, %v38_v13  ;;  %v54_v24 = vadd.f32 %v113_v7, %v39_v16  ;;  %v55_v25 = vadd.f32 %v113_v7, %v40_v17 }
   0x7   :  { %v56_v26 = vadd.f32 %v113_v7, %v41_v18  ;;  %v57_v27 = vadd.f32 %v113_v7, %v42_v19  ;;  %v58_v30 = vadd.f32 %v113_v7, %v43_v22  ;;  %v59_v31 = vadd.f32 %v113_v7, %v44_v23 }
   0x8   :  { %v60_v28 = vmax.f32 %v52_v20, 0.0  ;;  %v61_v29 = vmax.f32 %v53_v21, 0.0  ;;  %v62_v32 = vmax.f32 %v54_v24, 0.0  ;;  %v63_v33 = vmax.f32 %v55_v25, 0.0 }
   0x9   :  { %v64_v34 = vmax.f32 %v56_v26, 0.0  ;;  %v65_v35 = vmax.f32 %v57_v27, 0.0  ;;  %v66_v37 = vmax.f32 %v58_v30, 0.0  ;;  %v67_v38 = vmax.f32 %v59_v31, 0.0 }
   0xa   :  { %v149_v36 = vpack.c.bf16 %v61_v29, %v60_v28  ;;  %v154_v39 = vpack.c.bf16 %v63_v33, %v62_v32 }
   0xb   :  { %v159_v40 = vpack.c.bf16 %v65_v35, %v64_v34  ;;  %v164_v41 = vpack.c.bf16 %v67_v38, %v66_v37 }
   0xc   :  { %150 = vst [vmem:[%s225_s3] sm:$0xff] %v149_v36   ;;  %169 = vst [vmem:[%s225_s3 + $0x8] sm:$0xff] %v154_v39  }
   0xd   :  { %170 = vst [vmem:[%s225_s3 + $0x10] sm:$0xff] %v159_v40   ;;  %171 = vst [vmem:[%s225_s3 + $0x18] sm:$0xff] %v164_v41  }

// kernel: _lambda_.37
= control target key start
LH: loop header
LB: loop body
LE: loop exit
PB: predicated region body
PF: predicated region fallthrough
CT: control target
= control target key end

     0   :  { %s1919_s12 = smov 0   ;;  %s1921_s13 = smov 0   ;;  %s2153_s0 = inlined_call_operand.vmem [shape: bf16[1,512,256], index: 0, kind: input, shape index: {}]   ;;  %s2154_s1 = inlined_call_operand.vmem [shape: bf16[1,256,128], index: 1, kind: input, shape index: {}]   ;;  %s2155_s2 = inlined_call_operand.vmem [shape: bf16[1,512,128], index: 2, kind: output, shape index: {0}]   ;;  %s2156_s3 = inlined_call_operand.vmem [shape: f32[1,2,8,128], index: 3, kind: output, shape index: {1}]  }
   0x1   :  { %s1923_s14 = smov 0  }
   0x2 LB: > { %s36_s15 = sadd.s32 1, %s1892_s13  ;;  %p1440_p0 = scmp.ge.s32.totalorder %s1896_s14, 1  ;;  %s1896_s14 = sphi %s1923_s14, %s14_s14   ;;  %s1892_s13 = sphi %s1921_s13, %s2158_s13   ;;  %s1888_s12 = sphi %s1919_s12, %s2157_s12  }
   0x3   : > { %p38_p1 = scmp.ge.s32.totalorder %s36_s15, 2  ;;  %p211_p2 = scmp.lt.s32.totalorder %s1896_s14, 3 }
   0x5   : > { %s2160_s15 = smov (%p38_p1, %s36_s15), 0  ;;  %p212_p3 = pnand %p1440_p0, %p211_p2 }
   0x6   : > { %v1810_v0 = vld [vmem:[%s2154_s1 + $0x40] sm:$0xff] (!%p212_p3)   ;;  %s1441_s18 = sshll.u32 (!%p212_p3), %s1888_s12, 5  ;;  %v1812_v2 = vld [vmem:[%s2154_s1 + $0x48] sm:$0xff] (!%p212_p3)   ;;  %v1814_v4 = vld [vmem:[%s2154_s1 + $0x50] sm:$0xff] (!%p212_p3)   ;;  %p318_p5 = scmp.lt.s32.totalorder (!%p212_p3), %s1888_s12, 1  ;;  %v1898_v48 = vmov (!%p212_p3), 0.0  }
   0x7   : > { %215 = sbr.rel (%p212_p3) target bundleno = 361 (0x169), region = 28  ;;  %v1811_v1 = vld [vmem:[%s2154_s1] sm:$0xff] (!%p212_p3)   ;;  %1657 = vmatprep.subr.bf16.mxu0 (!%p212_p3), %v1810_v0  ;;  %1769 = vmatprep.subr.bf16.mxu1 (!%p212_p3), %v1810_v0  ;;  %v1813_v3 = vld [vmem:[%s2154_s1 + $0x8] sm:$0xff] (!%p212_p3)   ;;  %p278_p4 = scmp.lt.s32.totalorder (!%p212_p3), %s1441_s18, 63  ;;  %v1815_v5 = vld [vmem:[%s2154_s1 + $0x10] sm:$0xff] (!%p212_p3)  }
   0x8   : > { %1658 = vmatpush3.bf16.msra.mxu0 (!%p212_p3), %v1811_v1  ;;  %1777 = vmatpush3.bf16.msra.mxu1 (!%p212_p3), %v1811_v1  ;;  %v1816_v6 = vld [vmem:[%s2154_s1 + $0x58] sm:$0xff] (!%p212_p3)   ;;  %v1818_v8 = vld [vmem:[%s2154_s1 + $0x60] sm:$0xff] (!%p212_p3)   ;;  %v1820_v10 = vld [vmem:[%s2154_s1 + $0x68] sm:$0xff] (!%p212_p3)  }
   0x9   : > { %1659 = vmatprep.subr.bf16.mxu0 (!%p212_p3), %v1812_v2  ;;  %1770 = vmatprep.subr.bf16.mxu1 (!%p212_p3), %v1812_v2  ;;  %v1817_v7 = vld [vmem:[%s2154_s1 + $0x18] sm:$0xff] (!%p212_p3)   ;;  %v1819_v9 = vld [vmem:[%s2154_s1 + $0x20] sm:$0xff] (!%p212_p3)   ;;  %v1821_v12 = vld [vmem:[%s2154_s1 + $0x28] sm:$0xff] (!%p212_p3)  }
   0xa   : > { %v1822_v13 = vld [vmem:[%s2154_s1 + $0x70] sm:$0xff] (!%p212_p3)   ;;  %v1824_v16 = vld [vmem:[%s2154_s1 + $0x78] sm:$0xff] (!%p212_p3)  }
   0xb   : > { %v1823_v15 = vld [vmem:[%s2154_s1 + $0x30] sm:$0xff] (!%p212_p3)   ;;  %v1825_v17 = vld [vmem:[%s2154_s1 + $0x38] sm:$0xff] (!%p212_p3)  }
   0xc   : > { %1660 = vmatpush3.bf16.msra.mxu0 (!%p212_p3), %v1813_v3  ;;  %1778 = vmatpush3.bf16.msra.mxu1 (!%p212_p3), %v1813_v3 }
   0xd   : > { %1661 = vmatprep.subr.bf16.mxu0 (!%p212_p3), %v1814_v4  ;;  %1771 = vmatprep.subr.bf16.mxu1 (!%p212_p3), %v1814_v4 }
   0xe   : > { %s2162_s18 = smov (!%p278_p4, %s1441_s18), 63  ;;  %s2164_s12 = smov (!%p318_p5, %s1888_s12), 1 }
   0xf   : > { %s1529_s6 = sshll.u32 %s2162_s18, 3  ;;  %s1446_s4 = sshll.u32 %s2164_s12, 3 }
  0x10   : > { %1662 = vmatpush3.bf16.msra.mxu0 %v1815_v5  ;;  %1779 = vmatpush3.bf16.msra.mxu1 %v1815_v5  ;;  %s1973_s11 = scalar_lea.vmem %s2153_s0, %s1529_s6  ;;  %s2033_s7 = scalar_lea.vmem %s2156_s3, %s1446_s4 }
  0x11   : > { %1663 = vmatprep.subr.bf16.mxu0 %v1816_v6  ;;  %1772 = vmatprep.subr.bf16.mxu1 %v1816_v6  ;;  %v1828_v11 = vld [vmem:[%s1973_s11 + $0x4] ss:$8 sps:$4 sm:$0xff]   ;;  %v1826_v18 = vld [vmem:[%s1973_s11] ss:$8 sps:$4 sm:$0xff]   ;;  %v1829_v19 = vld [vmem:[%s1973_s11 + $0x14] ss:$8 sps:$4 sm:$0xff]   ;;  %364 = vst [vmem:[%s2033_s7] sm:$0xff] %v1898_v48 }
  0x12   : > { %749 = vmatprep.mubr.bf16.mxu0 %v1828_v11  ;;  %v1840_v14 = vld [vmem:[%s1973_s11 + $0x84] ss:$8 sps:$4 sm:$0xff]   ;;  %v1838_v20 = vld [vmem:[%s1973_s11 + $0x80] ss:$8 sps:$4 sm:$0xff]   ;;  %v1844_v21 = vld [vmem:[%s1973_s11 + $0x94] ss:$8 sps:$4 sm:$0xff]  }
  0x13   : > { %813 = vmatprep.mubr.bf16.mxu1 %v1840_v14  ;;  %v1831_v22 = vld [vmem:[%s1973_s11 + $0x10] ss:$8 sps:$4 sm:$0xff]   ;;  %v1832_v23 = vld [vmem:[%s1973_s11 + $0x24] ss:$8 sps:$4 sm:$0xff]   ;;  %v1834_v26 = vld [vmem:[%s1973_s11 + $0x20] ss:$8 sps:$4 sm:$0xff]  }
  0x14   : > { %1664 = vmatpush3.bf16.msra.mxu0 %v1817_v7  ;;  %1780 = vmatpush3.bf16.msra.mxu1 %v1817_v7  ;;  %v1846_v24 = vld [vmem:[%s1973_s11 + $0x90] ss:$8 sps:$4 sm:$0xff]   ;;  %v1850_v25 = vld [vmem:[%s1973_s11 + $0xa4] ss:$8 sps:$4 sm:$0xff]   ;;  %v1835_v27 = vld [vmem:[%s1973_s11 + $0x34] ss:$8 sps:$4 sm:$0xff]  }
  0x15   : > { %1665 = vmatprep.subr.bf16.mxu0 %v1818_v8  ;;  %1773 = vmatprep.subr.bf16.mxu1 %v1818_v8  ;;  %v1852_v28 = vld [vmem:[%s1973_s11 + $0xa0] ss:$8 sps:$4 sm:$0xff]   ;;  %v1856_v29 = vld [vmem:[%s1973_s11 + $0xb4] ss:$8 sps:$4 sm:$0xff]   ;;  %v1837_v30 = vld [vmem:[%s1973_s11 + $0x30] ss:$8 sps:$4 sm:$0xff]  }
  0x16   : > { %v1841_v31 = vld [vmem:[%s1973_s11 + $0x44] ss:$8 sps:$4 sm:$0xff]   ;;  %v1858_v32 = vld [vmem:[%s1973_s11 + $0xb0] ss:$8 sps:$4 sm:$0xff]   ;;  %v1843_v34 = vld [vmem:[%s1973_s11 + $0x40] ss:$8 sps:$4 sm:$0xff]  }
  0x17   : > { %v1862_v33 = vld [vmem:[%s1973_s11 + $0xc4] ss:$8 sps:$4 sm:$0xff]   ;;  %v1847_v35 = vld [vmem:[%s1973_s11 + $0x54] ss:$8 sps:$4 sm:$0xff]   ;;  %v1864_v36 = vld [vmem:[%s1973_s11 + $0xc0] ss:$8 sps:$4 sm:$0xff]  }
  0x18   : > { %1666 = vmatpush3.bf16.msra.mxu0 %v1819_v9  ;;  %1781 = vmatpush3.bf16.msra.mxu1 %v1819_v9  ;;  %v1865_v37 = vld [vmem:[%s1973_s11 + $0xd4] ss:$8 sps:$4 sm:$0xff]   ;;  %v1849_v38 = vld [vmem:[%s1973_s11 + $0x50] ss:$8 sps:$4 sm:$0xff]   ;;  %v1853_v39 = vld [vmem:[%s1973_s11 + $0x64] ss:$8 sps:$4 sm:$0xff]  }
  0x19   : > { %1667 = vmatprep.subr.bf16.mxu0 %v1820_v10  ;;  %1774 = vmatprep.subr.bf16.mxu1 %v1820_v10  ;;  %v1867_v40 = vld [vmem:[%s1973_s11 + $0xd0] ss:$8 sps:$4 sm:$0xff]   ;;  %v1868_v41 = vld [vmem:[%s1973_s11 + $0xe4] ss:$8 sps:$4 sm:$0xff]   ;;  %v1855_v42 = vld [vmem:[%s1973_s11 + $0x60] ss:$8 sps:$4 sm:$0xff]  }
  0x1a   : > { %v1859_v43 = vld [vmem:[%s1973_s11 + $0x74] ss:$8 sps:$4 sm:$0xff]   ;;  %v1870_v44 = vld [vmem:[%s1973_s11 + $0xe0] ss:$8 sps:$4 sm:$0xff]   ;;  %v1861_v46 = vld [vmem:[%s1973_s11 + $0x70] ss:$8 sps:$4 sm:$0xff]  }
  0x1b   : > { %v1871_v45 = vld [vmem:[%s1973_s11 + $0xf4] ss:$8 sps:$4 sm:$0xff]   ;;  %v1873_v47 = vld [vmem:[%s1973_s11 + $0xf0] ss:$8 sps:$4 sm:$0xff]   ;;  %s1445_s8 = sshll.u32 %s2162_s18, 2 }
  0x1c   : > { %1668 = vmatpush3.bf16.msra.mxu0 %v1821_v12  ;;  %1782 = vmatpush3.bf16.msra.mxu1 %v1821_v12  ;;  %s2042_s10 = scalar_lea.vmem %s2155_s2, %s1445_s8 }
  0x1d   : > { %1669 = vmatprep.subr.bf16.mxu0 %v1822_v13  ;;  %1775 = vmatprep.subr.bf16.mxu1 %v1822_v13 }
  0x20   : > { %1670 = vmatpush3.bf16.msra.mxu0 %v1823_v15  ;;  %1783 = vmatpush3.bf16.msra.mxu1 %v1823_v15 }
  0x21   : > { %1671 = vmatprep.subr.bf16.mxu0 %v1824_v16  ;;  %1776 = vmatprep.subr.bf16.mxu1 %v1824_v16 }
  0x24   : > { %1672 = vmatpush3.bf16.msra.mxu0 %v1825_v17  ;;  %1784 = vmatpush3.bf16.msra.mxu1 %v1825_v17 }
  0x27   : > { %750 = vmatmul.mubr.bf16.vlgmr.msra.gmra.mrb[0].mxu0 %v1826_v18  ;;  %814 = vmatmul.mubr.bf16.vlgmr.msra.gmra.mrb[0].mxu1 %v1838_v20 }
  0x28   : > { %757 = vmatprep.mubr.bf16.mxu0 %v1829_v19  ;;  %821 = vmatprep.mubr.bf16.mxu1 %v1844_v21 }
  0x2f   : > { %758 = vmatmul.mubr.bf16.gmra.mrb[4].mxu0 %v1831_v22  ;;  %822 = vmatmul.mubr.bf16.gmra.mrb[4].mxu1 %v1846_v24 }
  0x30   : > { %765 = vmatprep.mubr.bf16.mxu0 %v1832_v23  ;;  %829 = vmatprep.mubr.bf16.mxu1 %v1850_v25 }
  0x37   : > { %766 = vmatmul.mubr.bf16.gmra.mrb[8].mxu0 %v1834_v26  ;;  %830 = vmatmul.mubr.bf16.gmra.mrb[8].mxu1 %v1852_v28 }
  0x38   : > { %773 = vmatprep.mubr.bf16.mxu0 %v1835_v27  ;;  %837 = vmatprep.mubr.bf16.mxu1 %v1856_v29 }
  0x3f   : > { %774 = vmatmul.mubr.bf16.gmra.mrb[12].mxu0 %v1837_v30  ;;  %838 = vmatmul.mubr.bf16.gmra.mrb[12].mxu1 %v1858_v32 }
  0x40   : > { %781 = vmatprep.mubr.bf16.mxu0 %v1841_v31  ;;  %845 = vmatprep.mubr.bf16.mxu1 %v1862_v33 }
  0x47   : > { %782 = vmatmul.mubr.bf16.gmra.mrb[16].mxu0 %v1843_v34  ;;  %846 = vmatmul.mubr.bf16.gmra.mrb[16].mxu1 %v1864_v36 }
  0x48   : > { %789 = vmatprep.mubr.bf16.mxu0 %v1847_v35  ;;  %853 = vmatprep.mubr.bf16.mxu1 %v1865_v37 }
  0x4f   : > { %790 = vmatmul.mubr.bf16.gmra.mrb[20].mxu0 %v1849_v38  ;;  %854 = vmatmul.mubr.bf16.gmra.mrb[20].mxu1 %v1867_v40 }
  0x50   : > { %797 = vmatprep.mubr.bf16.mxu0 %v1853_v39  ;;  %861 = vmatprep.mubr.bf16.mxu1 %v1868_v41 }
  0x57   : > { %798 = vmatmul.mubr.bf16.gmra.mrb[24].mxu0 %v1855_v42  ;;  %862 = vmatmul.mubr.bf16.gmra.mrb[24].mxu1 %v1870_v44 }
  0x58   : > { %805 = vmatprep.mubr.bf16.mxu0 %v1859_v43  ;;  %869 = vmatprep.mubr.bf16.mxu1 %v1871_v45 }
  0x5f   : > { %806 = vmatmul.mubr.bf16.gmra.mrb[28].mxu0 %v1861_v46  ;;  %870 = vmatmul.mubr.bf16.gmra.mrb[28].mxu1 %v1873_v47 }
  0xfa   : > { %v1673_v49 = vpop.f32.mrb[0].mxu0  ;;  %v1721_v51 = vpop.f32.mrb[0].mxu1 }
  0xfb   : > { %v1674_v50 = vpop.f32.mrb[1].mxu0  ;;  %v1722_v54 = vpop.f32.mrb[1].mxu1 }
  0xfc   : > { %v1675_v52 = vadd.f32 %v1674_v50, %v1673_v49  ;;  %v1676_v53 = vpop.f32.mrb[2].mxu0  ;;  %v2037_v56 = vadd.f32 %v1722_v54, %v1721_v51  ;;  %v1724_v57 = vpop.f32.mrb[2].mxu1 }
  0xfd   : > { %v1677_v55 = vpop.f32.mrb[3].mxu0  ;;  %v1725_v59 = vpop.f32.mrb[3].mxu1 }
  0xfe   : > { %v1678_v58 = vadd.f32 %v1677_v55, %v1676_v53  ;;  %v2044_v60 = vadd.f32 %v1725_v59, %v1724_v57  ;;  %v1175_v61 = vmul.f32 %v1675_v52, %v1675_v52 }
 0x100   : > { %v1565_v62 = vpack.c.bf16 %v1678_v58, %v1675_v52  ;;  %v1137_v63 = vadd.f32 %v1678_v58, %v1675_v52  ;;  %v1176_v0 = vmul.f32 %v1678_v58, %v1678_v58  ;;  %v1605_v1 = vpack.c.bf16 %v2044_v60, %v2037_v56 }
 0x102   : > { %1566 = vst [vmem:[%s2042_s10] sm:$0xff] %v1565_v62   ;;  %v1207_v2 = vadd.f32 %v1176_v0, %v1175_v61  ;;  %v1679_v3 = vpop.f32.mrb[4].mxu0  ;;  %1649 = vst [vmem:[%s2042_s10 + $0x40] sm:$0xff] %v1605_v1   ;;  %v1727_v5 = vpop.f32.mrb[4].mxu1 }
 0x103   : > { %v1680_v4 = vpop.f32.mrb[5].mxu0  ;;  %v1728_v8 = vpop.f32.mrb[5].mxu1 }
 0x104   : > { %v1681_v6 = vadd.f32 %v1680_v4, %v1679_v3  ;;  %v1682_v7 = vpop.f32.mrb[6].mxu0  ;;  %v2050_v10 = vadd.f32 %v1728_v8, %v1727_v5  ;;  %v1730_v11 = vpop.f32.mrb[6].mxu1 }
 0x105   : > { %v1683_v9 = vpop.f32.mrb[7].mxu0  ;;  %v1731_v15 = vpop.f32.mrb[7].mxu1 }
 0x106   : > { %v1138_v12 = vadd.f32 %v1681_v6, %v1137_v63  ;;  %v1177_v13 = vmul.f32 %v1681_v6, %v1681_v6  ;;  %v1684_v14 = vadd.f32 %v1683_v9, %v1682_v7  ;;  %v2052_v16 = vadd.f32 %v1731_v15, %v1730_v11 }
 0x108   : > { %v1208_v17 = vadd.f32 %v1207_v2, %v1177_v13  ;;  %v1570_v18 = vpack.c.bf16 %v1684_v14, %v1681_v6  ;;  %v1139_v19 = vadd.f32 %v1684_v14, %v1138_v12  ;;  %v1178_v20 = vmul.f32 %v1684_v14, %v1684_v14 }
 0x109   : > { %v1610_v21 = vpack.c.bf16 %v2052_v16, %v2050_v10 }
 0x10a   : > { %1642 = vst [vmem:[%s2042_s10 + $0x8] sm:$0xff] %v1570_v18   ;;  %v1209_v22 = vadd.f32 %v1208_v17, %v1178_v20  ;;  %v1685_v23 = vpop.f32.mrb[8].mxu0  ;;  %v1733_v25 = vpop.f32.mrb[8].mxu1 }
 0x10b   : > { %v1686_v24 = vpop.f32.mrb[9].mxu0  ;;  %1650 = vst [vmem:[%s2042_s10 + $0x48] sm:$0xff] %v1610_v21   ;;  %v1734_v28 = vpop.f32.mrb[9].mxu1 }
 0x10c   : > { %v1687_v26 = vadd.f32 %v1686_v24, %v1685_v23  ;;  %v1688_v27 = vpop.f32.mrb[10].mxu0  ;;  %v2058_v30 = vadd.f32 %v1734_v28, %v1733_v25  ;;  %v1736_v31 = vpop.f32.mrb[10].mxu1 }
 0x10d   : > { %v1689_v29 = vpop.f32.mrb[11].mxu0  ;;  %v1737_v35 = vpop.f32.mrb[11].mxu1 }
 0x10e   : > { %v1140_v32 = vadd.f32 %v1687_v26, %v1139_v19  ;;  %v1179_v33 = vmul.f32 %v1687_v26, %v1687_v26  ;;  %v1690_v34 = vadd.f32 %v1689_v29, %v1688_v27  ;;  %v2060_v36 = vadd.f32 %v1737_v35, %v1736_v31 }
 0x110   : > { %v1210_v37 = vadd.f32 %v1209_v22, %v1179_v33  ;;  %v1575_v38 = vpack.c.bf16 %v1690_v34, %v1687_v26  ;;  %v1141_v39 = vadd.f32 %v1690_v34, %v1140_v32  ;;  %v1180_v40 = vmul.f32 %v1690_v34, %v1690_v34 }
 0x111   : > { %v1615_v41 = vpack.c.bf16 %v2060_v36, %v2058_v30 }
 0x112   : > { %1643 = vst [vmem:[%s2042_s10 + $0x10] sm:$0xff] %v1575_v38   ;;  %v1211_v42 = vadd.f32 %v1210_v37, %v1180_v40  ;;  %v1691_v43 = vpop.f32.mrb[12].mxu0  ;;  %v1739_v45 = vpop.f32.mrb[12].mxu1 }
 0x113   : > { %v1692_v44 = vpop.f32.mrb[13].mxu0  ;;  %1651 = vst [vmem:[%s2042_s10 + $0x50] sm:$0xff] %v1615_v41   ;;  %v1740_v48 = vpop.f32.mrb[13].mxu1 }
 0x114   : > { %v1693_v46 = vadd.f32 %v1692_v44, %v1691_v43  ;;  %v1694_v47 = vpop.f32.mrb[14].mxu0  ;;  %v2066_v50 = vadd.f32 %v1740_v48, %v1739_v45  ;;  %v1742_v51 = vpop.f32.mrb[14].mxu1 }
 0x115   : > { %v1695_v49 = vpop.f32.mrb[15].mxu0  ;;  %v1743_v55 = vpop.f32.mrb[15].mxu1 }
 0x116   : > { %v1142_v52 = vadd.f32 %v1693_v46, %v1141_v39  ;;  %v1181_v53 = vmul.f32 %v1693_v46, %v1693_v46  ;;  %v1696_v54 = vadd.f32 %v1695_v49, %v1694_v47  ;;  %v2068_v57 = vadd.f32 %v1743_v55, %v1742_v51 }
 0x118   : > { %v1212_v58 = vadd.f32 %v1211_v42, %v1181_v53  ;;  %v1580_v59 = vpack.c.bf16 %v1696_v54, %v1693_v46  ;;  %v1143_v61 = vadd.f32 %v1696_v54, %v1142_v52  ;;  %v1182_v62 = vmul.f32 %v1696_v54, %v1696_v54 }
 0x119   : > { %v1620_v63 = vpack.c.bf16 %v2068_v57, %v2066_v50 }
 0x11a   : > { %1644 = vst [vmem:[%s2042_s10 + $0x18] sm:$0xff] %v1580_v59   ;;  %v1213_v0 = vadd.f32 %v1212_v58, %v1182_v62  ;;  %v1697_v1 = vpop.f32.mrb[16].mxu0  ;;  %v1745_v3 = vpop.f32.mrb[16].mxu1 }
 0x11b   : > { %v1698_v2 = vpop.f32.mrb[17].mxu0  ;;  %1652 = vst [vmem:[%s2042_s10 + $0x58] sm:$0xff] %v1620_v63   ;;  %v1746_v6 = vpop.f32.mrb[17].mxu1 }
 0x11c   : > { %v1699_v4 = vadd.f32 %v1698_v2, %v1697_v1  ;;  %v1700_v5 = vpop.f32.mrb[18].mxu0  ;;  %v2074_v8 = vadd.f32 %v1746_v6, %v1745_v3  ;;  %v1748_v9 = vpop.f32.mrb[18].mxu1 }
 0x11d   : > { %v1701_v7 = vpop.f32.mrb[19].mxu0  ;;  %v1749_v14 = vpop.f32.mrb[19].mxu1 }
 0x11e   : > { %v1144_v11 = vadd.f32 %v1699_v4, %v1143_v61  ;;  %v1183_v12 = vmul.f32 %v1699_v4, %v1699_v4  ;;  %v1702_v13 = vadd.f32 %v1701_v7, %v1700_v5  ;;  %v2076_v15 = vadd.f32 %v1749_v14, %v1748_v9 }
 0x120   : > { %v1214_v17 = vadd.f32 %v1213_v0, %v1183_v12  ;;  %v1585_v18 = vpack.c.bf16 %v1702_v13, %v1699_v4  ;;  %v1145_v19 = vadd.f32 %v1702_v13, %v1144_v11  ;;  %v1184_v20 = vmul.f32 %v1702_v13, %v1702_v13 }
 0x121   : > { %v1625_v21 = vpack.c.bf16 %v2076_v15, %v2074_v8 }
 0x122   : > { %1645 = vst [vmem:[%s2042_s10 + $0x20] sm:$0xff] %v1585_v18   ;;  %v1215_v22 = vadd.f32 %v1214_v17, %v1184_v20  ;;  %v1703_v23 = vpop.f32.mrb[20].mxu0  ;;  %v1751_v25 = vpop.f32.mrb[20].mxu1 }
 0x123   : > { %v1704_v24 = vpop.f32.mrb[21].mxu0  ;;  %1653 = vst [vmem:[%s2042_s10 + $0x60] sm:$0xff] %v1625_v21   ;;  %v1752_v28 = vpop.f32.mrb[21].mxu1 }
 0x124   : > { %v1705_v26 = vadd.f32 %v1704_v24, %v1703_v23  ;;  %v1706_v27 = vpop.f32.mrb[22].mxu0  ;;  %v2082_v31 = vadd.f32 %v1752_v28, %v1751_v25  ;;  %v1754_v32 = vpop.f32.mrb[22].mxu1  ;;  %v1191_v28 = vmul.f32 %v2037_v56, %v2037_v56 }
 0x125   : > { %v1707_v29 = vpop.f32.mrb[23].mxu0  ;;  %v1755_v37 = vpop.f32.mrb[23].mxu1 }
 0x126   : > { %v1146_v33 = vadd.f32 %v1705_v26, %v1145_v19  ;;  %v1185_v34 = vmul.f32 %v1705_v26, %v1705_v26  ;;  %v1708_v35 = vadd.f32 %v1707_v29, %v1706_v27  ;;  %v2084_v38 = vadd.f32 %v1755_v37, %v1754_v32 }
 0x127   : > { %v1193_v37 = vmul.f32 %v2050_v10, %v2050_v10 }
 0x128   : > { %v1216_v39 = vadd.f32 %v1215_v22, %v1185_v34  ;;  %v1590_v40 = vpack.c.bf16 %v1708_v35, %v1705_v26  ;;  %v1147_v41 = vadd.f32 %v1708_v35, %v1146_v33  ;;  %v1186_v42 = vmul.f32 %v1708_v35, %v1708_v35 }
 0x129   : > { %v1630_v43 = vpack.c.bf16 %v2084_v38, %v2082_v31  ;;  %v1192_v33 = vmul.f32 %v2044_v60, %v2044_v60 }
 0x12a   : > { %1646 = vst [vmem:[%s2042_s10 + $0x28] sm:$0xff] %v1590_v40   ;;  %v1217_v44 = vadd.f32 %v1216_v39, %v1186_v42  ;;  %v1709_v45 = vpop.f32.mrb[24].mxu0  ;;  %v1757_v47 = vpop.f32.mrb[24].mxu1 }
 0x12b   : > { %v1710_v46 = vpop.f32.mrb[25].mxu0  ;;  %1654 = vst [vmem:[%s2042_s10 + $0x68] sm:$0xff] %v1630_v43   ;;  %v1758_v51 = vpop.f32.mrb[25].mxu1  ;;  %v1195_v43 = vmul.f32 %v2058_v30, %v2058_v30 }
 0x12c   : > { %v1711_v48 = vadd.f32 %v1710_v46, %v1709_v45  ;;  %v1712_v49 = vpop.f32.mrb[26].mxu0  ;;  %v2090_v53 = vadd.f32 %v1758_v51, %v1757_v47  ;;  %v1760_v54 = vpop.f32.mrb[26].mxu1 }
 0x12d   : > { %v1713_v52 = vpop.f32.mrb[27].mxu0  ;;  %v1761_v61 = vpop.f32.mrb[27].mxu1 }
 0x12e   : > { %v1148_v55 = vadd.f32 %v1711_v48, %v1147_v41  ;;  %v1187_v58 = vmul.f32 %v1711_v48, %v1711_v48  ;;  %v1714_v59 = vadd.f32 %v1713_v52, %v1712_v49  ;;  %v2092_v62 = vadd.f32 %v1761_v61, %v1760_v54 }
 0x12f   : > { %v1194_v41 = vmul.f32 %v2052_v16, %v2052_v16  ;;  %v1199_v54 = vmul.f32 %v2074_v8, %v2074_v8 }
 0x130   : > { %v1218_v63 = vadd.f32 %v1217_v44, %v1187_v58  ;;  %v1595_v0 = vpack.c.bf16 %v1714_v59, %v1711_v48  ;;  %v1149_v1 = vadd.f32 %v1714_v59, %v1148_v55  ;;  %v1188_v2 = vmul.f32 %v1714_v59, %v1714_v59 }
 0x131   : > { %v1635_v3 = vpack.c.bf16 %v2092_v62, %v2090_v53  ;;  %v1200_v59 = vmul.f32 %v2076_v15, %v2076_v15 }
 0x132   : > { %1647 = vst [vmem:[%s2042_s10 + $0x30] sm:$0xff] %v1595_v0   ;;  %v1219_v4 = vadd.f32 %v1218_v63, %v1188_v2  ;;  %v1715_v5 = vpop.f32.mrb[28].mxu0  ;;  %v1763_v7 = vpop.f32.mrb[28].mxu1  ;;  %v1201_v63 = vmul.f32 %v2082_v31, %v2082_v31 }
 0x133   : > { %v1716_v6 = vpop.f32.mrb[29].mxu0  ;;  %1655 = vst [vmem:[%s2042_s10 + $0x70] sm:$0xff] %v1635_v3   ;;  %v1764_v12 = vpop.f32.mrb[29].mxu1  ;;  %v1203_v3 = vmul.f32 %v2090_v53, %v2090_v53 }
 0x134   : > { %v1717_v9 = vadd.f32 %v1716_v6, %v1715_v5  ;;  %v1718_v11 = vpop.f32.mrb[30].mxu0  ;;  %v1765_v14 = vadd.f32 %v1764_v12, %v1763_v7  ;;  %v1766_v17 = vpop.f32.mrb[30].mxu1  ;;  %v1204_v5 = vmul.f32 %v2092_v62, %v2092_v62 }
 0x135   : > { %v1719_v13 = vpop.f32.mrb[31].mxu0  ;;  %v1767_v21 = vpop.f32.mrb[31].mxu1 }
 0x136   : > { %v1150_v18 = vadd.f32 %v1717_v9, %v1149_v1  ;;  %v1189_v19 = vmul.f32 %v1717_v9, %v1717_v9  ;;  %v1720_v20 = vadd.f32 %v1719_v13, %v1718_v11  ;;  %v1768_v22 = vadd.f32 %v1767_v21, %v1766_v17 }
 0x137   : > { %v1202_v1 = vmul.f32 %v2084_v38, %v2084_v38  ;;  %v1205_v6 = vmul.f32 %v1765_v14, %v1765_v14 }
 0x138   : > { %v1220_v23 = vadd.f32 %v1219_v4, %v1189_v19  ;;  %v1600_v24 = vpack.c.bf16 %v1720_v20, %v1717_v9  ;;  %v1151_v25 = vadd.f32 %v1720_v20, %v1150_v18  ;;  %v1190_v26 = vmul.f32 %v1720_v20, %v1720_v20 }
 0x139   : > { %v1640_v27 = vpack.c.bf16 %v1768_v22, %v1765_v14 }
 0x13a   : > { %1648 = vst [vmem:[%s2042_s10 + $0x38] sm:$0xff] %v1600_v24   ;;  %v1152_v29 = vadd.f32 %v2037_v56, %v1151_v25  ;;  %v1221_v32 = vadd.f32 %v1220_v23, %v1190_v26 }
 0x13b   : > { %1656 = vst [vmem:[%s2042_s10 + $0x78] sm:$0xff] %v1640_v27  }
 0x13c   : > { %v1153_v34 = vadd.f32 %v2044_v60, %v1152_v29  ;;  %v1222_v35 = vadd.f32 %v1221_v32, %v1191_v28  ;;  %v1196_v60 = vmul.f32 %v2060_v36, %v2060_v36 }
 0x13e   : > { %v1154_v39 = vadd.f32 %v2050_v10, %v1153_v34  ;;  %v1223_v40 = vadd.f32 %v1222_v35, %v1192_v33  ;;  %v1197_v10 = vmul.f32 %v2066_v50, %v2066_v50 }
 0x140   : > { %v1155_v42 = vadd.f32 %v2052_v16, %v1154_v39  ;;  %v1224_v56 = vadd.f32 %v1223_v40, %v1193_v37  ;;  %v1198_v16 = vmul.f32 %v2068_v57, %v2068_v57 }
 0x142   : > { %v1225_v44 = vadd.f32 %v1224_v56, %v1194_v41  ;;  %v1156_v45 = vadd.f32 %v2058_v30, %v1155_v42 }
 0x144   : > { %v1157_v46 = vadd.f32 %v2060_v36, %v1156_v45  ;;  %v1226_v47 = vadd.f32 %v1225_v44, %v1195_v43 }
 0x146   : > { %v1158_v48 = vadd.f32 %v2066_v50, %v1157_v46  ;;  %v1227_v49 = vadd.f32 %v1226_v47, %v1196_v60 }
 0x148   : > { %v1159_v51 = vadd.f32 %v2068_v57, %v1158_v48  ;;  %v1228_v52 = vadd.f32 %v1227_v49, %v1197_v10 }
 0x14a   : > { %v1160_v30 = vadd.f32 %v2074_v8, %v1159_v51  ;;  %v1229_v55 = vadd.f32 %v1228_v52, %v1198_v16 }
 0x14c   : > { %v1230_v36 = vadd.f32 %v1229_v55, %v1199_v54  ;;  %v1161_v58 = vadd.f32 %v2076_v15, %v1160_v30 }
 0x14e   : > { %v1231_v50 = vadd.f32 %v1230_v36, %v1200_v59  ;;  %v1162_v61 = vadd.f32 %v2082_v31, %v1161_v58 }
 0x150   : > { %v1232_v57 = vadd.f32 %v1231_v50, %v1201_v63  ;;  %v1163_v0 = vadd.f32 %v2084_v38, %v1162_v61  ;;  %v1206_v38 = vmul.f32 %v1768_v22, %v1768_v22 }
 0x152   : > { %v1233_v8 = vadd.f32 %v1232_v57, %v1202_v1  ;;  %v1164_v2 = vadd.f32 %v2090_v53, %v1163_v0 }
 0x154   : > { %v1234_v4 = vadd.f32 %v1233_v8, %v1203_v3  ;;  %v1165_v15 = vadd.f32 %v2092_v62, %v1164_v2 }
 0x156   : > { %v1235_v31 = vadd.f32 %v1234_v4, %v1204_v5  ;;  %v1166_v7 = vadd.f32 %v1765_v14, %v1165_v15 }
 0x158   : > { %v1236_v9 = vadd.f32 %v1235_v31, %v1205_v6  ;;  %v1167_v11 = vadd.f32 %v1768_v22, %v1166_v7 }
 0x15a   : > { %v1168_v12 = vrot.slane %v1167_v11, 4  ;;  %v1237_v13 = vadd.f32 %v1236_v9, %v1206_v38 }
 0x15c   : > { %v1169_v17 = vadd.f32 %v1168_v12, %v1167_v11  ;;  %v1238_v18 = vrot.slane %v1237_v13, 4 }
 0x15e   : > { %v1170_v19 = vrot.slane %v1169_v17, 2  ;;  %v1239_v53 = vadd.f32 %v1238_v18, %v1237_v13 }
 0x160   : > { %v1171_v20 = vadd.f32 %v1170_v19, %v1169_v17  ;;  %v1240_v21 = vrot.slane %v1239_v53, 2 }
 0x162   : > { %v1172_v23 = vrot.slane %v1171_v20, 1  ;;  %v1241_v24 = vadd.f32 %v1240_v21, %v1239_v53 }
 0x164   : > { %v1173_v25 = vadd.f32 %v1172_v23, %v1171_v20  ;;  %v1242_v62 = vrot.slane %v1241_v24, 1 }
 0x166   : > { %1174 = vst [vmem:[%s2033_s7] sm:$0x1] %v1173_v25  ;;  %v1243_v26 = vadd.f32 %v1242_v62, %v1241_v24 }
 0x168   : > { %1244 = vst [vmem:[%s2033_s7 + $0x1] sm:$0x1] %v1243_v26 }
 0x169 PF: > { %s14_s14 = sadd.s32 1, %s1896_s14   ;;  %s2157_s12 = smov %s1892_s13 }
 0x16a   : > { %p11_p6 = scmp.ge.s32.totalorder %s14_s14, 4   ;;  %s2158_s13 = smov %s2160_s15 }
 0x16c   :  { %13 = sbr.rel (!%p11_p6) target bundleno = 2 (0x2), region = 81 }

// kernel: tile.155
= control target key start
LH: loop header
LB: loop body
LE: loop exit
PB: predicated region body
PF: predicated region fallthrough
CT: control target
= control target key end

     0   :  { %s22_s0 = inlined_call_operand.vmem [shape: f32[64], index: 0, kind: input, shape index: {}]   ;;  %s23_s1 = inlined_call_operand.vmem [shape: f32[2,64], index: 1, kind: output, shape index: {}]  }
   0x1   :  { %v4_v0 = vld [vmem:[%s22_s0] ss:$0 sm:$0xff] }
   0x2   :  { %5 = vst [vmem:[%s23_s1] sm:$0x3] %v4_v0 }

// kernel: tile.156
= control target key start
LH: loop header
LB: loop body
LE: loop exit
PB: predicated region body
PF: predicated region fallthrough
CT: control target
= control target key end

     0   :  { %vm7_vm0 = vcmask 523264   ;;  %vm13_vm1 = vcmask 1048064   ;;  %s39_s0 = inlined_call_operand.vmem [shape: f32[2,64], index: 0, kind: input, shape index: {}]   ;;  %s40_s1 = inlined_call_operand.vmem [shape: f32[1,128], index: 1, kind: output, shape index: {}]  }
   0x1   :  { %v4_v0 = vld [vmem:[%s39_s0] sm:$0x3]  ;;  %s22_s0 = smov 64  }
   0x2   :  { %5 = vst [vmem:[#allocation1] sm:$0x3] %v4_v0 }
   0x9   :  { %v10_v1 = vld [vmem:[#allocation1 + $0x1] sm:$0x1]   ;;  %v6_v2 = vld [vmem:[#allocation1] sm:$0x1]  }
   0xa   :  { %11 = vrot.lane.b32.xlu0 %v10_v1, %s22_s0  ;;  %8 = vst.msk [vmem:[#allocation0] sm:$0x1] %vm7_vm0, %v6_v2  }
  0x7c   :  { %v12_v3 = vpop.permute.xlu0 %11  }
  0x7d   :  { %14 = vst.msk [vmem:[#allocation0] sm:$0x1] %vm13_vm1, %v12_v3  }
  0x84   :  { %v18_v4 = vld [vmem:[#allocation0] sm:$0x1] }
  0x85   :  { %20 = vst [vmem:[%s40_s1] sm:$0x1] %v18_v4 }

// kernel: _lambda_.39
= control target key start
LH: loop header
LB: loop body
LE: loop exit
PB: predicated region body
PF: predicated region fallthrough
CT: control target
= control target key end

     0   :  { %s939_s15 = smov 0   ;;  %s1224_s0 = inlined_call_operand.vmem [shape: bf16[2,9,9,16], index: 0, kind: input, shape index: {}]   ;;  %s1225_s1 = inlined_call_operand.vmem [shape: bf16[2,9,9,16], index: 1, kind: input, shape index: {}]   ;;  %s1226_s2 = inlined_call_operand.vmem [shape: bf16[2,9,9,16], index: 2, kind: input, shape index: {}]   ;;  %s1227_s3 = inlined_call_operand.vmem [shape: bf16[2,9,9,16], index: 3, kind: input, shape index: {}]   ;;  %s1228_s4 = inlined_call_operand.vmem [shape: bf16[2,8,8,16], index: 4, kind: output, shape index: {}]  }
   0x1 LB: > { %s859_s16 = sadd.s32 4294967295, %s912_s15   ;;  %p863_p0 = scmp.ge.s32.totalorder %s912_s15, 1  ;;  %s912_s15 = sphi %s939_s15, %s14_s15  }
   0x2   : > { %p192_p1 = scmp.lt.s32.totalorder %s912_s15, 3 }
   0x4   : > { %p193_p2 = pnand %p863_p0, %p192_p1 }
   0x5   : > { %p233_p3 = scmp.lt.s32.totalorder (!%p193_p2), %s859_s16, 1  ;;  %vm290_vm0 = vsmask.f32 (!%p193_p2), 3328  ;;  %vm291_vm1 = vsmask.f32 (!%p193_p2), 7440  ;;  %vm759_vm3 = vcmask (!%p193_p2), 125952  }
   0x6   : > { %196 = sbr.rel (%p193_p2) target bundleno = 100 (0x64), region = 36  ;;  %vm984_vm2 = vmor (!%p193_p2), %vm290_vm0, %vm291_vm1 }
   0xd   : > { %s1232_s16 = smov (!%p233_p3, %s859_s16), 1 }
   0xe   : > { %s950_s17 = smul.u32 72, %s1232_s16  ;;  %s896_s30 = sshll.u32 %s1232_s16, 5 }
   0xf   : > { %s1049_s7 = scalar_lea.vmem %s1228_s4, %s896_s30 }
  0x10   : > { %s956_s20 = scalar_lea.vmem %s1224_s0, %s950_s17  ;;  %s962_s23 = scalar_lea.vmem %s1225_s1, %s950_s17 }
  0x11   : > { %s968_s26 = scalar_lea.vmem %s1226_s2, %s950_s17  ;;  %v258_v0 = vld [vmem:[%s956_s20] sm:$0xf]  ;;  %v282_v1 = vld [vmem:[%s956_s20 + $0x4] sm:$0x1]  ;;  %v976_v13 = vld [vmem:[%s956_s20 + $0x8] sm:$0xf]  ;;  %s997_s29 = scalar_lea.vmem %s1227_s3, %s950_s17 }
  0x12   : > { %v294_v2 = vshrl.u32 %v258_v0, 16  ;;  %v297_v3 = vshll.u32 %v258_v0, 16  ;;  %v303_v4 = vshll.u32 %v282_v1, 16  ;;  %v421_v5 = vld [vmem:[%s968_s26] sm:$0xf]  ;;  %v632_v19 = vshrl.u32 %v976_v13, 16 }
  0x13   : > { %v266_v6 = vld [vmem:[%s962_s23] sm:$0xf]  ;;  %v453_v7 = vld [vmem:[%s968_s26 + $0x4] sm:$0x1]  ;;  %v462_v8 = vshrl.u32 %v421_v5, 16  ;;  %v465_v9 = vshll.u32 %v421_v5, 16 }
  0x14   : > { %v296_v10 = vrot.slane %v294_v2, 4  ;;  %v299_v11 = vrot.slane %v297_v3, 5  ;;  %v471_v12 = vshll.u32 %v453_v7, 16  ;;  %v886_v16 = vld [vmem:[%s956_s20 + $0xc] sm:$0x1]  ;;  %v305_v18 = vrot.slane %v303_v4, 5 }
  0x15   : > { %v464_v14 = vrot.slane %v462_v8, 4  ;;  %v467_v15 = vrot.slane %v465_v9, 5  ;;  %v635_v20 = vshll.u32 %v976_v13, 16  ;;  %v259_v21 = vld [vmem:[%s956_s20 + $0x8] sm:$0xf]  ;;  %v274_v22 = vmax.bf16 %v266_v6, %v258_v0 }
  0x16   : > { %v300_v17 = vor.u32 %v299_v11, %v296_v10  ;;  %v641_v25 = vshll.u32 %v886_v16, 16  ;;  %v267_v26 = vld [vmem:[%s962_s23 + $0x8] sm:$0xf]  ;;  %v283_v27 = vld [vmem:[%s956_s20 + $0xc] sm:$0x1]  ;;  %v308_v28 = vshrl.u32 %v259_v21, 16 }
  0x17   : > { %v468_v24 = vor.u32 %v467_v15, %v464_v14  ;;  %v473_v30 = vrot.slane %v471_v12, 5  ;;  %v634_v31 = vrot.slane %v632_v19, 4  ;;  %v637_v32 = vrot.slane %v635_v20, 5  ;;  %v991_v33 = vld [vmem:[%s968_s26 + $0x8] sm:$0xf] }
  0x18   : > { %v301_v29 = vrot.slane %v300_v17, 4  ;;  %v275_v35 = vmax.bf16 %v267_v26, %v259_v21  ;;  %v310_v36 = vrot.slane %v308_v28, 4  ;;  %v311_v37 = vshll.u32 %v259_v21, 16  ;;  %v454_v41 = vld [vmem:[%s968_s26 + $0xc] sm:$0x1] }
  0x19   : > { %v469_v34 = vrot.slane %v468_v24, 4  ;;  %v638_v39 = vor.u32 %v637_v32, %v634_v31  ;;  %v317_v40 = vshll.u32 %v283_v27, 16  ;;  %v476_v42 = vshrl.u32 %v991_v33, 16  ;;  %v1004_v43 = vld [vmem:[%s956_s20 + $0x10] sm:$0xf] }
  0x1a   : > { %v306_v38 = vsel %vm984_vm2, %v301_v29, %v305_v18  ;;  %v1006_v45 = vrot.slane %v641_v25, 5  ;;  %v313_v46 = vrot.slane %v311_v37, 5  ;;  %v479_v47 = vshll.u32 %v991_v33, 16  ;;  %v887_v48 = vld [vmem:[%s956_s20 + $0x14] sm:$0x1] }
  0x1b   : > { %v413_v44 = vmax.bf16 %v306_v38, %v274_v22  ;;  %v437_v49 = vld [vmem:[%s997_s29] sm:$0xf]  ;;  %v639_v50 = vrot.slane %v638_v39, 4  ;;  %v319_v51 = vrot.slane %v317_v40, 5  ;;  %v478_v52 = vrot.slane %v476_v42, 4 }
  0x1c   : > { %v485_v53 = vshll.u32 %v454_v41, 16  ;;  %v314_v55 = vor.u32 %v313_v46, %v310_v36  ;;  %v481_v56 = vrot.slane %v479_v47, 5  ;;  %v646_v57 = vshrl.u32 %v1004_v43, 16  ;;  %v1013_v58 = vld [vmem:[%s956_s20 + $0x10] sm:$0xf] }
  0x1d   : > { %v429_v54 = vmax.bf16 %v421_v5, %v413_v44  ;;  %v474_v59 = vsel %vm984_vm2, %v469_v34, %v473_v30  ;;  %v649_v61 = vshll.u32 %v1004_v43, 16  ;;  %v655_v62 = vshll.u32 %v887_v48, 16  ;;  %v284_v3 = vld [vmem:[%s956_s20 + $0x14] sm:$0x1]  ;;  %v1026_v8 = vld [vmem:[%s968_s26 + $0x10] sm:$0xf] }
  0x1e   : > { %v487_v60 = vrot.slane %v485_v53, 5  ;;  %v315_v0 = vrot.slane %v314_v55, 4  ;;  %v482_v1 = vor.u32 %v481_v56, %v478_v52  ;;  %v648_v2 = vrot.slane %v646_v57, 4  ;;  %v878_v10 = vld [vmem:[%s962_s23 + $0x8] sm:$0xf] }
  0x1f   : > { %v445_v63 = vmax.bf16 %v437_v49, %v429_v54  ;;  %v644_v4 = vsel %vm984_vm2, %v639_v50, %v1006_v45  ;;  %v651_v5 = vrot.slane %v649_v61, 5  ;;  %v1022_v6 = vrot.slane %v655_v62, 5  ;;  %v438_v16 = vld [vmem:[%s997_s29 + $0x8] sm:$0xf]  ;;  %v455_v20 = vld [vmem:[%s968_s26 + $0x14] sm:$0x1] }
  0x20   : > { %v322_v7 = vshrl.u32 %v1013_v58, 16  ;;  %v320_v11 = vsel %vm984_vm2, %v315_v0, %v319_v51  ;;  %v483_v12 = vrot.slane %v482_v1, 4  ;;  %v325_v14 = vshll.u32 %v1013_v58, 16  ;;  %v268_v24 = vld [vmem:[%s962_s23 + $0x10] sm:$0xf] }
  0x21   : > { %v581_v9 = vmax.bf16 %v474_v59, %v445_v63  ;;  %v414_v15 = vmax.bf16 %v320_v11, %v275_v35  ;;  %v652_v17 = vor.u32 %v651_v5, %v648_v2  ;;  %v331_v19 = vshll.u32 %v284_v3, 16  ;;  %v1041_v27 = vld [vmem:[%s956_s20 + $0x18] sm:$0xf]  ;;  %v888_v36 = vld [vmem:[%s956_s20 + $0x1c] sm:$0x1] }
  0x22   : > { %v324_v18 = vrot.slane %v322_v7, 4  ;;  %v488_v22 = vsel %vm984_vm2, %v483_v12, %v487_v60  ;;  %v327_v25 = vrot.slane %v325_v14, 5  ;;  %v490_v26 = vshrl.u32 %v1026_v8, 16  ;;  %v1054_v40 = vld [vmem:[%s956_s20 + $0x18] sm:$0xf] }
  0x23   : > { %v598_v21 = vmax.bf16 %v976_v13, %v581_v9  ;;  %v430_v28 = vmax.bf16 %v991_v33, %v414_v15  ;;  %v653_v29 = vrot.slane %v652_v17, 4  ;;  %v333_v30 = vrot.slane %v331_v19, 5  ;;  %v1061_v46 = vld [vmem:[%s962_s23 + $0x18] sm:$0xf]  ;;  %v879_v48 = vld [vmem:[%s962_s23 + $0x10] sm:$0xf] }
  0x24   : > { %v493_v31 = vshll.u32 %v1026_v8, 16  ;;  %v328_v34 = vor.u32 %v327_v25, %v324_v18  ;;  %v492_v13 = vrot.slane %v490_v26, 4  ;;  %v499_v35 = vshll.u32 %v455_v20, 16  ;;  %v285_v52 = vld [vmem:[%s956_s20 + $0x1c] sm:$0x1] }
  0x25   : > { %v615_v32 = vmax.bf16 %v878_v10, %v598_v21  ;;  %v446_v37 = vmax.bf16 %v438_v16, %v430_v28  ;;  %v276_v33 = vmax.bf16 %v268_v24, %v1013_v58  ;;  %v660_v39 = vshrl.u32 %v1041_v27, 16  ;;  %v1071_v57 = vld [vmem:[%s968_s26 + $0x18] sm:$0xf]  ;;  %v439_v60 = vld [vmem:[%s997_s29 + $0x10] sm:$0xf] }
  0x26   : > { %v495_v38 = vrot.slane %v493_v31, 5  ;;  %v658_v42 = vsel %vm984_vm2, %v653_v29, %v1022_v6  ;;  %v329_v44 = vrot.slane %v328_v34, 4  ;;  %v663_v45 = vshll.u32 %v1041_v27, 16  ;;  %v456_v3 = vld [vmem:[%s968_s26 + $0x1c] sm:$0x1] }
  0x27   : > { %v751_v41 = vmax.bf16 %v644_v4, %v615_v32  ;;  %v582_v47 = vmax.bf16 %v488_v22, %v446_v37  ;;  %v662_v50 = vrot.slane %v660_v39, 4  ;;  %v669_v51 = vshll.u32 %v888_v36, 16  ;;  %v1082_v7 = vld [vmem:[%s956_s20 + $0x20] sm:$0xf]  ;;  %v889_v14 = vld [vmem:[%s956_s20 + $0x24] sm:$0x1] }
  0x28   : > { %v496_v49 = vor.u32 %v495_v38, %v492_v13  ;;  %v334_v53 = vsel %vm984_vm2, %v329_v44, %v333_v30  ;;  %v501_v54 = vrot.slane %v499_v35, 5  ;;  %v665_v55 = vrot.slane %v663_v45, 5  ;;  %v1090_v22 = vld [vmem:[%s956_s20 + $0x20] sm:$0xf]  ;;  %v286_v29 = vld [vmem:[%s956_s20 + $0x24] sm:$0x1] }
  0x29   : > { %760 = vst.msk [vmem:[%s1049_s7] sm:$0xf] %vm759_vm3, %v751_v41  ;;  %v336_v56 = vshrl.u32 %v1054_v40, 16  ;;  %v599_v58 = vmax.bf16 %v1004_v43, %v582_v47  ;;  %v415_v59 = vmax.bf16 %v334_v53, %v276_v33  ;;  %v277_v62 = vmax.bf16 %v1061_v46, %v1054_v40  ;;  %v880_v30 = vld [vmem:[%s962_s23 + $0x18] sm:$0xf] }
  0x2a   : > { %v497_v61 = vrot.slane %v496_v49, 4  ;;  %v666_v63 = vor.u32 %v665_v55, %v662_v50  ;;  %v339_v1 = vshll.u32 %v1054_v40, 16  ;;  %v345_v2 = vshll.u32 %v285_v52, 16  ;;  %v1104_v38 = vld [vmem:[%s968_s26 + $0x20] sm:$0xf] }
  0x2b   : > { %v338_v0 = vrot.slane %v336_v56, 4  ;;  %v616_v4 = vmax.bf16 %v879_v48, %v599_v58  ;;  %v431_v5 = vmax.bf16 %v1026_v8, %v415_v59  ;;  %v671_v6 = vrot.slane %v669_v51, 5  ;;  %v440_v40 = vld [vmem:[%s997_s29 + $0x18] sm:$0xf]  ;;  %v457_v48 = vld [vmem:[%s968_s26 + $0x24] sm:$0x1] }
  0x2c   : > { %v504_v43 = vshrl.u32 %v1071_v57, 16  ;;  %v502_v9 = vsel %vm984_vm2, %v497_v61, %v501_v54  ;;  %v667_v10 = vrot.slane %v666_v63, 4  ;;  %v341_v11 = vrot.slane %v339_v1, 5  ;;  %v1112_v49 = vld [vmem:[%s956_s20 + $0x28] sm:$0xf] }
  0x2d   : > { %v507_v12 = vshll.u32 %v1071_v57, 16  ;;  %v752_v15 = vmax.bf16 %v658_v42, %v616_v4  ;;  %v447_v16 = vmax.bf16 %v439_v60, %v431_v5  ;;  %v513_v17 = vshll.u32 %v456_v3, 16  ;;  %v270_v51 = vld [vmem:[%s962_s23 + $0x20] sm:$0xf]  ;;  %v890_v63 = vld [vmem:[%s956_s20 + $0x2c] sm:$0x1] }
  0x2e   : > { %v506_v8 = vrot.slane %v504_v43, 4  ;;  %v342_v18 = vor.u32 %v341_v11, %v338_v0  ;;  %v347_v19 = vrot.slane %v345_v2, 5  ;;  %v674_v21 = vshrl.u32 %v1082_v7, 16  ;;  %v263_v4 = vld [vmem:[%s956_s20 + $0x28] sm:$0xf] }
  0x2f   : > { %v509_v20 = vrot.slane %v507_v12, 5  ;;  %761 = vst.msk [vmem:[%s1049_s7 + $0x4] sm:$0xf] %vm759_vm3, %v752_v15  ;;  %v583_v24 = vmax.bf16 %v502_v9, %v447_v16  ;;  %v672_v25 = vsel %vm984_vm2, %v667_v10, %v671_v6  ;;  %v677_v26 = vshll.u32 %v1082_v7, 16  ;;  %v271_v5 = vld [vmem:[%s962_s23 + $0x28] sm:$0xf] }
  0x30   : > { %v683_v28 = vshll.u32 %v889_v14, 16  ;;  %v343_v31 = vrot.slane %v342_v18, 4  ;;  %v515_v34 = vrot.slane %v513_v17, 5  ;;  %v676_v13 = vrot.slane %v674_v21, 4  ;;  %v287_v16 = vld [vmem:[%s956_s20 + $0x2c] sm:$0x1] }
  0x31   : > { %v510_v32 = vor.u32 %v509_v20, %v506_v8  ;;  %v600_v35 = vmax.bf16 %v1041_v27, %v583_v24  ;;  %v679_v36 = vrot.slane %v677_v26, 5  ;;  %v350_v33 = vshrl.u32 %v1090_v22, 16  ;;  %v1133_v8 = vld [vmem:[%s968_s26 + $0x28] sm:$0xf]  ;;  %v881_v17 = vld [vmem:[%s962_s23 + $0x20] sm:$0xf] }
  0x32   : > { %v1100_v37 = vrot.slane %v683_v28, 5  ;;  %v348_v39 = vsel %vm984_vm2, %v343_v31, %v347_v19  ;;  %v353_v42 = vshll.u32 %v1090_v22, 16  ;;  %v359_v44 = vshll.u32 %v286_v29, 16 }
  0x33   : > { %v511_v41 = vrot.slane %v510_v32, 4  ;;  %v617_v45 = vmax.bf16 %v880_v30, %v600_v35  ;;  %v416_v46 = vmax.bf16 %v348_v39, %v277_v62  ;;  %v680_v47 = vor.u32 %v679_v36, %v676_v13  ;;  %v458_v32 = vld [vmem:[%s968_s26 + $0x2c] sm:$0x1] }
  0x34   : > { %v352_v27 = vrot.slane %v350_v33, 4  ;;  %v355_v52 = vrot.slane %v353_v42, 5  ;;  %v361_v53 = vrot.slane %v359_v44, 5  ;;  %v518_v54 = vshrl.u32 %v1104_v38, 16  ;;  %v891_v42 = vld [vmem:[%s956_s20 + $0x34] sm:$0x1] }
  0x35   : > { %v516_v50 = vsel %vm984_vm2, %v511_v41, %v515_v34  ;;  %v753_v55 = vmax.bf16 %v672_v25, %v617_v45  ;;  %v432_v56 = vmax.bf16 %v1071_v57, %v416_v46  ;;  %v681_v58 = vrot.slane %v680_v47, 4  ;;  %v441_v25 = vld [vmem:[%s997_s29 + $0x20] sm:$0xf] }
  0x36   : > { %v521_v59 = vshll.u32 %v1104_v38, 16  ;;  %v356_v60 = vor.u32 %v355_v52, %v352_v27  ;;  %v520_v61 = vrot.slane %v518_v54, 4  ;;  %v527_v62 = vshll.u32 %v457_v48, 16 }
  0x37   : > { %v688_v0 = vshrl.u32 %v1112_v49, 16  ;;  %762 = vst.msk [vmem:[%s1049_s7 + $0x8] sm:$0xf] %vm759_vm3, %v753_v55  ;;  %v448_v1 = vmax.bf16 %v440_v40, %v432_v56  ;;  %v278_v2 = vmax.bf16 %v270_v51, %v1090_v22  ;;  %v691_v57 = vshll.u32 %v1112_v49, 16  ;;  %v1153_v51 = vld [vmem:[%s956_s20 + $0x30] sm:$0xf] }
  0x38   : > { %v523_v3 = vrot.slane %v521_v59, 5  ;;  %v686_v6 = vsel %vm984_vm2, %v681_v58, %v1100_v37  ;;  %v357_v43 = vrot.slane %v356_v60, 4  ;;  %v529_v9 = vrot.slane %v527_v62, 5  ;;  %v288_v55 = vld [vmem:[%s956_s20 + $0x34] sm:$0x1] }
  0x39   : > { %v690_v10 = vrot.slane %v688_v0, 4  ;;  %v584_v11 = vmax.bf16 %v516_v50, %v448_v1  ;;  %v693_v14 = vrot.slane %v691_v57, 5  ;;  %v697_v15 = vshll.u32 %v890_v63, 16  ;;  %v882_v56 = vld [vmem:[%s962_s23 + $0x28] sm:$0xf] }
  0x3a   : > { %v524_v12 = vor.u32 %v523_v3, %v520_v61  ;;  %v362_v18 = vsel %vm984_vm2, %v357_v43, %v361_v53  ;;  %v279_v19 = vmax.bf16 %v271_v5, %v263_v4  ;;  %v364_v20 = vshrl.u32 %v263_v4, 16  ;;  %v1162_v62 = vld [vmem:[%s968_s26 + $0x30] sm:$0xf]  ;;  %v442_v3 = vld [vmem:[%s997_s29 + $0x28] sm:$0xf] }
  0x3b   : > { %v367_v21 = vshll.u32 %v263_v4, 16  ;;  %v601_v22 = vmax.bf16 %v1082_v7, %v584_v11  ;;  %v417_v24 = vmax.bf16 %v362_v18, %v278_v2  ;;  %v694_v28 = vor.u32 %v693_v14, %v690_v10  ;;  %v1146_v7 = vld [vmem:[%s956_s20 + $0x30] sm:$0xf] }
  0x3c   : > { %v525_v26 = vrot.slane %v524_v12, 4  ;;  %v366_v29 = vrot.slane %v364_v20, 4  ;;  %v373_v31 = vshll.u32 %v287_v16, 16  ;;  %v532_v34 = vshrl.u32 %v1133_v8, 16  ;;  %v1174_v12 = vld [vmem:[%s956_s20 + $0x38] sm:$0xf] }
  0x3d   : > { %v369_v30 = vrot.slane %v367_v21, 5  ;;  %v618_v13 = vmax.bf16 %v881_v17, %v601_v22  ;;  %v433_v35 = vmax.bf16 %v1104_v38, %v417_v24  ;;  %v699_v37 = vrot.slane %v697_v15, 5  ;;  %v272_v17 = vld [vmem:[%s962_s23 + $0x30] sm:$0xf]  ;;  %v892_v22 = vld [vmem:[%s956_s20 + $0x3c] sm:$0x1] }
  0x3e   : > { %v530_v36 = vsel %vm984_vm2, %v525_v26, %v529_v9  ;;  %v375_v39 = vrot.slane %v373_v31, 5  ;;  %v534_v40 = vrot.slane %v532_v34, 4  ;;  %v535_v41 = vshll.u32 %v1133_v8, 16  ;;  %v883_v24 = vld [vmem:[%s962_s23 + $0x30] sm:$0xf] }
  0x3f   : > { %v370_v33 = vor.u32 %v369_v30, %v366_v29  ;;  %v754_v44 = vmax.bf16 %v686_v6, %v618_v13  ;;  %v449_v45 = vmax.bf16 %v441_v25, %v433_v35  ;;  %v695_v46 = vrot.slane %v694_v28, 4  ;;  %v265_v13 = vld [vmem:[%s956_s20 + $0x38] sm:$0xf]  ;;  %v289_v35 = vld [vmem:[%s956_s20 + $0x3c] sm:$0x1] }
  0x40   : > { %v541_v38 = vshll.u32 %v458_v32, 16  ;;  %v537_v27 = vrot.slane %v535_v41, 5  ;;  %v702_v48 = vshrl.u32 %v1146_v7, 16  ;;  %v705_v50 = vshll.u32 %v1146_v7, 16 }
  0x41   : > { %v371_v47 = vrot.slane %v370_v33, 4  ;;  %763 = vst.msk [vmem:[%s1049_s7 + $0xc] sm:$0xf] %vm759_vm3, %v754_v44  ;;  %v585_v52 = vmax.bf16 %v530_v36, %v449_v45  ;;  %v711_v54 = vshll.u32 %v891_v42, 16  ;;  %v700_v0 = vsel %vm984_vm2, %v695_v46, %v699_v37  ;;  %v428_v46 = vld [vmem:[%s968_s26 + $0x38] sm:$0xf] }
  0x42   : > { %v543_v53 = vrot.slane %v541_v38, 5  ;;  %v538_v59 = vor.u32 %v537_v27, %v534_v40  ;;  %v704_v60 = vrot.slane %v702_v48, 4  ;;  %v707_v61 = vrot.slane %v705_v50, 5  ;;  %v273_v40 = vld [vmem:[%s962_s23 + $0x38] sm:$0xf] }
  0x43   : > { %v376_v58 = vsel %vm984_vm2, %v371_v47, %v375_v39  ;;  %v602_v63 = vmax.bf16 %v1112_v49, %v585_v52  ;;  %v378_v2 = vshrl.u32 %v1153_v51, 16  ;;  %v381_v5 = vshll.u32 %v1153_v51, 16  ;;  %v459_v49 = vld [vmem:[%s968_s26 + $0x34] sm:$0x1]  ;;  %v443_v52 = vld [vmem:[%s997_s29 + $0x30] sm:$0xf] }
  0x44   : > { %v418_v1 = vmax.bf16 %v376_v58, %v279_v19  ;;  %v539_v57 = vrot.slane %v538_v59, 4  ;;  %v708_v4 = vor.u32 %v707_v61, %v704_v60  ;;  %v387_v6 = vshll.u32 %v288_v55, 16  ;;  %v460_v55 = vld [vmem:[%s968_s26 + $0x3c] sm:$0x1]  ;;  %v877_v60 = vld [vmem:[%s956_s20 + $0x40] sm:$0xf] }
  0x45   : > { %v619_v43 = vmax.bf16 %v882_v56, %v602_v63  ;;  %v380_v10 = vrot.slane %v378_v2, 4  ;;  %v546_v11 = vshrl.u32 %v1162_v62, 16  ;;  %v713_v16 = vrot.slane %v711_v54, 5  ;;  %v893_v2 = vld [vmem:[%s956_s20 + $0x44] sm:$0x1] }
  0x46   : > { %v434_v9 = vmax.bf16 %v1133_v8, %v418_v1  ;;  %v544_v14 = vsel %vm984_vm2, %v539_v57, %v543_v53  ;;  %v709_v15 = vrot.slane %v708_v4, 4  ;;  %v383_v18 = vrot.slane %v381_v5, 5 }
  0x47   : > { %v755_v19 = vmax.bf16 %v700_v0, %v619_v43  ;;  %v548_v21 = vrot.slane %v546_v11, 4  ;;  %v549_v8 = vshll.u32 %v1162_v62, 16  ;;  %v389_v26 = vrot.slane %v387_v6, 5 }
  0x48   : > { %v450_v20 = vmax.bf16 %v442_v3, %v434_v9  ;;  %v384_v25 = vor.u32 %v383_v18, %v380_v10  ;;  %v555_v28 = vshll.u32 %v459_v49, 16  ;;  %v716_v29 = vshrl.u32 %v1174_v12, 16  ;;  %v884_v18 = vld [vmem:[%s962_s23 + $0x38] sm:$0xf] }
  0x49   : > { %764 = vst.msk [vmem:[%s1049_s7 + $0x10] sm:$0xf] %vm759_vm3, %v755_v19  ;;  %v280_v31 = vmax.bf16 %v272_v17, %v1153_v51  ;;  %v551_v32 = vrot.slane %v549_v8, 5  ;;  %v719_v34 = vshll.u32 %v1174_v12, 16  ;;  %v714_v36 = vsel %vm984_vm2, %v709_v15, %v713_v16 }
  0x4a   : > { %v586_v30 = vmax.bf16 %v544_v14, %v450_v20  ;;  %v385_v37 = vrot.slane %v384_v25, 4  ;;  %v718_v33 = vrot.slane %v716_v29, 4  ;;  %v725_v39 = vshll.u32 %v892_v22, 16 }
  0x4b   : > { %v552_v42 = vor.u32 %v551_v32, %v548_v21  ;;  %v557_v44 = vrot.slane %v555_v28, 5  ;;  %v721_v45 = vrot.slane %v719_v34, 5  ;;  %v392_v47 = vshrl.u32 %v265_v13, 16  ;;  %v444_v28 = vld [vmem:[%s997_s29 + $0x38] sm:$0xf] }
  0x4c   : > { %v603_v41 = vmax.bf16 %v1146_v7, %v586_v30  ;;  %v390_v38 = vsel %vm984_vm2, %v385_v37, %v389_v26  ;;  %v395_v27 = vshll.u32 %v265_v13, 16  ;;  %v401_v48 = vshll.u32 %v289_v35, 16  ;;  %v885_v37 = vld [vmem:[%s962_s23 + $0x40] sm:$0xf] }
  0x4d   : > { %v419_v51 = vmax.bf16 %v390_v38, %v280_v31  ;;  %v553_v53 = vrot.slane %v552_v42, 4  ;;  %v281_v54 = vmax.bf16 %v273_v40, %v265_v13  ;;  %v722_v7 = vor.u32 %v721_v45, %v718_v33 }
  0x4e   : > { %v620_v50 = vmax.bf16 %v883_v24, %v603_v41  ;;  %v394_v56 = vrot.slane %v392_v47, 4  ;;  %v397_v58 = vrot.slane %v395_v27, 5  ;;  %v560_v59 = vshrl.u32 %v428_v46, 16 }
  0x4f   : > { %v435_v63 = vmax.bf16 %v1162_v62, %v419_v51  ;;  %v558_v0 = vsel %vm984_vm2, %v553_v53, %v557_v44  ;;  %v403_v1 = vrot.slane %v401_v48, 5  ;;  %v563_v4 = vshll.u32 %v428_v46, 16 }
  0x50   : > { %v756_v61 = vmax.bf16 %v714_v36, %v620_v50  ;;  %v398_v3 = vor.u32 %v397_v58, %v394_v56  ;;  %v562_v57 = vrot.slane %v560_v59, 4  ;;  %v569_v5 = vshll.u32 %v460_v55, 16 }
  0x51   : > { %v451_v6 = vmax.bf16 %v443_v52, %v435_v63  ;;  %v727_v43 = vrot.slane %v725_v39, 5  ;;  %v730_v9 = vshrl.u32 %v877_v60, 16  ;;  %v733_v10 = vshll.u32 %v877_v60, 16 }
  0x52   : > { %765 = vst.msk [vmem:[%s1049_s7 + $0x14] sm:$0xf] %vm759_vm3, %v756_v61  ;;  %v723_v49 = vrot.slane %v722_v7, 4  ;;  %v399_v11 = vrot.slane %v398_v3, 4  ;;  %v565_v62 = vrot.slane %v563_v4, 5  ;;  %v739_v14 = vshll.u32 %v893_v2, 16 }
  0x53   : > { %v587_v15 = vmax.bf16 %v558_v0, %v451_v6  ;;  %v732_v16 = vrot.slane %v730_v9, 4  ;;  %v735_v17 = vrot.slane %v733_v10, 5  ;;  %v571_v21 = vrot.slane %v569_v5, 5 }
  0x54   : > { %v404_v19 = vsel %vm984_vm2, %v399_v11, %v403_v1  ;;  %v566_v20 = vor.u32 %v565_v62, %v562_v57  ;;  %v741_v25 = vrot.slane %v739_v14, 5  ;;  %v728_v26 = vsel %vm984_vm2, %v723_v49, %v727_v43 }
  0x55   : > { %v604_v8 = vmax.bf16 %v1174_v12, %v587_v15  ;;  %v420_v22 = vmax.bf16 %v404_v19, %v281_v54  ;;  %v736_v24 = vor.u32 %v735_v17, %v732_v16 }
  0x56   : > { %v567_v29 = vrot.slane %v566_v20, 4 }
  0x57   : > { %v621_v30 = vmax.bf16 %v884_v18, %v604_v8  ;;  %v436_v31 = vmax.bf16 %v428_v46, %v420_v22  ;;  %v737_v32 = vrot.slane %v736_v24, 4 }
  0x58   : > { %v572_v34 = vsel %vm984_vm2, %v567_v29, %v571_v21 }
  0x59   : > { %v757_v13 = vmax.bf16 %v728_v26, %v621_v30  ;;  %v452_v35 = vmax.bf16 %v444_v28, %v436_v31  ;;  %v742_v12 = vsel %vm984_vm2, %v737_v32, %v741_v25 }
  0x5b   : > { %766 = vst.msk [vmem:[%s1049_s7 + $0x18] sm:$0xf] %vm759_vm3, %v757_v13  ;;  %v588_v36 = vmax.bf16 %v572_v34, %v452_v35 }
  0x5d   : > { %v605_v33 = vmax.bf16 %v877_v60, %v588_v36 }
  0x5f   : > { %v622_v39 = vmax.bf16 %v885_v37, %v605_v33 }
  0x61   : > { %v758_v40 = vmax.bf16 %v742_v12, %v622_v39 }
  0x63   : > { %767 = vst.msk [vmem:[%s1049_s7 + $0x1c] sm:$0xf] %vm759_vm3, %v758_v40 }
  0x64 PF: > { %s14_s15 = sadd.s32 1, %s912_s15  }
  0x65   : > { %p11_p4 = scmp.ge.s32.totalorder %s14_s15, 4  }
  0x67   :  { %13 = sbr.rel (!%p11_p4) target bundleno = 1 (0x1), region = 77 }

// kernel: _lambda_.46
= control target key start
LH: loop header
LB: loop body
LE: loop exit
PB: predicated region body
PF: predicated region fallthrough
CT: control target
= control target key end

     0   :  { %s214_s0 = inlined_call_operand.vmem [shape: bf16[64,128], index: 0, kind: input, shape index: {}]   ;;  %s215_s1 = inlined_call_operand.vmem [shape: f32[1,128], index: 1, kind: input, shape index: {}]   ;;  %s216_s2 = inlined_call_operand.vmem [shape: f32[1,128], index: 2, kind: input, shape index: {}]   ;;  %s217_s3 = inlined_call_operand.vmem [shape: bf16[64,128], index: 3, kind: output, shape index: {}]  }
   0x1   :  { %v123_v0 = vld [vmem:[%s214_s0] sm:$0xff]   ;;  %v158_v4 = vld [vmem:[%s214_s0 + $0x8] sm:$0xff]   ;;  %v159_v5 = vld [vmem:[%s214_s0 + $0x10] sm:$0xff]  }
   0x2   :  { %v104_v1 = vld [vmem:[%s215_s1] ss:$0 sm:$0xff]  ;;  %v124_v2 = vunpack.c.l.bf16 %v123_v0  ;;  %v125_v3 = vunpack.c.h.bf16 %v123_v0  ;;  %v160_v6 = vld [vmem:[%s214_s0 + $0x18] sm:$0xff]   ;;  %v128_v8 = vunpack.c.l.bf16 %v158_v4  ;;  %v129_v9 = vunpack.c.h.bf16 %v158_v4 }
   0x3   :  { %v105_v7 = vld [vmem:[%s216_s2] ss:$0 sm:$0xff]  ;;  %v132_v10 = vunpack.c.l.bf16 %v159_v5  ;;  %v133_v11 = vunpack.c.h.bf16 %v159_v5  ;;  %v136_v14 = vunpack.c.l.bf16 %v160_v6  ;;  %v137_v15 = vunpack.c.h.bf16 %v160_v6 }
   0x4   :  { %v37_v12 = vmul.f32 %v124_v2, %v104_v1  ;;  %v38_v13 = vmul.f32 %v125_v3, %v104_v1  ;;  %v39_v16 = vmul.f32 %v128_v8, %v104_v1  ;;  %v40_v17 = vmul.f32 %v129_v9, %v104_v1 }
   0x5   :  { %v41_v18 = vmul.f32 %v132_v10, %v104_v1  ;;  %v42_v19 = vmul.f32 %v133_v11, %v104_v1  ;;  %v43_v22 = vmul.f32 %v136_v14, %v104_v1  ;;  %v44_v23 = vmul.f32 %v137_v15, %v104_v1 }
   0x6   :  { %v52_v20 = vadd.f32 %v105_v7, %v37_v12  ;;  %v53_v21 = vadd.f32 %v105_v7, %v38_v13  ;;  %v54_v24 = vadd.f32 %v105_v7, %v39_v16  ;;  %v55_v25 = vadd.f32 %v105_v7, %v40_v17 }
   0x7   :  { %v56_v26 = vadd.f32 %v105_v7, %v41_v18  ;;  %v57_v27 = vadd.f32 %v105_v7, %v42_v19  ;;  %v58_v29 = vadd.f32 %v105_v7, %v43_v22  ;;  %v59_v30 = vadd.f32 %v105_v7, %v44_v23 }
   0x8   :  { %v141_v28 = vpack.c.bf16 %v53_v21, %v52_v20  ;;  %v146_v31 = vpack.c.bf16 %v55_v25, %v54_v24 }
   0x9   :  { %v151_v32 = vpack.c.bf16 %v57_v27, %v56_v26  ;;  %v156_v33 = vpack.c.bf16 %v59_v30, %v58_v29 }
   0xa   :  { %142 = vst [vmem:[%s217_s3] sm:$0xff] %v141_v28   ;;  %161 = vst [vmem:[%s217_s3 + $0x8] sm:$0xff] %v146_v31  }
   0xb   :  { %162 = vst [vmem:[%s217_s3 + $0x10] sm:$0xff] %v151_v32   ;;  %163 = vst [vmem:[%s217_s3 + $0x18] sm:$0xff] %v156_v33  }

// kernel: _lambda_.45
= control target key start
LH: loop header
LB: loop body
LE: loop exit
PB: predicated region body
PF: predicated region fallthrough
CT: control target
= control target key end

     0   :  { %v651_v16 = vmov 0.0   ;;  %s753_s1 = inlined_call_operand.vmem [shape: bf16[1,128,128], index: 1, kind: input, shape index: {}]   ;;  %s754_s0 = inlined_call_operand.vmem [shape: bf16[1,128,128], index: 0, kind: input, shape index: {}]   ;;  %s755_s3 = inlined_call_operand.vmem [shape: f32[1,1,8,128], index: 3, kind: output, shape index: {1}]   ;;  %s756_s2 = inlined_call_operand.vmem [shape: bf16[1,128,128], index: 2, kind: output, shape index: {0}]  }
   0x1   :  { %v635_v0 = vld [vmem:[%s753_s1] sm:$0xff]   ;;  %v636_v1 = vld [vmem:[%s753_s1 + $0x8] sm:$0xff]   ;;  %v637_v2 = vld [vmem:[%s753_s1 + $0x10] sm:$0xff]   ;;  %34 = vst [vmem:[%s755_s3] sm:$0xff] %v651_v16 }
   0x2   :  { %586 = vmatprep.subr.bf16.mxu0 %v635_v0  ;;  %618 = vmatprep.subr.bf16.mxu1 %v635_v0  ;;  %v638_v3 = vld [vmem:[%s753_s1 + $0x18] sm:$0xff]   ;;  %v643_v4 = vld [vmem:[%s754_s0] sm:$0xff]   ;;  %v640_v7 = vld [vmem:[%s753_s1 + $0x28] sm:$0xff]  }
   0x3   :  { %587 = vmatpush3.bf16.msra.mxu0 %v635_v0  ;;  %626 = vmatpush3.bf16.msra.mxu1 %v635_v0  ;;  %v639_v5 = vld [vmem:[%s753_s1 + $0x20] sm:$0xff]   ;;  %v641_v8 = vld [vmem:[%s753_s1 + $0x30] sm:$0xff]   ;;  %v642_v9 = vld [vmem:[%s753_s1 + $0x38] sm:$0xff]  }
   0x4   :  { %588 = vmatprep.subr.bf16.mxu0 %v636_v1  ;;  %619 = vmatprep.subr.bf16.mxu1 %v636_v1  ;;  %v647_v6 = vld [vmem:[%s754_s0 + $0x20] sm:$0xff]   ;;  %v644_v10 = vld [vmem:[%s754_s0 + $0x8] sm:$0xff]   ;;  %v645_v12 = vld [vmem:[%s754_s0 + $0x10] sm:$0xff]  }
   0x5   :  { %602 = vmatprep.mubr.bf16.mxu0 %v643_v4  ;;  %610 = vmatprep.mubr.bf16.mxu1 %v647_v6  ;;  %v648_v11 = vld [vmem:[%s754_s0 + $0x28] sm:$0xff]   ;;  %v649_v13 = vld [vmem:[%s754_s0 + $0x30] sm:$0xff]   ;;  %v646_v14 = vld [vmem:[%s754_s0 + $0x18] sm:$0xff]  }
   0x6   :  { %v650_v15 = vld [vmem:[%s754_s0 + $0x38] sm:$0xff]  }
   0x7   :  { %589 = vmatpush3.bf16.msra.mxu0 %v636_v1  ;;  %627 = vmatpush3.bf16.msra.mxu1 %v636_v1 }
   0x8   :  { %590 = vmatprep.subr.bf16.mxu0 %v637_v2  ;;  %620 = vmatprep.subr.bf16.mxu1 %v637_v2 }
   0xb   :  { %591 = vmatpush3.bf16.msra.mxu0 %v637_v2  ;;  %628 = vmatpush3.bf16.msra.mxu1 %v637_v2 }
   0xc   :  { %592 = vmatprep.subr.bf16.mxu0 %v638_v3  ;;  %621 = vmatprep.subr.bf16.mxu1 %v638_v3 }
   0xf   :  { %593 = vmatpush3.bf16.msra.mxu0 %v638_v3  ;;  %629 = vmatpush3.bf16.msra.mxu1 %v638_v3 }
  0x10   :  { %594 = vmatprep.subr.bf16.mxu0 %v639_v5  ;;  %622 = vmatprep.subr.bf16.mxu1 %v639_v5 }
  0x13   :  { %595 = vmatpush3.bf16.msra.mxu0 %v639_v5  ;;  %630 = vmatpush3.bf16.msra.mxu1 %v639_v5 }
  0x14   :  { %596 = vmatprep.subr.bf16.mxu0 %v640_v7  ;;  %623 = vmatprep.subr.bf16.mxu1 %v640_v7 }
  0x17   :  { %597 = vmatpush3.bf16.msra.mxu0 %v640_v7  ;;  %631 = vmatpush3.bf16.msra.mxu1 %v640_v7 }
  0x18   :  { %598 = vmatprep.subr.bf16.mxu0 %v641_v8  ;;  %624 = vmatprep.subr.bf16.mxu1 %v641_v8 }
  0x1b   :  { %599 = vmatpush3.bf16.msra.mxu0 %v641_v8  ;;  %632 = vmatpush3.bf16.msra.mxu1 %v641_v8 }
  0x1c   :  { %600 = vmatprep.subr.bf16.mxu0 %v642_v9  ;;  %625 = vmatprep.subr.bf16.mxu1 %v642_v9 }
  0x1f   :  { %601 = vmatpush3.bf16.msra.mxu0 %v642_v9  ;;  %633 = vmatpush3.bf16.msra.mxu1 %v642_v9 }
  0x22   :  { %603 = vmatmul.mubr.bf16.vlgmr.msra.gmra.mrb[0].mxu0 %v644_v10  ;;  %611 = vmatmul.mubr.bf16.vlgmr.msra.gmra.mrb[0].mxu1 %v648_v11 }
  0x23   :  { %606 = vmatprep.mubr.bf16.mxu0 %v645_v12  ;;  %614 = vmatprep.mubr.bf16.mxu1 %v649_v13 }
  0x2a   :  { %607 = vmatmul.mubr.bf16.gmra.mrb[4].mxu0 %v646_v14  ;;  %615 = vmatmul.mubr.bf16.gmra.mrb[4].mxu1 %v650_v15 }
  0xf5   :  { %v604_v17 = vpop.f32.mrb[0].mxu0  ;;  %v612_v18 = vpop.f32.mrb[0].mxu1 }
  0xf6   :  { %v213_v19 = vpop.f32.mrb[1].mxu0  ;;  %v245_v20 = vpop.f32.mrb[1].mxu1  ;;  %v431_v32 = vmul.f32 %v604_v17, %v604_v17  ;;  %v439_v4 = vmul.f32 %v612_v18, %v612_v18 }
  0xf7   :  { %v605_v21 = vpop.f32.mrb[2].mxu0  ;;  %v613_v22 = vpop.f32.mrb[2].mxu1  ;;  %v429_v23 = vmul.f32 %v213_v19, %v213_v19  ;;  %v437_v62 = vmul.f32 %v245_v20, %v245_v20 }
  0xf8   :  { %v531_v24 = vpack.c.bf16 %v605_v21, %v604_v17  ;;  %v216_v25 = vpop.f32.mrb[3].mxu0  ;;  %v551_v26 = vpack.c.bf16 %v613_v22, %v612_v18  ;;  %v248_v27 = vpop.f32.mrb[3].mxu1  ;;  %v432_v35 = vmul.f32 %v605_v21, %v605_v21  ;;  %v440_v7 = vmul.f32 %v613_v22, %v613_v22 }
  0xf9   :  { %v526_v28 = vpack.c.bf16 %v216_v25, %v213_v19  ;;  %v407_v29 = vadd.f32 %v216_v25, %v213_v19  ;;  %v430_v30 = vmul.f32 %v216_v25, %v216_v25  ;;  %v546_v31 = vpack.c.bf16 %v248_v27, %v245_v20 }
  0xfa   :  { %563 = vst [vmem:[%s756_s2 + $0x8] sm:$0xff] %v531_v24   ;;  %567 = vst [vmem:[%s756_s2 + $0x28] sm:$0xff] %v551_v26   ;;  %v438_v3 = vmul.f32 %v248_v27, %v248_v27 }
  0xfb   :  { %527 = vst [vmem:[%s756_s2] sm:$0xff] %v526_v28   ;;  %v408_v33 = vadd.f32 %v604_v17, %v407_v29  ;;  %v445_v34 = vadd.f32 %v430_v30, %v429_v23  ;;  %566 = vst [vmem:[%s756_s2 + $0x20] sm:$0xff] %v546_v31  }
  0xfd   :  { %v446_v36 = vadd.f32 %v445_v34, %v431_v32  ;;  %v608_v37 = vpop.f32.mrb[4].mxu0  ;;  %v409_v38 = vadd.f32 %v605_v21, %v408_v33  ;;  %v616_v39 = vpop.f32.mrb[4].mxu1 }
  0xfe   :  { %v229_v40 = vpop.f32.mrb[5].mxu0  ;;  %v261_v41 = vpop.f32.mrb[5].mxu1  ;;  %v435_v56 = vmul.f32 %v608_v37, %v608_v37  ;;  %v443_v16 = vmul.f32 %v616_v39, %v616_v39 }
  0xff   :  { %v410_v42 = vadd.f32 %v409_v38, %v229_v40  ;;  %v433_v43 = vmul.f32 %v229_v40, %v229_v40  ;;  %v447_v44 = vadd.f32 %v446_v36, %v432_v35  ;;  %v609_v45 = vpop.f32.mrb[6].mxu0  ;;  %v617_v46 = vpop.f32.mrb[6].mxu1  ;;  %v441_v10 = vmul.f32 %v261_v41, %v261_v41 }
 0x100   :  { %v541_v47 = vpack.c.bf16 %v609_v45, %v608_v37  ;;  %v232_v48 = vpop.f32.mrb[7].mxu0  ;;  %v561_v49 = vpack.c.bf16 %v617_v46, %v616_v39  ;;  %v264_v50 = vpop.f32.mrb[7].mxu1  ;;  %v436_v59 = vmul.f32 %v609_v45, %v609_v45 }
 0x101   :  { %v448_v51 = vadd.f32 %v447_v44, %v433_v43  ;;  %v536_v52 = vpack.c.bf16 %v232_v48, %v229_v40  ;;  %v411_v53 = vadd.f32 %v410_v42, %v232_v48  ;;  %v434_v54 = vmul.f32 %v232_v48, %v232_v48 }
 0x102   :  { %565 = vst [vmem:[%s756_s2 + $0x18] sm:$0xff] %v541_v47   ;;  %569 = vst [vmem:[%s756_s2 + $0x38] sm:$0xff] %v561_v49   ;;  %v556_v55 = vpack.c.bf16 %v264_v50, %v261_v41  ;;  %v442_v15 = vmul.f32 %v264_v50, %v264_v50 }
 0x103   :  { %564 = vst [vmem:[%s756_s2 + $0x10] sm:$0xff] %v536_v52   ;;  %v412_v57 = vadd.f32 %v608_v37, %v411_v53  ;;  %v449_v58 = vadd.f32 %v448_v51, %v434_v54 }
 0x104   :  { %568 = vst [vmem:[%s756_s2 + $0x30] sm:$0xff] %v556_v55  }
 0x105   :  { %v450_v60 = vadd.f32 %v449_v58, %v435_v56  ;;  %v413_v61 = vadd.f32 %v609_v45, %v412_v57 }
 0x107   :  { %v414_v63 = vadd.f32 %v413_v61, %v245_v20  ;;  %v451_v0 = vadd.f32 %v450_v60, %v436_v59  ;;  %v444_v20 = vmul.f32 %v617_v46, %v617_v46 }
 0x109   :  { %v452_v1 = vadd.f32 %v451_v0, %v437_v62  ;;  %v415_v2 = vadd.f32 %v414_v63, %v248_v27 }
 0x10b   :  { %v416_v5 = vadd.f32 %v612_v18, %v415_v2  ;;  %v453_v6 = vadd.f32 %v452_v1, %v438_v3 }
 0x10d   :  { %v454_v8 = vadd.f32 %v453_v6, %v439_v4  ;;  %v417_v9 = vadd.f32 %v613_v22, %v416_v5 }
 0x10f   :  { %v418_v11 = vadd.f32 %v417_v9, %v261_v41  ;;  %v455_v12 = vadd.f32 %v454_v8, %v440_v7 }
 0x111   :  { %v456_v13 = vadd.f32 %v455_v12, %v441_v10  ;;  %v419_v14 = vadd.f32 %v418_v11, %v264_v50 }
 0x113   :  { %v420_v17 = vadd.f32 %v616_v39, %v419_v14  ;;  %v457_v19 = vadd.f32 %v456_v13, %v442_v15 }
 0x115   :  { %v421_v21 = vadd.f32 %v617_v46, %v420_v17  ;;  %v458_v23 = vadd.f32 %v457_v19, %v443_v16 }
 0x117   :  { %v422_v24 = vrot.slane %v421_v21, 4  ;;  %v459_v25 = vadd.f32 %v458_v23, %v444_v20 }
 0x119   :  { %v423_v26 = vadd.f32 %v422_v24, %v421_v21  ;;  %v460_v18 = vrot.slane %v459_v25, 4 }
 0x11b   :  { %v424_v27 = vrot.slane %v423_v26, 2  ;;  %v461_v28 = vadd.f32 %v460_v18, %v459_v25 }
 0x11d   :  { %v425_v29 = vadd.f32 %v424_v27, %v423_v26  ;;  %v462_v22 = vrot.slane %v461_v28, 2 }
 0x11f   :  { %v426_v30 = vrot.slane %v425_v29, 1  ;;  %v463_v31 = vadd.f32 %v462_v22, %v461_v28 }
 0x121   :  { %v427_v32 = vadd.f32 %v426_v30, %v425_v29  ;;  %v464_v33 = vrot.slane %v463_v31, 1 }
 0x123   :  { %428 = vst [vmem:[%s755_s3] sm:$0x1] %v427_v32  ;;  %v465_v34 = vadd.f32 %v464_v33, %v463_v31 }
 0x125   :  { %466 = vst [vmem:[%s755_s3 + $0x1] sm:$0x1] %v465_v34 }

// kernel: tile.135
= control target key start
LH: loop header
LB: loop body
LE: loop exit
PB: predicated region body
PF: predicated region fallthrough
CT: control target
= control target key end

     0   :  { %s28_s0 = inlined_call_operand.vmem [shape: f32[8], index: 0, kind: input, shape index: {}]   ;;  %s29_s1 = inlined_call_operand.vmem [shape: f32[16,8], index: 1, kind: output, shape index: {}]  }
   0x1   :  { %v4_v0 = vld [vmem:[%s28_s0] ss:$0 sm:$0xff] }
   0x2   :  { %5 = vst [vmem:[%s29_s1] sm:$0xff] %v4_v0  ;;  %8 = vst [vmem:[%s29_s1 + $0x8] sm:$0xff] %v4_v0 }

// kernel: tile.136
= control target key start
LH: loop header
LB: loop body
LE: loop exit
PB: predicated region body
PF: predicated region fallthrough
CT: control target
= control target key end

     0   :  { %s131_s10 = smov 120   ;;  %s132_s11 = smov 104   ;;  %vm3_vm0 = vcmask 64512   ;;  %vm9_vm1 = vcmask 1048512   ;;  %vm15_vm2 = vcmask 982912   ;;  %vm21_vm3 = vcmask 917312   ;;  %s207_s0 = inlined_call_operand.vmem [shape: f32[16,8], index: 0, kind: input, shape index: {}]   ;;  %s208_s1 = inlined_call_operand.vmem [shape: f32[1,128], index: 1, kind: output, shape index: {}]  }
   0x1   :  { %v101_v0 = vld [vmem:[%s207_s0 + $0xf] sm:$0x1]   ;;  %v103_v1 = vld [vmem:[%s207_s0 + $0xd] sm:$0x1]   ;;  %v102_v2 = vld [vmem:[%s207_s0 + $0xe] sm:$0x1]  }
   0x2   :  { %7 = vrot.lane.b32.xlu0 %v101_v0, %s131_s10  ;;  %19 = vrot.lane.b32.xlu1 %v103_v1, %s132_s11  ;;  %v104_v3 = vld [vmem:[%s207_s0 + $0xc] sm:$0x1]   ;;  %s133_s16 = smov 112   ;;  %s134_s17 = smov 96   ;;  %v105_v4 = vld [vmem:[%s207_s0 + $0xb] sm:$0x1]  }
   0x3   :  { %v106_v5 = vld [vmem:[%s207_s0 + $0xa] sm:$0x1]   ;;  %v2_v6 = vld [vmem:[%s207_s0] sm:$0x1]   ;;  %s135_s24 = smov 88   ;;  %s136_s25 = smov 80  }
   0x4   :  { %4 = vst.msk [vmem:[#allocation0] sm:$0x1] %vm3_vm0, %v2_v6   ;;  %v107_v7 = vld [vmem:[%s207_s0 + $0x9] sm:$0x1]   ;;  %v108_v8 = vld [vmem:[%s207_s0 + $0x8] sm:$0x1]  }
   0x5   :  { %s137_s30 = smov 72   ;;  %s138_s2 = smov 64   ;;  %v109_v9 = vld [vmem:[%s207_s0 + $0x7] sm:$0x1]   ;;  %v110_v10 = vld [vmem:[%s207_s0 + $0x6] sm:$0x1]  }
   0x6   :  { %13 = vrot.lane.b32.xlu0 %v102_v2, %s133_s16  ;;  %25 = vrot.lane.b32.xlu1 %v104_v3, %s134_s17  ;;  %s139_s7 = smov 56   ;;  %s140_s8 = smov 48   ;;  %v111_v11 = vld [vmem:[%s207_s0 + $0x5] sm:$0x1]   ;;  %v112_v12 = vld [vmem:[%s207_s0 + $0x4] sm:$0x1]  }
   0x7   :  { %s141_s13 = smov 40   ;;  %s142_s14 = smov 32   ;;  %v113_v13 = vld [vmem:[%s207_s0 + $0x3] sm:$0x1]   ;;  %v114_v14 = vld [vmem:[%s207_s0 + $0x2] sm:$0x1]  }
   0x8   :  { %s143_s19 = smov 24   ;;  %s144_s20 = smov 16   ;;  %v115_v15 = vld [vmem:[%s207_s0 + $0x1] sm:$0x1]   ;;  %vm27_vm4 = vcmask 851712   ;;  %vm33_vm5 = vcmask 786112  }
   0x9   :  { %s145_s0 = smov 8   ;;  %vm39_vm6 = vcmask 720512   ;;  %vm45_vm7 = vcmask 654912   ;;  %vm51_vm8 = vcmask 589312   ;;  %vm57_vm9 = vcmask 523712  }
   0xa   :  { %31 = vrot.lane.b32.xlu0 %v105_v4, %s135_s24  ;;  %37 = vrot.lane.b32.xlu1 %v106_v5, %s136_s25  ;;  %vm63_vm10 = vcmask 458112   ;;  %vm69_vm11 = vcmask 392512   ;;  %vm75_vm12 = vcmask 326912   ;;  %vm81_vm13 = vcmask 261312  }
   0xb   :  { %vm87_vm14 = vcmask 195712   ;;  %vm93_vm15 = vcmask 130112  }
   0xe   :  { %43 = vrot.lane.b32.xlu0 %v107_v7, %s137_s30  ;;  %49 = vrot.lane.b32.xlu1 %v108_v8, %s138_s2 }
  0x12   :  { %55 = vrot.lane.b32.xlu0 %v109_v9, %s139_s7  ;;  %61 = vrot.lane.b32.xlu1 %v110_v10, %s140_s8 }
  0x16   :  { %67 = vrot.lane.b32.xlu0 %v111_v11, %s141_s13  ;;  %73 = vrot.lane.b32.xlu1 %v112_v12, %s142_s14 }
  0x1a   :  { %79 = vrot.lane.b32.xlu0 %v113_v13, %s143_s19  ;;  %85 = vrot.lane.b32.xlu1 %v114_v14, %s144_s20 }
  0x1e   :  { %91 = vrot.lane.b32.xlu0 %v115_v15, %s145_s0 }
  0x74   :  { %v8_v16 = vpop.permute.xlu0 %7   ;;  %v20_v17 = vpop.permute.xlu1 %19  }
  0x75   :  { %10 = vst.msk [vmem:[#allocation0] sm:$0x1] %vm9_vm1, %v8_v16  }
  0x78   :  { %v14_v18 = vpop.permute.xlu0 %13   ;;  %v26_v19 = vpop.permute.xlu1 %25  }
  0x79   :  { %16 = vst.msk [vmem:[#allocation0] sm:$0x1] %vm15_vm2, %v14_v18  }
  0x7a   :  { %22 = vst.msk [vmem:[#allocation0] sm:$0x1] %vm21_vm3, %v20_v17  }
  0x7b   :  { %28 = vst.msk [vmem:[#allocation0] sm:$0x1] %vm27_vm4, %v26_v19  }
  0x7c   :  { %v32_v20 = vpop.permute.xlu0 %31   ;;  %v38_v21 = vpop.permute.xlu1 %37  }
  0x7d   :  { %34 = vst.msk [vmem:[#allocation0] sm:$0x1] %vm33_vm5, %v32_v20  }
  0x7e   :  { %40 = vst.msk [vmem:[#allocation0] sm:$0x1] %vm39_vm6, %v38_v21  }
  0x80   :  { %v44_v22 = vpop.permute.xlu0 %43   ;;  %v50_v23 = vpop.permute.xlu1 %49  }
  0x81   :  { %46 = vst.msk [vmem:[#allocation0] sm:$0x1] %vm45_vm7, %v44_v22  }
  0x82   :  { %52 = vst.msk [vmem:[#allocation0] sm:$0x1] %vm51_vm8, %v50_v23  }
  0x84   :  { %v56_v24 = vpop.permute.xlu0 %55   ;;  %v62_v25 = vpop.permute.xlu1 %61  }
  0x85   :  { %58 = vst.msk [vmem:[#allocation0] sm:$0x1] %vm57_vm9, %v56_v24  }
  0x86   :  { %64 = vst.msk [vmem:[#allocation0] sm:$0x1] %vm63_vm10, %v62_v25  }
  0x88   :  { %v68_v26 = vpop.permute.xlu0 %67   ;;  %v74_v27 = vpop.permute.xlu1 %73  }
  0x89   :  { %70 = vst.msk [vmem:[#allocation0] sm:$0x1] %vm69_vm11, %v68_v26  }
  0x8a   :  { %76 = vst.msk [vmem:[#allocation0] sm:$0x1] %vm75_vm12, %v74_v27  }
  0x8c   :  { %v80_v28 = vpop.permute.xlu0 %79   ;;  %v86_v29 = vpop.permute.xlu1 %85  }
  0x8d   :  { %82 = vst.msk [vmem:[#allocation0] sm:$0x1] %vm81_vm13, %v80_v28  }
  0x8e   :  { %88 = vst.msk [vmem:[#allocation0] sm:$0x1] %vm87_vm14, %v86_v29  }
  0x90   :  { %v92_v30 = vpop.permute.xlu0 %91  }
  0x91   :  { %94 = vst.msk [vmem:[#allocation0] sm:$0x1] %vm93_vm15, %v92_v30  }
  0x98   :  { %v98_v31 = vld [vmem:[#allocation0] sm:$0x1] }
  0x99   :  { %100 = vst [vmem:[%s208_s1] sm:$0x1] %v98_v31 }

// kernel: _lambda_.41
= control target key start
LH: loop header
LB: loop body
LE: loop exit
PB: predicated region body
PF: predicated region fallthrough
CT: control target
= control target key end

     0   :  { %s99_s0 = inlined_call_operand.vmem [shape: bf16[16,128], index: 0, kind: input, shape index: {}]   ;;  %s100_s1 = inlined_call_operand.vmem [shape: f32[1,128], index: 1, kind: input, shape index: {}]   ;;  %s101_s2 = inlined_call_operand.vmem [shape: f32[1,128], index: 2, kind: input, shape index: {}]   ;;  %s102_s3 = inlined_call_operand.vmem [shape: bf16[16,128], index: 3, kind: output, shape index: {}]  }
   0x1   :  { %v59_v0 = vld [vmem:[%s99_s0] sm:$0xff]  }
   0x2   :  { %v52_v1 = vld [vmem:[%s100_s1] ss:$0 sm:$0xff]  ;;  %v60_v2 = vunpack.c.l.bf16 %v59_v0  ;;  %v61_v3 = vunpack.c.h.bf16 %v59_v0 }
   0x3   :  { %v53_v4 = vld [vmem:[%s101_s2] ss:$0 sm:$0xff] }
   0x4   :  { %v25_v5 = vmul.f32 %v60_v2, %v52_v1  ;;  %v26_v6 = vmul.f32 %v61_v3, %v52_v1 }
   0x6   :  { %v34_v7 = vadd.f32 %v53_v4, %v25_v5  ;;  %v35_v8 = vadd.f32 %v53_v4, %v26_v6 }
   0x8   :  { %v36_v9 = vmax.f32 %v34_v7, 0.0  ;;  %v37_v10 = vmax.f32 %v35_v8, 0.0 }
   0xa   :  { %v65_v11 = vpack.c.bf16 %v37_v10, %v36_v9 }
   0xc   :  { %66 = vst [vmem:[%s102_s3] sm:$0xff] %v65_v11  }

// kernel: _lambda_.42
= control target key start
LH: loop header
LB: loop body
LE: loop exit
PB: predicated region body
PF: predicated region fallthrough
CT: control target
= control target key end

     0   :  { %s1211_s12 = smov 0   ;;  %s1213_s13 = smov 0   ;;  %s1294_s0 = inlined_call_operand.vmem [shape: bf16[4,128,128], index: 0, kind: input, shape index: {}]   ;;  %s1295_s1 = inlined_call_operand.vmem [shape: bf16[4,128,128], index: 1, kind: input, shape index: {}]   ;;  %s1296_s2 = inlined_call_operand.vmem [shape: bf16[4,128,128], index: 2, kind: output, shape index: {0}]   ;;  %s1297_s3 = inlined_call_operand.vmem [shape: f32[4,1,8,128], index: 3, kind: output, shape index: {1}]  }
   0x1   :  { %s1215_s14 = smov 0  }
   0x2 LB: > { %s40_s15 = sadd.s32 1, %s1184_s13  ;;  %p953_p0 = scmp.ge.s32.totalorder %s1188_s14, 1  ;;  %s1188_s14 = sphi %s1215_s14, %s14_s14   ;;  %s1184_s13 = sphi %s1213_s13, %s1299_s13   ;;  %s1180_s12 = sphi %s1211_s12, %s1298_s12  }
   0x3   : > { %p42_p1 = scmp.ge.s32.totalorder %s40_s15, 4  ;;  %p208_p2 = scmp.lt.s32.totalorder %s1188_s14, 5 }
   0x5   : > { %s1301_s15 = smov (%p42_p1, %s40_s15), 0  ;;  %p209_p3 = pnand %p953_p0, %p208_p2 }
   0x6   : > { %p269_p4 = scmp.lt.s32.totalorder (!%p209_p3), %s1180_s12, 3  ;;  %v1190_v16 = vmov (!%p209_p3), 0.0  }
   0x7   : > { %212 = sbr.rel (%p209_p3) target bundleno = 310 (0x136), region = 28 }
   0xe   : > { %s1303_s12 = smov (!%p269_p4, %s1180_s12), 3 }
   0xf   : > { %s1232_s16 = sshll.u32 %s1303_s12, 6  ;;  %s960_s23 = sshll.u32 %s1303_s12, 3 }
  0x10   : > { %s1238_s19 = scalar_lea.vmem %s1295_s1, %s1232_s16  ;;  %s1247_s22 = scalar_lea.vmem %s1294_s0, %s1232_s16 }
  0x11   : > { %v1150_v0 = vld [vmem:[%s1238_s19] sm:$0xff]   ;;  %v1151_v1 = vld [vmem:[%s1238_s19 + $0x8] sm:$0xff]   ;;  %v1152_v2 = vld [vmem:[%s1238_s19 + $0x10] sm:$0xff]   ;;  %s1266_s26 = scalar_lea.vmem %s1297_s3, %s960_s23  ;;  %s1273_s29 = scalar_lea.vmem %s1296_s2, %s1232_s16 }
  0x12   : > { %1077 = vmatprep.subr.bf16.mxu0 %v1150_v0  ;;  %1109 = vmatprep.subr.bf16.mxu1 %v1150_v0  ;;  %v1153_v3 = vld [vmem:[%s1238_s19 + $0x18] sm:$0xff]   ;;  %v1158_v4 = vld [vmem:[%s1247_s22] sm:$0xff]   ;;  %v1155_v7 = vld [vmem:[%s1238_s19 + $0x28] sm:$0xff]   ;;  %338 = vst [vmem:[%s1266_s26] sm:$0xff] %v1190_v16 }
  0x13   : > { %1078 = vmatpush3.bf16.msra.mxu0 %v1150_v0  ;;  %1117 = vmatpush3.bf16.msra.mxu1 %v1150_v0  ;;  %v1154_v5 = vld [vmem:[%s1238_s19 + $0x20] sm:$0xff]   ;;  %v1156_v8 = vld [vmem:[%s1238_s19 + $0x30] sm:$0xff]   ;;  %v1157_v9 = vld [vmem:[%s1238_s19 + $0x38] sm:$0xff]  }
  0x14   : > { %1079 = vmatprep.subr.bf16.mxu0 %v1151_v1  ;;  %1110 = vmatprep.subr.bf16.mxu1 %v1151_v1  ;;  %v1162_v6 = vld [vmem:[%s1247_s22 + $0x20] sm:$0xff]   ;;  %v1159_v10 = vld [vmem:[%s1247_s22 + $0x8] sm:$0xff]   ;;  %v1160_v12 = vld [vmem:[%s1247_s22 + $0x10] sm:$0xff]  }
  0x15   : > { %1093 = vmatprep.mubr.bf16.mxu0 %v1158_v4  ;;  %1101 = vmatprep.mubr.bf16.mxu1 %v1162_v6  ;;  %v1163_v11 = vld [vmem:[%s1247_s22 + $0x28] sm:$0xff]   ;;  %v1164_v13 = vld [vmem:[%s1247_s22 + $0x30] sm:$0xff]   ;;  %v1161_v14 = vld [vmem:[%s1247_s22 + $0x18] sm:$0xff]  }
  0x16   : > { %v1165_v15 = vld [vmem:[%s1247_s22 + $0x38] sm:$0xff]  }
  0x17   : > { %1080 = vmatpush3.bf16.msra.mxu0 %v1151_v1  ;;  %1118 = vmatpush3.bf16.msra.mxu1 %v1151_v1 }
  0x18   : > { %1081 = vmatprep.subr.bf16.mxu0 %v1152_v2  ;;  %1111 = vmatprep.subr.bf16.mxu1 %v1152_v2 }
  0x1b   : > { %1082 = vmatpush3.bf16.msra.mxu0 %v1152_v2  ;;  %1119 = vmatpush3.bf16.msra.mxu1 %v1152_v2 }
  0x1c   : > { %1083 = vmatprep.subr.bf16.mxu0 %v1153_v3  ;;  %1112 = vmatprep.subr.bf16.mxu1 %v1153_v3 }
  0x1f   : > { %1084 = vmatpush3.bf16.msra.mxu0 %v1153_v3  ;;  %1120 = vmatpush3.bf16.msra.mxu1 %v1153_v3 }
  0x20   : > { %1085 = vmatprep.subr.bf16.mxu0 %v1154_v5  ;;  %1113 = vmatprep.subr.bf16.mxu1 %v1154_v5 }
  0x23   : > { %1086 = vmatpush3.bf16.msra.mxu0 %v1154_v5  ;;  %1121 = vmatpush3.bf16.msra.mxu1 %v1154_v5 }
  0x24   : > { %1087 = vmatprep.subr.bf16.mxu0 %v1155_v7  ;;  %1114 = vmatprep.subr.bf16.mxu1 %v1155_v7 }
  0x27   : > { %1088 = vmatpush3.bf16.msra.mxu0 %v1155_v7  ;;  %1122 = vmatpush3.bf16.msra.mxu1 %v1155_v7 }
  0x28   : > { %1089 = vmatprep.subr.bf16.mxu0 %v1156_v8  ;;  %1115 = vmatprep.subr.bf16.mxu1 %v1156_v8 }
  0x2b   : > { %1090 = vmatpush3.bf16.msra.mxu0 %v1156_v8  ;;  %1123 = vmatpush3.bf16.msra.mxu1 %v1156_v8 }
  0x2c   : > { %1091 = vmatprep.subr.bf16.mxu0 %v1157_v9  ;;  %1116 = vmatprep.subr.bf16.mxu1 %v1157_v9 }
  0x2f   : > { %1092 = vmatpush3.bf16.msra.mxu0 %v1157_v9  ;;  %1124 = vmatpush3.bf16.msra.mxu1 %v1157_v9 }
  0x32   : > { %1094 = vmatmul.mubr.bf16.vlgmr.msra.gmra.mrb[0].mxu0 %v1159_v10  ;;  %1102 = vmatmul.mubr.bf16.vlgmr.msra.gmra.mrb[0].mxu1 %v1163_v11 }
  0x33   : > { %1097 = vmatprep.mubr.bf16.mxu0 %v1160_v12  ;;  %1105 = vmatprep.mubr.bf16.mxu1 %v1164_v13 }
  0x3a   : > { %1098 = vmatmul.mubr.bf16.gmra.mrb[4].mxu0 %v1161_v14  ;;  %1106 = vmatmul.mubr.bf16.gmra.mrb[4].mxu1 %v1165_v15 }
 0x105   : > { %v1095_v17 = vpop.f32.mrb[0].mxu0  ;;  %v1103_v18 = vpop.f32.mrb[0].mxu1 }
 0x106   : > { %v517_v19 = vpop.f32.mrb[1].mxu0  ;;  %v549_v20 = vpop.f32.mrb[1].mxu1  ;;  %v735_v32 = vmul.f32 %v1095_v17, %v1095_v17  ;;  %v743_v4 = vmul.f32 %v1103_v18, %v1103_v18 }
 0x107   : > { %v1096_v21 = vpop.f32.mrb[2].mxu0  ;;  %v1104_v22 = vpop.f32.mrb[2].mxu1  ;;  %v733_v23 = vmul.f32 %v517_v19, %v517_v19  ;;  %v741_v62 = vmul.f32 %v549_v20, %v549_v20 }
 0x108   : > { %v1022_v24 = vpack.c.bf16 %v1096_v21, %v1095_v17  ;;  %v520_v25 = vpop.f32.mrb[3].mxu0  ;;  %v1042_v26 = vpack.c.bf16 %v1104_v22, %v1103_v18  ;;  %v552_v27 = vpop.f32.mrb[3].mxu1  ;;  %v736_v35 = vmul.f32 %v1096_v21, %v1096_v21  ;;  %v744_v7 = vmul.f32 %v1104_v22, %v1104_v22 }
 0x109   : > { %v1017_v28 = vpack.c.bf16 %v520_v25, %v517_v19  ;;  %v711_v29 = vadd.f32 %v520_v25, %v517_v19  ;;  %v734_v30 = vmul.f32 %v520_v25, %v520_v25  ;;  %v1037_v31 = vpack.c.bf16 %v552_v27, %v549_v20 }
 0x10a   : > { %1054 = vst [vmem:[%s1273_s29 + $0x8] sm:$0xff] %v1022_v24   ;;  %1058 = vst [vmem:[%s1273_s29 + $0x28] sm:$0xff] %v1042_v26   ;;  %v742_v3 = vmul.f32 %v552_v27, %v552_v27 }
 0x10b   : > { %1018 = vst [vmem:[%s1273_s29] sm:$0xff] %v1017_v28   ;;  %v712_v33 = vadd.f32 %v1095_v17, %v711_v29  ;;  %v749_v34 = vadd.f32 %v734_v30, %v733_v23  ;;  %1057 = vst [vmem:[%s1273_s29 + $0x20] sm:$0xff] %v1037_v31  }
 0x10d   : > { %v750_v36 = vadd.f32 %v749_v34, %v735_v32  ;;  %v1099_v37 = vpop.f32.mrb[4].mxu0  ;;  %v713_v38 = vadd.f32 %v1096_v21, %v712_v33  ;;  %v1107_v39 = vpop.f32.mrb[4].mxu1 }
 0x10e   : > { %v533_v40 = vpop.f32.mrb[5].mxu0  ;;  %v565_v41 = vpop.f32.mrb[5].mxu1  ;;  %v739_v56 = vmul.f32 %v1099_v37, %v1099_v37  ;;  %v747_v16 = vmul.f32 %v1107_v39, %v1107_v39 }
 0x10f   : > { %v714_v42 = vadd.f32 %v713_v38, %v533_v40  ;;  %v737_v43 = vmul.f32 %v533_v40, %v533_v40  ;;  %v751_v44 = vadd.f32 %v750_v36, %v736_v35  ;;  %v1100_v45 = vpop.f32.mrb[6].mxu0  ;;  %v1108_v46 = vpop.f32.mrb[6].mxu1  ;;  %v745_v10 = vmul.f32 %v565_v41, %v565_v41 }
 0x110   : > { %v1032_v47 = vpack.c.bf16 %v1100_v45, %v1099_v37  ;;  %v536_v48 = vpop.f32.mrb[7].mxu0  ;;  %v1052_v49 = vpack.c.bf16 %v1108_v46, %v1107_v39  ;;  %v568_v50 = vpop.f32.mrb[7].mxu1  ;;  %v740_v59 = vmul.f32 %v1100_v45, %v1100_v45 }
 0x111   : > { %v752_v51 = vadd.f32 %v751_v44, %v737_v43  ;;  %v1027_v52 = vpack.c.bf16 %v536_v48, %v533_v40  ;;  %v715_v53 = vadd.f32 %v714_v42, %v536_v48  ;;  %v738_v54 = vmul.f32 %v536_v48, %v536_v48 }
 0x112   : > { %1056 = vst [vmem:[%s1273_s29 + $0x18] sm:$0xff] %v1032_v47   ;;  %1060 = vst [vmem:[%s1273_s29 + $0x38] sm:$0xff] %v1052_v49   ;;  %v1047_v55 = vpack.c.bf16 %v568_v50, %v565_v41  ;;  %v746_v15 = vmul.f32 %v568_v50, %v568_v50 }
 0x113   : > { %1055 = vst [vmem:[%s1273_s29 + $0x10] sm:$0xff] %v1027_v52   ;;  %v716_v57 = vadd.f32 %v1099_v37, %v715_v53  ;;  %v753_v58 = vadd.f32 %v752_v51, %v738_v54 }
 0x114   : > { %1059 = vst [vmem:[%s1273_s29 + $0x30] sm:$0xff] %v1047_v55  }
 0x115   : > { %v754_v60 = vadd.f32 %v753_v58, %v739_v56  ;;  %v717_v61 = vadd.f32 %v1100_v45, %v716_v57 }
 0x117   : > { %v718_v63 = vadd.f32 %v717_v61, %v549_v20  ;;  %v755_v0 = vadd.f32 %v754_v60, %v740_v59  ;;  %v748_v20 = vmul.f32 %v1108_v46, %v1108_v46 }
 0x119   : > { %v756_v1 = vadd.f32 %v755_v0, %v741_v62  ;;  %v719_v2 = vadd.f32 %v718_v63, %v552_v27 }
 0x11b   : > { %v720_v5 = vadd.f32 %v1103_v18, %v719_v2  ;;  %v757_v6 = vadd.f32 %v756_v1, %v742_v3 }
 0x11d   : > { %v758_v8 = vadd.f32 %v757_v6, %v743_v4  ;;  %v721_v9 = vadd.f32 %v1104_v22, %v720_v5 }
 0x11f   : > { %v722_v11 = vadd.f32 %v721_v9, %v565_v41  ;;  %v759_v12 = vadd.f32 %v758_v8, %v744_v7 }
 0x121   : > { %v760_v13 = vadd.f32 %v759_v12, %v745_v10  ;;  %v723_v14 = vadd.f32 %v722_v11, %v568_v50 }
 0x123   : > { %v724_v17 = vadd.f32 %v1107_v39, %v723_v14  ;;  %v761_v19 = vadd.f32 %v760_v13, %v746_v15 }
 0x125   : > { %v725_v21 = vadd.f32 %v1108_v46, %v724_v17  ;;  %v762_v23 = vadd.f32 %v761_v19, %v747_v16 }
 0x127   : > { %v726_v24 = vrot.slane %v725_v21, 4  ;;  %v763_v18 = vadd.f32 %v762_v23, %v748_v20 }
 0x129   : > { %v727_v25 = vadd.f32 %v726_v24, %v725_v21  ;;  %v764_v26 = vrot.slane %v763_v18, 4 }
 0x12b   : > { %v728_v27 = vrot.slane %v727_v25, 2  ;;  %v765_v22 = vadd.f32 %v764_v26, %v763_v18 }
 0x12d   : > { %v729_v28 = vadd.f32 %v728_v27, %v727_v25  ;;  %v766_v29 = vrot.slane %v765_v22, 2 }
 0x12f   : > { %v730_v30 = vrot.slane %v729_v28, 1  ;;  %v767_v31 = vadd.f32 %v766_v29, %v765_v22 }
 0x131   : > { %v731_v32 = vadd.f32 %v730_v30, %v729_v28  ;;  %v768_v33 = vrot.slane %v767_v31, 1 }
 0x133   : > { %732 = vst [vmem:[%s1266_s26] sm:$0x1] %v731_v32  ;;  %v769_v34 = vadd.f32 %v768_v33, %v767_v31 }
 0x135   : > { %770 = vst [vmem:[%s1266_s26 + $0x1] sm:$0x1] %v769_v34 }
 0x136 PF: > { %s14_s14 = sadd.s32 1, %s1188_s14   ;;  %s1298_s12 = smov %s1184_s13 }
 0x137   : > { %p11_p5 = scmp.ge.s32.totalorder %s14_s14, 6   ;;  %s1299_s13 = smov %s1301_s15 }
 0x139   :  { %13 = sbr.rel (!%p11_p5) target bundleno = 2 (0x2), region = 81 }

// kernel: _lambda_.53
= control target key start
LH: loop header
LB: loop body
LE: loop exit
PB: predicated region body
PF: predicated region fallthrough
CT: control target
= control target key end

     0   :  { %v293_v10 = vmov 0.0   ;;  %s359_s1 = inlined_call_operand.vmem [shape: bf16[1,128,128], index: 1, kind: input, shape index: {}]   ;;  %s360_s0 = inlined_call_operand.vmem [shape: bf16[1,32,128], index: 0, kind: input, shape index: {}]   ;;  %s361_s3 = inlined_call_operand.vmem [shape: f32[1,1,8,128], index: 3, kind: output, shape index: {1}]   ;;  %s362_s2 = inlined_call_operand.vmem [shape: bf16[1,32,128], index: 2, kind: output, shape index: {0}]  }
   0x1   :  { %v283_v0 = vld [vmem:[%s359_s1] sm:$0xff]   ;;  %v284_v1 = vld [vmem:[%s359_s1 + $0x8] sm:$0xff]   ;;  %v285_v2 = vld [vmem:[%s359_s1 + $0x10] sm:$0xff]   ;;  %22 = vst [vmem:[%s361_s3] sm:$0xff] %v293_v10 }
   0x2   :  { %262 = vmatprep.subr.bf16.mxu0 %v283_v0  ;;  %v286_v3 = vld [vmem:[%s359_s1 + $0x18] sm:$0xff]   ;;  %v291_v4 = vld [vmem:[%s360_s0] sm:$0xff]   ;;  %v288_v6 = vld [vmem:[%s359_s1 + $0x28] sm:$0xff]  }
   0x3   :  { %263 = vmatpush3.bf16.msra.mxu0 %v283_v0  ;;  %278 = vmatprep.mubr.bf16.mxu0 %v291_v4  ;;  %v287_v5 = vld [vmem:[%s359_s1 + $0x20] sm:$0xff]   ;;  %v289_v7 = vld [vmem:[%s359_s1 + $0x30] sm:$0xff]   ;;  %v290_v8 = vld [vmem:[%s359_s1 + $0x38] sm:$0xff]  }
   0x4   :  { %264 = vmatprep.subr.bf16.mxu0 %v284_v1  ;;  %v292_v9 = vld [vmem:[%s360_s0 + $0x8] sm:$0xff]  }
   0x7   :  { %265 = vmatpush3.bf16.msra.mxu0 %v284_v1 }
   0x8   :  { %266 = vmatprep.subr.bf16.mxu0 %v285_v2 }
   0xb   :  { %267 = vmatpush3.bf16.msra.mxu0 %v285_v2 }
   0xc   :  { %268 = vmatprep.subr.bf16.mxu0 %v286_v3 }
   0xf   :  { %269 = vmatpush3.bf16.msra.mxu0 %v286_v3 }
  0x10   :  { %270 = vmatprep.subr.bf16.mxu0 %v287_v5 }
  0x13   :  { %271 = vmatpush3.bf16.msra.mxu0 %v287_v5 }
  0x14   :  { %272 = vmatprep.subr.bf16.mxu0 %v288_v6 }
  0x17   :  { %273 = vmatpush3.bf16.msra.mxu0 %v288_v6 }
  0x18   :  { %274 = vmatprep.subr.bf16.mxu0 %v289_v7 }
  0x1b   :  { %275 = vmatpush3.bf16.msra.mxu0 %v289_v7 }
  0x1c   :  { %276 = vmatprep.subr.bf16.mxu0 %v290_v8 }
  0x1f   :  { %277 = vmatpush3.bf16.msra.mxu0 %v290_v8 }
  0x22   :  { %279 = vmatmul.mubr.bf16.vlgmr.msra.gmra.mrb[0].mxu0 %v292_v9 }
  0xf5   :  { %v280_v11 = vpop.f32.mrb[0].mxu0 }
  0xf6   :  { %v141_v12 = vpop.f32.mrb[1].mxu0  ;;  %v203_v20 = vmul.f32 %v280_v11, %v280_v11 }
  0xf7   :  { %v281_v13 = vpop.f32.mrb[2].mxu0  ;;  %v201_v16 = vmul.f32 %v141_v12, %v141_v12 }
  0xf8   :  { %v249_v14 = vpack.c.bf16 %v281_v13, %v280_v11  ;;  %v144_v15 = vpop.f32.mrb[3].mxu0  ;;  %v204_v23 = vmul.f32 %v281_v13, %v281_v13 }
  0xf9   :  { %v244_v17 = vpack.c.bf16 %v144_v15, %v141_v12  ;;  %v191_v18 = vadd.f32 %v144_v15, %v141_v12  ;;  %v202_v19 = vmul.f32 %v144_v15, %v144_v15 }
  0xfa   :  { %251 = vst [vmem:[%s362_s2 + $0x8] sm:$0xff] %v249_v14  }
  0xfb   :  { %245 = vst [vmem:[%s362_s2] sm:$0xff] %v244_v17   ;;  %v192_v21 = vadd.f32 %v280_v11, %v191_v18  ;;  %v205_v22 = vadd.f32 %v202_v19, %v201_v16 }
  0xfd   :  { %v193_v24 = vadd.f32 %v281_v13, %v192_v21  ;;  %v206_v25 = vadd.f32 %v205_v22, %v203_v20 }
  0xff   :  { %v194_v26 = vrot.slane %v193_v24, 4  ;;  %v207_v27 = vadd.f32 %v206_v25, %v204_v23 }
 0x101   :  { %v195_v28 = vadd.f32 %v194_v26, %v193_v24  ;;  %v208_v29 = vrot.slane %v207_v27, 4 }
 0x103   :  { %v196_v30 = vrot.slane %v195_v28, 2  ;;  %v209_v31 = vadd.f32 %v208_v29, %v207_v27 }
 0x105   :  { %v197_v32 = vadd.f32 %v196_v30, %v195_v28  ;;  %v210_v33 = vrot.slane %v209_v31, 2 }
 0x107   :  { %v198_v34 = vrot.slane %v197_v32, 1  ;;  %v211_v35 = vadd.f32 %v210_v33, %v209_v31 }
 0x109   :  { %v199_v36 = vadd.f32 %v198_v34, %v197_v32  ;;  %v212_v37 = vrot.slane %v211_v35, 1 }
 0x10b   :  { %200 = vst [vmem:[%s361_s3] sm:$0x1] %v199_v36  ;;  %v213_v38 = vadd.f32 %v212_v37, %v211_v35 }
 0x10d   :  { %214 = vst [vmem:[%s361_s3 + $0x1] sm:$0x1] %v213_v38 }

// kernel: _lambda_.47
= control target key start
LH: loop header
LB: loop body
LE: loop exit
PB: predicated region body
PF: predicated region fallthrough
CT: control target
= control target key end

     0   :  { %s285_s0 = inlined_call_operand.vmem [shape: bf16[64,128], index: 0, kind: input, shape index: {}]   ;;  %s286_s1 = inlined_call_operand.vmem [shape: f32[1,128], index: 1, kind: input, shape index: {}]   ;;  %s287_s2 = inlined_call_operand.vmem [shape: f32[1,128], index: 2, kind: input, shape index: {}]   ;;  %s288_s3 = inlined_call_operand.vmem [shape: bf16[64,128], index: 3, kind: input, shape index: {}]   ;;  %s289_s4 = inlined_call_operand.vmem [shape: bf16[64,128], index: 4, kind: output, shape index: {}]  }
   0x1   :  { %v158_v0 = vld [vmem:[%s285_s0] sm:$0xff]   ;;  %v209_v5 = vld [vmem:[%s285_s0 + $0x8] sm:$0xff]   ;;  %v210_v12 = vld [vmem:[%s285_s0 + $0x10] sm:$0xff]  }
   0x2   :  { %v139_v1 = vld [vmem:[%s286_s1] ss:$0 sm:$0xff]  ;;  %v159_v2 = vunpack.c.l.bf16 %v158_v0  ;;  %v160_v3 = vunpack.c.h.bf16 %v158_v0  ;;  %v212_v6 = vld [vmem:[%s288_s3 + $0x8] sm:$0xff]   ;;  %v163_v10 = vunpack.c.l.bf16 %v209_v5  ;;  %v164_v11 = vunpack.c.h.bf16 %v209_v5  ;;  %v213_v13 = vld [vmem:[%s288_s3 + $0x10] sm:$0xff]  }
   0x3   :  { %v174_v4 = vld [vmem:[%s288_s3] sm:$0xff]   ;;  %v179_v16 = vunpack.c.l.bf16 %v212_v6  ;;  %v180_v17 = vunpack.c.h.bf16 %v212_v6  ;;  %v167_v20 = vunpack.c.l.bf16 %v210_v12  ;;  %v168_v21 = vunpack.c.h.bf16 %v210_v12  ;;  %v211_v22 = vld [vmem:[%s285_s0 + $0x18] sm:$0xff]  }
   0x4   :  { %v140_v7 = vld [vmem:[%s287_s2] ss:$0 sm:$0xff]  ;;  %v175_v8 = vunpack.c.l.bf16 %v174_v4  ;;  %v176_v9 = vunpack.c.h.bf16 %v174_v4  ;;  %v40_v14 = vmul.f32 %v159_v2, %v139_v1  ;;  %v41_v15 = vmul.f32 %v160_v3, %v139_v1  ;;  %v214_v39 = vld [vmem:[%s288_s3 + $0x18] sm:$0xff]  }
   0x5   :  { %v42_v18 = vmul.f32 %v163_v10, %v139_v1  ;;  %v43_v19 = vmul.f32 %v164_v11, %v139_v1  ;;  %v183_v25 = vunpack.c.l.bf16 %v213_v13  ;;  %v184_v26 = vunpack.c.h.bf16 %v213_v13 }
   0x6   :  { %v55_v23 = vadd.f32 %v140_v7, %v40_v14  ;;  %v56_v24 = vadd.f32 %v140_v7, %v41_v15  ;;  %v44_v29 = vmul.f32 %v167_v20, %v139_v1  ;;  %v45_v30 = vmul.f32 %v168_v21, %v139_v1 }
   0x7   :  { %v57_v27 = vadd.f32 %v140_v7, %v42_v18  ;;  %v58_v28 = vadd.f32 %v140_v7, %v43_v19  ;;  %v171_v33 = vunpack.c.l.bf16 %v211_v22  ;;  %v172_v34 = vunpack.c.h.bf16 %v211_v22 }
   0x8   :  { %v79_v31 = vadd.f32 %v175_v8, %v55_v23  ;;  %v80_v32 = vadd.f32 %v176_v9, %v56_v24  ;;  %v59_v37 = vadd.f32 %v140_v7, %v44_v29  ;;  %v60_v38 = vadd.f32 %v140_v7, %v45_v30 }
   0x9   :  { %v81_v35 = vadd.f32 %v179_v16, %v57_v27  ;;  %v82_v36 = vadd.f32 %v180_v17, %v58_v28  ;;  %v46_v42 = vmul.f32 %v171_v33, %v139_v1  ;;  %v47_v43 = vmul.f32 %v172_v34, %v139_v1 }
   0xa   :  { %v87_v40 = vmax.f32 %v79_v31, 0.0  ;;  %v88_v41 = vmax.f32 %v80_v32, 0.0  ;;  %v83_v46 = vadd.f32 %v183_v25, %v59_v37  ;;  %v84_v47 = vadd.f32 %v184_v26, %v60_v38 }
   0xb   :  { %v89_v44 = vmax.f32 %v81_v35, 0.0  ;;  %v90_v45 = vmax.f32 %v82_v36, 0.0  ;;  %v61_v49 = vadd.f32 %v140_v7, %v46_v42  ;;  %v62_v50 = vadd.f32 %v140_v7, %v47_v43 }
   0xc   :  { %v192_v48 = vpack.c.bf16 %v88_v41, %v87_v40  ;;  %v187_v51 = vunpack.c.l.bf16 %v214_v39  ;;  %v91_v53 = vmax.f32 %v83_v46, 0.0  ;;  %v92_v54 = vmax.f32 %v84_v47, 0.0 }
   0xd   :  { %v197_v52 = vpack.c.bf16 %v90_v45, %v89_v44  ;;  %v188_v55 = vunpack.c.h.bf16 %v214_v39 }
   0xe   :  { %193 = vst [vmem:[%s289_s4] sm:$0xff] %v192_v48   ;;  %v85_v56 = vadd.f32 %v187_v51, %v61_v49  ;;  %v202_v57 = vpack.c.bf16 %v92_v54, %v91_v53 }
   0xf   :  { %215 = vst [vmem:[%s289_s4 + $0x8] sm:$0xff] %v197_v52   ;;  %v86_v58 = vadd.f32 %v188_v55, %v62_v50 }
  0x10   :  { %v93_v59 = vmax.f32 %v85_v56, 0.0  ;;  %216 = vst [vmem:[%s289_s4 + $0x10] sm:$0xff] %v202_v57  }
  0x11   :  { %v94_v60 = vmax.f32 %v86_v58, 0.0 }
  0x13   :  { %v207_v61 = vpack.c.bf16 %v94_v60, %v93_v59 }
  0x15   :  { %217 = vst [vmem:[%s289_s4 + $0x18] sm:$0xff] %v207_v61  }

// kernel: _lambda_.54
= control target key start
LH: loop header
LB: loop body
LE: loop exit
PB: predicated region body
PF: predicated region fallthrough
CT: control target
= control target key end

     0   :  { %s136_s0 = inlined_call_operand.vmem [shape: bf16[32,128], index: 0, kind: input, shape index: {}]   ;;  %s137_s1 = inlined_call_operand.vmem [shape: f32[1,128], index: 1, kind: input, shape index: {}]   ;;  %s138_s2 = inlined_call_operand.vmem [shape: f32[1,128], index: 2, kind: input, shape index: {}]   ;;  %s139_s3 = inlined_call_operand.vmem [shape: bf16[32,128], index: 3, kind: output, shape index: {}]  }
   0x1   :  { %v79_v0 = vld [vmem:[%s136_s0] sm:$0xff]   ;;  %v96_v4 = vld [vmem:[%s136_s0 + $0x8] sm:$0xff]  }
   0x2   :  { %v68_v1 = vld [vmem:[%s137_s1] ss:$0 sm:$0xff]  ;;  %v80_v2 = vunpack.c.l.bf16 %v79_v0  ;;  %v81_v3 = vunpack.c.h.bf16 %v79_v0  ;;  %v84_v6 = vunpack.c.l.bf16 %v96_v4  ;;  %v85_v7 = vunpack.c.h.bf16 %v96_v4 }
   0x3   :  { %v69_v5 = vld [vmem:[%s138_s2] ss:$0 sm:$0xff] }
   0x4   :  { %v29_v8 = vmul.f32 %v80_v2, %v68_v1  ;;  %v30_v9 = vmul.f32 %v81_v3, %v68_v1  ;;  %v31_v10 = vmul.f32 %v84_v6, %v68_v1  ;;  %v32_v11 = vmul.f32 %v85_v7, %v68_v1 }
   0x6   :  { %v40_v12 = vadd.f32 %v69_v5, %v29_v8  ;;  %v41_v13 = vadd.f32 %v69_v5, %v30_v9  ;;  %v42_v14 = vadd.f32 %v69_v5, %v31_v10  ;;  %v43_v15 = vadd.f32 %v69_v5, %v32_v11 }
   0x8   :  { %v89_v16 = vpack.c.bf16 %v41_v13, %v40_v12  ;;  %v94_v17 = vpack.c.bf16 %v43_v15, %v42_v14 }
   0xa   :  { %90 = vst [vmem:[%s139_s3] sm:$0xff] %v89_v16   ;;  %97 = vst [vmem:[%s139_s3 + $0x8] sm:$0xff] %v94_v17  }

// kernel: _lambda_.50
= control target key start
LH: loop header
LB: loop body
LE: loop exit
PB: predicated region body
PF: predicated region fallthrough
CT: control target
= control target key end

     0   :  { %s853_s12 = smov 0   ;;  %s855_s13 = smov 0   ;;  %s906_s0 = inlined_call_operand.vmem [shape: bf16[4,32,128], index: 0, kind: input, shape index: {}]   ;;  %s907_s1 = inlined_call_operand.vmem [shape: bf16[4,128,128], index: 1, kind: input, shape index: {}]   ;;  %s908_s2 = inlined_call_operand.vmem [shape: bf16[4,32,128], index: 2, kind: output, shape index: {0}]   ;;  %s909_s3 = inlined_call_operand.vmem [shape: f32[4,1,8,128], index: 3, kind: output, shape index: {1}]  }
   0x1   :  { %s857_s14 = smov 0  }
   0x2 LB: > { %s40_s15 = sadd.s32 1, %s826_s13  ;;  %p701_p0 = scmp.ge.s32.totalorder %s830_s14, 1  ;;  %s830_s14 = sphi %s857_s14, %s14_s14   ;;  %s826_s13 = sphi %s855_s13, %s911_s13   ;;  %s822_s12 = sphi %s853_s12, %s910_s12  }
   0x3   : > { %p42_p1 = scmp.ge.s32.totalorder %s40_s15, 4  ;;  %p208_p2 = scmp.lt.s32.totalorder %s830_s14, 5 }
   0x5   : > { %s913_s15 = smov (%p42_p1, %s40_s15), 0  ;;  %p209_p3 = pnand %p701_p0, %p208_p2 }
   0x6   : > { %p269_p4 = scmp.lt.s32.totalorder (!%p209_p3), %s822_s12, 3  ;;  %v832_v10 = vmov (!%p209_p3), 0.0  }
   0x7   : > { %212 = sbr.rel (%p209_p3) target bundleno = 286 (0x11e), region = 28 }
   0xe   : > { %s915_s12 = smov (!%p269_p4, %s822_s12), 3 }
   0xf   : > { %s726_s16 = sshll.u32 %s915_s12, 6  ;;  %s725_s20 = sshll.u32 %s915_s12, 4 }
  0x10   : > { %s292_s19 = scalar_lea.vmem %s907_s1, %s726_s16  ;;  %s279_s23 = scalar_lea.vmem %s906_s0, %s725_s20 }
  0x11   : > { %v798_v0 = vld [vmem:[%s292_s19] sm:$0xff]   ;;  %v799_v1 = vld [vmem:[%s292_s19 + $0x8] sm:$0xff]   ;;  %v800_v2 = vld [vmem:[%s292_s19 + $0x10] sm:$0xff]   ;;  %s708_s24 = sshll.u32 %s915_s12, 3  ;;  %s305_s30 = scalar_lea.vmem %s908_s2, %s725_s20 }
  0x12   : > { %753 = vmatprep.subr.bf16.mxu0 %v798_v0  ;;  %v801_v3 = vld [vmem:[%s292_s19 + $0x18] sm:$0xff]   ;;  %v806_v4 = vld [vmem:[%s279_s23] sm:$0xff]   ;;  %v803_v6 = vld [vmem:[%s292_s19 + $0x28] sm:$0xff]   ;;  %s887_s27 = scalar_lea.vmem %s909_s3, %s708_s24 }
  0x13   : > { %754 = vmatpush3.bf16.msra.mxu0 %v798_v0  ;;  %769 = vmatprep.mubr.bf16.mxu0 %v806_v4  ;;  %v802_v5 = vld [vmem:[%s292_s19 + $0x20] sm:$0xff]   ;;  %v804_v7 = vld [vmem:[%s292_s19 + $0x30] sm:$0xff]   ;;  %v805_v8 = vld [vmem:[%s292_s19 + $0x38] sm:$0xff]   ;;  %326 = vst [vmem:[%s887_s27] sm:$0xff] %v832_v10 }
  0x14   : > { %755 = vmatprep.subr.bf16.mxu0 %v799_v1  ;;  %v807_v9 = vld [vmem:[%s279_s23 + $0x8] sm:$0xff]  }
  0x17   : > { %756 = vmatpush3.bf16.msra.mxu0 %v799_v1 }
  0x18   : > { %757 = vmatprep.subr.bf16.mxu0 %v800_v2 }
  0x1b   : > { %758 = vmatpush3.bf16.msra.mxu0 %v800_v2 }
  0x1c   : > { %759 = vmatprep.subr.bf16.mxu0 %v801_v3 }
  0x1f   : > { %760 = vmatpush3.bf16.msra.mxu0 %v801_v3 }
  0x20   : > { %761 = vmatprep.subr.bf16.mxu0 %v802_v5 }
  0x23   : > { %762 = vmatpush3.bf16.msra.mxu0 %v802_v5 }
  0x24   : > { %763 = vmatprep.subr.bf16.mxu0 %v803_v6 }
  0x27   : > { %764 = vmatpush3.bf16.msra.mxu0 %v803_v6 }
  0x28   : > { %765 = vmatprep.subr.bf16.mxu0 %v804_v7 }
  0x2b   : > { %766 = vmatpush3.bf16.msra.mxu0 %v804_v7 }
  0x2c   : > { %767 = vmatprep.subr.bf16.mxu0 %v805_v8 }
  0x2f   : > { %768 = vmatpush3.bf16.msra.mxu0 %v805_v8 }
  0x32   : > { %770 = vmatmul.mubr.bf16.vlgmr.msra.gmra.mrb[0].mxu0 %v807_v9 }
 0x105   : > { %v771_v11 = vpop.f32.mrb[0].mxu0 }
 0x106   : > { %v445_v12 = vpop.f32.mrb[1].mxu0  ;;  %v507_v20 = vmul.f32 %v771_v11, %v771_v11 }
 0x107   : > { %v772_v13 = vpop.f32.mrb[2].mxu0  ;;  %v505_v16 = vmul.f32 %v445_v12, %v445_v12 }
 0x108   : > { %v740_v14 = vpack.c.bf16 %v772_v13, %v771_v11  ;;  %v448_v15 = vpop.f32.mrb[3].mxu0  ;;  %v508_v23 = vmul.f32 %v772_v13, %v772_v13 }
 0x109   : > { %v735_v17 = vpack.c.bf16 %v448_v15, %v445_v12  ;;  %v495_v18 = vadd.f32 %v448_v15, %v445_v12  ;;  %v506_v19 = vmul.f32 %v448_v15, %v448_v15 }
 0x10a   : > { %742 = vst [vmem:[%s305_s30 + $0x8] sm:$0xff] %v740_v14  }
 0x10b   : > { %736 = vst [vmem:[%s305_s30] sm:$0xff] %v735_v17   ;;  %v496_v21 = vadd.f32 %v771_v11, %v495_v18  ;;  %v509_v22 = vadd.f32 %v506_v19, %v505_v16 }
 0x10d   : > { %v497_v24 = vadd.f32 %v772_v13, %v496_v21  ;;  %v510_v25 = vadd.f32 %v509_v22, %v507_v20 }
 0x10f   : > { %v498_v26 = vrot.slane %v497_v24, 4  ;;  %v511_v27 = vadd.f32 %v510_v25, %v508_v23 }
 0x111   : > { %v499_v28 = vadd.f32 %v498_v26, %v497_v24  ;;  %v512_v29 = vrot.slane %v511_v27, 4 }
 0x113   : > { %v500_v30 = vrot.slane %v499_v28, 2  ;;  %v513_v31 = vadd.f32 %v512_v29, %v511_v27 }
 0x115   : > { %v501_v32 = vadd.f32 %v500_v30, %v499_v28  ;;  %v514_v33 = vrot.slane %v513_v31, 2 }
 0x117   : > { %v502_v34 = vrot.slane %v501_v32, 1  ;;  %v515_v35 = vadd.f32 %v514_v33, %v513_v31 }
 0x119   : > { %v503_v36 = vadd.f32 %v502_v34, %v501_v32  ;;  %v516_v37 = vrot.slane %v515_v35, 1 }
 0x11b   : > { %504 = vst [vmem:[%s887_s27] sm:$0x1] %v503_v36  ;;  %v517_v38 = vadd.f32 %v516_v37, %v515_v35 }
 0x11d   : > { %518 = vst [vmem:[%s887_s27 + $0x1] sm:$0x1] %v517_v38 }
 0x11e PF: > { %s14_s14 = sadd.s32 1, %s830_s14   ;;  %s910_s12 = smov %s826_s13 }
 0x11f   : > { %p11_p5 = scmp.ge.s32.totalorder %s14_s14, 6   ;;  %s911_s13 = smov %s913_s15 }
 0x121   :  { %13 = sbr.rel (!%p11_p5) target bundleno = 2 (0x2), region = 81 }

// kernel: _lambda_.55
= control target key start
LH: loop header
LB: loop body
LE: loop exit
PB: predicated region body
PF: predicated region fallthrough
CT: control target
= control target key end

     0   :  { %s175_s0 = inlined_call_operand.vmem [shape: bf16[32,128], index: 0, kind: input, shape index: {}]   ;;  %s176_s1 = inlined_call_operand.vmem [shape: f32[1,128], index: 1, kind: input, shape index: {}]   ;;  %s177_s2 = inlined_call_operand.vmem [shape: f32[1,128], index: 2, kind: input, shape index: {}]   ;;  %s178_s3 = inlined_call_operand.vmem [shape: bf16[32,128], index: 3, kind: input, shape index: {}]   ;;  %s179_s4 = inlined_call_operand.vmem [shape: bf16[32,128], index: 4, kind: output, shape index: {}]  }
   0x1   :  { %v98_v0 = vld [vmem:[%s175_s0] sm:$0xff]   ;;  %v123_v5 = vld [vmem:[%s175_s0 + $0x8] sm:$0xff]  }
   0x2   :  { %v87_v1 = vld [vmem:[%s176_s1] ss:$0 sm:$0xff]  ;;  %v99_v2 = vunpack.c.l.bf16 %v98_v0  ;;  %v100_v3 = vunpack.c.h.bf16 %v98_v0  ;;  %v124_v6 = vld [vmem:[%s178_s3 + $0x8] sm:$0xff]   ;;  %v103_v8 = vunpack.c.l.bf16 %v123_v5  ;;  %v104_v9 = vunpack.c.h.bf16 %v123_v5 }
   0x3   :  { %v106_v4 = vld [vmem:[%s178_s3] sm:$0xff]   ;;  %v111_v16 = vunpack.c.l.bf16 %v124_v6  ;;  %v112_v17 = vunpack.c.h.bf16 %v124_v6 }
   0x4   :  { %v88_v7 = vld [vmem:[%s177_s2] ss:$0 sm:$0xff]  ;;  %v32_v10 = vmul.f32 %v99_v2, %v87_v1  ;;  %v33_v11 = vmul.f32 %v100_v3, %v87_v1  ;;  %v107_v12 = vunpack.c.l.bf16 %v106_v4  ;;  %v108_v13 = vunpack.c.h.bf16 %v106_v4 }
   0x5   :  { %v34_v14 = vmul.f32 %v103_v8, %v87_v1  ;;  %v35_v15 = vmul.f32 %v104_v9, %v87_v1 }
   0x6   :  { %v43_v18 = vadd.f32 %v88_v7, %v32_v10  ;;  %v44_v19 = vadd.f32 %v88_v7, %v33_v11 }
   0x7   :  { %v45_v20 = vadd.f32 %v88_v7, %v34_v14  ;;  %v46_v21 = vadd.f32 %v88_v7, %v35_v15 }
   0x8   :  { %v55_v22 = vadd.f32 %v107_v12, %v43_v18  ;;  %v56_v23 = vadd.f32 %v108_v13, %v44_v19 }
   0x9   :  { %v57_v24 = vadd.f32 %v111_v16, %v45_v20  ;;  %v58_v25 = vadd.f32 %v112_v17, %v46_v21 }
   0xa   :  { %v59_v26 = vmax.f32 %v55_v22, 0.0  ;;  %v60_v27 = vmax.f32 %v56_v23, 0.0 }
   0xb   :  { %v61_v28 = vmax.f32 %v57_v24, 0.0  ;;  %v62_v29 = vmax.f32 %v58_v25, 0.0 }
   0xc   :  { %v116_v30 = vpack.c.bf16 %v60_v27, %v59_v26 }
   0xd   :  { %v121_v31 = vpack.c.bf16 %v62_v29, %v61_v28 }
   0xe   :  { %117 = vst [vmem:[%s179_s4] sm:$0xff] %v116_v30  }
   0xf   :  { %125 = vst [vmem:[%s179_s4 + $0x8] sm:$0xff] %v121_v31  }

// kernel: _lambda_.61
= control target key start
LH: loop header
LB: loop body
LE: loop exit
PB: predicated region body
PF: predicated region fallthrough
CT: control target
= control target key end

     0   :  { %v339_v1 = vmov 0   ;;  %v340_v18 = vmov 0.0   ;;  %v341_v38 = vmov 1966171168   ;;  %v224_v40 = vlaneseq  ;;  %s431_s1 = inlined_call_operand.vmem [shape: bf16[1,128,256], index: 1, kind: input, shape index: {}]   ;;  %s432_s0 = inlined_call_operand.vmem [shape: bf16[1,16,128], index: 0, kind: input, shape index: {}]   ;;  %s433_s3 = inlined_call_operand.vmem [shape: f32[1,1,8,256], index: 3, kind: output, shape index: {1}]   ;;  %s434_s2 = inlined_call_operand.vmem [shape: bf16[1,16,256], index: 2, kind: output, shape index: {0}]  }
   0x1   :  { %v314_v0 = vld [vmem:[%s431_s1 + $0x4] ss:$8 sps:$4 sm:$0xff]   ;;  %164 = vmatprep.mubr.bf16.mxu0 %v339_v1  ;;  %v316_v2 = vld [vmem:[%s431_s1] ss:$8 sps:$4 sm:$0xff]   ;;  %v317_v3 = vld [vmem:[%s431_s1 + $0x14] ss:$8 sps:$4 sm:$0xff]   ;;  %22 = vst [vmem:[%s433_s3] sm:$0xff] %v340_v18  ;;  %v222_v39 = vunpack.c.l.s4 %v341_v38 }
   0x2   :  { %132 = vmatprep.subr.bf16.mxu0 %v314_v0  ;;  %v319_v4 = vld [vmem:[%s431_s1 + $0x10] ss:$8 sps:$4 sm:$0xff]   ;;  %v320_v5 = vld [vmem:[%s431_s1 + $0x24] ss:$8 sps:$4 sm:$0xff]   ;;  %v322_v6 = vld [vmem:[%s431_s1 + $0x20] ss:$8 sps:$4 sm:$0xff]  }
   0x3   :  { %133 = vmatpush1.bf16.msra.mxu0 %v316_v2  ;;  %v323_v7 = vld [vmem:[%s431_s1 + $0x34] ss:$8 sps:$4 sm:$0xff]   ;;  %v325_v8 = vld [vmem:[%s431_s1 + $0x30] ss:$8 sps:$4 sm:$0xff]   ;;  %v326_v9 = vld [vmem:[%s431_s1 + $0x44] ss:$8 sps:$4 sm:$0xff]   ;;  %v223_v49 = vunpack.c.0.s8 %v222_v39 }
   0x4   :  { %134 = vmatprep.subr.bf16.mxu0 %v317_v3  ;;  %v328_v10 = vld [vmem:[%s431_s1 + $0x40] ss:$8 sps:$4 sm:$0xff]   ;;  %v329_v11 = vld [vmem:[%s431_s1 + $0x54] ss:$8 sps:$4 sm:$0xff]   ;;  %v331_v12 = vld [vmem:[%s431_s1 + $0x50] ss:$8 sps:$4 sm:$0xff]  }
   0x5   :  { %v332_v13 = vld [vmem:[%s431_s1 + $0x64] ss:$8 sps:$4 sm:$0xff]   ;;  %v334_v14 = vld [vmem:[%s431_s1 + $0x60] ss:$8 sps:$4 sm:$0xff]   ;;  %v335_v15 = vld [vmem:[%s431_s1 + $0x74] ss:$8 sps:$4 sm:$0xff]  }
   0x6   :  { %v337_v16 = vld [vmem:[%s431_s1 + $0x70] ss:$8 sps:$4 sm:$0xff]   ;;  %v338_v17 = vld [vmem:[%s432_s0] sm:$0xff]   ;;  %23 = vst [vmem:[%s433_s3 + $0x8] sm:$0xff] %v340_v18  ;;  %v225_v50 = vshrl.u32 %v224_v40, 7  ;;  %vm238_vm0 = vcmp.lt.s32.totalorder %v224_v40, 256 }
   0x7   :  { %135 = vmatpush1.bf16.msra.mxu0 %v319_v4 }
   0x8   :  { %136 = vmatprep.subr.bf16.mxu0 %v320_v5  ;;  %v226_v59 = vsub.s32 %v223_v49, %v225_v50 }
   0xb   :  { %137 = vmatpush1.bf16.msra.mxu0 %v322_v6 }
   0xc   :  { %138 = vmatprep.subr.bf16.mxu0 %v323_v7 }
   0xf   :  { %139 = vmatpush1.bf16.msra.mxu0 %v325_v8 }
  0x10   :  { %140 = vmatprep.subr.bf16.mxu0 %v326_v9 }
  0x13   :  { %141 = vmatpush1.bf16.msra.mxu0 %v328_v10 }
  0x14   :  { %142 = vmatprep.subr.bf16.mxu0 %v329_v11 }
  0x17   :  { %143 = vmatpush1.bf16.msra.mxu0 %v331_v12 }
  0x18   :  { %144 = vmatprep.subr.bf16.mxu0 %v332_v13 }
  0x1b   :  { %145 = vmatpush1.bf16.msra.mxu0 %v334_v14 }
  0x1c   :  { %146 = vmatprep.subr.bf16.mxu0 %v335_v15 }
  0x1f   :  { %147 = vmatpush1.bf16.msra.mxu0 %v337_v16 }
  0x22   :  { %165 = vmatmul.mubr.bf16.vlgmr.msra.gmra.mrb[0].mxu0 %v338_v17 }
  0xf5   :  { %v166_v19 = vpop.f32.mrb[0].mxu0 }
  0xf6   :  { %v168_v20 = vpop.f32.mrb[1].mxu0  ;;  %v242_v23 = vmul.f32 %v166_v19, %v166_v19 }
  0xf7   :  { %v309_v21 = vpack.c.bf16 %v168_v20, %v166_v19  ;;  %v170_v22 = vpop.f32.mrb[2].mxu0  ;;  %v243_v27 = vmul.f32 %v168_v20, %v168_v20 }
  0xf8   :  { %v204_v24 = vadd.f32 %v170_v22, %v166_v19  ;;  %v244_v25 = vmul.f32 %v170_v22, %v170_v22  ;;  %v172_v26 = vpop.f32.mrb[3].mxu0 }
  0xf9   :  { %v310_v28 = vpack.c.bf16 %v172_v26, %v170_v22  ;;  %202 = vst [vmem:[%s434_s2] sm:$0xff] %v309_v21  ;;  %v211_v29 = vadd.f32 %v172_v26, %v168_v20  ;;  %v245_v30 = vmul.f32 %v172_v26, %v172_v26 }
  0xfa   :  { %v205_v31 = vrot.slane %v204_v24, 4  ;;  %v246_v32 = vadd.f32 %v244_v25, %v242_v23 }
  0xfb   :  { %203 = vst [vmem:[%s434_s2 + $0x8] sm:$0xff] %v310_v28  ;;  %v212_v33 = vrot.slane %v211_v29, 4  ;;  %v253_v34 = vadd.f32 %v245_v30, %v243_v27 }
  0xfc   :  { %v206_v35 = vadd.f32 %v205_v31, %v204_v24  ;;  %v247_v36 = vrot.slane %v246_v32, 4 }
  0xfd   :  { %v213_v37 = vadd.f32 %v212_v33, %v211_v29  ;;  %v254_v41 = vrot.slane %v253_v34, 4 }
  0xfe   :  { %v207_v42 = vrot.slane %v206_v35, 2  ;;  %v248_v43 = vadd.f32 %v247_v36, %v246_v32 }
  0xff   :  { %v214_v44 = vrot.slane %v213_v37, 2  ;;  %v255_v45 = vadd.f32 %v254_v41, %v253_v34 }
 0x100   :  { %v208_v46 = vadd.f32 %v207_v42, %v206_v35  ;;  %v249_v47 = vrot.slane %v248_v43, 2 }
 0x101   :  { %v215_v48 = vadd.f32 %v214_v44, %v213_v37  ;;  %v256_v51 = vrot.slane %v255_v45, 2 }
 0x102   :  { %v209_v52 = vrot.slane %v208_v46, 1  ;;  %v250_v53 = vadd.f32 %v249_v47, %v248_v43 }
 0x103   :  { %v216_v54 = vrot.slane %v215_v48, 1  ;;  %v257_v55 = vadd.f32 %v256_v51, %v255_v45 }
 0x104   :  { %v210_v56 = vadd.f32 %v209_v52, %v208_v46  ;;  %v251_v57 = vrot.slane %v250_v53, 1 }
 0x105   :  { %v217_v58 = vadd.f32 %v216_v54, %v215_v48  ;;  %v258_v60 = vrot.slane %v257_v55, 1 }
 0x106   :  { %v252_v61 = vadd.f32 %v251_v57, %v250_v53 }
 0x107   :  { %v220_v62 = vcombine.low %v210_v56, %v217_v58  ;;  %v259_v63 = vadd.f32 %v258_v60, %v257_v55 }
 0x109   :  { %v227_v0 = vrot.slane %v220_v62, %v226_v59  ;;  %v262_v1 = vcombine.low %v252_v61, %v259_v63 }
 0x10b   :  { %v234_v2 = vrot.slane %v227_v0, %v226_v59  ;;  %v269_v3 = vrot.slane %v262_v1, %v226_v59 }
 0x10d   :  { %240 = vst.msk [vmem:[%s433_s3] ss:$8 sm:$0x3] %vm238_vm0, %v234_v2  ;;  %v276_v4 = vrot.slane %v269_v3, %v226_v59 }
 0x10f   :  { %308 = vst.msk [vmem:[%s433_s3 + $0x1] ss:$8 sm:$0x3] %vm238_vm0, %v276_v4 }

// kernel: _lambda_.62
= control target key start
LH: loop header
LB: loop body
LE: loop exit
PB: predicated region body
PF: predicated region fallthrough
CT: control target
= control target key end

     0   :  { %v22_v0 = vlaneseq  ;;  %s112_s0 = inlined_call_operand.vmem [shape: bf16[16,256], index: 0, kind: input, shape index: {}]   ;;  %s113_s1 = inlined_call_operand.vmem [shape: f32[1,256], index: 1, kind: input, shape index: {}]   ;;  %s114_s2 = inlined_call_operand.vmem [shape: f32[1,256], index: 2, kind: input, shape index: {}]   ;;  %s115_s3 = inlined_call_operand.vmem [shape: bf16[16,256], index: 3, kind: output, shape index: {}]  }
   0x1   :  { %v14_v1 = vld [vmem:[%s112_s0] sm:$0xff]  ;;  %v15_v3 = vld [vmem:[%s112_s0 + $0x8] sm:$0xff] }
   0x2   :  { %v23_v2 = vshrl.u32 %v22_v0, 7  ;;  %v16_v4 = vunpack.c.l.bf16 %v14_v1  ;;  %v17_v5 = vunpack.c.h.bf16 %v14_v1  ;;  %v20_v6 = vld [vmem:[%s113_s1] sm:$0x3]  ;;  %v18_v10 = vunpack.c.l.bf16 %v15_v3 }
   0x3   :  { %v36_v7 = vld [vmem:[%s114_s2] sm:$0x3]  ;;  %v19_v11 = vunpack.c.h.bf16 %v15_v3 }
   0x4   :  { %v24_v8 = vsub.s32 0, %v23_v2  ;;  %v28_v9 = vsub.s32 1, %v23_v2 }
   0x6   :  { %v25_v12 = vrot.slane %v20_v6, %v24_v8  ;;  %v29_v13 = vrot.slane %v20_v6, %v28_v9  ;;  %v41_v14 = vrot.slane %v36_v7, %v24_v8  ;;  %v45_v15 = vrot.slane %v36_v7, %v28_v9 }
   0x8   :  { %v32_v16 = vmul.f32 %v25_v12, %v16_v4  ;;  %v33_v17 = vmul.f32 %v29_v13, %v17_v5  ;;  %v34_v18 = vmul.f32 %v25_v12, %v18_v10  ;;  %v35_v19 = vmul.f32 %v29_v13, %v19_v11 }
   0xa   :  { %v48_v20 = vadd.f32 %v41_v14, %v32_v16  ;;  %v49_v21 = vadd.f32 %v45_v15, %v33_v17  ;;  %v50_v22 = vadd.f32 %v41_v14, %v34_v18  ;;  %v51_v23 = vadd.f32 %v45_v15, %v35_v19 }
   0xc   :  { %v72_v24 = vpack.c.bf16 %v49_v21, %v48_v20  ;;  %v73_v25 = vpack.c.bf16 %v51_v23, %v50_v22 }
   0xe   :  { %64 = vst [vmem:[%s115_s3] sm:$0xff] %v72_v24  ;;  %65 = vst [vmem:[%s115_s3 + $0x8] sm:$0xff] %v73_v25 }

// kernel: tile.199
= control target key start
LH: loop header
LB: loop body
LE: loop exit
PB: predicated region body
PF: predicated region fallthrough
CT: control target
= control target key end

     0   :  { %s22_s0 = inlined_call_operand.vmem [shape: f32[32], index: 0, kind: input, shape index: {}]   ;;  %s23_s1 = inlined_call_operand.vmem [shape: f32[4,32], index: 1, kind: output, shape index: {}]  }
   0x1   :  { %v4_v0 = vld [vmem:[%s22_s0] ss:$0 sm:$0xff] }
   0x2   :  { %5 = vst [vmem:[%s23_s1] sm:$0xf] %v4_v0 }

// kernel: tile.200
= control target key start
LH: loop header
LB: loop body
LE: loop exit
PB: predicated region body
PF: predicated region fallthrough
CT: control target
= control target key end

     0   :  { %vm7_vm0 = vcmask 261120   ;;  %s37_s8 = smov 32   ;;  %s38_s9 = smov 64   ;;  %vm13_vm1 = vcmask 1048320   ;;  %vm19_vm2 = vcmask 785920   ;;  %vm25_vm3 = vcmask 523520   ;;  %s55_s0 = inlined_call_operand.vmem [shape: f32[4,32], index: 0, kind: input, shape index: {}]   ;;  %s56_s1 = inlined_call_operand.vmem [shape: f32[1,128], index: 1, kind: output, shape index: {}]  }
   0x1   :  { %v4_v0 = vld [vmem:[%s55_s0] sm:$0xf]  ;;  %s36_s0 = smov 96  }
   0x2   :  { %5 = vst [vmem:[#allocation1] sm:$0xf] %v4_v0 }
   0x9   :  { %v10_v1 = vld [vmem:[#allocation1 + $0x3] sm:$0x1]   ;;  %v22_v2 = vld [vmem:[#allocation1 + $0x1] sm:$0x1]   ;;  %v6_v3 = vld [vmem:[#allocation1] sm:$0x1]  }
   0xa   :  { %11 = vrot.lane.b32.xlu0 %v10_v1, %s36_s0  ;;  %23 = vrot.lane.b32.xlu1 %v22_v2, %s37_s8  ;;  %v16_v4 = vld [vmem:[#allocation1 + $0x2] sm:$0x1]   ;;  %8 = vst.msk [vmem:[#allocation0] sm:$0x1] %vm7_vm0, %v6_v3  }
   0xe   :  { %17 = vrot.lane.b32.xlu0 %v16_v4, %s38_s9 }
  0x7c   :  { %v12_v5 = vpop.permute.xlu0 %11   ;;  %v24_v6 = vpop.permute.xlu1 %23  }
  0x7d   :  { %14 = vst.msk [vmem:[#allocation0] sm:$0x1] %vm13_vm1, %v12_v5  }
  0x80   :  { %v18_v7 = vpop.permute.xlu0 %17  }
  0x81   :  { %20 = vst.msk [vmem:[#allocation0] sm:$0x1] %vm19_vm2, %v18_v7  }
  0x82   :  { %26 = vst.msk [vmem:[#allocation0] sm:$0x1] %vm25_vm3, %v24_v6  }
  0x89   :  { %v30_v8 = vld [vmem:[#allocation0] sm:$0x1] }
  0x8a   :  { %32 = vst [vmem:[%s56_s1] sm:$0x1] %v30_v8 }

// kernel: _lambda_.58
= control target key start
LH: loop header
LB: loop body
LE: loop exit
PB: predicated region body
PF: predicated region fallthrough
CT: control target
= control target key end

     0   :  { %s800_s12 = smov 0   ;;  %s802_s13 = smov 0   ;;  %s849_s0 = inlined_call_operand.vmem [shape: bf16[4,16,128], index: 0, kind: input, shape index: {}]   ;;  %s850_s1 = inlined_call_operand.vmem [shape: bf16[4,128,128], index: 1, kind: input, shape index: {}]   ;;  %s851_s2 = inlined_call_operand.vmem [shape: bf16[4,16,128], index: 2, kind: output, shape index: {0}]   ;;  %s852_s3 = inlined_call_operand.vmem [shape: f32[4,1,8,128], index: 3, kind: output, shape index: {1}]  }
   0x1   :  { %s804_s14 = smov 0  }
   0x2 LB: > { %s40_s15 = sadd.s32 1, %s772_s13  ;;  %p659_p0 = scmp.ge.s32.totalorder %s776_s14, 1  ;;  %s776_s14 = sphi %s804_s14, %s14_s14   ;;  %s772_s13 = sphi %s802_s13, %s854_s13   ;;  %s768_s12 = sphi %s800_s12, %s853_s12  }
   0x3   : > { %p42_p1 = scmp.ge.s32.totalorder %s40_s15, 4  ;;  %p208_p2 = scmp.lt.s32.totalorder %s776_s14, 5 }
   0x5   : > { %s856_s15 = smov (%p42_p1, %s40_s15), 0  ;;  %p209_p3 = pnand %p659_p0, %p208_p2 }
   0x6   : > { %p269_p4 = scmp.lt.s32.totalorder (!%p209_p3), %s768_s12, 3  ;;  %v778_v0 = vmov (!%p209_p3), 0.0   ;;  %vm779_vm0 = vmmov (!%p209_p3), 0  }
   0x7   : > { %212 = sbr.rel (%p209_p3) target bundleno = 280 (0x118), region = 28  ;;  %699 = vmatprep.subr.bf16.mxu0 (!%p209_p3), %v778_v0  ;;  %715 = vmatprep.mubr.msk.bf16.mxu0 (!%p209_p3), %vm779_vm0, %v778_v0 }
   0xe   : > { %s858_s12 = smov (!%p269_p4, %s768_s12), 3 }
   0xf   : > { %s681_s16 = sshll.u32 %s858_s12, 6  ;;  %s821_s20 = sshll.u32 %s858_s12, 3 }
  0x10   : > { %s292_s19 = scalar_lea.vmem %s850_s1, %s681_s16  ;;  %s827_s23 = scalar_lea.vmem %s852_s3, %s821_s20 }
  0x11   : > { %v745_v1 = vld [vmem:[%s292_s19] sm:$0xff]   ;;  %324 = vst [vmem:[%s827_s23] sm:$0xff] %v778_v0  ;;  %v746_v2 = vld [vmem:[%s292_s19 + $0x8] sm:$0xff]   ;;  %v747_v3 = vld [vmem:[%s292_s19 + $0x10] sm:$0xff]   ;;  %s279_s26 = scalar_lea.vmem %s849_s0, %s821_s20  ;;  %s305_s29 = scalar_lea.vmem %s851_s2, %s821_s20 }
  0x12   : > { %700 = vmatpush3.bf16.msra.mxu0 %v745_v1  ;;  %v748_v4 = vld [vmem:[%s292_s19 + $0x18] sm:$0xff]   ;;  %v749_v5 = vld [vmem:[%s292_s19 + $0x20] sm:$0xff]   ;;  %v750_v6 = vld [vmem:[%s292_s19 + $0x28] sm:$0xff]  }
  0x13   : > { %701 = vmatprep.subr.bf16.mxu0 %v778_v0  ;;  %v751_v7 = vld [vmem:[%s292_s19 + $0x30] sm:$0xff]   ;;  %v752_v8 = vld [vmem:[%s292_s19 + $0x38] sm:$0xff]   ;;  %v753_v9 = vld [vmem:[%s279_s26] sm:$0xff]  }
  0x16   : > { %702 = vmatpush3.bf16.msra.mxu0 %v746_v2 }
  0x17   : > { %703 = vmatprep.subr.bf16.mxu0 %v778_v0 }
  0x1a   : > { %704 = vmatpush3.bf16.msra.mxu0 %v747_v3 }
  0x1b   : > { %705 = vmatprep.subr.bf16.mxu0 %v778_v0 }
  0x1e   : > { %706 = vmatpush3.bf16.msra.mxu0 %v748_v4 }
  0x1f   : > { %707 = vmatprep.subr.bf16.mxu0 %v778_v0 }
  0x22   : > { %708 = vmatpush3.bf16.msra.mxu0 %v749_v5 }
  0x23   : > { %709 = vmatprep.subr.bf16.mxu0 %v778_v0 }
  0x26   : > { %710 = vmatpush3.bf16.msra.mxu0 %v750_v6 }
  0x27   : > { %711 = vmatprep.subr.bf16.mxu0 %v778_v0 }
  0x2a   : > { %712 = vmatpush3.bf16.msra.mxu0 %v751_v7 }
  0x2b   : > { %713 = vmatprep.subr.bf16.mxu0 %v778_v0 }
  0x2e   : > { %714 = vmatpush3.bf16.msra.mxu0 %v752_v8 }
  0x31   : > { %716 = vmatmul.mubr.bf16.vlgmr.msra.gmra.mrb[0].mxu0 %v753_v9 }
 0x104   : > { %v433_v10 = vpop.f32.mrb[0].mxu0 }
 0x105   : > { %v717_v11 = vpop.f32.mrb[1].mxu0  ;;  %v467_v13 = vmul.f32 %v433_v10, %v433_v10 }
 0x106   : > { %v436_v12 = vpop.f32.mrb[2].mxu0 }
 0x107   : > { %v688_v14 = vpack.c.bf16 %v436_v12, %v433_v10  ;;  %v459_v15 = vadd.f32 %v436_v12, %v433_v10  ;;  %v468_v16 = vmul.f32 %v436_v12, %v436_v12  ;;  %v718_v17 = vpop.f32.mrb[3].mxu0 }
 0x109   : > { %689 = vst [vmem:[%s305_s29] sm:$0xff] %v688_v14   ;;  %v460_v18 = vrot.slane %v459_v15, 4  ;;  %v469_v19 = vadd.f32 %v468_v16, %v467_v13 }
 0x10b   : > { %v461_v20 = vadd.f32 %v460_v18, %v459_v15  ;;  %v470_v21 = vrot.slane %v469_v19, 4 }
 0x10d   : > { %v462_v22 = vrot.slane %v461_v20, 2  ;;  %v471_v23 = vadd.f32 %v470_v21, %v469_v19 }
 0x10f   : > { %v463_v24 = vadd.f32 %v462_v22, %v461_v20  ;;  %v472_v25 = vrot.slane %v471_v23, 2 }
 0x111   : > { %v464_v26 = vrot.slane %v463_v24, 1  ;;  %v473_v27 = vadd.f32 %v472_v25, %v471_v23 }
 0x113   : > { %v465_v28 = vadd.f32 %v464_v26, %v463_v24  ;;  %v474_v29 = vrot.slane %v473_v27, 1 }
 0x115   : > { %466 = vst [vmem:[%s827_s23] sm:$0x1] %v465_v28  ;;  %v475_v30 = vadd.f32 %v474_v29, %v473_v27 }
 0x117   : > { %476 = vst [vmem:[%s827_s23 + $0x1] sm:$0x1] %v475_v30 }
 0x118 PF: > { %s14_s14 = sadd.s32 1, %s776_s14   ;;  %s853_s12 = smov %s772_s13 }
 0x119   : > { %p11_p5 = scmp.ge.s32.totalorder %s14_s14, 6   ;;  %s854_s13 = smov %s856_s15 }
 0x11b   :  { %13 = sbr.rel (!%p11_p5) target bundleno = 2 (0x2), region = 81 }

// kernel: _lambda_.63
= control target key start
LH: loop header
LB: loop body
LE: loop exit
PB: predicated region body
PF: predicated region fallthrough
CT: control target
= control target key end

     0   :  { %v25_v0 = vlaneseq  ;;  %s140_s0 = inlined_call_operand.vmem [shape: bf16[16,256], index: 0, kind: input, shape index: {}]   ;;  %s141_s1 = inlined_call_operand.vmem [shape: f32[1,256], index: 1, kind: input, shape index: {}]   ;;  %s142_s2 = inlined_call_operand.vmem [shape: f32[1,256], index: 2, kind: input, shape index: {}]   ;;  %s143_s3 = inlined_call_operand.vmem [shape: bf16[16,256], index: 3, kind: input, shape index: {}]   ;;  %s144_s4 = inlined_call_operand.vmem [shape: bf16[16,256], index: 4, kind: output, shape index: {}]  }
   0x1   :  { %v17_v1 = vld [vmem:[%s140_s0] sm:$0xff]  ;;  %v18_v3 = vld [vmem:[%s140_s0 + $0x8] sm:$0xff] }
   0x2   :  { %v26_v2 = vshrl.u32 %v25_v0, 7  ;;  %v19_v4 = vunpack.c.l.bf16 %v17_v1  ;;  %v20_v5 = vunpack.c.h.bf16 %v17_v1  ;;  %v23_v6 = vld [vmem:[%s141_s1] sm:$0x3]  ;;  %v21_v11 = vunpack.c.l.bf16 %v18_v3  ;;  %v56_v13 = vld [vmem:[%s143_s3 + $0x8] sm:$0xff] }
   0x3   :  { %v39_v7 = vld [vmem:[%s142_s2] sm:$0x3]  ;;  %v22_v12 = vunpack.c.h.bf16 %v18_v3  ;;  %v59_v20 = vunpack.c.l.bf16 %v56_v13  ;;  %v60_v21 = vunpack.c.h.bf16 %v56_v13 }
   0x4   :  { %v27_v8 = vsub.s32 0, %v26_v2  ;;  %v31_v9 = vsub.s32 1, %v26_v2  ;;  %v55_v10 = vld [vmem:[%s143_s3] sm:$0xff] }
   0x5   :  { %v57_v18 = vunpack.c.l.bf16 %v55_v10  ;;  %v58_v19 = vunpack.c.h.bf16 %v55_v10 }
   0x6   :  { %v28_v14 = vrot.slane %v23_v6, %v27_v8  ;;  %v32_v15 = vrot.slane %v23_v6, %v31_v9  ;;  %v44_v16 = vrot.slane %v39_v7, %v27_v8  ;;  %v48_v17 = vrot.slane %v39_v7, %v31_v9 }
   0x8   :  { %v35_v22 = vmul.f32 %v28_v14, %v19_v4  ;;  %v36_v23 = vmul.f32 %v32_v15, %v20_v5  ;;  %v37_v24 = vmul.f32 %v28_v14, %v21_v11  ;;  %v38_v25 = vmul.f32 %v32_v15, %v22_v12 }
   0xa   :  { %v51_v26 = vadd.f32 %v44_v16, %v35_v22  ;;  %v52_v27 = vadd.f32 %v48_v17, %v36_v23  ;;  %v53_v28 = vadd.f32 %v44_v16, %v37_v24  ;;  %v54_v29 = vadd.f32 %v48_v17, %v38_v25 }
   0xc   :  { %v61_v30 = vadd.f32 %v57_v18, %v51_v26  ;;  %v62_v31 = vadd.f32 %v58_v19, %v52_v27  ;;  %v63_v32 = vadd.f32 %v59_v20, %v53_v28  ;;  %v64_v33 = vadd.f32 %v60_v21, %v54_v29 }
   0xe   :  { %v65_v34 = vmax.f32 %v61_v30, 0.0  ;;  %v66_v35 = vmax.f32 %v62_v31, 0.0  ;;  %v67_v36 = vmax.f32 %v63_v32, 0.0  ;;  %v68_v37 = vmax.f32 %v64_v33, 0.0 }
  0x10   :  { %v89_v38 = vpack.c.bf16 %v66_v35, %v65_v34  ;;  %v90_v39 = vpack.c.bf16 %v68_v37, %v67_v36 }
  0x12   :  { %81 = vst [vmem:[%s144_s4] sm:$0xff] %v89_v38  ;;  %82 = vst [vmem:[%s144_s4 + $0x8] sm:$0xff] %v90_v39 }

// kernel: _lambda_.70
= control target key start
LH: loop header
LB: loop body
LE: loop exit
PB: predicated region body
PF: predicated region fallthrough
CT: control target
= control target key end

     0   :  { %v28_v0 = vlaneseq  ;;  %s176_s0 = inlined_call_operand.vmem [shape: bf16[16,512], index: 0, kind: input, shape index: {}]   ;;  %s177_s1 = inlined_call_operand.vmem [shape: f32[1,512], index: 1, kind: input, shape index: {}]   ;;  %s178_s2 = inlined_call_operand.vmem [shape: f32[1,512], index: 2, kind: input, shape index: {}]   ;;  %s179_s3 = inlined_call_operand.vmem [shape: bf16[16,512], index: 3, kind: output, shape index: {}]  }
   0x1   :  { %v14_v1 = vld [vmem:[%s176_s0] sm:$0xff]  ;;  %v15_v3 = vld [vmem:[%s176_s0 + $0x8] sm:$0xff]  ;;  %v16_v4 = vld [vmem:[%s176_s0 + $0x10] sm:$0xff] }
   0x2   :  { %v29_v2 = vshrl.u32 %v28_v0, 7  ;;  %v17_v5 = vld [vmem:[%s176_s0 + $0x18] sm:$0xff]  ;;  %v18_v6 = vunpack.c.l.bf16 %v14_v1  ;;  %v19_v7 = vunpack.c.h.bf16 %v14_v1  ;;  %v26_v8 = vld [vmem:[%s177_s1] sm:$0xf]  ;;  %v22_v10 = vunpack.c.l.bf16 %v16_v4 }
   0x3   :  { %v56_v9 = vld [vmem:[%s178_s2] sm:$0xf]  ;;  %v23_v11 = vunpack.c.h.bf16 %v16_v4  ;;  %v20_v16 = vunpack.c.l.bf16 %v15_v3  ;;  %v21_v17 = vunpack.c.h.bf16 %v15_v3  ;;  %v24_v18 = vunpack.c.l.bf16 %v17_v5 }
   0x4   :  { %v30_v12 = vsub.s32 0, %v29_v2  ;;  %v34_v13 = vsub.s32 1, %v29_v2  ;;  %v38_v14 = vsub.s32 2, %v29_v2  ;;  %v42_v15 = vsub.s32 3, %v29_v2 }
   0x5   :  { %v25_v19 = vunpack.c.h.bf16 %v17_v5 }
   0x6   :  { %v31_v20 = vrot.slane %v26_v8, %v30_v12  ;;  %v35_v21 = vrot.slane %v26_v8, %v34_v13  ;;  %v61_v22 = vrot.slane %v56_v9, %v30_v12  ;;  %v65_v23 = vrot.slane %v56_v9, %v34_v13 }
   0x7   :  { %v39_v24 = vrot.slane %v26_v8, %v38_v14  ;;  %v43_v25 = vrot.slane %v26_v8, %v42_v15  ;;  %v69_v26 = vrot.slane %v56_v9, %v38_v14  ;;  %v73_v27 = vrot.slane %v56_v9, %v42_v15 }
   0x8   :  { %v48_v28 = vmul.f32 %v31_v20, %v18_v6  ;;  %v49_v29 = vmul.f32 %v35_v21, %v19_v7  ;;  %v52_v30 = vmul.f32 %v31_v20, %v22_v10  ;;  %v53_v31 = vmul.f32 %v35_v21, %v23_v11 }
   0x9   :  { %v50_v32 = vmul.f32 %v39_v24, %v20_v16  ;;  %v51_v33 = vmul.f32 %v43_v25, %v21_v17  ;;  %v54_v34 = vmul.f32 %v39_v24, %v24_v18  ;;  %v55_v35 = vmul.f32 %v43_v25, %v25_v19 }
   0xa   :  { %v78_v36 = vadd.f32 %v61_v22, %v48_v28  ;;  %v79_v37 = vadd.f32 %v65_v23, %v49_v29  ;;  %v82_v38 = vadd.f32 %v61_v22, %v52_v30  ;;  %v83_v39 = vadd.f32 %v65_v23, %v53_v31 }
   0xb   :  { %v80_v40 = vadd.f32 %v69_v26, %v50_v32  ;;  %v81_v41 = vadd.f32 %v73_v27, %v51_v33  ;;  %v84_v42 = vadd.f32 %v69_v26, %v54_v34  ;;  %v85_v43 = vadd.f32 %v73_v27, %v55_v35 }
   0xc   :  { %v122_v44 = vpack.c.bf16 %v79_v37, %v78_v36  ;;  %v124_v45 = vpack.c.bf16 %v83_v39, %v82_v38 }
   0xd   :  { %v123_v46 = vpack.c.bf16 %v81_v41, %v80_v40  ;;  %v125_v47 = vpack.c.bf16 %v85_v43, %v84_v42 }
   0xe   :  { %110 = vst [vmem:[%s179_s3] sm:$0xff] %v122_v44  ;;  %112 = vst [vmem:[%s179_s3 + $0x10] sm:$0xff] %v124_v45 }
   0xf   :  { %111 = vst [vmem:[%s179_s3 + $0x8] sm:$0xff] %v123_v46  ;;  %113 = vst [vmem:[%s179_s3 + $0x18] sm:$0xff] %v125_v47 }

// kernel: _lambda_.69
= control target key start
LH: loop header
LB: loop body
LE: loop exit
PB: predicated region body
PF: predicated region fallthrough
CT: control target
= control target key end

     0   :  { %s1262_s12 = smov 0   ;;  %s1264_s13 = smov 0   ;;  %s1462_s0 = inlined_call_operand.vmem [shape: bf16[1,16,256], index: 0, kind: input, shape index: {}]   ;;  %s1463_s1 = inlined_call_operand.vmem [shape: bf16[1,256,512], index: 1, kind: input, shape index: {}]   ;;  %s1464_s2 = inlined_call_operand.vmem [shape: bf16[1,16,512], index: 2, kind: output, shape index: {0}]   ;;  %s1465_s3 = inlined_call_operand.vmem [shape: f32[1,1,8,512], index: 3, kind: output, shape index: {1}]  }
   0x1   :  { %s1266_s14 = smov 0   ;;  %s1268_s15 = smov 0  }
   0x2   :  { %s1270_s16 = smov 0  }
   0x3 LB: > { %s32_s17 = sadd.s32 1, %s1234_s15  ;;  %s1048_s18 = sadd.s32 4294967295, %s1238_s16   ;;  %s1238_s16 = sphi %s1270_s16, %s14_s16   ;;  %s1234_s15 = sphi %s1268_s15, %s1470_s15   ;;  %s1230_s14 = sphi %s1266_s14, %s1469_s14   ;;  %s1226_s13 = sphi %s1264_s13, %s1468_s13   ;;  %s1222_s12 = sphi %s1262_s12, %s1467_s12  }
   0x4   : > { %p34_p0 = scmp.ge.s32.totalorder %s32_s17, 2  ;;  %p88_p1 = scmp.ne.s32.totalorder %s1226_s13, %s1222_s12 }
   0x5   : > { %p89_p2 = scmp.eq.s32.totalorder %s1238_s16, 0  ;;  %p122_p4 = scmp.eq.s32.totalorder %s1048_s18, 1 }
   0x6   : > { %s1472_s17 = smov (%p34_p0, %s32_s17), 0  ;;  %s81_s20 = sadd.s32 1, %s1226_s13 }
   0x7   : > { %p90_p3 = por %p89_p2, %p88_p1  ;;  %s77_s19 = ssub.s32 %s1234_s15, %s1472_s17 }
   0x8   : > { %p79_p5 = scmp.eq.s32.totalorder %s77_s19, 0  ;;  %p1297_p6 = por %p122_p4, %p88_p1 }
   0x9   : > { %p1052_p7 = scmp.ge.s32.totalorder %s1238_s16, 2 }
   0xa   : > { %s1302_s22 = scalar_select %p79_p5, %s1226_s13, %s81_s20  }
   0xb   : > { %193 = sbr.rel (%p1052_p7) target bundleno = 38 (0x26), region = 20 }
  0x12   : > { %196 = sbr.rel (!%p90_p3) target bundleno = 38 (0x26), region = 24  ;;  %s198_s23 = sand.u32 (%p90_p3), 1, %s1226_s13  }
  0x13   : > { %s1103_s24 = sshll.u32 (%p90_p3), %s1234_s15, 3  ;;  %s1053_s25 = sshll.u32 (%p90_p3), %s198_s23, 8 }
  0x14   : > { %s1310_s28 = scalar_lea.vmem (%p90_p3), %s1463_s1, %s1103_s24  ;;  %s1315_s29 = scalar_lea.vmem (%p90_p3), [#allocation3], %s1053_s25 }
  0x15   : > { %v298_v0 = vld [vmem:[%s1310_s28] sm:$0xff] (%p90_p3)  ;;  %v300_v1 = vld [vmem:[%s1310_s28 + $0x10] sm:$0xff] (%p90_p3) }
  0x16   : > { %v302_v2 = vld [vmem:[%s1310_s28 + $0x20] sm:$0xff] (%p90_p3)  ;;  %299 = vst [vmem:[%s1315_s29] sm:$0xff] (%p90_p3), %v298_v0  ;;  %301 = vst [vmem:[%s1315_s29 + $0x8] sm:$0xff] (%p90_p3), %v300_v1  ;;  %v304_v3 = vld [vmem:[%s1310_s28 + $0x30] sm:$0xff] (%p90_p3) }
  0x17   : > { %303 = vst [vmem:[%s1315_s29 + $0x10] sm:$0xff] (%p90_p3), %v302_v2  ;;  %v306_v4 = vld [vmem:[%s1310_s28 + $0x40] sm:$0xff] (%p90_p3)  ;;  %v308_v5 = vld [vmem:[%s1310_s28 + $0x50] sm:$0xff] (%p90_p3)  ;;  %305 = vst [vmem:[%s1315_s29 + $0x18] sm:$0xff] (%p90_p3), %v304_v3 }
  0x18   : > { %307 = vst [vmem:[%s1315_s29 + $0x20] sm:$0xff] (%p90_p3), %v306_v4  ;;  %309 = vst [vmem:[%s1315_s29 + $0x28] sm:$0xff] (%p90_p3), %v308_v5  ;;  %v310_v6 = vld [vmem:[%s1310_s28 + $0x60] sm:$0xff] (%p90_p3)  ;;  %v312_v7 = vld [vmem:[%s1310_s28 + $0x70] sm:$0xff] (%p90_p3) }
  0x19   : > { %v314_v8 = vld [vmem:[%s1310_s28 + $0x80] sm:$0xff]  ;;  %311 = vst [vmem:[%s1315_s29 + $0x30] sm:$0xff] %v310_v6  ;;  %313 = vst [vmem:[%s1315_s29 + $0x38] sm:$0xff] %v312_v7  ;;  %v316_v9 = vld [vmem:[%s1310_s28 + $0x90] sm:$0xff] }
  0x1a   : > { %315 = vst [vmem:[%s1315_s29 + $0x40] sm:$0xff] %v314_v8  ;;  %v318_v10 = vld [vmem:[%s1310_s28 + $0xa0] sm:$0xff]  ;;  %v320_v11 = vld [vmem:[%s1310_s28 + $0xb0] sm:$0xff]  ;;  %317 = vst [vmem:[%s1315_s29 + $0x48] sm:$0xff] %v316_v9 }
  0x1b   : > { %319 = vst [vmem:[%s1315_s29 + $0x50] sm:$0xff] %v318_v10  ;;  %321 = vst [vmem:[%s1315_s29 + $0x58] sm:$0xff] %v320_v11  ;;  %v322_v12 = vld [vmem:[%s1310_s28 + $0xc0] sm:$0xff]  ;;  %v324_v13 = vld [vmem:[%s1310_s28 + $0xd0] sm:$0xff] }
  0x1c   : > { %v326_v14 = vld [vmem:[%s1310_s28 + $0xe0] sm:$0xff]  ;;  %323 = vst [vmem:[%s1315_s29 + $0x60] sm:$0xff] %v322_v12  ;;  %325 = vst [vmem:[%s1315_s29 + $0x68] sm:$0xff] %v324_v13  ;;  %v328_v15 = vld [vmem:[%s1310_s28 + $0xf0] sm:$0xff] }
  0x1d   : > { %327 = vst [vmem:[%s1315_s29 + $0x70] sm:$0xff] %v326_v14  ;;  %v330_v16 = vld [vmem:[%s1310_s28 + $0x100] sm:$0xff]  ;;  %v332_v17 = vld [vmem:[%s1310_s28 + $0x110] sm:$0xff]  ;;  %329 = vst [vmem:[%s1315_s29 + $0x78] sm:$0xff] %v328_v15 }
  0x1e   : > { %331 = vst [vmem:[%s1315_s29 + $0x80] sm:$0xff] %v330_v16  ;;  %333 = vst [vmem:[%s1315_s29 + $0x88] sm:$0xff] %v332_v17  ;;  %v334_v18 = vld [vmem:[%s1310_s28 + $0x120] sm:$0xff]  ;;  %v336_v19 = vld [vmem:[%s1310_s28 + $0x130] sm:$0xff] }
  0x1f   : > { %v338_v20 = vld [vmem:[%s1310_s28 + $0x140] sm:$0xff]  ;;  %335 = vst [vmem:[%s1315_s29 + $0x90] sm:$0xff] %v334_v18  ;;  %337 = vst [vmem:[%s1315_s29 + $0x98] sm:$0xff] %v336_v19  ;;  %v340_v21 = vld [vmem:[%s1310_s28 + $0x150] sm:$0xff] }
  0x20   : > { %339 = vst [vmem:[%s1315_s29 + $0xa0] sm:$0xff] %v338_v20  ;;  %v342_v22 = vld [vmem:[%s1310_s28 + $0x160] sm:$0xff]  ;;  %v344_v23 = vld [vmem:[%s1310_s28 + $0x170] sm:$0xff]  ;;  %341 = vst [vmem:[%s1315_s29 + $0xa8] sm:$0xff] %v340_v21 }
  0x21   : > { %343 = vst [vmem:[%s1315_s29 + $0xb0] sm:$0xff] %v342_v22  ;;  %345 = vst [vmem:[%s1315_s29 + $0xb8] sm:$0xff] %v344_v23  ;;  %v346_v24 = vld [vmem:[%s1310_s28 + $0x180] sm:$0xff]  ;;  %v348_v25 = vld [vmem:[%s1310_s28 + $0x190] sm:$0xff] }
  0x22   : > { %v350_v26 = vld [vmem:[%s1310_s28 + $0x1a0] sm:$0xff]  ;;  %347 = vst [vmem:[%s1315_s29 + $0xc0] sm:$0xff] %v346_v24  ;;  %349 = vst [vmem:[%s1315_s29 + $0xc8] sm:$0xff] %v348_v25  ;;  %v352_v27 = vld [vmem:[%s1310_s28 + $0x1b0] sm:$0xff] }
  0x23   : > { %351 = vst [vmem:[%s1315_s29 + $0xd0] sm:$0xff] %v350_v26  ;;  %v354_v28 = vld [vmem:[%s1310_s28 + $0x1c0] sm:$0xff]  ;;  %v356_v29 = vld [vmem:[%s1310_s28 + $0x1d0] sm:$0xff]  ;;  %353 = vst [vmem:[%s1315_s29 + $0xd8] sm:$0xff] %v352_v27 }
  0x24   : > { %355 = vst [vmem:[%s1315_s29 + $0xe0] sm:$0xff] %v354_v28  ;;  %357 = vst [vmem:[%s1315_s29 + $0xe8] sm:$0xff] %v356_v29  ;;  %v358_v30 = vld [vmem:[%s1310_s28 + $0x1e0] sm:$0xff]  ;;  %v360_v31 = vld [vmem:[%s1310_s28 + $0x1f0] sm:$0xff] }
  0x25   : > { %359 = vst [vmem:[%s1315_s29 + $0xf0] sm:$0xff] %v358_v30  ;;  %361 = vst [vmem:[%s1315_s29 + $0xf8] sm:$0xff] %v360_v31 }
  0x26 PF: > { %p1056_p8 = scmp.ge.s32.totalorder %s1238_s16, 1  ;;  %p366_p9 = scmp.lt.s32.totalorder %s1238_s16, 3 }
  0x28   : > { %p367_p10 = pnand %p1056_p8, %p366_p9 }
  0x29   : > { %s373_s30 = sand.u32 (!%p367_p10), 1, %s1222_s12   ;;  %v1199_v32 = vld [vmem:[%s1462_s0 + $0x4] ss:$8 sps:$4 sm:$0xff] (!%p367_p10)   ;;  %v1197_v1 = vld [vmem:[%s1462_s0] ss:$8 sps:$4 sm:$0xff] (!%p367_p10)   ;;  %s1059_s10 = sshll.u32 (!%p367_p10), %s1230_s14, 1  ;;  %v766_v24 = vlaneseq (!%p367_p10) }
  0x2a   : > { %370 = sbr.rel (%p367_p10) target bundleno = 347 (0x15b), region = 62  ;;  %s1057_s4 = sshll.u32 (!%p367_p10), %s373_s30, 8  ;;  %706 = vmatprep.mubr.bf16.mxu0 (!%p367_p10), %v1199_v32  ;;  %v1240_v2 = vmov (!%p367_p10), 0.0   ;;  %v1241_v22 = vmov (!%p367_p10), 1966171168  }
  0x2b   : > { %s1386_s7 = scalar_lea.vmem (!%p367_p10), [#allocation3], %s1057_s4  ;;  %p447_p11 = scmp.lt.s32.totalorder (!%p367_p10), %s1059_s10, 3  ;;  %v764_v23 = vunpack.c.l.s4 (!%p367_p10), %v1241_v22  ;;  %vm780_vm0 = vcmp.lt.s32.totalorder (!%p367_p10), %v766_v24, 256 }
  0x2c   : > { %v1149_v33 = vld [vmem:[%s1386_s7 + $0x4] ss:$8 sps:$4 sm:$0xff] (!%p367_p10)   ;;  %v1151_v34 = vld [vmem:[%s1386_s7] ss:$8 sps:$4 sm:$0xff] (!%p367_p10)   ;;  %v1152_v35 = vld [vmem:[%s1386_s7 + $0x14] ss:$8 sps:$4 sm:$0xff] (!%p367_p10)  }
  0x2d   : > { %674 = vmatprep.subr.bf16.mxu0 (!%p367_p10), %v1149_v33  ;;  %v1154_v36 = vld [vmem:[%s1386_s7 + $0x10] ss:$8 sps:$4 sm:$0xff] (!%p367_p10)   ;;  %v1155_v37 = vld [vmem:[%s1386_s7 + $0x24] ss:$8 sps:$4 sm:$0xff] (!%p367_p10)   ;;  %v1157_v38 = vld [vmem:[%s1386_s7 + $0x20] ss:$8 sps:$4 sm:$0xff] (!%p367_p10)   ;;  %v765_v33 = vunpack.c.0.s8 (!%p367_p10), %v764_v23 }
  0x2e   : > { %675 = vmatpush1.bf16.msra.mxu0 (!%p367_p10), %v1151_v34  ;;  %v1158_v39 = vld [vmem:[%s1386_s7 + $0x34] ss:$8 sps:$4 sm:$0xff] (!%p367_p10)   ;;  %v1160_v40 = vld [vmem:[%s1386_s7 + $0x30] ss:$8 sps:$4 sm:$0xff] (!%p367_p10)   ;;  %v1161_v41 = vld [vmem:[%s1386_s7 + $0x44] ss:$8 sps:$4 sm:$0xff] (!%p367_p10)  }
  0x2f   : > { %676 = vmatprep.subr.bf16.mxu0 (!%p367_p10), %v1152_v35  ;;  %v1163_v42 = vld [vmem:[%s1386_s7 + $0x40] ss:$8 sps:$4 sm:$0xff] (!%p367_p10)   ;;  %v1164_v43 = vld [vmem:[%s1386_s7 + $0x54] ss:$8 sps:$4 sm:$0xff] (!%p367_p10)   ;;  %v1166_v44 = vld [vmem:[%s1386_s7 + $0x50] ss:$8 sps:$4 sm:$0xff] (!%p367_p10)  }
  0x30   : > { %v1167_v45 = vld [vmem:[%s1386_s7 + $0x64] ss:$8 sps:$4 sm:$0xff] (!%p367_p10)   ;;  %v1169_v46 = vld [vmem:[%s1386_s7 + $0x60] ss:$8 sps:$4 sm:$0xff] (!%p367_p10)   ;;  %v1170_v47 = vld [vmem:[%s1386_s7 + $0x74] ss:$8 sps:$4 sm:$0xff] (!%p367_p10)  }
  0x31   : > { %v1172_v48 = vld [vmem:[%s1386_s7 + $0x70] ss:$8 sps:$4 sm:$0xff]   ;;  %v1173_v49 = vld [vmem:[%s1386_s7 + $0x84] ss:$8 sps:$4 sm:$0xff]   ;;  %v1175_v50 = vld [vmem:[%s1386_s7 + $0x80] ss:$8 sps:$4 sm:$0xff]  }
  0x32   : > { %677 = vmatpush1.bf16.msra.mxu0 %v1154_v36  ;;  %v1176_v51 = vld [vmem:[%s1386_s7 + $0x94] ss:$8 sps:$4 sm:$0xff]   ;;  %v1178_v52 = vld [vmem:[%s1386_s7 + $0x90] ss:$8 sps:$4 sm:$0xff]   ;;  %v1179_v53 = vld [vmem:[%s1386_s7 + $0xa4] ss:$8 sps:$4 sm:$0xff]  }
  0x33   : > { %678 = vmatprep.subr.bf16.mxu0 %v1155_v37  ;;  %v1181_v54 = vld [vmem:[%s1386_s7 + $0xa0] ss:$8 sps:$4 sm:$0xff]   ;;  %v1182_v55 = vld [vmem:[%s1386_s7 + $0xb4] ss:$8 sps:$4 sm:$0xff]   ;;  %v1184_v56 = vld [vmem:[%s1386_s7 + $0xb0] ss:$8 sps:$4 sm:$0xff]  }
  0x34   : > { %v1185_v57 = vld [vmem:[%s1386_s7 + $0xc4] ss:$8 sps:$4 sm:$0xff]   ;;  %v1187_v58 = vld [vmem:[%s1386_s7 + $0xc0] ss:$8 sps:$4 sm:$0xff]   ;;  %v1188_v59 = vld [vmem:[%s1386_s7 + $0xd4] ss:$8 sps:$4 sm:$0xff]  }
  0x35   : > { %v1190_v60 = vld [vmem:[%s1386_s7 + $0xd0] ss:$8 sps:$4 sm:$0xff]   ;;  %v1191_v61 = vld [vmem:[%s1386_s7 + $0xe4] ss:$8 sps:$4 sm:$0xff]   ;;  %v1193_v62 = vld [vmem:[%s1386_s7 + $0xe0] ss:$8 sps:$4 sm:$0xff]  }
  0x36   : > { %679 = vmatpush1.bf16.msra.mxu0 %v1157_v38  ;;  %v1194_v63 = vld [vmem:[%s1386_s7 + $0xf4] ss:$8 sps:$4 sm:$0xff]   ;;  %v1196_v0 = vld [vmem:[%s1386_s7 + $0xf0] ss:$8 sps:$4 sm:$0xff]   ;;  %s1474_s10 = smov (!%p447_p11, %s1059_s10), 3  ;;  %s1058_s23 = sshll.u32 %s373_s30, 4 }
  0x37   : > { %680 = vmatprep.subr.bf16.mxu0 %v1158_v39  ;;  %s1060_s11 = sshll.u32 %s1474_s10, 3  ;;  %s1433_s24 = scalar_lea.vmem [#allocation4], %s1058_s23  ;;  %v767_v34 = vshrl.u32 %v766_v24, 7 }
  0x38   : > { %s1427_s20 = scalar_lea.vmem %s1465_s3, %s1060_s11  ;;  %s1106_s12 = sshll.u32 (%p1297_p6), %s1230_s14, 3 }
  0x39   : > { %464 = vst [vmem:[%s1427_s20] sm:$0xff] %v1240_v2  ;;  %465 = vst [vmem:[%s1427_s20 + $0x8] sm:$0xff] %v1240_v2  ;;  %s850_s27 = scalar_lea.vmem (%p1297_p6), %s1464_s2, %s1106_s12 }
  0x3a   : > { %681 = vmatpush1.bf16.msra.mxu0 %v1160_v40 }
  0x3b   : > { %682 = vmatprep.subr.bf16.mxu0 %v1161_v41 }
  0x3e   : > { %683 = vmatpush1.bf16.msra.mxu0 %v1163_v42 }
  0x3f   : > { %684 = vmatprep.subr.bf16.mxu0 %v1164_v43  ;;  %v768_v43 = vsub.s32 %v765_v33, %v767_v34 }
  0x42   : > { %685 = vmatpush1.bf16.msra.mxu0 %v1166_v44 }
  0x43   : > { %686 = vmatprep.subr.bf16.mxu0 %v1167_v45 }
  0x46   : > { %687 = vmatpush1.bf16.msra.mxu0 %v1169_v46 }
  0x47   : > { %688 = vmatprep.subr.bf16.mxu0 %v1170_v47 }
  0x4a   : > { %689 = vmatpush1.bf16.msra.mxu0 %v1172_v48 }
  0x4b   : > { %690 = vmatprep.subr.bf16.mxu0 %v1173_v49 }
  0x4e   : > { %691 = vmatpush1.bf16.msra.mxu0 %v1175_v50 }
  0x4f   : > { %692 = vmatprep.subr.bf16.mxu0 %v1176_v51 }
  0x52   : > { %693 = vmatpush1.bf16.msra.mxu0 %v1178_v52 }
  0x53   : > { %694 = vmatprep.subr.bf16.mxu0 %v1179_v53 }
  0x56   : > { %695 = vmatpush1.bf16.msra.mxu0 %v1181_v54 }
  0x57   : > { %696 = vmatprep.subr.bf16.mxu0 %v1182_v55 }
  0x5a   : > { %697 = vmatpush1.bf16.msra.mxu0 %v1184_v56 }
  0x5b   : > { %698 = vmatprep.subr.bf16.mxu0 %v1185_v57 }
  0x5e   : > { %699 = vmatpush1.bf16.msra.mxu0 %v1187_v58 }
  0x5f   : > { %700 = vmatprep.subr.bf16.mxu0 %v1188_v59 }
  0x62   : > { %701 = vmatpush1.bf16.msra.mxu0 %v1190_v60 }
  0x63   : > { %702 = vmatprep.subr.bf16.mxu0 %v1191_v61 }
  0x66   : > { %703 = vmatpush1.bf16.msra.mxu0 %v1193_v62 }
  0x67   : > { %704 = vmatprep.subr.bf16.mxu0 %v1194_v63 }
  0x6a   : > { %705 = vmatpush1.bf16.msra.mxu0 %v1196_v0 }
  0x6d   : > { %707 = vmatmul.mubr.bf16.vlgmr.msra.gmra.mrb[0].mxu0 %v1197_v1 }
 0x140   : > { %v708_v3 = vpop.f32.mrb[0].mxu0 }
 0x141   : > { %v710_v4 = vpop.f32.mrb[1].mxu0  ;;  %v784_v7 = vmul.f32 %v708_v3, %v708_v3 }
 0x142   : > { %v1104_v5 = vpack.c.bf16 %v710_v4, %v708_v3  ;;  %v712_v6 = vpop.f32.mrb[2].mxu0  ;;  %v785_v11 = vmul.f32 %v710_v4, %v710_v4 }
 0x143   : > { %v746_v8 = vadd.f32 %v712_v6, %v708_v3  ;;  %v786_v9 = vmul.f32 %v712_v6, %v712_v6  ;;  %v714_v10 = vpop.f32.mrb[3].mxu0 }
 0x144   : > { %v1105_v12 = vpack.c.bf16 %v714_v10, %v712_v6  ;;  %744 = vst [vmem:[%s1433_s24] sm:$0xff] %v1104_v5  ;;  %v753_v13 = vadd.f32 %v714_v10, %v710_v4  ;;  %v787_v14 = vmul.f32 %v714_v10, %v714_v10 }
 0x145   : > { %v747_v15 = vrot.slane %v746_v8, 4  ;;  %v788_v16 = vadd.f32 %v786_v9, %v784_v7 }
 0x146   : > { %745 = vst [vmem:[%s1433_s24 + $0x8] sm:$0xff] %v1105_v12  ;;  %v754_v17 = vrot.slane %v753_v13, 4  ;;  %v795_v18 = vadd.f32 %v787_v14, %v785_v11 }
 0x147   : > { %v748_v19 = vadd.f32 %v747_v15, %v746_v8  ;;  %v789_v20 = vrot.slane %v788_v16, 4 }
 0x148   : > { %v755_v21 = vadd.f32 %v754_v17, %v753_v13  ;;  %v796_v25 = vrot.slane %v795_v18, 4 }
 0x149   : > { %v749_v26 = vrot.slane %v748_v19, 2  ;;  %v790_v27 = vadd.f32 %v789_v20, %v788_v16 }
 0x14a   : > { %v756_v28 = vrot.slane %v755_v21, 2  ;;  %v797_v29 = vadd.f32 %v796_v25, %v795_v18 }
 0x14b   : > { %v750_v30 = vadd.f32 %v749_v26, %v748_v19  ;;  %v791_v31 = vrot.slane %v790_v27, 2  ;;  %v880_v53 = vld [vmem:[%s1433_s24] sm:$0xff] (%p1297_p6) }
 0x14c   : > { %v757_v32 = vadd.f32 %v756_v28, %v755_v21  ;;  %v798_v35 = vrot.slane %v797_v29, 2  ;;  %881 = vst [vmem:[%s850_s27] sm:$0xff] (%p1297_p6), %v880_v53 }
 0x14d   : > { %v751_v36 = vrot.slane %v750_v30, 1  ;;  %v792_v37 = vadd.f32 %v791_v31, %v790_v27  ;;  %v882_v54 = vld [vmem:[%s1433_s24 + $0x8] sm:$0xff] (%p1297_p6) }
 0x14e   : > { %v758_v38 = vrot.slane %v757_v32, 1  ;;  %v799_v39 = vadd.f32 %v798_v35, %v797_v29  ;;  %883 = vst [vmem:[%s850_s27 + $0x10] sm:$0xff] (%p1297_p6), %v882_v54 }
 0x14f   : > { %v752_v40 = vadd.f32 %v751_v36, %v750_v30  ;;  %v793_v41 = vrot.slane %v792_v37, 1 }
 0x150   : > { %v759_v42 = vadd.f32 %v758_v38, %v757_v32  ;;  %v800_v44 = vrot.slane %v799_v39, 1 }
 0x151   : > { %v794_v45 = vadd.f32 %v793_v41, %v792_v37 }
 0x152   : > { %v762_v46 = vcombine.low %v752_v40, %v759_v42  ;;  %v801_v47 = vadd.f32 %v800_v44, %v799_v39 }
 0x154   : > { %v769_v48 = vrot.slane %v762_v46, %v768_v43  ;;  %v804_v49 = vcombine.low %v794_v45, %v801_v47  ;;  %842 = sbr.rel (!%p1297_p6) target bundleno = 347 (0x15b), region = 78 }
 0x156   : > { %v776_v50 = vrot.slane %v769_v48, %v768_v43  ;;  %v811_v51 = vrot.slane %v804_v49, %v768_v43 }
 0x158   : > { %782 = vst.msk [vmem:[%s1427_s20] ss:$8 sm:$0x3] %vm780_vm0, %v776_v50  ;;  %v818_v52 = vrot.slane %v811_v51, %v768_v43 }
 0x15a   : > { %1097 = vst.msk [vmem:[%s1427_s20 + $0x1] ss:$8 sm:$0x3] %vm780_vm0, %v818_v52 }
 0x15b PF: > { %s14_s16 = sadd.s32 1, %s1238_s16   ;;  %s1467_s12 = smov %s1226_s13 }
 0x15c   : > { %p11_p12 = scmp.ge.s32.totalorder %s14_s16, 4   ;;  %s1468_s13 = smov %s1302_s22 }
 0x15d   : > { %s1469_s14 = smov %s1234_s15  ;;  %s1470_s15 = smov %s1472_s17 }
 0x15e   :  { %13 = sbr.rel (!%p11_p12) target bundleno = 3 (0x3), region = 163 }

// kernel: _lambda_.64
= control target key start
LH: loop header
LB: loop body
LE: loop exit
PB: predicated region body
PF: predicated region fallthrough
CT: control target
= control target key end

     0   :  { %v318_v18 = vmov 0.0   ;;  %s405_s1 = inlined_call_operand.vmem [shape: bf16[1,256,128], index: 1, kind: input, shape index: {}]   ;;  %s406_s0 = inlined_call_operand.vmem [shape: bf16[1,16,256], index: 0, kind: input, shape index: {}]   ;;  %s407_s3 = inlined_call_operand.vmem [shape: f32[1,1,8,128], index: 3, kind: output, shape index: {1}]   ;;  %s408_s2 = inlined_call_operand.vmem [shape: bf16[1,16,128], index: 2, kind: output, shape index: {0}]  }
   0x1   :  { %v299_v0 = vld [vmem:[%s405_s1 + $0x40] sm:$0xff]   ;;  %v301_v2 = vld [vmem:[%s405_s1 + $0x48] sm:$0xff]   ;;  %v303_v4 = vld [vmem:[%s405_s1 + $0x50] sm:$0xff]   ;;  %20 = vst [vmem:[%s407_s3] sm:$0xff] %v318_v18 }
   0x2   :  { %v300_v1 = vld [vmem:[%s405_s1] sm:$0xff]   ;;  %276 = vmatprep.subr.bf16.mxu0 %v299_v0  ;;  %v302_v3 = vld [vmem:[%s405_s1 + $0x8] sm:$0xff]   ;;  %v304_v5 = vld [vmem:[%s405_s1 + $0x10] sm:$0xff]  }
   0x3   :  { %277 = vmatpush3.bf16.msra.mxu0 %v300_v1  ;;  %v305_v6 = vld [vmem:[%s405_s1 + $0x58] sm:$0xff]   ;;  %v307_v8 = vld [vmem:[%s405_s1 + $0x60] sm:$0xff]   ;;  %v309_v10 = vld [vmem:[%s405_s1 + $0x68] sm:$0xff]  }
   0x4   :  { %278 = vmatprep.subr.bf16.mxu0 %v301_v2  ;;  %v306_v7 = vld [vmem:[%s405_s1 + $0x18] sm:$0xff]   ;;  %v308_v9 = vld [vmem:[%s405_s1 + $0x20] sm:$0xff]   ;;  %v310_v12 = vld [vmem:[%s405_s1 + $0x28] sm:$0xff]  }
   0x5   :  { %v317_v11 = vld [vmem:[%s406_s0 + $0x4] ss:$8 sps:$4 sm:$0xff]   ;;  %v311_v13 = vld [vmem:[%s405_s1 + $0x70] sm:$0xff]   ;;  %v313_v15 = vld [vmem:[%s405_s1 + $0x78] sm:$0xff]  }
   0x6   :  { %195 = vmatprep.mubr.bf16.mxu0 %v317_v11  ;;  %v312_v14 = vld [vmem:[%s405_s1 + $0x30] sm:$0xff]   ;;  %v314_v16 = vld [vmem:[%s405_s1 + $0x38] sm:$0xff]   ;;  %v315_v17 = vld [vmem:[%s406_s0] ss:$8 sps:$4 sm:$0xff]  }
   0x7   :  { %279 = vmatpush3.bf16.msra.mxu0 %v302_v3 }
   0x8   :  { %280 = vmatprep.subr.bf16.mxu0 %v303_v4 }
   0xb   :  { %281 = vmatpush3.bf16.msra.mxu0 %v304_v5 }
   0xc   :  { %282 = vmatprep.subr.bf16.mxu0 %v305_v6 }
   0xf   :  { %283 = vmatpush3.bf16.msra.mxu0 %v306_v7 }
  0x10   :  { %284 = vmatprep.subr.bf16.mxu0 %v307_v8 }
  0x13   :  { %285 = vmatpush3.bf16.msra.mxu0 %v308_v9 }
  0x14   :  { %286 = vmatprep.subr.bf16.mxu0 %v309_v10 }
  0x17   :  { %287 = vmatpush3.bf16.msra.mxu0 %v310_v12 }
  0x18   :  { %288 = vmatprep.subr.bf16.mxu0 %v311_v13 }
  0x1b   :  { %289 = vmatpush3.bf16.msra.mxu0 %v312_v14 }
  0x1c   :  { %290 = vmatprep.subr.bf16.mxu0 %v313_v15 }
  0x1f   :  { %291 = vmatpush3.bf16.msra.mxu0 %v314_v16 }
  0x22   :  { %196 = vmatmul.mubr.bf16.vlgmr.msra.gmra.mrb[0].mxu0 %v315_v17 }
  0xf5   :  { %v292_v19 = vpop.f32.mrb[0].mxu0 }
  0xf6   :  { %v293_v20 = vpop.f32.mrb[1].mxu0 }
  0xf7   :  { %v294_v21 = vadd.f32 %v293_v20, %v292_v19  ;;  %v295_v22 = vpop.f32.mrb[2].mxu0 }
  0xf8   :  { %v296_v23 = vpop.f32.mrb[3].mxu0 }
  0xf9   :  { %v297_v24 = vadd.f32 %v296_v23, %v295_v22  ;;  %v231_v25 = vmul.f32 %v294_v21, %v294_v21 }
  0xfb   :  { %v274_v26 = vpack.c.bf16 %v297_v24, %v294_v21  ;;  %v223_v27 = vadd.f32 %v297_v24, %v294_v21  ;;  %v232_v28 = vmul.f32 %v297_v24, %v297_v24 }
  0xfd   :  { %275 = vst [vmem:[%s408_s2] sm:$0xff] %v274_v26   ;;  %v224_v29 = vrot.slane %v223_v27, 4  ;;  %v233_v30 = vadd.f32 %v232_v28, %v231_v25 }
  0xff   :  { %v225_v31 = vadd.f32 %v224_v29, %v223_v27  ;;  %v234_v32 = vrot.slane %v233_v30, 4 }
 0x101   :  { %v226_v33 = vrot.slane %v225_v31, 2  ;;  %v235_v34 = vadd.f32 %v234_v32, %v233_v30 }
 0x103   :  { %v227_v35 = vadd.f32 %v226_v33, %v225_v31  ;;  %v236_v36 = vrot.slane %v235_v34, 2 }
 0x105   :  { %v228_v37 = vrot.slane %v227_v35, 1  ;;  %v237_v38 = vadd.f32 %v236_v36, %v235_v34 }
 0x107   :  { %v229_v39 = vadd.f32 %v228_v37, %v227_v35  ;;  %v238_v40 = vrot.slane %v237_v38, 1 }
 0x109   :  { %230 = vst [vmem:[%s407_s3] sm:$0x1] %v229_v39  ;;  %v239_v41 = vadd.f32 %v238_v40, %v237_v38 }
 0x10b   :  { %240 = vst [vmem:[%s407_s3 + $0x1] sm:$0x1] %v239_v41 }

// kernel: _lambda_.66
= control target key start
LH: loop header
LB: loop body
LE: loop exit
PB: predicated region body
PF: predicated region fallthrough
CT: control target
= control target key end

     0   :  { %s889_s12 = smov 0   ;;  %s891_s13 = smov 0   ;;  %s951_s0 = inlined_call_operand.vmem [shape: bf16[4,16,256], index: 0, kind: input, shape index: {}]   ;;  %s952_s1 = inlined_call_operand.vmem [shape: bf16[4,256,128], index: 1, kind: input, shape index: {}]   ;;  %s953_s2 = inlined_call_operand.vmem [shape: bf16[4,16,128], index: 2, kind: output, shape index: {0}]   ;;  %s954_s3 = inlined_call_operand.vmem [shape: f32[4,1,8,128], index: 3, kind: output, shape index: {1}]  }
   0x1   :  { %s893_s14 = smov 0  }
   0x2 LB: > { %s40_s15 = sadd.s32 1, %s862_s13  ;;  %p738_p0 = scmp.ge.s32.totalorder %s866_s14, 1  ;;  %s866_s14 = sphi %s893_s14, %s14_s14   ;;  %s862_s13 = sphi %s891_s13, %s956_s13   ;;  %s858_s12 = sphi %s889_s12, %s955_s12  }
   0x3   : > { %p42_p1 = scmp.ge.s32.totalorder %s40_s15, 4  ;;  %p211_p2 = scmp.lt.s32.totalorder %s866_s14, 5 }
   0x5   : > { %s958_s15 = smov (%p42_p1, %s40_s15), 0  ;;  %p212_p3 = pnand %p738_p0, %p211_p2 }
   0x6   : > { %p275_p4 = scmp.lt.s32.totalorder (!%p212_p3), %s858_s12, 3  ;;  %v868_v18 = vmov (!%p212_p3), 0.0  }
   0x7   : > { %215 = sbr.rel (%p212_p3) target bundleno = 284 (0x11c), region = 28 }
   0xe   : > { %s960_s12 = smov (!%p275_p4, %s858_s12), 3 }
   0xf   : > { %s769_s16 = sshll.u32 %s960_s12, 7  ;;  %s768_s20 = sshll.u32 %s960_s12, 4 }
  0x10   : > { %s913_s19 = scalar_lea.vmem %s952_s1, %s769_s16  ;;  %s286_s23 = scalar_lea.vmem %s951_s0, %s768_s20 }
  0x11   : > { %v825_v0 = vld [vmem:[%s913_s19 + $0x40] sm:$0xff]   ;;  %v827_v2 = vld [vmem:[%s913_s19 + $0x48] sm:$0xff]   ;;  %v829_v4 = vld [vmem:[%s913_s19 + $0x50] sm:$0xff]   ;;  %s770_s24 = sshll.u32 %s960_s12, 3 }
  0x12   : > { %v826_v1 = vld [vmem:[%s913_s19] sm:$0xff]   ;;  %778 = vmatprep.subr.bf16.mxu0 %v825_v0  ;;  %v828_v3 = vld [vmem:[%s913_s19 + $0x8] sm:$0xff]   ;;  %v830_v5 = vld [vmem:[%s913_s19 + $0x10] sm:$0xff]   ;;  %s324_s27 = scalar_lea.vmem %s954_s3, %s770_s24  ;;  %s313_s30 = scalar_lea.vmem %s953_s2, %s770_s24 }
  0x13   : > { %779 = vmatpush3.bf16.msra.mxu0 %v826_v1  ;;  %v831_v6 = vld [vmem:[%s913_s19 + $0x58] sm:$0xff]   ;;  %v833_v8 = vld [vmem:[%s913_s19 + $0x60] sm:$0xff]   ;;  %v835_v10 = vld [vmem:[%s913_s19 + $0x68] sm:$0xff]   ;;  %332 = vst [vmem:[%s324_s27] sm:$0xff] %v868_v18 }
  0x14   : > { %780 = vmatprep.subr.bf16.mxu0 %v827_v2  ;;  %v832_v7 = vld [vmem:[%s913_s19 + $0x18] sm:$0xff]   ;;  %v834_v9 = vld [vmem:[%s913_s19 + $0x20] sm:$0xff]   ;;  %v836_v12 = vld [vmem:[%s913_s19 + $0x28] sm:$0xff]  }
  0x15   : > { %v843_v11 = vld [vmem:[%s286_s23 + $0x4] ss:$8 sps:$4 sm:$0xff]   ;;  %v837_v13 = vld [vmem:[%s913_s19 + $0x70] sm:$0xff]   ;;  %v839_v15 = vld [vmem:[%s913_s19 + $0x78] sm:$0xff]  }
  0x16   : > { %507 = vmatprep.mubr.bf16.mxu0 %v843_v11  ;;  %v838_v14 = vld [vmem:[%s913_s19 + $0x30] sm:$0xff]   ;;  %v840_v16 = vld [vmem:[%s913_s19 + $0x38] sm:$0xff]   ;;  %v841_v17 = vld [vmem:[%s286_s23] ss:$8 sps:$4 sm:$0xff]  }
  0x17   : > { %781 = vmatpush3.bf16.msra.mxu0 %v828_v3 }
  0x18   : > { %782 = vmatprep.subr.bf16.mxu0 %v829_v4 }
  0x1b   : > { %783 = vmatpush3.bf16.msra.mxu0 %v830_v5 }
  0x1c   : > { %784 = vmatprep.subr.bf16.mxu0 %v831_v6 }
  0x1f   : > { %785 = vmatpush3.bf16.msra.mxu0 %v832_v7 }
  0x20   : > { %786 = vmatprep.subr.bf16.mxu0 %v833_v8 }
  0x23   : > { %787 = vmatpush3.bf16.msra.mxu0 %v834_v9 }
  0x24   : > { %788 = vmatprep.subr.bf16.mxu0 %v835_v10 }
  0x27   : > { %789 = vmatpush3.bf16.msra.mxu0 %v836_v12 }
  0x28   : > { %790 = vmatprep.subr.bf16.mxu0 %v837_v13 }
  0x2b   : > { %791 = vmatpush3.bf16.msra.mxu0 %v838_v14 }
  0x2c   : > { %792 = vmatprep.subr.bf16.mxu0 %v839_v15 }
  0x2f   : > { %793 = vmatpush3.bf16.msra.mxu0 %v840_v16 }
  0x32   : > { %508 = vmatmul.mubr.bf16.vlgmr.msra.gmra.mrb[0].mxu0 %v841_v17 }
 0x105   : > { %v794_v19 = vpop.f32.mrb[0].mxu0 }
 0x106   : > { %v795_v20 = vpop.f32.mrb[1].mxu0 }
 0x107   : > { %v796_v21 = vadd.f32 %v795_v20, %v794_v19  ;;  %v797_v22 = vpop.f32.mrb[2].mxu0 }
 0x108   : > { %v798_v23 = vpop.f32.mrb[3].mxu0 }
 0x109   : > { %v799_v24 = vadd.f32 %v798_v23, %v797_v22  ;;  %v543_v25 = vmul.f32 %v796_v21, %v796_v21 }
 0x10b   : > { %v776_v26 = vpack.c.bf16 %v799_v24, %v796_v21  ;;  %v535_v27 = vadd.f32 %v799_v24, %v796_v21  ;;  %v544_v28 = vmul.f32 %v799_v24, %v799_v24 }
 0x10d   : > { %777 = vst [vmem:[%s313_s30] sm:$0xff] %v776_v26   ;;  %v536_v29 = vrot.slane %v535_v27, 4  ;;  %v545_v30 = vadd.f32 %v544_v28, %v543_v25 }
 0x10f   : > { %v537_v31 = vadd.f32 %v536_v29, %v535_v27  ;;  %v546_v32 = vrot.slane %v545_v30, 4 }
 0x111   : > { %v538_v33 = vrot.slane %v537_v31, 2  ;;  %v547_v34 = vadd.f32 %v546_v32, %v545_v30 }
 0x113   : > { %v539_v35 = vadd.f32 %v538_v33, %v537_v31  ;;  %v548_v36 = vrot.slane %v547_v34, 2 }
 0x115   : > { %v540_v37 = vrot.slane %v539_v35, 1  ;;  %v549_v38 = vadd.f32 %v548_v36, %v547_v34 }
 0x117   : > { %v541_v39 = vadd.f32 %v540_v37, %v539_v35  ;;  %v550_v40 = vrot.slane %v549_v38, 1 }
 0x119   : > { %542 = vst [vmem:[%s324_s27] sm:$0x1] %v541_v39  ;;  %v551_v41 = vadd.f32 %v550_v40, %v549_v38 }
 0x11b   : > { %552 = vst [vmem:[%s324_s27 + $0x1] sm:$0x1] %v551_v41 }
 0x11c PF: > { %s14_s14 = sadd.s32 1, %s866_s14   ;;  %s955_s12 = smov %s862_s13 }
 0x11d   : > { %p11_p5 = scmp.ge.s32.totalorder %s14_s14, 6   ;;  %s956_s13 = smov %s958_s15 }
 0x11f   :  { %13 = sbr.rel (!%p11_p5) target bundleno = 2 (0x2), region = 81 }

// kernel: _lambda_.71
= control target key start
LH: loop header
LB: loop body
LE: loop exit
PB: predicated region body
PF: predicated region fallthrough
CT: control target
= control target key end

     0   :  { %v31_v0 = vlaneseq  ;;  %s224_s0 = inlined_call_operand.vmem [shape: bf16[16,512], index: 0, kind: input, shape index: {}]   ;;  %s225_s1 = inlined_call_operand.vmem [shape: f32[1,512], index: 1, kind: input, shape index: {}]   ;;  %s226_s2 = inlined_call_operand.vmem [shape: f32[1,512], index: 2, kind: input, shape index: {}]   ;;  %s227_s3 = inlined_call_operand.vmem [shape: bf16[16,512], index: 3, kind: input, shape index: {}]   ;;  %s228_s4 = inlined_call_operand.vmem [shape: bf16[16,512], index: 4, kind: output, shape index: {}]  }
   0x1   :  { %v17_v1 = vld [vmem:[%s224_s0] sm:$0xff]  ;;  %v18_v6 = vld [vmem:[%s224_s0 + $0x8] sm:$0xff]  ;;  %v19_v14 = vld [vmem:[%s224_s0 + $0x10] sm:$0xff] }
   0x2   :  { %v21_v2 = vunpack.c.l.bf16 %v17_v1  ;;  %v22_v3 = vunpack.c.h.bf16 %v17_v1  ;;  %v32_v4 = vshrl.u32 %v31_v0, 7  ;;  %v89_v5 = vld [vmem:[%s227_s3] sm:$0xff]  ;;  %v90_v7 = vld [vmem:[%s227_s3 + $0x8] sm:$0xff]  ;;  %v23_v12 = vunpack.c.l.bf16 %v18_v6  ;;  %v91_v27 = vld [vmem:[%s227_s3 + $0x10] sm:$0xff] }
   0x3   :  { %v29_v8 = vld [vmem:[%s225_s1] sm:$0xf]  ;;  %v93_v10 = vunpack.c.l.bf16 %v89_v5  ;;  %v94_v11 = vunpack.c.h.bf16 %v89_v5  ;;  %v24_v13 = vunpack.c.h.bf16 %v18_v6  ;;  %v95_v19 = vunpack.c.l.bf16 %v90_v7  ;;  %v20_v36 = vld [vmem:[%s224_s0 + $0x18] sm:$0xff] }
   0x4   :  { %v59_v9 = vld [vmem:[%s226_s2] sm:$0xf]  ;;  %v33_v15 = vsub.s32 0, %v32_v4  ;;  %v37_v16 = vsub.s32 1, %v32_v4  ;;  %v41_v17 = vsub.s32 2, %v32_v4  ;;  %v45_v18 = vsub.s32 3, %v32_v4 }
   0x5   :  { %v96_v20 = vunpack.c.h.bf16 %v90_v7  ;;  %v25_v21 = vunpack.c.l.bf16 %v19_v14  ;;  %v26_v22 = vunpack.c.h.bf16 %v19_v14  ;;  %v97_v39 = vunpack.c.l.bf16 %v91_v27  ;;  %v92_v57 = vld [vmem:[%s227_s3 + $0x18] sm:$0xff] }
   0x6   :  { %v34_v23 = vrot.slane %v29_v8, %v33_v15  ;;  %v38_v24 = vrot.slane %v29_v8, %v37_v16  ;;  %v64_v25 = vrot.slane %v59_v9, %v33_v15  ;;  %v68_v26 = vrot.slane %v59_v9, %v37_v16 }
   0x7   :  { %v42_v28 = vrot.slane %v29_v8, %v41_v17  ;;  %v46_v29 = vrot.slane %v29_v8, %v45_v18  ;;  %v72_v30 = vrot.slane %v59_v9, %v41_v17  ;;  %v76_v31 = vrot.slane %v59_v9, %v45_v18 }
   0x8   :  { %v51_v32 = vmul.f32 %v34_v23, %v21_v2  ;;  %v52_v33 = vmul.f32 %v38_v24, %v22_v3  ;;  %v55_v34 = vmul.f32 %v34_v23, %v25_v21  ;;  %v56_v35 = vmul.f32 %v38_v24, %v26_v22 }
   0x9   :  { %v53_v37 = vmul.f32 %v42_v28, %v23_v12  ;;  %v54_v38 = vmul.f32 %v46_v29, %v24_v13  ;;  %v98_v40 = vunpack.c.h.bf16 %v91_v27  ;;  %v27_v47 = vunpack.c.l.bf16 %v20_v36 }
   0xa   :  { %v81_v41 = vadd.f32 %v64_v25, %v51_v32  ;;  %v82_v42 = vadd.f32 %v68_v26, %v52_v33  ;;  %v85_v43 = vadd.f32 %v64_v25, %v55_v34  ;;  %v86_v44 = vadd.f32 %v68_v26, %v56_v35 }
   0xb   :  { %v83_v45 = vadd.f32 %v72_v30, %v53_v37  ;;  %v84_v46 = vadd.f32 %v76_v31, %v54_v38  ;;  %v28_v48 = vunpack.c.h.bf16 %v20_v36  ;;  %v57_v55 = vmul.f32 %v42_v28, %v27_v47 }
   0xc   :  { %v101_v49 = vadd.f32 %v93_v10, %v81_v41  ;;  %v102_v50 = vadd.f32 %v94_v11, %v82_v42  ;;  %v105_v51 = vadd.f32 %v97_v39, %v85_v43  ;;  %v106_v52 = vadd.f32 %v98_v40, %v86_v44 }
   0xd   :  { %v103_v53 = vadd.f32 %v95_v19, %v83_v45  ;;  %v104_v54 = vadd.f32 %v96_v20, %v84_v46  ;;  %v58_v56 = vmul.f32 %v46_v29, %v28_v48  ;;  %v87_v0 = vadd.f32 %v72_v30, %v57_v55 }
   0xe   :  { %v109_v58 = vmax.f32 %v101_v49, 0.0  ;;  %v110_v59 = vmax.f32 %v102_v50, 0.0  ;;  %v113_v60 = vmax.f32 %v105_v51, 0.0  ;;  %v114_v61 = vmax.f32 %v106_v52, 0.0 }
   0xf   :  { %v111_v62 = vmax.f32 %v103_v53, 0.0  ;;  %v112_v63 = vmax.f32 %v104_v54, 0.0  ;;  %v88_v1 = vadd.f32 %v76_v31, %v58_v56  ;;  %v99_v4 = vunpack.c.l.bf16 %v92_v57 }
  0x10   :  { %v153_v2 = vpack.c.bf16 %v110_v59, %v109_v58  ;;  %v155_v3 = vpack.c.bf16 %v114_v61, %v113_v60  ;;  %v100_v5 = vunpack.c.h.bf16 %v92_v57 }
  0x11   :  { %v154_v6 = vpack.c.bf16 %v112_v63, %v111_v62  ;;  %v107_v7 = vadd.f32 %v99_v4, %v87_v0 }
  0x12   :  { %141 = vst [vmem:[%s228_s4] sm:$0xff] %v153_v2  ;;  %143 = vst [vmem:[%s228_s4 + $0x10] sm:$0xff] %v155_v3  ;;  %v108_v8 = vadd.f32 %v100_v5, %v88_v1 }
  0x13   :  { %142 = vst [vmem:[%s228_s4 + $0x8] sm:$0xff] %v154_v6  ;;  %v115_v9 = vmax.f32 %v107_v7, 0.0 }
  0x14   :  { %v116_v10 = vmax.f32 %v108_v8, 0.0 }
  0x16   :  { %v156_v11 = vpack.c.bf16 %v116_v10, %v115_v9 }
  0x18   :  { %144 = vst [vmem:[%s228_s4 + $0x18] sm:$0xff] %v156_v11 }

// kernel: _lambda_.68
= control target key start
LH: loop header
LB: loop body
LE: loop exit
PB: predicated region body
PF: predicated region fallthrough
CT: control target
= control target key end

     0   :  { %s1047_s12 = smov 0   ;;  %s1049_s13 = smov 0   ;;  %s1160_s0 = inlined_call_operand.vmem [shape: bf16[1,16,128], index: 0, kind: input, shape index: {}]   ;;  %s1161_s1 = inlined_call_operand.vmem [shape: bf16[1,128,512], index: 1, kind: input, shape index: {}]   ;;  %s1162_s2 = inlined_call_operand.vmem [shape: bf16[1,16,512], index: 2, kind: output, shape index: {0}]   ;;  %s1163_s3 = inlined_call_operand.vmem [shape: f32[1,1,8,512], index: 3, kind: output, shape index: {1}]  }
   0x1   :  { %s1051_s14 = smov 0   ;;  %s1053_s15 = smov 0  }
   0x2   :  { %s1055_s16 = smov 0  }
   0x3 LB: > { %s32_s17 = sadd.s32 1, %s1018_s15  ;;  %s874_s18 = sadd.s32 4294967295, %s1022_s16   ;;  %s1022_s16 = sphi %s1055_s16, %s14_s16   ;;  %s1018_s15 = sphi %s1053_s15, %s1168_s15   ;;  %s1014_s14 = sphi %s1051_s14, %s1167_s14   ;;  %s1010_s13 = sphi %s1049_s13, %s1166_s13   ;;  %s1006_s12 = sphi %s1047_s12, %s1165_s12  }
   0x4   : > { %p34_p0 = scmp.ge.s32.totalorder %s32_s17, 2  ;;  %p88_p1 = scmp.ne.s32.totalorder %s1010_s13, %s1006_s12 }
   0x5   : > { %p89_p2 = scmp.eq.s32.totalorder %s1022_s16, 0  ;;  %p122_p4 = scmp.eq.s32.totalorder %s874_s18, 1 }
   0x6   : > { %s1170_s17 = smov (%p34_p0, %s32_s17), 0  ;;  %s81_s20 = sadd.s32 1, %s1010_s13 }
   0x7   : > { %p90_p3 = por %p89_p2, %p88_p1  ;;  %s77_s19 = ssub.s32 %s1018_s15, %s1170_s17 }
   0x8   : > { %p79_p5 = scmp.eq.s32.totalorder %s77_s19, 0  ;;  %p1082_p6 = por %p122_p4, %p88_p1 }
   0x9   : > { %p878_p7 = scmp.ge.s32.totalorder %s1022_s16, 2 }
   0xa   : > { %s1087_s22 = scalar_select %p79_p5, %s1010_s13, %s81_s20  }
   0xb   : > { %190 = sbr.rel (%p878_p7) target bundleno = 30 (0x1e), region = 20 }
  0x12   : > { %193 = sbr.rel (!%p90_p3) target bundleno = 30 (0x1e), region = 24  ;;  %s195_s23 = sand.u32 (%p90_p3), 1, %s1010_s13  }
  0x13   : > { %s912_s24 = sshll.u32 (%p90_p3), %s1018_s15, 3  ;;  %s879_s25 = sshll.u32 (%p90_p3), %s195_s23, 7 }
  0x14   : > { %s1095_s28 = scalar_lea.vmem (%p90_p3), %s1161_s1, %s912_s24  ;;  %s197_s29 = scalar_lea.vmem (%p90_p3), [#allocation3], %s879_s25 }
  0x15   : > { %v263_v0 = vld [vmem:[%s1095_s28] sm:$0xff] (%p90_p3)  ;;  %v265_v1 = vld [vmem:[%s1095_s28 + $0x10] sm:$0xff] (%p90_p3) }
  0x16   : > { %v267_v2 = vld [vmem:[%s1095_s28 + $0x20] sm:$0xff] (%p90_p3)  ;;  %264 = vst [vmem:[%s197_s29] sm:$0xff] (%p90_p3), %v263_v0  ;;  %266 = vst [vmem:[%s197_s29 + $0x8] sm:$0xff] (%p90_p3), %v265_v1  ;;  %v269_v3 = vld [vmem:[%s1095_s28 + $0x30] sm:$0xff] (%p90_p3) }
  0x17   : > { %268 = vst [vmem:[%s197_s29 + $0x10] sm:$0xff] (%p90_p3), %v267_v2  ;;  %v271_v4 = vld [vmem:[%s1095_s28 + $0x40] sm:$0xff] (%p90_p3)  ;;  %v273_v5 = vld [vmem:[%s1095_s28 + $0x50] sm:$0xff] (%p90_p3)  ;;  %270 = vst [vmem:[%s197_s29 + $0x18] sm:$0xff] (%p90_p3), %v269_v3 }
  0x18   : > { %272 = vst [vmem:[%s197_s29 + $0x20] sm:$0xff] (%p90_p3), %v271_v4  ;;  %274 = vst [vmem:[%s197_s29 + $0x28] sm:$0xff] (%p90_p3), %v273_v5  ;;  %v275_v6 = vld [vmem:[%s1095_s28 + $0x60] sm:$0xff] (%p90_p3)  ;;  %v277_v7 = vld [vmem:[%s1095_s28 + $0x70] sm:$0xff] (%p90_p3) }
  0x19   : > { %v279_v8 = vld [vmem:[%s1095_s28 + $0x80] sm:$0xff]  ;;  %276 = vst [vmem:[%s197_s29 + $0x30] sm:$0xff] %v275_v6  ;;  %278 = vst [vmem:[%s197_s29 + $0x38] sm:$0xff] %v277_v7  ;;  %v281_v9 = vld [vmem:[%s1095_s28 + $0x90] sm:$0xff] }
  0x1a   : > { %280 = vst [vmem:[%s197_s29 + $0x40] sm:$0xff] %v279_v8  ;;  %v283_v10 = vld [vmem:[%s1095_s28 + $0xa0] sm:$0xff]  ;;  %v285_v11 = vld [vmem:[%s1095_s28 + $0xb0] sm:$0xff]  ;;  %282 = vst [vmem:[%s197_s29 + $0x48] sm:$0xff] %v281_v9 }
  0x1b   : > { %284 = vst [vmem:[%s197_s29 + $0x50] sm:$0xff] %v283_v10  ;;  %286 = vst [vmem:[%s197_s29 + $0x58] sm:$0xff] %v285_v11  ;;  %v287_v12 = vld [vmem:[%s1095_s28 + $0xc0] sm:$0xff]  ;;  %v289_v13 = vld [vmem:[%s1095_s28 + $0xd0] sm:$0xff] }
  0x1c   : > { %v291_v14 = vld [vmem:[%s1095_s28 + $0xe0] sm:$0xff]  ;;  %288 = vst [vmem:[%s197_s29 + $0x60] sm:$0xff] %v287_v12  ;;  %290 = vst [vmem:[%s197_s29 + $0x68] sm:$0xff] %v289_v13  ;;  %v293_v15 = vld [vmem:[%s1095_s28 + $0xf0] sm:$0xff] }
  0x1d   : > { %292 = vst [vmem:[%s197_s29 + $0x70] sm:$0xff] %v291_v14  ;;  %294 = vst [vmem:[%s197_s29 + $0x78] sm:$0xff] %v293_v15 }
  0x1e PF: > { %p882_p8 = scmp.ge.s32.totalorder %s1022_s16, 1  ;;  %p299_p9 = scmp.lt.s32.totalorder %s1022_s16, 3 }
  0x20   : > { %p300_p10 = pnand %p882_p8, %p299_p9 }
  0x21   : > { %s306_s30 = sand.u32 (!%p300_p10), 1, %s1006_s12   ;;  %v1024_v16 = vmov (!%p300_p10), 0   ;;  %v983_v33 = vld [vmem:[%s1160_s0] sm:$0xff] (!%p300_p10)   ;;  %s885_s8 = sshll.u32 (!%p300_p10), %s1014_s14, 1  ;;  %v1025_v34 = vmov (!%p300_p10), 0.0   ;;  %v595_v56 = vlaneseq (!%p300_p10) }
  0x22   : > { %303 = sbr.rel (%p300_p10) target bundleno = 307 (0x133), region = 62  ;;  %s883_s4 = sshll.u32 (!%p300_p10), %s306_s30, 7  ;;  %535 = vmatprep.mubr.bf16.mxu0 (!%p300_p10), %v1024_v16  ;;  %v1026_v54 = vmov (!%p300_p10), 1966171168  }
  0x23   : > { %s308_s5 = scalar_lea.vmem (!%p300_p10), [#allocation3], %s883_s4  ;;  %p375_p11 = scmp.lt.s32.totalorder (!%p300_p10), %s885_s8, 3  ;;  %v593_v55 = vunpack.c.l.s4 (!%p300_p10), %v1026_v54  ;;  %v596_v2 = vshrl.u32 (!%p300_p10), %v595_v56, 7  ;;  %vm609_vm0 = vcmp.lt.s32.totalorder (!%p300_p10), %v595_v56, 256 }
  0x24   : > { %v959_v17 = vld [vmem:[%s308_s5 + $0x4] ss:$8 sps:$4 sm:$0xff] (!%p300_p10)   ;;  %v961_v18 = vld [vmem:[%s308_s5] ss:$8 sps:$4 sm:$0xff] (!%p300_p10)   ;;  %v962_v19 = vld [vmem:[%s308_s5 + $0x14] ss:$8 sps:$4 sm:$0xff] (!%p300_p10)  }
  0x25   : > { %503 = vmatprep.subr.bf16.mxu0 (!%p300_p10), %v959_v17  ;;  %v964_v20 = vld [vmem:[%s308_s5 + $0x10] ss:$8 sps:$4 sm:$0xff] (!%p300_p10)   ;;  %v965_v21 = vld [vmem:[%s308_s5 + $0x24] ss:$8 sps:$4 sm:$0xff] (!%p300_p10)   ;;  %v967_v22 = vld [vmem:[%s308_s5 + $0x20] ss:$8 sps:$4 sm:$0xff] (!%p300_p10)   ;;  %v594_v1 = vunpack.c.0.s8 (!%p300_p10), %v593_v55 }
  0x26   : > { %504 = vmatpush1.bf16.msra.mxu0 (!%p300_p10), %v961_v18  ;;  %v968_v23 = vld [vmem:[%s308_s5 + $0x34] ss:$8 sps:$4 sm:$0xff] (!%p300_p10)   ;;  %v970_v24 = vld [vmem:[%s308_s5 + $0x30] ss:$8 sps:$4 sm:$0xff] (!%p300_p10)   ;;  %v971_v25 = vld [vmem:[%s308_s5 + $0x44] ss:$8 sps:$4 sm:$0xff] (!%p300_p10)  }
  0x27   : > { %505 = vmatprep.subr.bf16.mxu0 (!%p300_p10), %v962_v19  ;;  %v973_v26 = vld [vmem:[%s308_s5 + $0x40] ss:$8 sps:$4 sm:$0xff] (!%p300_p10)   ;;  %v974_v27 = vld [vmem:[%s308_s5 + $0x54] ss:$8 sps:$4 sm:$0xff] (!%p300_p10)   ;;  %v976_v28 = vld [vmem:[%s308_s5 + $0x50] ss:$8 sps:$4 sm:$0xff] (!%p300_p10)   ;;  %v597_v11 = vsub.s32 (!%p300_p10), %v594_v1, %v596_v2 }
  0x28   : > { %v977_v29 = vld [vmem:[%s308_s5 + $0x64] ss:$8 sps:$4 sm:$0xff] (!%p300_p10)   ;;  %v979_v30 = vld [vmem:[%s308_s5 + $0x60] ss:$8 sps:$4 sm:$0xff] (!%p300_p10)   ;;  %v980_v31 = vld [vmem:[%s308_s5 + $0x74] ss:$8 sps:$4 sm:$0xff] (!%p300_p10)  }
  0x29   : > { %v982_v32 = vld [vmem:[%s308_s5 + $0x70] ss:$8 sps:$4 sm:$0xff]   ;;  %s1172_s8 = smov (!%p375_p11, %s885_s8), 3  ;;  %s884_s19 = sshll.u32 %s306_s30, 4 }
  0x2a   : > { %506 = vmatpush1.bf16.msra.mxu0 %v964_v20  ;;  %s886_s9 = sshll.u32 %s1172_s8, 3  ;;  %s1131_s20 = scalar_lea.vmem [#allocation4], %s884_s19 }
  0x2b   : > { %507 = vmatprep.subr.bf16.mxu0 %v965_v21  ;;  %s1125_s18 = scalar_lea.vmem %s1163_s3, %s886_s9  ;;  %s915_s12 = sshll.u32 (%p1082_p6), %s1014_s14, 3 }
  0x2c   : > { %393 = vst [vmem:[%s1125_s18] sm:$0xff] %v1025_v34  ;;  %394 = vst [vmem:[%s1125_s18 + $0x8] sm:$0xff] %v1025_v34  ;;  %s679_s25 = scalar_lea.vmem (%p1082_p6), %s1162_s2, %s915_s12 }
  0x2e   : > { %508 = vmatpush1.bf16.msra.mxu0 %v967_v22 }
  0x2f   : > { %509 = vmatprep.subr.bf16.mxu0 %v968_v23 }
  0x32   : > { %510 = vmatpush1.bf16.msra.mxu0 %v970_v24 }
  0x33   : > { %511 = vmatprep.subr.bf16.mxu0 %v971_v25 }
  0x36   : > { %512 = vmatpush1.bf16.msra.mxu0 %v973_v26 }
  0x37   : > { %513 = vmatprep.subr.bf16.mxu0 %v974_v27 }
  0x3a   : > { %514 = vmatpush1.bf16.msra.mxu0 %v976_v28 }
  0x3b   : > { %515 = vmatprep.subr.bf16.mxu0 %v977_v29 }
  0x3e   : > { %516 = vmatpush1.bf16.msra.mxu0 %v979_v30 }
  0x3f   : > { %517 = vmatprep.subr.bf16.mxu0 %v980_v31 }
  0x42   : > { %518 = vmatpush1.bf16.msra.mxu0 %v982_v32 }
  0x45   : > { %536 = vmatmul.mubr.bf16.vlgmr.msra.gmra.mrb[0].mxu0 %v983_v33 }
 0x118   : > { %v537_v35 = vpop.f32.mrb[0].mxu0 }
 0x119   : > { %v539_v36 = vpop.f32.mrb[1].mxu0  ;;  %v613_v39 = vmul.f32 %v537_v35, %v537_v35 }
 0x11a   : > { %v913_v37 = vpack.c.bf16 %v539_v36, %v537_v35  ;;  %v541_v38 = vpop.f32.mrb[2].mxu0  ;;  %v614_v43 = vmul.f32 %v539_v36, %v539_v36 }
 0x11b   : > { %v575_v40 = vadd.f32 %v541_v38, %v537_v35  ;;  %v615_v41 = vmul.f32 %v541_v38, %v541_v38  ;;  %v543_v42 = vpop.f32.mrb[3].mxu0 }
 0x11c   : > { %v914_v44 = vpack.c.bf16 %v543_v42, %v541_v38  ;;  %573 = vst [vmem:[%s1131_s20] sm:$0xff] %v913_v37  ;;  %v582_v45 = vadd.f32 %v543_v42, %v539_v36  ;;  %v616_v46 = vmul.f32 %v543_v42, %v543_v42 }
 0x11d   : > { %v576_v47 = vrot.slane %v575_v40, 4  ;;  %v617_v48 = vadd.f32 %v615_v41, %v613_v39 }
 0x11e   : > { %574 = vst [vmem:[%s1131_s20 + $0x8] sm:$0xff] %v914_v44  ;;  %v583_v49 = vrot.slane %v582_v45, 4  ;;  %v624_v50 = vadd.f32 %v616_v46, %v614_v43 }
 0x11f   : > { %v577_v51 = vadd.f32 %v576_v47, %v575_v40  ;;  %v618_v52 = vrot.slane %v617_v48, 4 }
 0x120   : > { %v584_v53 = vadd.f32 %v583_v49, %v582_v45  ;;  %v625_v57 = vrot.slane %v624_v50, 4 }
 0x121   : > { %v578_v58 = vrot.slane %v577_v51, 2  ;;  %v619_v59 = vadd.f32 %v618_v52, %v617_v48 }
 0x122   : > { %v585_v60 = vrot.slane %v584_v53, 2  ;;  %v626_v61 = vadd.f32 %v625_v57, %v624_v50 }
 0x123   : > { %v579_v62 = vadd.f32 %v578_v58, %v577_v51  ;;  %v620_v63 = vrot.slane %v619_v59, 2  ;;  %v709_v21 = vld [vmem:[%s1131_s20] sm:$0xff] (%p1082_p6) }
 0x124   : > { %v586_v0 = vadd.f32 %v585_v60, %v584_v53  ;;  %v627_v3 = vrot.slane %v626_v61, 2  ;;  %710 = vst [vmem:[%s679_s25] sm:$0xff] (%p1082_p6), %v709_v21 }
 0x125   : > { %v580_v4 = vrot.slane %v579_v62, 1  ;;  %v621_v5 = vadd.f32 %v620_v63, %v619_v59  ;;  %v711_v22 = vld [vmem:[%s1131_s20 + $0x8] sm:$0xff] (%p1082_p6) }
 0x126   : > { %v587_v6 = vrot.slane %v586_v0, 1  ;;  %v628_v7 = vadd.f32 %v627_v3, %v626_v61  ;;  %712 = vst [vmem:[%s679_s25 + $0x10] sm:$0xff] (%p1082_p6), %v711_v22 }
 0x127   : > { %v581_v8 = vadd.f32 %v580_v4, %v579_v62  ;;  %v622_v9 = vrot.slane %v621_v5, 1 }
 0x128   : > { %v588_v10 = vadd.f32 %v587_v6, %v586_v0  ;;  %v629_v12 = vrot.slane %v628_v7, 1 }
 0x129   : > { %v623_v13 = vadd.f32 %v622_v9, %v621_v5 }
 0x12a   : > { %v591_v14 = vcombine.low %v581_v8, %v588_v10  ;;  %v630_v15 = vadd.f32 %v629_v12, %v628_v7 }
 0x12c   : > { %v598_v16 = vrot.slane %v591_v14, %v597_v11  ;;  %v633_v17 = vcombine.low %v623_v13, %v630_v15  ;;  %671 = sbr.rel (!%p1082_p6) target bundleno = 307 (0x133), region = 78 }
 0x12e   : > { %v605_v18 = vrot.slane %v598_v16, %v597_v11  ;;  %v640_v19 = vrot.slane %v633_v17, %v597_v11 }
 0x130   : > { %611 = vst.msk [vmem:[%s1125_s18] ss:$8 sm:$0x3] %vm609_vm0, %v605_v18  ;;  %v647_v20 = vrot.slane %v640_v19, %v597_v11 }
 0x132   : > { %906 = vst.msk [vmem:[%s1125_s18 + $0x1] ss:$8 sm:$0x3] %vm609_vm0, %v647_v20 }
 0x133 PF: > { %s14_s16 = sadd.s32 1, %s1022_s16   ;;  %s1165_s12 = smov %s1010_s13 }
 0x134   : > { %p11_p12 = scmp.ge.s32.totalorder %s14_s16, 4   ;;  %s1166_s13 = smov %s1087_s22 }
 0x135   : > { %s1167_s14 = smov %s1018_s15  ;;  %s1168_s15 = smov %s1170_s17 }
 0x136   :  { %13 = sbr.rel (!%p11_p12) target bundleno = 3 (0x3), region = 163 }

// kernel: _lambda_.72
= control target key start
LH: loop header
LB: loop body
LE: loop exit
PB: predicated region body
PF: predicated region fallthrough
CT: control target
= control target key end

     0   :  { %v101_v0 = vlaneseq  ;;  %v157_v4 = vmov 1966171168   ;;  %s208_s0 = inlined_call_operand.vmem [shape: bf16[2,16,512], index: 0, kind: input, shape index: {}]   ;;  %s209_s1 = inlined_call_operand.vmem [shape: f32[2,1,512], index: 1, kind: output, shape index: {}]  }
   0x1   :  { %v8_v1 = vld [vmem:[%s208_s0] sm:$0xff]  ;;  %v9_v2 = vld [vmem:[%s208_s0 + $0x8] sm:$0xff]  ;;  %v10_v3 = vld [vmem:[%s208_s0 + $0x10] sm:$0xff]  ;;  %v99_v5 = vunpack.c.l.s4 %v157_v4 }
   0x2   :  { %v11_v6 = vld [vmem:[%s208_s0 + $0x18] sm:$0xff]  ;;  %v16_v7 = vunpack.c.l.bf16 %v8_v1  ;;  %v17_v8 = vunpack.c.h.bf16 %v8_v1  ;;  %v18_v9 = vunpack.c.l.bf16 %v9_v2  ;;  %v19_v10 = vunpack.c.h.bf16 %v9_v2  ;;  %v12_v11 = vld [vmem:[%s208_s0 + $0x20] sm:$0xff]  ;;  %v13_v16 = vld [vmem:[%s208_s0 + $0x28] sm:$0xff] }
   0x3   :  { %v20_v12 = vunpack.c.l.bf16 %v10_v3  ;;  %v21_v13 = vunpack.c.h.bf16 %v10_v3  ;;  %v22_v14 = vunpack.c.l.bf16 %v11_v6  ;;  %v23_v15 = vunpack.c.h.bf16 %v11_v6  ;;  %v14_v24 = vld [vmem:[%s208_s0 + $0x30] sm:$0xff]  ;;  %v15_v25 = vld [vmem:[%s208_s0 + $0x38] sm:$0xff] }
   0x4   :  { %v100_v17 = vunpack.c.0.s8 %v99_v5  ;;  %v102_v18 = vshrl.u32 %v101_v0, 7  ;;  %v24_v19 = vunpack.c.l.bf16 %v12_v11  ;;  %v25_v27 = vunpack.c.h.bf16 %v12_v11 }
   0x5   :  { %v32_v20 = vadd.f32 %v20_v12, %v16_v7  ;;  %v39_v21 = vadd.f32 %v21_v13, %v17_v8  ;;  %v46_v22 = vadd.f32 %v22_v14, %v18_v9  ;;  %v53_v23 = vadd.f32 %v23_v15, %v19_v10 }
   0x6   :  { %v193_v26 = vsub.s32 %v100_v17, %v102_v18  ;;  %v26_v28 = vunpack.c.l.bf16 %v13_v16  ;;  %v27_v29 = vunpack.c.h.bf16 %v13_v16  ;;  %v28_v34 = vunpack.c.l.bf16 %v14_v24 }
   0x7   :  { %v33_v30 = vrot.slane %v32_v20, 4  ;;  %v40_v31 = vrot.slane %v39_v21, 4  ;;  %v47_v32 = vrot.slane %v46_v22, 4  ;;  %v54_v33 = vrot.slane %v53_v23, 4 }
   0x8   :  { %v29_v35 = vunpack.c.h.bf16 %v14_v24  ;;  %v30_v36 = vunpack.c.l.bf16 %v15_v25  ;;  %v31_v37 = vunpack.c.h.bf16 %v15_v25  ;;  %v60_v42 = vadd.f32 %v28_v34, %v24_v19 }
   0x9   :  { %v34_v38 = vadd.f32 %v33_v30, %v32_v20  ;;  %v41_v39 = vadd.f32 %v40_v31, %v39_v21  ;;  %v48_v40 = vadd.f32 %v47_v32, %v46_v22  ;;  %v55_v41 = vadd.f32 %v54_v33, %v53_v23 }
   0xa   :  { %v67_v43 = vadd.f32 %v29_v35, %v25_v27  ;;  %v74_v44 = vadd.f32 %v30_v36, %v26_v28  ;;  %v81_v45 = vadd.f32 %v31_v37, %v27_v29  ;;  %v61_v50 = vrot.slane %v60_v42, 4 }
   0xb   :  { %v35_v46 = vrot.slane %v34_v38, 2  ;;  %v42_v47 = vrot.slane %v41_v39, 2  ;;  %v49_v48 = vrot.slane %v48_v40, 2  ;;  %v56_v49 = vrot.slane %v55_v41, 2 }
   0xc   :  { %v68_v51 = vrot.slane %v67_v43, 4  ;;  %v75_v52 = vrot.slane %v74_v44, 4  ;;  %v82_v53 = vrot.slane %v81_v45, 4  ;;  %v62_v58 = vadd.f32 %v61_v50, %v60_v42 }
   0xd   :  { %v36_v54 = vadd.f32 %v35_v46, %v34_v38  ;;  %v43_v55 = vadd.f32 %v42_v47, %v41_v39  ;;  %v50_v56 = vadd.f32 %v49_v48, %v48_v40  ;;  %v57_v57 = vadd.f32 %v56_v49, %v55_v41 }
   0xe   :  { %v69_v59 = vadd.f32 %v68_v51, %v67_v43  ;;  %v76_v60 = vadd.f32 %v75_v52, %v74_v44  ;;  %v83_v61 = vadd.f32 %v82_v53, %v81_v45  ;;  %v63_v3 = vrot.slane %v62_v58, 2 }
   0xf   :  { %v37_v62 = vrot.slane %v36_v54, 1  ;;  %v44_v63 = vrot.slane %v43_v55, 1  ;;  %v51_v1 = vrot.slane %v50_v56, 1  ;;  %v58_v2 = vrot.slane %v57_v57, 1 }
  0x10   :  { %v70_v4 = vrot.slane %v69_v59, 2  ;;  %v77_v5 = vrot.slane %v76_v60, 2  ;;  %v84_v6 = vrot.slane %v83_v61, 2  ;;  %v64_v11 = vadd.f32 %v63_v3, %v62_v58 }
  0x11   :  { %v38_v7 = vadd.f32 %v37_v62, %v36_v54  ;;  %v45_v8 = vadd.f32 %v44_v63, %v43_v55  ;;  %v52_v9 = vadd.f32 %v51_v1, %v50_v56  ;;  %v59_v10 = vadd.f32 %v58_v2, %v57_v57 }
  0x12   :  { %v71_v12 = vadd.f32 %v70_v4, %v69_v59  ;;  %v78_v13 = vadd.f32 %v77_v5, %v76_v60  ;;  %v85_v14 = vadd.f32 %v84_v6, %v83_v61  ;;  %v65_v17 = vrot.slane %v64_v11, 1 }
  0x13   :  { %v96_v15 = vcombine.low %v38_v7, %v45_v8  ;;  %v97_v16 = vcombine.low %v52_v9, %v59_v10  ;;  %vm148_vm0 = vcmp.lt.s32.totalorder %v101_v0, 512 }
  0x14   :  { %v72_v18 = vrot.slane %v71_v12, 1  ;;  %v79_v19 = vrot.slane %v78_v13, 1  ;;  %v86_v20 = vrot.slane %v85_v14, 1  ;;  %v66_v23 = vadd.f32 %v65_v17, %v64_v11 }
  0x15   :  { %v104_v21 = vrot.slane %v96_v15, %v193_v26  ;;  %v111_v22 = vrot.slane %v97_v16, %v193_v26 }
  0x16   :  { %v73_v24 = vadd.f32 %v72_v18, %v71_v12  ;;  %v80_v25 = vadd.f32 %v79_v19, %v78_v13  ;;  %v87_v27 = vadd.f32 %v86_v20, %v85_v14 }
  0x17   :  { %v112_v28 = vcombine.low %v104_v21, %v111_v22 }
  0x18   :  { %v120_v29 = vcombine.low %v66_v23, %v73_v24  ;;  %v121_v30 = vcombine.low %v80_v25, %v87_v27 }
  0x19   :  { %v119_v31 = vrot.slane %v112_v28, %v193_v26 }
  0x1a   :  { %v128_v32 = vrot.slane %v120_v29, %v193_v26  ;;  %v135_v33 = vrot.slane %v121_v30, %v193_v26 }
  0x1b   :  { %150 = vst.msk [vmem:[%s209_s1] sm:$0xf] %vm148_vm0, %v119_v31 }
  0x1c   :  { %v136_v34 = vcombine.low %v128_v32, %v135_v33 }
  0x1e   :  { %v143_v35 = vrot.slane %v136_v34, %v193_v26 }
  0x20   :  { %151 = vst.msk [vmem:[%s209_s1 + $0x4] sm:$0xf] %vm148_vm0, %v143_v35 }

// kernel: _lambda_.73
= control target key start
LH: loop header
LB: loop body
LE: loop exit
PB: predicated region body
PF: predicated region fallthrough
CT: control target
= control target key end

     0   :  { %s644_s1 = inlined_call_operand.vmem [shape: bf16[1,512,128], index: 1, kind: input, shape index: {}]   ;;  %s645_s0 = inlined_call_operand.vmem [shape: bf16[1,16,512], index: 0, kind: input, shape index: {}]   ;;  %s646_s2 = inlined_call_operand.vmem [shape: f32[1,16,128], index: 2, kind: output, shape index: {}]  }
   0x1   :  { %v477_v0 = vld [vmem:[%s644_s1 + $0x40] sm:$0xff]   ;;  %v481_v4 = vld [vmem:[%s644_s1 + $0x48] sm:$0xff]   ;;  %v485_v8 = vld [vmem:[%s644_s1 + $0x50] sm:$0xff]  }
   0x2   :  { %v478_v1 = vld [vmem:[%s644_s1 + $0xc0] sm:$0xff]   ;;  %433 = vmatprep.subr.bf16.mxu0 %v477_v0  ;;  %v482_v5 = vld [vmem:[%s644_s1 + $0xc8] sm:$0xff]   ;;  %v486_v9 = vld [vmem:[%s644_s1 + $0xd0] sm:$0xff]  }
   0x3   :  { %v479_v2 = vld [vmem:[%s644_s1] sm:$0xff]   ;;  %455 = vmatprep.subr.bf16.mxu1 %v478_v1  ;;  %v483_v6 = vld [vmem:[%s644_s1 + $0x8] sm:$0xff]   ;;  %v487_v10 = vld [vmem:[%s644_s1 + $0x10] sm:$0xff]  }
   0x4   :  { %v480_v3 = vld [vmem:[%s644_s1 + $0x80] sm:$0xff]   ;;  %434 = vmatpush3.bf16.msra.mxu0 %v479_v2  ;;  %v484_v7 = vld [vmem:[%s644_s1 + $0x88] sm:$0xff]   ;;  %v488_v11 = vld [vmem:[%s644_s1 + $0x90] sm:$0xff]  }
   0x5   :  { %456 = vmatpush3.bf16.msra.mxu1 %v480_v3  ;;  %435 = vmatprep.subr.bf16.mxu0 %v481_v4  ;;  %v489_v12 = vld [vmem:[%s644_s1 + $0x58] sm:$0xff]   ;;  %v493_v16 = vld [vmem:[%s644_s1 + $0x60] sm:$0xff]   ;;  %v497_v20 = vld [vmem:[%s644_s1 + $0x68] sm:$0xff]  }
   0x6   :  { %457 = vmatprep.subr.bf16.mxu1 %v482_v5  ;;  %v490_v13 = vld [vmem:[%s644_s1 + $0xd8] sm:$0xff]   ;;  %v494_v17 = vld [vmem:[%s644_s1 + $0xe0] sm:$0xff]   ;;  %v498_v21 = vld [vmem:[%s644_s1 + $0xe8] sm:$0xff]  }
   0x7   :  { %v491_v14 = vld [vmem:[%s644_s1 + $0x18] sm:$0xff]   ;;  %v495_v18 = vld [vmem:[%s644_s1 + $0x20] sm:$0xff]   ;;  %v499_v22 = vld [vmem:[%s644_s1 + $0x28] sm:$0xff]  }
   0x8   :  { %436 = vmatpush3.bf16.msra.mxu0 %v483_v6  ;;  %v492_v15 = vld [vmem:[%s644_s1 + $0x98] sm:$0xff]   ;;  %v496_v19 = vld [vmem:[%s644_s1 + $0xa0] sm:$0xff]   ;;  %v500_v23 = vld [vmem:[%s644_s1 + $0xa8] sm:$0xff]  }
   0x9   :  { %458 = vmatpush3.bf16.msra.mxu1 %v484_v7  ;;  %437 = vmatprep.subr.bf16.mxu0 %v485_v8  ;;  %v501_v24 = vld [vmem:[%s644_s1 + $0x70] sm:$0xff]   ;;  %v505_v28 = vld [vmem:[%s644_s1 + $0x78] sm:$0xff]  }
   0xa   :  { %459 = vmatprep.subr.bf16.mxu1 %v486_v9  ;;  %v502_v25 = vld [vmem:[%s644_s1 + $0xf0] sm:$0xff]   ;;  %v506_v29 = vld [vmem:[%s644_s1 + $0xf8] sm:$0xff]  }
   0xb   :  { %v503_v26 = vld [vmem:[%s644_s1 + $0x30] sm:$0xff]   ;;  %v507_v30 = vld [vmem:[%s644_s1 + $0x38] sm:$0xff]  }
   0xc   :  { %438 = vmatpush3.bf16.msra.mxu0 %v487_v10  ;;  %v504_v27 = vld [vmem:[%s644_s1 + $0xb0] sm:$0xff]   ;;  %v508_v31 = vld [vmem:[%s644_s1 + $0xb8] sm:$0xff]  }
   0xd   :  { %460 = vmatpush3.bf16.msra.mxu1 %v488_v11  ;;  %439 = vmatprep.subr.bf16.mxu0 %v489_v12  ;;  %v509_v32 = vld [vmem:[%s645_s0] ss:$16 sps:$4 sm:$0xff]   ;;  %v511_v33 = vld [vmem:[%s645_s0 + $0x4] ss:$16 sps:$4 sm:$0xff]   ;;  %v512_v34 = vld [vmem:[%s645_s0 + $0x8] ss:$16 sps:$4 sm:$0xff]  }
   0xe   :  { %461 = vmatprep.subr.bf16.mxu1 %v490_v13  ;;  %v514_v35 = vld [vmem:[%s645_s0 + $0xc] ss:$16 sps:$4 sm:$0xff]   ;;  %332 = vmatprep.mubr.bf16.mxu0 %v511_v33 }
   0xf   :  { %373 = vmatprep.mubr.bf16.mxu1 %v514_v35 }
  0x10   :  { %440 = vmatpush3.bf16.msra.mxu0 %v491_v14 }
  0x11   :  { %462 = vmatpush3.bf16.msra.mxu1 %v492_v15  ;;  %441 = vmatprep.subr.bf16.mxu0 %v493_v16 }
  0x12   :  { %463 = vmatprep.subr.bf16.mxu1 %v494_v17 }
  0x14   :  { %442 = vmatpush3.bf16.msra.mxu0 %v495_v18 }
  0x15   :  { %464 = vmatpush3.bf16.msra.mxu1 %v496_v19  ;;  %443 = vmatprep.subr.bf16.mxu0 %v497_v20 }
  0x16   :  { %465 = vmatprep.subr.bf16.mxu1 %v498_v21 }
  0x18   :  { %444 = vmatpush3.bf16.msra.mxu0 %v499_v22 }
  0x19   :  { %466 = vmatpush3.bf16.msra.mxu1 %v500_v23  ;;  %445 = vmatprep.subr.bf16.mxu0 %v501_v24 }
  0x1a   :  { %467 = vmatprep.subr.bf16.mxu1 %v502_v25 }
  0x1c   :  { %446 = vmatpush3.bf16.msra.mxu0 %v503_v26 }
  0x1d   :  { %468 = vmatpush3.bf16.msra.mxu1 %v504_v27  ;;  %447 = vmatprep.subr.bf16.mxu0 %v505_v28 }
  0x1e   :  { %469 = vmatprep.subr.bf16.mxu1 %v506_v29 }
  0x20   :  { %448 = vmatpush3.bf16.msra.mxu0 %v507_v30 }
  0x21   :  { %470 = vmatpush3.bf16.msra.mxu1 %v508_v31 }
  0x23   :  { %333 = vmatmul.mubr.bf16.vlgmr.msra.gmra.mrb[0].mxu0 %v509_v32 }
  0x24   :  { %374 = vmatmul.mubr.bf16.vlgmr.msra.gmra.mrb[0].mxu1 %v512_v34 }
  0xf6   :  { %v449_v36 = vpop.f32.mrb[0].mxu0 }
  0xf7   :  { %v471_v37 = vpop.f32.mrb[0].mxu1  ;;  %v450_v38 = vpop.f32.mrb[1].mxu0 }
  0xf8   :  { %v451_v39 = vadd.f32 %v450_v38, %v449_v36  ;;  %v472_v40 = vpop.f32.mrb[1].mxu1  ;;  %v452_v41 = vpop.f32.mrb[2].mxu0 }
  0xf9   :  { %v473_v42 = vadd.f32 %v472_v40, %v471_v37  ;;  %v474_v43 = vpop.f32.mrb[2].mxu1  ;;  %v453_v44 = vpop.f32.mrb[3].mxu0 }
  0xfa   :  { %v454_v45 = vadd.f32 %v453_v44, %v452_v41  ;;  %v475_v46 = vpop.f32.mrb[3].mxu1 }
  0xfb   :  { %v376_v47 = vadd.f32 %v473_v42, %v451_v39  ;;  %v476_v48 = vadd.f32 %v475_v46, %v474_v43 }
  0xfd   :  { %391 = vst [vmem:[%s646_s2] sm:$0xff] %v376_v47  ;;  %v379_v49 = vadd.f32 %v476_v48, %v454_v45 }
  0xff   :  { %392 = vst [vmem:[%s646_s2 + $0x8] sm:$0xff] %v379_v49 }

</bundles_post_ra>
